<compile_context>
chip_gen: v6e
topology: v6e:2x2x1
jax: 0.10.0
libtpu: 0.0.40
codegen_flags: <defaults>
</compile_context>

<pallas_src>
import math

import jax
import jax.numpy as jnp
from jax import lax
from jax.experimental import pallas as pl
from jax.experimental.pallas import tpu as pltpu

_LANE = 128
_SUBLANE = 8


def _round_up(n, m):
    return ((n + m - 1) // m) * m


def _autoencoder_kernel(x_ref, wih_e_ref, whh_e_ref, be_ref,
                        wih_d_ref, whh_d_ref, bd_ref,
                        y_ref,
                        xg_e, h_prev, h_e, c_e, h_d, c_d):
    """Fused, interleaved LSTM encoder+decoder forward.

    Rows are time-major: row = t*Bp + b.  Decoder is skewed by one step so
    encoder step t and decoder step t-1 form two independent dependence chains
    inside one loop iteration.
    """
    TB = x_ref.shape[0]
    Bp = h_e.shape[0]
    T = TB // Bp                 # static Python int (ref shapes are static)
    Hp = h_e.shape[1]            # padded encoder hidden size (multiple of 128)
    Dp = h_d.shape[1]            # padded decoder hidden (=input) size

    def _lstm_step(gates, c_ref, h_ref, hsz):
        # gates: (Bp, 4*hsz); per-gate segments are lane-aligned (hsz % 128 == 0)
        i = jax.nn.sigmoid(gates[:, 0 * hsz:1 * hsz])
        f = jax.nn.sigmoid(gates[:, 1 * hsz:2 * hsz])
        g = jnp.tanh(gates[:, 2 * hsz:3 * hsz])
        o = jax.nn.sigmoid(gates[:, 3 * hsz:4 * hsz])
        c_new = f * c_ref[...] + i * g
        h_new = o * jnp.tanh(c_new)
        c_ref[...] = c_new
        h_ref[...] = h_new
        return h_new

    # Hoisted encoder input projection over ALL T steps: one big bf16 MXU
    # matmul with f32 accumulation (the only throughput-relevant matmul).
    xg_e[...] = (
        jnp.dot(x_ref[...], wih_e_ref[...], preferred_element_type=jnp.float32)
        + be_ref[...]
    )

    h_e[...] = jnp.zeros_like(h_e)
    c_e[...] = jnp.zeros_like(c_e)
    h_d[...] = jnp.zeros_like(h_d)
    c_d[...] = jnp.zeros_like(c_d)

    def _enc_step(row):
        gates = xg_e[pl.ds(row, Bp), :] + jnp.dot(
            h_e[...], whh_e_ref[...], preferred_element_type=jnp.float32)
        return _lstm_step(gates, c_e, h_e, Hp)

    def _dec_input_gates():
        # Decoder input projection of the PREVIOUS encoder output (f32; this
        # sits on the latency-bound serial path, bf16 would not help here).
        return (jnp.dot(h_prev[...], wih_d_ref[...],
                        preferred_element_type=jnp.float32) + bd_ref[...])

    def _dec_step(row, xg_d_t):
        gates = xg_d_t + jnp.dot(
            h_d[...], whh_d_ref[...], preferred_element_type=jnp.float32)
        h_new = _lstm_step(gates, c_d, h_d, Dp)
        y_ref[pl.ds(row, Bp), :] = h_new.astype(y_ref.dtype)

    # ---- prologue: encoder step 0 (no decoder work yet) ----
    h_prev[...] = _enc_step(0)

    # ---- steady state: encoder step t || decoder step t-1 ----
    def _body(t, carry):
        xg_d_t = _dec_input_gates()                      # uses h_enc_{t-1}
        h_enc_t = _enc_step(pl.multiple_of(t * Bp, Bp))  # independent enc chain
        _dec_step(pl.multiple_of((t - 1) * Bp, Bp), xg_d_t)  # independent dec chain
        h_prev[...] = h_enc_t
        return carry

    unroll = True if T <= 16 else 8   # bounded unroll to avoid vreg-spill cliff
    lax.fori_loop(1, T, _body, 0, unroll=unroll)

    # ---- epilogue: decoder step T-1 ----
    _dec_step((T - 1) * Bp, _dec_input_gates())


def _pack_lstm_params(w_ih, w_hh, b_ih, b_hh, in_pad, out_pad):
    """PyTorch LSTM params -> transposed, gate-aligned, zero-padded operands.

    w_ih: (4H, Din), w_hh: (4H, H), b_*: (4H,)  -- PyTorch gate order (i, f, g, o).
    Gate k of the packed weights occupies columns [k*out_pad, k*out_pad + H);
    all padded rows/columns are zero, so padded lanes stay exactly zero through
    the recurrence (gate pre-activations are 0 and the cell state starts at 0).
    """
    four_h = w_ih.shape[0]
    h = four_h // 4

    def pack_w(w, row_pad):
        rows = w.shape[1]
        wt = jnp.asarray(w, jnp.float32).T.reshape(rows, 4, h)
        wt = jnp.pad(wt, ((0, row_pad - rows), (0, 0), (0, out_pad - h)))
        return wt.reshape(row_pad, 4 * out_pad)

    w_ih_p = pack_w(w_ih, in_pad)
    w_hh_p = pack_w(w_hh, out_pad)
    b = (jnp.asarray(b_ih, jnp.float32) + jnp.asarray(b_hh, jnp.float32)).reshape(4, h)
    b_p = jnp.pad(b, ((0, 0), (0, out_pad - h))).reshape(1, 4 * out_pad)
    return w_ih_p, w_hh_p, b_p


@jax.jit
def autoencoder_forward(x, enc_params, dec_params):
    """x: (B, T, input_size) -> (B, T, input_size). Matches PyTorch Autoencoder.forward."""
    x = jnp.asarray(x, jnp.float32)
    B, T, Din = x.shape
    H = enc_params[1].shape[1]       # encoder weight_hh: (4H, H)
    Dout = dec_params[1].shape[1]    # decoder weight_hh: (4*Dout, Dout)

    Hp = _round_up(H, _LANE)
    Dp = _round_up(Dout, _LANE)
    Bp = _round_up(B, _SUBLANE)
    Dinp = _round_up(Din, _LANE)     # lane-dense, K-aligned encoder input dim

    wih_e, whh_e, b_e = _pack_lstm_params(*enc_params, in_pad=Dinp, out_pad=Hp)
    wih_d, whh_d, b_d = _pack_lstm_params(*dec_params, in_pad=Hp, out_pad=Dp)

    # bf16 MXU operands for the big hoisted projection (f32 accumulation in-kernel).
    wih_e = wih_e.astype(jnp.bfloat16)

    # Time-major rows, batch padded to full sublanes, features padded to full
    # lanes: row = t*Bp + b.  Zero padding is numerically inert.
    x_tm = jnp.transpose(x, (1, 0, 2))                              # (T, B, Din)
    x_tm = jnp.pad(x_tm, ((0, 0), (0, Bp - B), (0, Dinp - Din)))    # (T, Bp, Dinp)
    x2d = x_tm.reshape(T * Bp, Dinp).astype(jnp.bfloat16)

    # Explicit scoped-VMEM budget from the actual footprint (with 2x margin),
    # so the 16/32 MiB defaults never cause a spurious OOM as shapes grow.
    needed = (
        T * Bp * Dinp * 2                 # x2d (bf16)
        + Dinp * 4 * Hp * 2               # wih_e (bf16)
        + Hp * 4 * Hp * 4 + 4 * Hp * 4    # whh_e, b_e
        + Hp * 4 * Dp * 4                 # wih_d
        + Dp * 4 * Dp * 4 + 4 * Dp * 4    # whh_d, b_d
        + T * Bp * Dp * 4                 # output
        + T * Bp * 4 * Hp * 4             # xg_e scratch
        + 3 * Bp * Hp * 4                 # h_prev, h_e, c_e
        + 2 * Bp * Dp * 4                 # h_d, c_d
    )
    vmem_limit = int(min(100 * 2**20, max(32 * 2**20, 2 * needed)))

    vmem = pl.BlockSpec(memory_space=pltpu.MemorySpace.VMEM)

    y2d = pl.pallas_call(
        _autoencoder_kernel,
        out_shape=jax.ShapeDtypeStruct((T * Bp, Dp), jnp.float32),
        in_specs=[vmem] * 7,
        out_specs=vmem,
        scratch_shapes=[
            pltpu.VMEM((T * Bp, 4 * Hp), jnp.float32),     # hoisted encoder x-gates
            pltpu.VMEM((Bp, Hp), jnp.float32),             # h_prev (skew carry)
            pltpu.VMEM((Bp, Hp), jnp.float32),             # h_enc
            pltpu.VMEM((Bp, Hp), jnp.float32),             # c_enc
            pltpu.VMEM((Bp, Dp), jnp.float32),             # h_dec
            pltpu.VMEM((Bp, Dp), jnp.float32),             # c_dec
        ],
        compiler_params=pltpu.CompilerParams(vmem_limit_bytes=vmem_limit),
    )(x2d, wih_e, whh_e, b_e, wih_d, whh_d, b_d)

    y = y2d.reshape(T, Bp, Dp)[:, :B, :Dout]               # drop sublane/lane padding
    return jnp.transpose(y, (1, 0, 2))                     # back to (B, T, Dout)


# ----------------------- pure-JAX reference (for verification) -----------------------
def _lstm_ref(x, w_ih, w_hh, b_ih, b_hh):
    B = x.shape[0]
    Hh = w_hh.shape[1]
    hi = jax.lax.Precision.HIGHEST

    def step(carry, x_t):
        h, c = carry
        gates = (jnp.dot(x_t, w_ih.T, precision=hi)
                 + jnp.dot(h, w_hh.T, precision=hi) + b_ih + b_hh)
        i, f, g, o = jnp.split(gates, 4, axis=-1)
        c = jax.nn.sigmoid(f) * c + jax.nn.sigmoid(i) * jnp.tanh(g)
        h = jax.nn.sigmoid(o) * jnp.tanh(c)
        return (h, c), h

    init = (jnp.zeros((B, Hh), jnp.float32), jnp.zeros((B, Hh), jnp.float32))
    _, ys = lax.scan(step, init, jnp.swapaxes(x, 0, 1))
    return jnp.swapaxes(ys, 0, 1)


def _autoencoder_ref(x, enc_params, dec_params):
    h = _lstm_ref(x, *enc_params)
    return _lstm_ref(h, *dec_params)


def init_lstm_params(key, input_size, hidden_size):
    """Deterministic PyTorch-style init: U(-1/sqrt(H), 1/sqrt(H))."""
    k = 1.0 / math.sqrt(hidden_size)
    ks = jax.random.split(key, 4)
    w_ih = jax.random.uniform(ks[0], (4 * hidden_size, input_size), jnp.float32, -k, k)
    w_hh = jax.random.uniform(ks[1], (4 * hidden_size, hidden_size), jnp.float32, -k, k)
    b_ih = jax.random.uniform(ks[2], (4 * hidden_size,), jnp.float32, -k, k)
    b_hh = jax.random.uniform(ks[3], (4 * hidden_size,), jnp.float32, -k, k)
    return w_ih, w_hh, b_ih, b_hh


if __name__ == "__main__":
    batch = 2
    seq_len = 8
    input_size = 8
    hidden_size = 16

    root = jax.random.PRNGKey(0)
    k_x, k_enc, k_dec = jax.random.split(root, 3)

    sequences = jax.random.normal(k_x, (batch, seq_len, input_size), jnp.float32)
    enc_params = init_lstm_params(k_enc, input_size, hidden_size)   # encoder LSTM
    dec_params = init_lstm_params(k_dec, hidden_size, input_size)   # decoder LSTM

    out = autoencoder_forward(sequences, enc_params, dec_params)
    out = jax.block_until_ready(out)

    assert out.shape == (batch, seq_len, input_size)
    assert out.dtype == jnp.float32

    # Verify against a pure-JAX (f32, HIGHEST precision) reference of the
    # PyTorch module.  Tolerance accounts for bf16 MXU operands on the hoisted
    # input projection (recurrent matmuls and gate math remain f32).
    ref = jax.block_until_ready(_autoencoder_ref(sequences, enc_params, dec_params))
    max_err = float(jnp.max(jnp.abs(out - ref)))
    assert max_err < 1e-2, f"mismatch vs reference: max abs err {max_err}"

    print("KERNEL_OK")
</pallas_src>

<mosaic_0001>
module attributes {stable_mosaic.version = 11 : i64} {
  func.func @_autoencoder_kernel(%arg0: memref<64x128xbf16, #tpu.memory_space<vmem>>, %arg1: memref<128x512xbf16, #tpu.memory_space<vmem>>, %arg2: memref<128x512xf32, #tpu.memory_space<vmem>>, %arg3: memref<1x512xf32, #tpu.memory_space<vmem>>, %arg4: memref<128x512xf32, #tpu.memory_space<vmem>>, %arg5: memref<128x512xf32, #tpu.memory_space<vmem>>, %arg6: memref<1x512xf32, #tpu.memory_space<vmem>>, %arg7: memref<64x128xf32, #tpu.memory_space<vmem>>, %arg8: memref<64x512xf32, #tpu.memory_space<vmem>>, %arg9: memref<8x128xf32, #tpu.memory_space<vmem>>, %arg10: memref<8x128xf32, #tpu.memory_space<vmem>>, %arg11: memref<8x128xf32, #tpu.memory_space<vmem>>, %arg12: memref<8x128xf32, #tpu.memory_space<vmem>>, %arg13: memref<8x128xf32, #tpu.memory_space<vmem>>) attributes {dimension_semantics = [], scalar_prefetch = 0 : i64, scratch_operands = 6 : i64, tpu.core_type = #tpu.core_type<tc>} {
    %c0 = arith.constant 0 : index
    %c0_0 = arith.constant 0 : index
    %0 = vector.load %arg0[%c0, %c0_0] : memref<64x128xbf16, #tpu.memory_space<vmem>>, vector<64x128xbf16>
    %c0_1 = arith.constant 0 : index
    %c0_2 = arith.constant 0 : index
    %1 = vector.load %arg1[%c0_1, %c0_2] : memref<128x512xbf16, #tpu.memory_space<vmem>>, vector<128x512xbf16>
    %cst = arith.constant dense<0.000000e+00> : vector<64x512xf32>
    %2 = tpu.matmul %0, %1, %cst {dimension_numbers = #tpu.dot_dimension_numbers<[1], [0], [0], [1], [0, 0, 1, 1], [], []>} : vector<64x128xbf16>, vector<128x512xbf16>, vector<64x512xf32> -> vector<64x512xf32>
    %c0_3 = arith.constant 0 : index
    %c0_4 = arith.constant 0 : index
    %3 = vector.load %arg3[%c0_3, %c0_4] : memref<1x512xf32, #tpu.memory_space<vmem>>, vector<1x512xf32>
    %4 = vector.broadcast %3 : vector<1x512xf32> to vector<64x512xf32>
    %5 = arith.addf %2, %4 : vector<64x512xf32>
    %c0_5 = arith.constant 0 : index
    %c0_6 = arith.constant 0 : index
    %6 = vector.load %arg8[%c0_5, %c0_6] : memref<64x512xf32, #tpu.memory_space<vmem>>, vector<64x512xf32>
    tpu.vector_store %arg8[%c0_5, %c0_6], %5 {strides = array<i32>} : memref<64x512xf32, #tpu.memory_space<vmem>>, vector<64x512xf32>,
    %cst_7 = arith.constant 0.000000e+00 : f32
    %7 = vector.broadcast %cst_7 : f32 to vector<8x128xf32>
    %c0_8 = arith.constant 0 : index
    %c0_9 = arith.constant 0 : index
    %8 = vector.load %arg10[%c0_8, %c0_9] : memref<8x128xf32, #tpu.memory_space<vmem>>, vector<8x128xf32>
    tpu.vector_store %arg10[%c0_8, %c0_9], %7 {strides = array<i32>} : memref<8x128xf32, #tpu.memory_space<vmem>>, vector<8x128xf32>,
    %cst_10 = arith.constant 0.000000e+00 : f32
    %9 = vector.broadcast %cst_10 : f32 to vector<8x128xf32>
    %c0_11 = arith.constant 0 : index
    %c0_12 = arith.constant 0 : index
    %10 = vector.load %arg11[%c0_11, %c0_12] : memref<8x128xf32, #tpu.memory_space<vmem>>, vector<8x128xf32>
    tpu.vector_store %arg11[%c0_11, %c0_12], %9 {strides = array<i32>} : memref<8x128xf32, #tpu.memory_space<vmem>>, vector<8x128xf32>,
    %cst_13 = arith.constant 0.000000e+00 : f32
    %11 = vector.broadcast %cst_13 : f32 to vector<8x128xf32>
    %c0_14 = arith.constant 0 : index
    %c0_15 = arith.constant 0 : index
    %12 = vector.load %arg12[%c0_14, %c0_15] : memref<8x128xf32, #tpu.memory_space<vmem>>, vector<8x128xf32>
    tpu.vector_store %arg12[%c0_14, %c0_15], %11 {strides = array<i32>} : memref<8x128xf32, #tpu.memory_space<vmem>>, vector<8x128xf32>,
    %cst_16 = arith.constant 0.000000e+00 : f32
    %13 = vector.broadcast %cst_16 : f32 to vector<8x128xf32>
    %c0_17 = arith.constant 0 : index
    %c0_18 = arith.constant 0 : index
    %14 = vector.load %arg13[%c0_17, %c0_18] : memref<8x128xf32, #tpu.memory_space<vmem>>, vector<8x128xf32>
    tpu.vector_store %arg13[%c0_17, %c0_18], %13 {strides = array<i32>} : memref<8x128xf32, #tpu.memory_space<vmem>>, vector<8x128xf32>,
    %c0_19 = arith.constant 0 : index
    %c0_20 = arith.constant 0 : index
    %15 = vector.load %arg8[%c0_19, %c0_20] : memref<64x512xf32, #tpu.memory_space<vmem>>, vector<8x512xf32>
    %c0_21 = arith.constant 0 : index
    %c0_22 = arith.constant 0 : index
    %16 = vector.load %arg10[%c0_21, %c0_22] : memref<8x128xf32, #tpu.memory_space<vmem>>, vector<8x128xf32>
    %c0_23 = arith.constant 0 : index
    %c0_24 = arith.constant 0 : index
    %17 = vector.load %arg2[%c0_23, %c0_24] : memref<128x512xf32, #tpu.memory_space<vmem>>, vector<128x512xf32>
    %cst_25 = arith.constant dense<0.000000e+00> : vector<8x512xf32>
    %18 = tpu.matmul %16, %17, %cst_25 {dimension_numbers = #tpu.dot_dimension_numbers<[1], [0], [0], [1], [0, 0, 1, 1], [], []>} : vector<8x128xf32>, vector<128x512xf32>, vector<8x512xf32> -> vector<8x512xf32>
    %19 = arith.addf %15, %18 : vector<8x512xf32>
    %20 = vector.extract_strided_slice %19 {offsets = [0, 0], sizes = [8, 128], strides = [1, 1]} : vector<8x512xf32> to vector<8x128xf32>
    %21 = arith.negf %20 : vector<8x128xf32>
    %22 = math.exp %21 : vector<8x128xf32>
    %cst_26 = arith.constant 1.000000e+00 : f32
    %23 = vector.broadcast %cst_26 : f32 to vector<8x128xf32>
    %24 = arith.addf %23, %22 : vector<8x128xf32>
    %25 = arith.divf %23, %24 : vector<8x128xf32>
    %26 = vector.extract_strided_slice %19 {offsets = [0, 128], sizes = [8, 128], strides = [1, 1]} : vector<8x512xf32> to vector<8x128xf32>
    %27 = arith.negf %26 : vector<8x128xf32>
    %28 = math.exp %27 : vector<8x128xf32>
    %cst_27 = arith.constant 1.000000e+00 : f32
    %29 = vector.broadcast %cst_27 : f32 to vector<8x128xf32>
    %30 = arith.addf %29, %28 : vector<8x128xf32>
    %31 = arith.divf %29, %30 : vector<8x128xf32>
    %32 = vector.extract_strided_slice %19 {offsets = [0, 256], sizes = [8, 128], strides = [1, 1]} : vector<8x512xf32> to vector<8x128xf32>
    %33 = math.tanh %32 : vector<8x128xf32>
    %34 = vector.extract_strided_slice %19 {offsets = [0, 384], sizes = [8, 128], strides = [1, 1]} : vector<8x512xf32> to vector<8x128xf32>
    %35 = arith.negf %34 : vector<8x128xf32>
    %36 = math.exp %35 : vector<8x128xf32>
    %cst_28 = arith.constant 1.000000e+00 : f32
    %37 = vector.broadcast %cst_28 : f32 to vector<8x128xf32>
    %38 = arith.addf %37, %36 : vector<8x128xf32>
    %39 = arith.divf %37, %38 : vector<8x128xf32>
    %c0_29 = arith.constant 0 : index
    %c0_30 = arith.constant 0 : index
    %40 = vector.load %arg11[%c0_29, %c0_30] : memref<8x128xf32, #tpu.memory_space<vmem>>, vector<8x128xf32>
    %41 = arith.mulf %31, %40 : vector<8x128xf32>
    %42 = arith.mulf %25, %33 : vector<8x128xf32>
    %43 = arith.addf %41, %42 : vector<8x128xf32>
    %44 = math.tanh %43 : vector<8x128xf32>
    %45 = arith.mulf %39, %44 : vector<8x128xf32>
    %c0_31 = arith.constant 0 : index
    %c0_32 = arith.constant 0 : index
    %46 = vector.load %arg11[%c0_31, %c0_32] : memref<8x128xf32, #tpu.memory_space<vmem>>, vector<8x128xf32>
    tpu.vector_store %arg11[%c0_31, %c0_32], %43 {strides = array<i32>} : memref<8x128xf32, #tpu.memory_space<vmem>>, vector<8x128xf32>,
    %c0_33 = arith.constant 0 : index
    %c0_34 = arith.constant 0 : index
    %47 = vector.load %arg10[%c0_33, %c0_34] : memref<8x128xf32, #tpu.memory_space<vmem>>, vector<8x128xf32>
    tpu.vector_store %arg10[%c0_33, %c0_34], %45 {strides = array<i32>} : memref<8x128xf32, #tpu.memory_space<vmem>>, vector<8x128xf32>,
    %c0_35 = arith.constant 0 : index
    %c0_36 = arith.constant 0 : index
    %48 = vector.load %arg9[%c0_35, %c0_36] : memref<8x128xf32, #tpu.memory_space<vmem>>, vector<8x128xf32>
    tpu.vector_store %arg9[%c0_35, %c0_36], %45 {strides = array<i32>} : memref<8x128xf32, #tpu.memory_space<vmem>>, vector<8x128xf32>,
    %c1_i32 = arith.constant 1 : i32
    %c0_37 = arith.constant 0 : index
    %c0_38 = arith.constant 0 : index
    %49 = vector.load %arg9[%c0_37, %c0_38] : memref<8x128xf32, #tpu.memory_space<vmem>>, vector<8x128xf32>
    %c0_39 = arith.constant 0 : index
    %c0_40 = arith.constant 0 : index
    %50 = vector.load %arg4[%c0_39, %c0_40] : memref<128x512xf32, #tpu.memory_space<vmem>>, vector<128x512xf32>
    %cst_41 = arith.constant dense<0.000000e+00> : vector<8x512xf32>
    %51 = tpu.matmul %49, %50, %cst_41 {dimension_numbers = #tpu.dot_dimension_numbers<[1], [0], [0], [1], [0, 0, 1, 1], [], []>} : vector<8x128xf32>, vector<128x512xf32>, vector<8x512xf32> -> vector<8x512xf32>
    %c0_42 = arith.constant 0 : index
    %c0_43 = arith.constant 0 : index
    %52 = vector.load %arg6[%c0_42, %c0_43] : memref<1x512xf32, #tpu.memory_space<vmem>>, vector<1x512xf32>
    %53 = vector.broadcast %52 : vector<1x512xf32> to vector<8x512xf32>
    %54 = arith.addf %51, %53 : vector<8x512xf32>
    %c8_i32 = arith.constant 8 : i32
    %55 = arith.muli %c1_i32, %c8_i32 : i32
    %56 = tpu.assume_multiple %55, 8 : i32
    %57 = arith.index_cast %56 : i32 to index
    %c0_44 = arith.constant 0 : index
    %58 = vector.load %arg8[%57, %c0_44] : memref<64x512xf32, #tpu.memory_space<vmem>>, vector<8x512xf32>
    %c0_45 = arith.constant 0 : index
    %c0_46 = arith.constant 0 : index
    %59 = vector.load %arg10[%c0_45, %c0_46] : memref<8x128xf32, #tpu.memory_space<vmem>>, vector<8x128xf32>
    %c0_47 = arith.constant 0 : index
    %c0_48 = arith.constant 0 : index
    %60 = vector.load %arg2[%c0_47, %c0_48] : memref<128x512xf32, #tpu.memory_space<vmem>>, vector<128x512xf32>
    %cst_49 = arith.constant dense<0.000000e+00> : vector<8x512xf32>
    %61 = tpu.matmul %59, %60, %cst_49 {dimension_numbers = #tpu.dot_dimension_numbers<[1], [0], [0], [1], [0, 0, 1, 1], [], []>} : vector<8x128xf32>, vector<128x512xf32>, vector<8x512xf32> -> vector<8x512xf32>
    %62 = arith.addf %58, %61 : vector<8x512xf32>
    %63 = vector.extract_strided_slice %62 {offsets = [0, 0], sizes = [8, 128], strides = [1, 1]} : vector<8x512xf32> to vector<8x128xf32>
    %64 = arith.negf %63 : vector<8x128xf32>
    %65 = math.exp %64 : vector<8x128xf32>
    %cst_50 = arith.constant 1.000000e+00 : f32
    %66 = vector.broadcast %cst_50 : f32 to vector<8x128xf32>
    %67 = arith.addf %66, %65 : vector<8x128xf32>
    %68 = arith.divf %66, %67 : vector<8x128xf32>
    %69 = vector.extract_strided_slice %62 {offsets = [0, 128], sizes = [8, 128], strides = [1, 1]} : vector<8x512xf32> to vector<8x128xf32>
    %70 = arith.negf %69 : vector<8x128xf32>
    %71 = math.exp %70 : vector<8x128xf32>
    %cst_51 = arith.constant 1.000000e+00 : f32
    %72 = vector.broadcast %cst_51 : f32 to vector<8x128xf32>
    %73 = arith.addf %72, %71 : vector<8x128xf32>
    %74 = arith.divf %72, %73 : vector<8x128xf32>
    %75 = vector.extract_strided_slice %62 {offsets = [0, 256], sizes = [8, 128], strides = [1, 1]} : vector<8x512xf32> to vector<8x128xf32>
    %76 = math.tanh %75 : vector<8x128xf32>
    %77 = vector.extract_strided_slice %62 {offsets = [0, 384], sizes = [8, 128], strides = [1, 1]} : vector<8x512xf32> to vector<8x128xf32>
    %78 = arith.negf %77 : vector<8x128xf32>
    %79 = math.exp %78 : vector<8x128xf32>
    %cst_52 = arith.constant 1.000000e+00 : f32
    %80 = vector.broadcast %cst_52 : f32 to vector<8x128xf32>
    %81 = arith.addf %80, %79 : vector<8x128xf32>
    %82 = arith.divf %80, %81 : vector<8x128xf32>
    %c0_53 = arith.constant 0 : index
    %c0_54 = arith.constant 0 : index
    %83 = vector.load %arg11[%c0_53, %c0_54] : memref<8x128xf32, #tpu.memory_space<vmem>>, vector<8x128xf32>
    %84 = arith.mulf %74, %83 : vector<8x128xf32>
    %85 = arith.mulf %68, %76 : vector<8x128xf32>
    %86 = arith.addf %84, %85 : vector<8x128xf32>
    %87 = math.tanh %86 : vector<8x128xf32>
    %88 = arith.mulf %82, %87 : vector<8x128xf32>
    %c0_55 = arith.constant 0 : index
    %c0_56 = arith.constant 0 : index
    %89 = vector.load %arg11[%c0_55, %c0_56] : memref<8x128xf32, #tpu.memory_space<vmem>>, vector<8x128xf32>
    tpu.vector_store %arg11[%c0_55, %c0_56], %86 {strides = array<i32>} : memref<8x128xf32, #tpu.memory_space<vmem>>, vector<8x128xf32>,
    %c0_57 = arith.constant 0 : index
    %c0_58 = arith.constant 0 : index
    %90 = vector.load %arg10[%c0_57, %c0_58] : memref<8x128xf32, #tpu.memory_space<vmem>>, vector<8x128xf32>
    tpu.vector_store %arg10[%c0_57, %c0_58], %88 {strides = array<i32>} : memref<8x128xf32, #tpu.memory_space<vmem>>, vector<8x128xf32>,
    %c1_i32_59 = arith.constant 1 : i32
    %91 = arith.subi %c1_i32, %c1_i32_59 : i32
    %c8_i32_60 = arith.constant 8 : i32
    %92 = arith.muli %91, %c8_i32_60 : i32
    %93 = tpu.assume_multiple %92, 8 : i32
    %c0_61 = arith.constant 0 : index
    %c0_62 = arith.constant 0 : index
    %94 = vector.load %arg12[%c0_61, %c0_62] : memref<8x128xf32, #tpu.memory_space<vmem>>, vector<8x128xf32>
    %c0_63 = arith.constant 0 : index
    %c0_64 = arith.constant 0 : index
    %95 = vector.load %arg5[%c0_63, %c0_64] : memref<128x512xf32, #tpu.memory_space<vmem>>, vector<128x512xf32>
    %cst_65 = arith.constant dense<0.000000e+00> : vector<8x512xf32>
    %96 = tpu.matmul %94, %95, %cst_65 {dimension_numbers = #tpu.dot_dimension_numbers<[1], [0], [0], [1], [0, 0, 1, 1], [], []>} : vector<8x128xf32>, vector<128x512xf32>, vector<8x512xf32> -> vector<8x512xf32>
    %97 = arith.addf %54, %96 : vector<8x512xf32>
    %98 = vector.extract_strided_slice %97 {offsets = [0, 0], sizes = [8, 128], strides = [1, 1]} : vector<8x512xf32> to vector<8x128xf32>
    %99 = arith.negf %98 : vector<8x128xf32>
    %100 = math.exp %99 : vector<8x128xf32>
    %cst_66 = arith.constant 1.000000e+00 : f32
    %101 = vector.broadcast %cst_66 : f32 to vector<8x128xf32>
    %102 = arith.addf %101, %100 : vector<8x128xf32>
    %103 = arith.divf %101, %102 : vector<8x128xf32>
    %104 = vector.extract_strided_slice %97 {offsets = [0, 128], sizes = [8, 128], strides = [1, 1]} : vector<8x512xf32> to vector<8x128xf32>
    %105 = arith.negf %104 : vector<8x128xf32>
    %106 = math.exp %105 : vector<8x128xf32>
    %cst_67 = arith.constant 1.000000e+00 : f32
    %107 = vector.broadcast %cst_67 : f32 to vector<8x128xf32>
    %108 = arith.addf %107, %106 : vector<8x128xf32>
    %109 = arith.divf %107, %108 : vector<8x128xf32>
    %110 = vector.extract_strided_slice %97 {offsets = [0, 256], sizes = [8, 128], strides = [1, 1]} : vector<8x512xf32> to vector<8x128xf32>
    %111 = math.tanh %110 : vector<8x128xf32>
    %112 = vector.extract_strided_slice %97 {offsets = [0, 384], sizes = [8, 128], strides = [1, 1]} : vector<8x512xf32> to vector<8x128xf32>
    %113 = arith.negf %112 : vector<8x128xf32>
    %114 = math.exp %113 : vector<8x128xf32>
    %cst_68 = arith.constant 1.000000e+00 : f32
    %115 = vector.broadcast %cst_68 : f32 to vector<8x128xf32>
    %116 = arith.addf %115, %114 : vector<8x128xf32>
    %117 = arith.divf %115, %116 : vector<8x128xf32>
    %c0_69 = arith.constant 0 : index
    %c0_70 = arith.constant 0 : index
    %118 = vector.load %arg13[%c0_69, %c0_70] : memref<8x128xf32, #tpu.memory_space<vmem>>, vector<8x128xf32>
    %119 = arith.mulf %109, %118 : vector<8x128xf32>
    %120 = arith.mulf %103, %111 : vector<8x128xf32>
    %121 = arith.addf %119, %120 : vector<8x128xf32>
    %122 = math.tanh %121 : vector<8x128xf32>
    %123 = arith.mulf %117, %122 : vector<8x128xf32>
    %c0_71 = arith.constant 0 : index
    %c0_72 = arith.constant 0 : index
    %124 = vector.load %arg13[%c0_71, %c0_72] : memref<8x128xf32, #tpu.memory_space<vmem>>, vector<8x128xf32>
    tpu.vector_store %arg13[%c0_71, %c0_72], %121 {strides = array<i32>} : memref<8x128xf32, #tpu.memory_space<vmem>>, vector<8x128xf32>,
    %c0_73 = arith.constant 0 : index
    %c0_74 = arith.constant 0 : index
    %125 = vector.load %arg12[%c0_73, %c0_74] : memref<8x128xf32, #tpu.memory_space<vmem>>, vector<8x128xf32>
    tpu.vector_store %arg12[%c0_73, %c0_74], %123 {strides = array<i32>} : memref<8x128xf32, #tpu.memory_space<vmem>>, vector<8x128xf32>,
    %126 = arith.index_cast %93 : i32 to index
    %c0_75 = arith.constant 0 : index
    %127 = vector.load %arg7[%126, %c0_75] : memref<64x128xf32, #tpu.memory_space<vmem>>, vector<8x128xf32>
    tpu.vector_store %arg7[%126, %c0_75], %123 {strides = array<i32>} : memref<64x128xf32, #tpu.memory_space<vmem>>, vector<8x128xf32>,
    %c0_76 = arith.constant 0 : index
    %c0_77 = arith.constant 0 : index
    %128 = vector.load %arg9[%c0_76, %c0_77] : memref<8x128xf32, #tpu.memory_space<vmem>>, vector<8x128xf32>
    tpu.vector_store %arg9[%c0_76, %c0_77], %88 {strides = array<i32>} : memref<8x128xf32, #tpu.memory_space<vmem>>, vector<8x128xf32>,
    %c2_i32 = arith.constant 2 : i32
    %c0_78 = arith.constant 0 : index
    %c0_79 = arith.constant 0 : index
    %129 = vector.load %arg9[%c0_78, %c0_79] : memref<8x128xf32, #tpu.memory_space<vmem>>, vector<8x128xf32>
    %c0_80 = arith.constant 0 : index
    %c0_81 = arith.constant 0 : index
    %130 = vector.load %arg4[%c0_80, %c0_81] : memref<128x512xf32, #tpu.memory_space<vmem>>, vector<128x512xf32>
    %cst_82 = arith.constant dense<0.000000e+00> : vector<8x512xf32>
    %131 = tpu.matmul %129, %130, %cst_82 {dimension_numbers = #tpu.dot_dimension_numbers<[1], [0], [0], [1], [0, 0, 1, 1], [], []>} : vector<8x128xf32>, vector<128x512xf32>, vector<8x512xf32> -> vector<8x512xf32>
    %c0_83 = arith.constant 0 : index
    %c0_84 = arith.constant 0 : index
    %132 = vector.load %arg6[%c0_83, %c0_84] : memref<1x512xf32, #tpu.memory_space<vmem>>, vector<1x512xf32>
    %133 = vector.broadcast %132 : vector<1x512xf32> to vector<8x512xf32>
    %134 = arith.addf %131, %133 : vector<8x512xf32>
    %c8_i32_85 = arith.constant 8 : i32
    %135 = arith.muli %c2_i32, %c8_i32_85 : i32
    %136 = tpu.assume_multiple %135, 8 : i32
    %137 = arith.index_cast %136 : i32 to index
    %c0_86 = arith.constant 0 : index
    %138 = vector.load %arg8[%137, %c0_86] : memref<64x512xf32, #tpu.memory_space<vmem>>, vector<8x512xf32>
    %c0_87 = arith.constant 0 : index
    %c0_88 = arith.constant 0 : index
    %139 = vector.load %arg10[%c0_87, %c0_88] : memref<8x128xf32, #tpu.memory_space<vmem>>, vector<8x128xf32>
    %c0_89 = arith.constant 0 : index
    %c0_90 = arith.constant 0 : index
    %140 = vector.load %arg2[%c0_89, %c0_90] : memref<128x512xf32, #tpu.memory_space<vmem>>, vector<128x512xf32>
    %cst_91 = arith.constant dense<0.000000e+00> : vector<8x512xf32>
    %141 = tpu.matmul %139, %140, %cst_91 {dimension_numbers = #tpu.dot_dimension_numbers<[1], [0], [0], [1], [0, 0, 1, 1], [], []>} : vector<8x128xf32>, vector<128x512xf32>, vector<8x512xf32> -> vector<8x512xf32>
    %142 = arith.addf %138, %141 : vector<8x512xf32>
    %143 = vector.extract_strided_slice %142 {offsets = [0, 0], sizes = [8, 128], strides = [1, 1]} : vector<8x512xf32> to vector<8x128xf32>
    %144 = arith.negf %143 : vector<8x128xf32>
    %145 = math.exp %144 : vector<8x128xf32>
    %cst_92 = arith.constant 1.000000e+00 : f32
    %146 = vector.broadcast %cst_92 : f32 to vector<8x128xf32>
    %147 = arith.addf %146, %145 : vector<8x128xf32>
    %148 = arith.divf %146, %147 : vector<8x128xf32>
    %149 = vector.extract_strided_slice %142 {offsets = [0, 128], sizes = [8, 128], strides = [1, 1]} : vector<8x512xf32> to vector<8x128xf32>
    %150 = arith.negf %149 : vector<8x128xf32>
    %151 = math.exp %150 : vector<8x128xf32>
    %cst_93 = arith.constant 1.000000e+00 : f32
    %152 = vector.broadcast %cst_93 : f32 to vector<8x128xf32>
    %153 = arith.addf %152, %151 : vector<8x128xf32>
    %154 = arith.divf %152, %153 : vector<8x128xf32>
    %155 = vector.extract_strided_slice %142 {offsets = [0, 256], sizes = [8, 128], strides = [1, 1]} : vector<8x512xf32> to vector<8x128xf32>
    %156 = math.tanh %155 : vector<8x128xf32>
    %157 = vector.extract_strided_slice %142 {offsets = [0, 384], sizes = [8, 128], strides = [1, 1]} : vector<8x512xf32> to vector<8x128xf32>
    %158 = arith.negf %157 : vector<8x128xf32>
    %159 = math.exp %158 : vector<8x128xf32>
    %cst_94 = arith.constant 1.000000e+00 : f32
    %160 = vector.broadcast %cst_94 : f32 to vector<8x128xf32>
    %161 = arith.addf %160, %159 : vector<8x128xf32>
    %162 = arith.divf %160, %161 : vector<8x128xf32>
    %c0_95 = arith.constant 0 : index
    %c0_96 = arith.constant 0 : index
    %163 = vector.load %arg11[%c0_95, %c0_96] : memref<8x128xf32, #tpu.memory_space<vmem>>, vector<8x128xf32>
    %164 = arith.mulf %154, %163 : vector<8x128xf32>
    %165 = arith.mulf %148, %156 : vector<8x128xf32>
    %166 = arith.addf %164, %165 : vector<8x128xf32>
    %167 = math.tanh %166 : vector<8x128xf32>
    %168 = arith.mulf %162, %167 : vector<8x128xf32>
    %c0_97 = arith.constant 0 : index
    %c0_98 = arith.constant 0 : index
    %169 = vector.load %arg11[%c0_97, %c0_98] : memref<8x128xf32, #tpu.memory_space<vmem>>, vector<8x128xf32>
    tpu.vector_store %arg11[%c0_97, %c0_98], %166 {strides = array<i32>} : memref<8x128xf32, #tpu.memory_space<vmem>>, vector<8x128xf32>,
    %c0_99 = arith.constant 0 : index
    %c0_100 = arith.constant 0 : index
    %170 = vector.load %arg10[%c0_99, %c0_100] : memref<8x128xf32, #tpu.memory_space<vmem>>, vector<8x128xf32>
    tpu.vector_store %arg10[%c0_99, %c0_100], %168 {strides = array<i32>} : memref<8x128xf32, #tpu.memory_space<vmem>>, vector<8x128xf32>,
    %c1_i32_101 = arith.constant 1 : i32
    %171 = arith.subi %c2_i32, %c1_i32_101 : i32
    %c8_i32_102 = arith.constant 8 : i32
    %172 = arith.muli %171, %c8_i32_102 : i32
    %173 = tpu.assume_multiple %172, 8 : i32
    %c0_103 = arith.constant 0 : index
    %c0_104 = arith.constant 0 : index
    %174 = vector.load %arg12[%c0_103, %c0_104] : memref<8x128xf32, #tpu.memory_space<vmem>>, vector<8x128xf32>
    %c0_105 = arith.constant 0 : index
    %c0_106 = arith.constant 0 : index
    %175 = vector.load %arg5[%c0_105, %c0_106] : memref<128x512xf32, #tpu.memory_space<vmem>>, vector<128x512xf32>
    %cst_107 = arith.constant dense<0.000000e+00> : vector<8x512xf32>
    %176 = tpu.matmul %174, %175, %cst_107 {dimension_numbers = #tpu.dot_dimension_numbers<[1], [0], [0], [1], [0, 0, 1, 1], [], []>} : vector<8x128xf32>, vector<128x512xf32>, vector<8x512xf32> -> vector<8x512xf32>
    %177 = arith.addf %134, %176 : vector<8x512xf32>
    %178 = vector.extract_strided_slice %177 {offsets = [0, 0], sizes = [8, 128], strides = [1, 1]} : vector<8x512xf32> to vector<8x128xf32>
    %179 = arith.negf %178 : vector<8x128xf32>
    %180 = math.exp %179 : vector<8x128xf32>
    %cst_108 = arith.constant 1.000000e+00 : f32
    %181 = vector.broadcast %cst_108 : f32 to vector<8x128xf32>
    %182 = arith.addf %181, %180 : vector<8x128xf32>
    %183 = arith.divf %181, %182 : vector<8x128xf32>
    %184 = vector.extract_strided_slice %177 {offsets = [0, 128], sizes = [8, 128], strides = [1, 1]} : vector<8x512xf32> to vector<8x128xf32>
    %185 = arith.negf %184 : vector<8x128xf32>
    %186 = math.exp %185 : vector<8x128xf32>
    %cst_109 = arith.constant 1.000000e+00 : f32
    %187 = vector.broadcast %cst_109 : f32 to vector<8x128xf32>
    %188 = arith.addf %187, %186 : vector<8x128xf32>
    %189 = arith.divf %187, %188 : vector<8x128xf32>
    %190 = vector.extract_strided_slice %177 {offsets = [0, 256], sizes = [8, 128], strides = [1, 1]} : vector<8x512xf32> to vector<8x128xf32>
    %191 = math.tanh %190 : vector<8x128xf32>
    %192 = vector.extract_strided_slice %177 {offsets = [0, 384], sizes = [8, 128], strides = [1, 1]} : vector<8x512xf32> to vector<8x128xf32>
    %193 = arith.negf %192 : vector<8x128xf32>
    %194 = math.exp %193 : vector<8x128xf32>
    %cst_110 = arith.constant 1.000000e+00 : f32
    %195 = vector.broadcast %cst_110 : f32 to vector<8x128xf32>
    %196 = arith.addf %195, %194 : vector<8x128xf32>
    %197 = arith.divf %195, %196 : vector<8x128xf32>
    %c0_111 = arith.constant 0 : index
    %c0_112 = arith.constant 0 : index
    %198 = vector.load %arg13[%c0_111, %c0_112] : memref<8x128xf32, #tpu.memory_space<vmem>>, vector<8x128xf32>
    %199 = arith.mulf %189, %198 : vector<8x128xf32>
    %200 = arith.mulf %183, %191 : vector<8x128xf32>
    %201 = arith.addf %199, %200 : vector<8x128xf32>
    %202 = math.tanh %201 : vector<8x128xf32>
    %203 = arith.mulf %197, %202 : vector<8x128xf32>
    %c0_113 = arith.constant 0 : index
    %c0_114 = arith.constant 0 : index
    %204 = vector.load %arg13[%c0_113, %c0_114] : memref<8x128xf32, #tpu.memory_space<vmem>>, vector<8x128xf32>
    tpu.vector_store %arg13[%c0_113, %c0_114], %201 {strides = array<i32>} : memref<8x128xf32, #tpu.memory_space<vmem>>, vector<8x128xf32>,
    %c0_115 = arith.constant 0 : index
    %c0_116 = arith.constant 0 : index
    %205 = vector.load %arg12[%c0_115, %c0_116] : memref<8x128xf32, #tpu.memory_space<vmem>>, vector<8x128xf32>
    tpu.vector_store %arg12[%c0_115, %c0_116], %203 {strides = array<i32>} : memref<8x128xf32, #tpu.memory_space<vmem>>, vector<8x128xf32>,
    %206 = arith.index_cast %173 : i32 to index
    %c0_117 = arith.constant 0 : index
    %207 = vector.load %arg7[%206, %c0_117] : memref<64x128xf32, #tpu.memory_space<vmem>>, vector<8x128xf32>
    tpu.vector_store %arg7[%206, %c0_117], %203 {strides = array<i32>} : memref<64x128xf32, #tpu.memory_space<vmem>>, vector<8x128xf32>,
    %c0_118 = arith.constant 0 : index
    %c0_119 = arith.constant 0 : index
    %208 = vector.load %arg9[%c0_118, %c0_119] : memref<8x128xf32, #tpu.memory_space<vmem>>, vector<8x128xf32>
    tpu.vector_store %arg9[%c0_118, %c0_119], %168 {strides = array<i32>} : memref<8x128xf32, #tpu.memory_space<vmem>>, vector<8x128xf32>,
    %c3_i32 = arith.constant 3 : i32
    %c0_120 = arith.constant 0 : index
    %c0_121 = arith.constant 0 : index
    %209 = vector.load %arg9[%c0_120, %c0_121] : memref<8x128xf32, #tpu.memory_space<vmem>>, vector<8x128xf32>
    %c0_122 = arith.constant 0 : index
    %c0_123 = arith.constant 0 : index
    %210 = vector.load %arg4[%c0_122, %c0_123] : memref<128x512xf32, #tpu.memory_space<vmem>>, vector<128x512xf32>
    %cst_124 = arith.constant dense<0.000000e+00> : vector<8x512xf32>
    %211 = tpu.matmul %209, %210, %cst_124 {dimension_numbers = #tpu.dot_dimension_numbers<[1], [0], [0], [1], [0, 0, 1, 1], [], []>} : vector<8x128xf32>, vector<128x512xf32>, vector<8x512xf32> -> vector<8x512xf32>
    %c0_125 = arith.constant 0 : index
    %c0_126 = arith.constant 0 : index
    %212 = vector.load %arg6[%c0_125, %c0_126] : memref<1x512xf32, #tpu.memory_space<vmem>>, vector<1x512xf32>
    %213 = vector.broadcast %212 : vector<1x512xf32> to vector<8x512xf32>
    %214 = arith.addf %211, %213 : vector<8x512xf32>
    %c8_i32_127 = arith.constant 8 : i32
    %215 = arith.muli %c3_i32, %c8_i32_127 : i32
    %216 = tpu.assume_multiple %215, 8 : i32
    %217 = arith.index_cast %216 : i32 to index
    %c0_128 = arith.constant 0 : index
    %218 = vector.load %arg8[%217, %c0_128] : memref<64x512xf32, #tpu.memory_space<vmem>>, vector<8x512xf32>
    %c0_129 = arith.constant 0 : index
    %c0_130 = arith.constant 0 : index
    %219 = vector.load %arg10[%c0_129, %c0_130] : memref<8x128xf32, #tpu.memory_space<vmem>>, vector<8x128xf32>
    %c0_131 = arith.constant 0 : index
    %c0_132 = arith.constant 0 : index
    %220 = vector.load %arg2[%c0_131, %c0_132] : memref<128x512xf32, #tpu.memory_space<vmem>>, vector<128x512xf32>
    %cst_133 = arith.constant dense<0.000000e+00> : vector<8x512xf32>
    %221 = tpu.matmul %219, %220, %cst_133 {dimension_numbers = #tpu.dot_dimension_numbers<[1], [0], [0], [1], [0, 0, 1, 1], [], []>} : vector<8x128xf32>, vector<128x512xf32>, vector<8x512xf32> -> vector<8x512xf32>
    %222 = arith.addf %218, %221 : vector<8x512xf32>
    %223 = vector.extract_strided_slice %222 {offsets = [0, 0], sizes = [8, 128], strides = [1, 1]} : vector<8x512xf32> to vector<8x128xf32>
    %224 = arith.negf %223 : vector<8x128xf32>
    %225 = math.exp %224 : vector<8x128xf32>
    %cst_134 = arith.constant 1.000000e+00 : f32
    %226 = vector.broadcast %cst_134 : f32 to vector<8x128xf32>
    %227 = arith.addf %226, %225 : vector<8x128xf32>
    %228 = arith.divf %226, %227 : vector<8x128xf32>
    %229 = vector.extract_strided_slice %222 {offsets = [0, 128], sizes = [8, 128], strides = [1, 1]} : vector<8x512xf32> to vector<8x128xf32>
    %230 = arith.negf %229 : vector<8x128xf32>
    %231 = math.exp %230 : vector<8x128xf32>
    %cst_135 = arith.constant 1.000000e+00 : f32
    %232 = vector.broadcast %cst_135 : f32 to vector<8x128xf32>
    %233 = arith.addf %232, %231 : vector<8x128xf32>
    %234 = arith.divf %232, %233 : vector<8x128xf32>
    %235 = vector.extract_strided_slice %222 {offsets = [0, 256], sizes = [8, 128], strides = [1, 1]} : vector<8x512xf32> to vector<8x128xf32>
    %236 = math.tanh %235 : vector<8x128xf32>
    %237 = vector.extract_strided_slice %222 {offsets = [0, 384], sizes = [8, 128], strides = [1, 1]} : vector<8x512xf32> to vector<8x128xf32>
    %238 = arith.negf %237 : vector<8x128xf32>
    %239 = math.exp %238 : vector<8x128xf32>
    %cst_136 = arith.constant 1.000000e+00 : f32
    %240 = vector.broadcast %cst_136 : f32 to vector<8x128xf32>
    %241 = arith.addf %240, %239 : vector<8x128xf32>
    %242 = arith.divf %240, %241 : vector<8x128xf32>
    %c0_137 = arith.constant 0 : index
    %c0_138 = arith.constant 0 : index
    %243 = vector.load %arg11[%c0_137, %c0_138] : memref<8x128xf32, #tpu.memory_space<vmem>>, vector<8x128xf32>
    %244 = arith.mulf %234, %243 : vector<8x128xf32>
    %245 = arith.mulf %228, %236 : vector<8x128xf32>
    %246 = arith.addf %244, %245 : vector<8x128xf32>
    %247 = math.tanh %246 : vector<8x128xf32>
    %248 = arith.mulf %242, %247 : vector<8x128xf32>
    %c0_139 = arith.constant 0 : index
    %c0_140 = arith.constant 0 : index
    %249 = vector.load %arg11[%c0_139, %c0_140] : memref<8x128xf32, #tpu.memory_space<vmem>>, vector<8x128xf32>
    tpu.vector_store %arg11[%c0_139, %c0_140], %246 {strides = array<i32>} : memref<8x128xf32, #tpu.memory_space<vmem>>, vector<8x128xf32>,
    %c0_141 = arith.constant 0 : index
    %c0_142 = arith.constant 0 : index
    %250 = vector.load %arg10[%c0_141, %c0_142] : memref<8x128xf32, #tpu.memory_space<vmem>>, vector<8x128xf32>
    tpu.vector_store %arg10[%c0_141, %c0_142], %248 {strides = array<i32>} : memref<8x128xf32, #tpu.memory_space<vmem>>, vector<8x128xf32>,
    %c1_i32_143 = arith.constant 1 : i32
    %251 = arith.subi %c3_i32, %c1_i32_143 : i32
    %c8_i32_144 = arith.constant 8 : i32
    %252 = arith.muli %251, %c8_i32_144 : i32
    %253 = tpu.assume_multiple %252, 8 : i32
    %c0_145 = arith.constant 0 : index
    %c0_146 = arith.constant 0 : index
    %254 = vector.load %arg12[%c0_145, %c0_146] : memref<8x128xf32, #tpu.memory_space<vmem>>, vector<8x128xf32>
    %c0_147 = arith.constant 0 : index
    %c0_148 = arith.constant 0 : index
    %255 = vector.load %arg5[%c0_147, %c0_148] : memref<128x512xf32, #tpu.memory_space<vmem>>, vector<128x512xf32>
    %cst_149 = arith.constant dense<0.000000e+00> : vector<8x512xf32>
    %256 = tpu.matmul %254, %255, %cst_149 {dimension_numbers = #tpu.dot_dimension_numbers<[1], [0], [0], [1], [0, 0, 1, 1], [], []>} : vector<8x128xf32>, vector<128x512xf32>, vector<8x512xf32> -> vector<8x512xf32>
    %257 = arith.addf %214, %256 : vector<8x512xf32>
    %258 = vector.extract_strided_slice %257 {offsets = [0, 0], sizes = [8, 128], strides = [1, 1]} : vector<8x512xf32> to vector<8x128xf32>
    %259 = arith.negf %258 : vector<8x128xf32>
    %260 = math.exp %259 : vector<8x128xf32>
    %cst_150 = arith.constant 1.000000e+00 : f32
    %261 = vector.broadcast %cst_150 : f32 to vector<8x128xf32>
    %262 = arith.addf %261, %260 : vector<8x128xf32>
    %263 = arith.divf %261, %262 : vector<8x128xf32>
    %264 = vector.extract_strided_slice %257 {offsets = [0, 128], sizes = [8, 128], strides = [1, 1]} : vector<8x512xf32> to vector<8x128xf32>
    %265 = arith.negf %264 : vector<8x128xf32>
    %266 = math.exp %265 : vector<8x128xf32>
    %cst_151 = arith.constant 1.000000e+00 : f32
    %267 = vector.broadcast %cst_151 : f32 to vector<8x128xf32>
    %268 = arith.addf %267, %266 : vector<8x128xf32>
    %269 = arith.divf %267, %268 : vector<8x128xf32>
    %270 = vector.extract_strided_slice %257 {offsets = [0, 256], sizes = [8, 128], strides = [1, 1]} : vector<8x512xf32> to vector<8x128xf32>
    %271 = math.tanh %270 : vector<8x128xf32>
    %272 = vector.extract_strided_slice %257 {offsets = [0, 384], sizes = [8, 128], strides = [1, 1]} : vector<8x512xf32> to vector<8x128xf32>
    %273 = arith.negf %272 : vector<8x128xf32>
    %274 = math.exp %273 : vector<8x128xf32>
    %cst_152 = arith.constant 1.000000e+00 : f32
    %275 = vector.broadcast %cst_152 : f32 to vector<8x128xf32>
    %276 = arith.addf %275, %274 : vector<8x128xf32>
    %277 = arith.divf %275, %276 : vector<8x128xf32>
    %c0_153 = arith.constant 0 : index
    %c0_154 = arith.constant 0 : index
    %278 = vector.load %arg13[%c0_153, %c0_154] : memref<8x128xf32, #tpu.memory_space<vmem>>, vector<8x128xf32>
    %279 = arith.mulf %269, %278 : vector<8x128xf32>
    %280 = arith.mulf %263, %271 : vector<8x128xf32>
    %281 = arith.addf %279, %280 : vector<8x128xf32>
    %282 = math.tanh %281 : vector<8x128xf32>
    %283 = arith.mulf %277, %282 : vector<8x128xf32>
    %c0_155 = arith.constant 0 : index
    %c0_156 = arith.constant 0 : index
    %284 = vector.load %arg13[%c0_155, %c0_156] : memref<8x128xf32, #tpu.memory_space<vmem>>, vector<8x128xf32>
    tpu.vector_store %arg13[%c0_155, %c0_156], %281 {strides = array<i32>} : memref<8x128xf32, #tpu.memory_space<vmem>>, vector<8x128xf32>,
    %c0_157 = arith.constant 0 : index
    %c0_158 = arith.constant 0 : index
    %285 = vector.load %arg12[%c0_157, %c0_158] : memref<8x128xf32, #tpu.memory_space<vmem>>, vector<8x128xf32>
    tpu.vector_store %arg12[%c0_157, %c0_158], %283 {strides = array<i32>} : memref<8x128xf32, #tpu.memory_space<vmem>>, vector<8x128xf32>,
    %286 = arith.index_cast %253 : i32 to index
    %c0_159 = arith.constant 0 : index
    %287 = vector.load %arg7[%286, %c0_159] : memref<64x128xf32, #tpu.memory_space<vmem>>, vector<8x128xf32>
    tpu.vector_store %arg7[%286, %c0_159], %283 {strides = array<i32>} : memref<64x128xf32, #tpu.memory_space<vmem>>, vector<8x128xf32>,
    %c0_160 = arith.constant 0 : index
    %c0_161 = arith.constant 0 : index
    %288 = vector.load %arg9[%c0_160, %c0_161] : memref<8x128xf32, #tpu.memory_space<vmem>>, vector<8x128xf32>
    tpu.vector_store %arg9[%c0_160, %c0_161], %248 {strides = array<i32>} : memref<8x128xf32, #tpu.memory_space<vmem>>, vector<8x128xf32>,
    %c4_i32 = arith.constant 4 : i32
    %c0_162 = arith.constant 0 : index
    %c0_163 = arith.constant 0 : index
    %289 = vector.load %arg9[%c0_162, %c0_163] : memref<8x128xf32, #tpu.memory_space<vmem>>, vector<8x128xf32>
    %c0_164 = arith.constant 0 : index
    %c0_165 = arith.constant 0 : index
    %290 = vector.load %arg4[%c0_164, %c0_165] : memref<128x512xf32, #tpu.memory_space<vmem>>, vector<128x512xf32>
    %cst_166 = arith.constant dense<0.000000e+00> : vector<8x512xf32>
    %291 = tpu.matmul %289, %290, %cst_166 {dimension_numbers = #tpu.dot_dimension_numbers<[1], [0], [0], [1], [0, 0, 1, 1], [], []>} : vector<8x128xf32>, vector<128x512xf32>, vector<8x512xf32> -> vector<8x512xf32>
    %c0_167 = arith.constant 0 : index
    %c0_168 = arith.constant 0 : index
    %292 = vector.load %arg6[%c0_167, %c0_168] : memref<1x512xf32, #tpu.memory_space<vmem>>, vector<1x512xf32>
    %293 = vector.broadcast %292 : vector<1x512xf32> to vector<8x512xf32>
    %294 = arith.addf %291, %293 : vector<8x512xf32>
    %c8_i32_169 = arith.constant 8 : i32
    %295 = arith.muli %c4_i32, %c8_i32_169 : i32
    %296 = tpu.assume_multiple %295, 8 : i32
    %297 = arith.index_cast %296 : i32 to index
    %c0_170 = arith.constant 0 : index
    %298 = vector.load %arg8[%297, %c0_170] : memref<64x512xf32, #tpu.memory_space<vmem>>, vector<8x512xf32>
    %c0_171 = arith.constant 0 : index
    %c0_172 = arith.constant 0 : index
    %299 = vector.load %arg10[%c0_171, %c0_172] : memref<8x128xf32, #tpu.memory_space<vmem>>, vector<8x128xf32>
    %c0_173 = arith.constant 0 : index
    %c0_174 = arith.constant 0 : index
    %300 = vector.load %arg2[%c0_173, %c0_174] : memref<128x512xf32, #tpu.memory_space<vmem>>, vector<128x512xf32>
    %cst_175 = arith.constant dense<0.000000e+00> : vector<8x512xf32>
    %301 = tpu.matmul %299, %300, %cst_175 {dimension_numbers = #tpu.dot_dimension_numbers<[1], [0], [0], [1], [0, 0, 1, 1], [], []>} : vector<8x128xf32>, vector<128x512xf32>, vector<8x512xf32> -> vector<8x512xf32>
    %302 = arith.addf %298, %301 : vector<8x512xf32>
    %303 = vector.extract_strided_slice %302 {offsets = [0, 0], sizes = [8, 128], strides = [1, 1]} : vector<8x512xf32> to vector<8x128xf32>
    %304 = arith.negf %303 : vector<8x128xf32>
    %305 = math.exp %304 : vector<8x128xf32>
    %cst_176 = arith.constant 1.000000e+00 : f32
    %306 = vector.broadcast %cst_176 : f32 to vector<8x128xf32>
    %307 = arith.addf %306, %305 : vector<8x128xf32>
    %308 = arith.divf %306, %307 : vector<8x128xf32>
    %309 = vector.extract_strided_slice %302 {offsets = [0, 128], sizes = [8, 128], strides = [1, 1]} : vector<8x512xf32> to vector<8x128xf32>
    %310 = arith.negf %309 : vector<8x128xf32>
    %311 = math.exp %310 : vector<8x128xf32>
    %cst_177 = arith.constant 1.000000e+00 : f32
    %312 = vector.broadcast %cst_177 : f32 to vector<8x128xf32>
    %313 = arith.addf %312, %311 : vector<8x128xf32>
    %314 = arith.divf %312, %313 : vector<8x128xf32>
    %315 = vector.extract_strided_slice %302 {offsets = [0, 256], sizes = [8, 128], strides = [1, 1]} : vector<8x512xf32> to vector<8x128xf32>
    %316 = math.tanh %315 : vector<8x128xf32>
    %317 = vector.extract_strided_slice %302 {offsets = [0, 384], sizes = [8, 128], strides = [1, 1]} : vector<8x512xf32> to vector<8x128xf32>
    %318 = arith.negf %317 : vector<8x128xf32>
    %319 = math.exp %318 : vector<8x128xf32>
    %cst_178 = arith.constant 1.000000e+00 : f32
    %320 = vector.broadcast %cst_178 : f32 to vector<8x128xf32>
    %321 = arith.addf %320, %319 : vector<8x128xf32>
    %322 = arith.divf %320, %321 : vector<8x128xf32>
    %c0_179 = arith.constant 0 : index
    %c0_180 = arith.constant 0 : index
    %323 = vector.load %arg11[%c0_179, %c0_180] : memref<8x128xf32, #tpu.memory_space<vmem>>, vector<8x128xf32>
    %324 = arith.mulf %314, %323 : vector<8x128xf32>
    %325 = arith.mulf %308, %316 : vector<8x128xf32>
    %326 = arith.addf %324, %325 : vector<8x128xf32>
    %327 = math.tanh %326 : vector<8x128xf32>
    %328 = arith.mulf %322, %327 : vector<8x128xf32>
    %c0_181 = arith.constant 0 : index
    %c0_182 = arith.constant 0 : index
    %329 = vector.load %arg11[%c0_181, %c0_182] : memref<8x128xf32, #tpu.memory_space<vmem>>, vector<8x128xf32>
    tpu.vector_store %arg11[%c0_181, %c0_182], %326 {strides = array<i32>} : memref<8x128xf32, #tpu.memory_space<vmem>>, vector<8x128xf32>,
    %c0_183 = arith.constant 0 : index
    %c0_184 = arith.constant 0 : index
    %330 = vector.load %arg10[%c0_183, %c0_184] : memref<8x128xf32, #tpu.memory_space<vmem>>, vector<8x128xf32>
    tpu.vector_store %arg10[%c0_183, %c0_184], %328 {strides = array<i32>} : memref<8x128xf32, #tpu.memory_space<vmem>>, vector<8x128xf32>,
    %c1_i32_185 = arith.constant 1 : i32
    %331 = arith.subi %c4_i32, %c1_i32_185 : i32
    %c8_i32_186 = arith.constant 8 : i32
    %332 = arith.muli %331, %c8_i32_186 : i32
    %333 = tpu.assume_multiple %332, 8 : i32
    %c0_187 = arith.constant 0 : index
    %c0_188 = arith.constant 0 : index
    %334 = vector.load %arg12[%c0_187, %c0_188] : memref<8x128xf32, #tpu.memory_space<vmem>>, vector<8x128xf32>
    %c0_189 = arith.constant 0 : index
    %c0_190 = arith.constant 0 : index
    %335 = vector.load %arg5[%c0_189, %c0_190] : memref<128x512xf32, #tpu.memory_space<vmem>>, vector<128x512xf32>
    %cst_191 = arith.constant dense<0.000000e+00> : vector<8x512xf32>
    %336 = tpu.matmul %334, %335, %cst_191 {dimension_numbers = #tpu.dot_dimension_numbers<[1], [0], [0], [1], [0, 0, 1, 1], [], []>} : vector<8x128xf32>, vector<128x512xf32>, vector<8x512xf32> -> vector<8x512xf32>
    %337 = arith.addf %294, %336 : vector<8x512xf32>
    %338 = vector.extract_strided_slice %337 {offsets = [0, 0], sizes = [8, 128], strides = [1, 1]} : vector<8x512xf32> to vector<8x128xf32>
    %339 = arith.negf %338 : vector<8x128xf32>
    %340 = math.exp %339 : vector<8x128xf32>
    %cst_192 = arith.constant 1.000000e+00 : f32
    %341 = vector.broadcast %cst_192 : f32 to vector<8x128xf32>
    %342 = arith.addf %341, %340 : vector<8x128xf32>
    %343 = arith.divf %341, %342 : vector<8x128xf32>
    %344 = vector.extract_strided_slice %337 {offsets = [0, 128], sizes = [8, 128], strides = [1, 1]} : vector<8x512xf32> to vector<8x128xf32>
    %345 = arith.negf %344 : vector<8x128xf32>
    %346 = math.exp %345 : vector<8x128xf32>
    %cst_193 = arith.constant 1.000000e+00 : f32
    %347 = vector.broadcast %cst_193 : f32 to vector<8x128xf32>
    %348 = arith.addf %347, %346 : vector<8x128xf32>
    %349 = arith.divf %347, %348 : vector<8x128xf32>
    %350 = vector.extract_strided_slice %337 {offsets = [0, 256], sizes = [8, 128], strides = [1, 1]} : vector<8x512xf32> to vector<8x128xf32>
    %351 = math.tanh %350 : vector<8x128xf32>
    %352 = vector.extract_strided_slice %337 {offsets = [0, 384], sizes = [8, 128], strides = [1, 1]} : vector<8x512xf32> to vector<8x128xf32>
    %353 = arith.negf %352 : vector<8x128xf32>
    %354 = math.exp %353 : vector<8x128xf32>
    %cst_194 = arith.constant 1.000000e+00 : f32
    %355 = vector.broadcast %cst_194 : f32 to vector<8x128xf32>
    %356 = arith.addf %355, %354 : vector<8x128xf32>
    %357 = arith.divf %355, %356 : vector<8x128xf32>
    %c0_195 = arith.constant 0 : index
    %c0_196 = arith.constant 0 : index
    %358 = vector.load %arg13[%c0_195, %c0_196] : memref<8x128xf32, #tpu.memory_space<vmem>>, vector<8x128xf32>
    %359 = arith.mulf %349, %358 : vector<8x128xf32>
    %360 = arith.mulf %343, %351 : vector<8x128xf32>
    %361 = arith.addf %359, %360 : vector<8x128xf32>
    %362 = math.tanh %361 : vector<8x128xf32>
    %363 = arith.mulf %357, %362 : vector<8x128xf32>
    %c0_197 = arith.constant 0 : index
    %c0_198 = arith.constant 0 : index
    %364 = vector.load %arg13[%c0_197, %c0_198] : memref<8x128xf32, #tpu.memory_space<vmem>>, vector<8x128xf32>
    tpu.vector_store %arg13[%c0_197, %c0_198], %361 {strides = array<i32>} : memref<8x128xf32, #tpu.memory_space<vmem>>, vector<8x128xf32>,
    %c0_199 = arith.constant 0 : index
    %c0_200 = arith.constant 0 : index
    %365 = vector.load %arg12[%c0_199, %c0_200] : memref<8x128xf32, #tpu.memory_space<vmem>>, vector<8x128xf32>
    tpu.vector_store %arg12[%c0_199, %c0_200], %363 {strides = array<i32>} : memref<8x128xf32, #tpu.memory_space<vmem>>, vector<8x128xf32>,
    %366 = arith.index_cast %333 : i32 to index
    %c0_201 = arith.constant 0 : index
    %367 = vector.load %arg7[%366, %c0_201] : memref<64x128xf32, #tpu.memory_space<vmem>>, vector<8x128xf32>
    tpu.vector_store %arg7[%366, %c0_201], %363 {strides = array<i32>} : memref<64x128xf32, #tpu.memory_space<vmem>>, vector<8x128xf32>,
    %c0_202 = arith.constant 0 : index
    %c0_203 = arith.constant 0 : index
    %368 = vector.load %arg9[%c0_202, %c0_203] : memref<8x128xf32, #tpu.memory_space<vmem>>, vector<8x128xf32>
    tpu.vector_store %arg9[%c0_202, %c0_203], %328 {strides = array<i32>} : memref<8x128xf32, #tpu.memory_space<vmem>>, vector<8x128xf32>,
    %c5_i32 = arith.constant 5 : i32
    %c0_204 = arith.constant 0 : index
    %c0_205 = arith.constant 0 : index
    %369 = vector.load %arg9[%c0_204, %c0_205] : memref<8x128xf32, #tpu.memory_space<vmem>>, vector<8x128xf32>
    %c0_206 = arith.constant 0 : index
    %c0_207 = arith.constant 0 : index
    %370 = vector.load %arg4[%c0_206, %c0_207] : memref<128x512xf32, #tpu.memory_space<vmem>>, vector<128x512xf32>
    %cst_208 = arith.constant dense<0.000000e+00> : vector<8x512xf32>
    %371 = tpu.matmul %369, %370, %cst_208 {dimension_numbers = #tpu.dot_dimension_numbers<[1], [0], [0], [1], [0, 0, 1, 1], [], []>} : vector<8x128xf32>, vector<128x512xf32>, vector<8x512xf32> -> vector<8x512xf32>
    %c0_209 = arith.constant 0 : index
    %c0_210 = arith.constant 0 : index
    %372 = vector.load %arg6[%c0_209, %c0_210] : memref<1x512xf32, #tpu.memory_space<vmem>>, vector<1x512xf32>
    %373 = vector.broadcast %372 : vector<1x512xf32> to vector<8x512xf32>
    %374 = arith.addf %371, %373 : vector<8x512xf32>
    %c8_i32_211 = arith.constant 8 : i32
    %375 = arith.muli %c5_i32, %c8_i32_211 : i32
    %376 = tpu.assume_multiple %375, 8 : i32
    %377 = arith.index_cast %376 : i32 to index
    %c0_212 = arith.constant 0 : index
    %378 = vector.load %arg8[%377, %c0_212] : memref<64x512xf32, #tpu.memory_space<vmem>>, vector<8x512xf32>
    %c0_213 = arith.constant 0 : index
    %c0_214 = arith.constant 0 : index
    %379 = vector.load %arg10[%c0_213, %c0_214] : memref<8x128xf32, #tpu.memory_space<vmem>>, vector<8x128xf32>
    %c0_215 = arith.constant 0 : index
    %c0_216 = arith.constant 0 : index
    %380 = vector.load %arg2[%c0_215, %c0_216] : memref<128x512xf32, #tpu.memory_space<vmem>>, vector<128x512xf32>
    %cst_217 = arith.constant dense<0.000000e+00> : vector<8x512xf32>
    %381 = tpu.matmul %379, %380, %cst_217 {dimension_numbers = #tpu.dot_dimension_numbers<[1], [0], [0], [1], [0, 0, 1, 1], [], []>} : vector<8x128xf32>, vector<128x512xf32>, vector<8x512xf32> -> vector<8x512xf32>
    %382 = arith.addf %378, %381 : vector<8x512xf32>
    %383 = vector.extract_strided_slice %382 {offsets = [0, 0], sizes = [8, 128], strides = [1, 1]} : vector<8x512xf32> to vector<8x128xf32>
    %384 = arith.negf %383 : vector<8x128xf32>
    %385 = math.exp %384 : vector<8x128xf32>
    %cst_218 = arith.constant 1.000000e+00 : f32
    %386 = vector.broadcast %cst_218 : f32 to vector<8x128xf32>
    %387 = arith.addf %386, %385 : vector<8x128xf32>
    %388 = arith.divf %386, %387 : vector<8x128xf32>
    %389 = vector.extract_strided_slice %382 {offsets = [0, 128], sizes = [8, 128], strides = [1, 1]} : vector<8x512xf32> to vector<8x128xf32>
    %390 = arith.negf %389 : vector<8x128xf32>
    %391 = math.exp %390 : vector<8x128xf32>
    %cst_219 = arith.constant 1.000000e+00 : f32
    %392 = vector.broadcast %cst_219 : f32 to vector<8x128xf32>
    %393 = arith.addf %392, %391 : vector<8x128xf32>
    %394 = arith.divf %392, %393 : vector<8x128xf32>
    %395 = vector.extract_strided_slice %382 {offsets = [0, 256], sizes = [8, 128], strides = [1, 1]} : vector<8x512xf32> to vector<8x128xf32>
    %396 = math.tanh %395 : vector<8x128xf32>
    %397 = vector.extract_strided_slice %382 {offsets = [0, 384], sizes = [8, 128], strides = [1, 1]} : vector<8x512xf32> to vector<8x128xf32>
    %398 = arith.negf %397 : vector<8x128xf32>
    %399 = math.exp %398 : vector<8x128xf32>
    %cst_220 = arith.constant 1.000000e+00 : f32
    %400 = vector.broadcast %cst_220 : f32 to vector<8x128xf32>
    %401 = arith.addf %400, %399 : vector<8x128xf32>
    %402 = arith.divf %400, %401 : vector<8x128xf32>
    %c0_221 = arith.constant 0 : index
    %c0_222 = arith.constant 0 : index
    %403 = vector.load %arg11[%c0_221, %c0_222] : memref<8x128xf32, #tpu.memory_space<vmem>>, vector<8x128xf32>
    %404 = arith.mulf %394, %403 : vector<8x128xf32>
    %405 = arith.mulf %388, %396 : vector<8x128xf32>
    %406 = arith.addf %404, %405 : vector<8x128xf32>
    %407 = math.tanh %406 : vector<8x128xf32>
    %408 = arith.mulf %402, %407 : vector<8x128xf32>
    %c0_223 = arith.constant 0 : index
    %c0_224 = arith.constant 0 : index
    %409 = vector.load %arg11[%c0_223, %c0_224] : memref<8x128xf32, #tpu.memory_space<vmem>>, vector<8x128xf32>
    tpu.vector_store %arg11[%c0_223, %c0_224], %406 {strides = array<i32>} : memref<8x128xf32, #tpu.memory_space<vmem>>, vector<8x128xf32>,
    %c0_225 = arith.constant 0 : index
    %c0_226 = arith.constant 0 : index
    %410 = vector.load %arg10[%c0_225, %c0_226] : memref<8x128xf32, #tpu.memory_space<vmem>>, vector<8x128xf32>
    tpu.vector_store %arg10[%c0_225, %c0_226], %408 {strides = array<i32>} : memref<8x128xf32, #tpu.memory_space<vmem>>, vector<8x128xf32>,
    %c1_i32_227 = arith.constant 1 : i32
    %411 = arith.subi %c5_i32, %c1_i32_227 : i32
    %c8_i32_228 = arith.constant 8 : i32
    %412 = arith.muli %411, %c8_i32_228 : i32
    %413 = tpu.assume_multiple %412, 8 : i32
    %c0_229 = arith.constant 0 : index
    %c0_230 = arith.constant 0 : index
    %414 = vector.load %arg12[%c0_229, %c0_230] : memref<8x128xf32, #tpu.memory_space<vmem>>, vector<8x128xf32>
    %c0_231 = arith.constant 0 : index
    %c0_232 = arith.constant 0 : index
    %415 = vector.load %arg5[%c0_231, %c0_232] : memref<128x512xf32, #tpu.memory_space<vmem>>, vector<128x512xf32>
    %cst_233 = arith.constant dense<0.000000e+00> : vector<8x512xf32>
    %416 = tpu.matmul %414, %415, %cst_233 {dimension_numbers = #tpu.dot_dimension_numbers<[1], [0], [0], [1], [0, 0, 1, 1], [], []>} : vector<8x128xf32>, vector<128x512xf32>, vector<8x512xf32> -> vector<8x512xf32>
    %417 = arith.addf %374, %416 : vector<8x512xf32>
    %418 = vector.extract_strided_slice %417 {offsets = [0, 0], sizes = [8, 128], strides = [1, 1]} : vector<8x512xf32> to vector<8x128xf32>
    %419 = arith.negf %418 : vector<8x128xf32>
    %420 = math.exp %419 : vector<8x128xf32>
    %cst_234 = arith.constant 1.000000e+00 : f32
    %421 = vector.broadcast %cst_234 : f32 to vector<8x128xf32>
    %422 = arith.addf %421, %420 : vector<8x128xf32>
    %423 = arith.divf %421, %422 : vector<8x128xf32>
    %424 = vector.extract_strided_slice %417 {offsets = [0, 128], sizes = [8, 128], strides = [1, 1]} : vector<8x512xf32> to vector<8x128xf32>
    %425 = arith.negf %424 : vector<8x128xf32>
    %426 = math.exp %425 : vector<8x128xf32>
    %cst_235 = arith.constant 1.000000e+00 : f32
    %427 = vector.broadcast %cst_235 : f32 to vector<8x128xf32>
    %428 = arith.addf %427, %426 : vector<8x128xf32>
    %429 = arith.divf %427, %428 : vector<8x128xf32>
    %430 = vector.extract_strided_slice %417 {offsets = [0, 256], sizes = [8, 128], strides = [1, 1]} : vector<8x512xf32> to vector<8x128xf32>
    %431 = math.tanh %430 : vector<8x128xf32>
    %432 = vector.extract_strided_slice %417 {offsets = [0, 384], sizes = [8, 128], strides = [1, 1]} : vector<8x512xf32> to vector<8x128xf32>
    %433 = arith.negf %432 : vector<8x128xf32>
    %434 = math.exp %433 : vector<8x128xf32>
    %cst_236 = arith.constant 1.000000e+00 : f32
    %435 = vector.broadcast %cst_236 : f32 to vector<8x128xf32>
    %436 = arith.addf %435, %434 : vector<8x128xf32>
    %437 = arith.divf %435, %436 : vector<8x128xf32>
    %c0_237 = arith.constant 0 : index
    %c0_238 = arith.constant 0 : index
    %438 = vector.load %arg13[%c0_237, %c0_238] : memref<8x128xf32, #tpu.memory_space<vmem>>, vector<8x128xf32>
    %439 = arith.mulf %429, %438 : vector<8x128xf32>
    %440 = arith.mulf %423, %431 : vector<8x128xf32>
    %441 = arith.addf %439, %440 : vector<8x128xf32>
    %442 = math.tanh %441 : vector<8x128xf32>
    %443 = arith.mulf %437, %442 : vector<8x128xf32>
    %c0_239 = arith.constant 0 : index
    %c0_240 = arith.constant 0 : index
    %444 = vector.load %arg13[%c0_239, %c0_240] : memref<8x128xf32, #tpu.memory_space<vmem>>, vector<8x128xf32>
    tpu.vector_store %arg13[%c0_239, %c0_240], %441 {strides = array<i32>} : memref<8x128xf32, #tpu.memory_space<vmem>>, vector<8x128xf32>,
    %c0_241 = arith.constant 0 : index
    %c0_242 = arith.constant 0 : index
    %445 = vector.load %arg12[%c0_241, %c0_242] : memref<8x128xf32, #tpu.memory_space<vmem>>, vector<8x128xf32>
    tpu.vector_store %arg12[%c0_241, %c0_242], %443 {strides = array<i32>} : memref<8x128xf32, #tpu.memory_space<vmem>>, vector<8x128xf32>,
    %446 = arith.index_cast %413 : i32 to index
    %c0_243 = arith.constant 0 : index
    %447 = vector.load %arg7[%446, %c0_243] : memref<64x128xf32, #tpu.memory_space<vmem>>, vector<8x128xf32>
    tpu.vector_store %arg7[%446, %c0_243], %443 {strides = array<i32>} : memref<64x128xf32, #tpu.memory_space<vmem>>, vector<8x128xf32>,
    %c0_244 = arith.constant 0 : index
    %c0_245 = arith.constant 0 : index
    %448 = vector.load %arg9[%c0_244, %c0_245] : memref<8x128xf32, #tpu.memory_space<vmem>>, vector<8x128xf32>
    tpu.vector_store %arg9[%c0_244, %c0_245], %408 {strides = array<i32>} : memref<8x128xf32, #tpu.memory_space<vmem>>, vector<8x128xf32>,
    %c6_i32 = arith.constant 6 : i32
    %c0_246 = arith.constant 0 : index
    %c0_247 = arith.constant 0 : index
    %449 = vector.load %arg9[%c0_246, %c0_247] : memref<8x128xf32, #tpu.memory_space<vmem>>, vector<8x128xf32>
    %c0_248 = arith.constant 0 : index
    %c0_249 = arith.constant 0 : index
    %450 = vector.load %arg4[%c0_248, %c0_249] : memref<128x512xf32, #tpu.memory_space<vmem>>, vector<128x512xf32>
    %cst_250 = arith.constant dense<0.000000e+00> : vector<8x512xf32>
    %451 = tpu.matmul %449, %450, %cst_250 {dimension_numbers = #tpu.dot_dimension_numbers<[1], [0], [0], [1], [0, 0, 1, 1], [], []>} : vector<8x128xf32>, vector<128x512xf32>, vector<8x512xf32> -> vector<8x512xf32>
    %c0_251 = arith.constant 0 : index
    %c0_252 = arith.constant 0 : index
    %452 = vector.load %arg6[%c0_251, %c0_252] : memref<1x512xf32, #tpu.memory_space<vmem>>, vector<1x512xf32>
    %453 = vector.broadcast %452 : vector<1x512xf32> to vector<8x512xf32>
    %454 = arith.addf %451, %453 : vector<8x512xf32>
    %c8_i32_253 = arith.constant 8 : i32
    %455 = arith.muli %c6_i32, %c8_i32_253 : i32
    %456 = tpu.assume_multiple %455, 8 : i32
    %457 = arith.index_cast %456 : i32 to index
    %c0_254 = arith.constant 0 : index
    %458 = vector.load %arg8[%457, %c0_254] : memref<64x512xf32, #tpu.memory_space<vmem>>, vector<8x512xf32>
    %c0_255 = arith.constant 0 : index
    %c0_256 = arith.constant 0 : index
    %459 = vector.load %arg10[%c0_255, %c0_256] : memref<8x128xf32, #tpu.memory_space<vmem>>, vector<8x128xf32>
    %c0_257 = arith.constant 0 : index
    %c0_258 = arith.constant 0 : index
    %460 = vector.load %arg2[%c0_257, %c0_258] : memref<128x512xf32, #tpu.memory_space<vmem>>, vector<128x512xf32>
    %cst_259 = arith.constant dense<0.000000e+00> : vector<8x512xf32>
    %461 = tpu.matmul %459, %460, %cst_259 {dimension_numbers = #tpu.dot_dimension_numbers<[1], [0], [0], [1], [0, 0, 1, 1], [], []>} : vector<8x128xf32>, vector<128x512xf32>, vector<8x512xf32> -> vector<8x512xf32>
    %462 = arith.addf %458, %461 : vector<8x512xf32>
    %463 = vector.extract_strided_slice %462 {offsets = [0, 0], sizes = [8, 128], strides = [1, 1]} : vector<8x512xf32> to vector<8x128xf32>
    %464 = arith.negf %463 : vector<8x128xf32>
    %465 = math.exp %464 : vector<8x128xf32>
    %cst_260 = arith.constant 1.000000e+00 : f32
    %466 = vector.broadcast %cst_260 : f32 to vector<8x128xf32>
    %467 = arith.addf %466, %465 : vector<8x128xf32>
    %468 = arith.divf %466, %467 : vector<8x128xf32>
    %469 = vector.extract_strided_slice %462 {offsets = [0, 128], sizes = [8, 128], strides = [1, 1]} : vector<8x512xf32> to vector<8x128xf32>
    %470 = arith.negf %469 : vector<8x128xf32>
    %471 = math.exp %470 : vector<8x128xf32>
    %cst_261 = arith.constant 1.000000e+00 : f32
    %472 = vector.broadcast %cst_261 : f32 to vector<8x128xf32>
    %473 = arith.addf %472, %471 : vector<8x128xf32>
    %474 = arith.divf %472, %473 : vector<8x128xf32>
    %475 = vector.extract_strided_slice %462 {offsets = [0, 256], sizes = [8, 128], strides = [1, 1]} : vector<8x512xf32> to vector<8x128xf32>
    %476 = math.tanh %475 : vector<8x128xf32>
    %477 = vector.extract_strided_slice %462 {offsets = [0, 384], sizes = [8, 128], strides = [1, 1]} : vector<8x512xf32> to vector<8x128xf32>
    %478 = arith.negf %477 : vector<8x128xf32>
    %479 = math.exp %478 : vector<8x128xf32>
    %cst_262 = arith.constant 1.000000e+00 : f32
    %480 = vector.broadcast %cst_262 : f32 to vector<8x128xf32>
    %481 = arith.addf %480, %479 : vector<8x128xf32>
    %482 = arith.divf %480, %481 : vector<8x128xf32>
    %c0_263 = arith.constant 0 : index
    %c0_264 = arith.constant 0 : index
    %483 = vector.load %arg11[%c0_263, %c0_264] : memref<8x128xf32, #tpu.memory_space<vmem>>, vector<8x128xf32>
    %484 = arith.mulf %474, %483 : vector<8x128xf32>
    %485 = arith.mulf %468, %476 : vector<8x128xf32>
    %486 = arith.addf %484, %485 : vector<8x128xf32>
    %487 = math.tanh %486 : vector<8x128xf32>
    %488 = arith.mulf %482, %487 : vector<8x128xf32>
    %c0_265 = arith.constant 0 : index
    %c0_266 = arith.constant 0 : index
    %489 = vector.load %arg11[%c0_265, %c0_266] : memref<8x128xf32, #tpu.memory_space<vmem>>, vector<8x128xf32>
    tpu.vector_store %arg11[%c0_265, %c0_266], %486 {strides = array<i32>} : memref<8x128xf32, #tpu.memory_space<vmem>>, vector<8x128xf32>,
    %c0_267 = arith.constant 0 : index
    %c0_268 = arith.constant 0 : index
    %490 = vector.load %arg10[%c0_267, %c0_268] : memref<8x128xf32, #tpu.memory_space<vmem>>, vector<8x128xf32>
    tpu.vector_store %arg10[%c0_267, %c0_268], %488 {strides = array<i32>} : memref<8x128xf32, #tpu.memory_space<vmem>>, vector<8x128xf32>,
    %c1_i32_269 = arith.constant 1 : i32
    %491 = arith.subi %c6_i32, %c1_i32_269 : i32
    %c8_i32_270 = arith.constant 8 : i32
    %492 = arith.muli %491, %c8_i32_270 : i32
    %493 = tpu.assume_multiple %492, 8 : i32
    %c0_271 = arith.constant 0 : index
    %c0_272 = arith.constant 0 : index
    %494 = vector.load %arg12[%c0_271, %c0_272] : memref<8x128xf32, #tpu.memory_space<vmem>>, vector<8x128xf32>
    %c0_273 = arith.constant 0 : index
    %c0_274 = arith.constant 0 : index
    %495 = vector.load %arg5[%c0_273, %c0_274] : memref<128x512xf32, #tpu.memory_space<vmem>>, vector<128x512xf32>
    %cst_275 = arith.constant dense<0.000000e+00> : vector<8x512xf32>
    %496 = tpu.matmul %494, %495, %cst_275 {dimension_numbers = #tpu.dot_dimension_numbers<[1], [0], [0], [1], [0, 0, 1, 1], [], []>} : vector<8x128xf32>, vector<128x512xf32>, vector<8x512xf32> -> vector<8x512xf32>
    %497 = arith.addf %454, %496 : vector<8x512xf32>
    %498 = vector.extract_strided_slice %497 {offsets = [0, 0], sizes = [8, 128], strides = [1, 1]} : vector<8x512xf32> to vector<8x128xf32>
    %499 = arith.negf %498 : vector<8x128xf32>
    %500 = math.exp %499 : vector<8x128xf32>
    %cst_276 = arith.constant 1.000000e+00 : f32
    %501 = vector.broadcast %cst_276 : f32 to vector<8x128xf32>
    %502 = arith.addf %501, %500 : vector<8x128xf32>
    %503 = arith.divf %501, %502 : vector<8x128xf32>
    %504 = vector.extract_strided_slice %497 {offsets = [0, 128], sizes = [8, 128], strides = [1, 1]} : vector<8x512xf32> to vector<8x128xf32>
    %505 = arith.negf %504 : vector<8x128xf32>
    %506 = math.exp %505 : vector<8x128xf32>
    %cst_277 = arith.constant 1.000000e+00 : f32
    %507 = vector.broadcast %cst_277 : f32 to vector<8x128xf32>
    %508 = arith.addf %507, %506 : vector<8x128xf32>
    %509 = arith.divf %507, %508 : vector<8x128xf32>
    %510 = vector.extract_strided_slice %497 {offsets = [0, 256], sizes = [8, 128], strides = [1, 1]} : vector<8x512xf32> to vector<8x128xf32>
    %511 = math.tanh %510 : vector<8x128xf32>
    %512 = vector.extract_strided_slice %497 {offsets = [0, 384], sizes = [8, 128], strides = [1, 1]} : vector<8x512xf32> to vector<8x128xf32>
    %513 = arith.negf %512 : vector<8x128xf32>
    %514 = math.exp %513 : vector<8x128xf32>
    %cst_278 = arith.constant 1.000000e+00 : f32
    %515 = vector.broadcast %cst_278 : f32 to vector<8x128xf32>
    %516 = arith.addf %515, %514 : vector<8x128xf32>
    %517 = arith.divf %515, %516 : vector<8x128xf32>
    %c0_279 = arith.constant 0 : index
    %c0_280 = arith.constant 0 : index
    %518 = vector.load %arg13[%c0_279, %c0_280] : memref<8x128xf32, #tpu.memory_space<vmem>>, vector<8x128xf32>
    %519 = arith.mulf %509, %518 : vector<8x128xf32>
    %520 = arith.mulf %503, %511 : vector<8x128xf32>
    %521 = arith.addf %519, %520 : vector<8x128xf32>
    %522 = math.tanh %521 : vector<8x128xf32>
    %523 = arith.mulf %517, %522 : vector<8x128xf32>
    %c0_281 = arith.constant 0 : index
    %c0_282 = arith.constant 0 : index
    %524 = vector.load %arg13[%c0_281, %c0_282] : memref<8x128xf32, #tpu.memory_space<vmem>>, vector<8x128xf32>
    tpu.vector_store %arg13[%c0_281, %c0_282], %521 {strides = array<i32>} : memref<8x128xf32, #tpu.memory_space<vmem>>, vector<8x128xf32>,
    %c0_283 = arith.constant 0 : index
    %c0_284 = arith.constant 0 : index
    %525 = vector.load %arg12[%c0_283, %c0_284] : memref<8x128xf32, #tpu.memory_space<vmem>>, vector<8x128xf32>
    tpu.vector_store %arg12[%c0_283, %c0_284], %523 {strides = array<i32>} : memref<8x128xf32, #tpu.memory_space<vmem>>, vector<8x128xf32>,
    %526 = arith.index_cast %493 : i32 to index
    %c0_285 = arith.constant 0 : index
    %527 = vector.load %arg7[%526, %c0_285] : memref<64x128xf32, #tpu.memory_space<vmem>>, vector<8x128xf32>
    tpu.vector_store %arg7[%526, %c0_285], %523 {strides = array<i32>} : memref<64x128xf32, #tpu.memory_space<vmem>>, vector<8x128xf32>,
    %c0_286 = arith.constant 0 : index
    %c0_287 = arith.constant 0 : index
    %528 = vector.load %arg9[%c0_286, %c0_287] : memref<8x128xf32, #tpu.memory_space<vmem>>, vector<8x128xf32>
    tpu.vector_store %arg9[%c0_286, %c0_287], %488 {strides = array<i32>} : memref<8x128xf32, #tpu.memory_space<vmem>>, vector<8x128xf32>,
    %c7_i32 = arith.constant 7 : i32
    %c0_288 = arith.constant 0 : index
    %c0_289 = arith.constant 0 : index
    %529 = vector.load %arg9[%c0_288, %c0_289] : memref<8x128xf32, #tpu.memory_space<vmem>>, vector<8x128xf32>
    %c0_290 = arith.constant 0 : index
    %c0_291 = arith.constant 0 : index
    %530 = vector.load %arg4[%c0_290, %c0_291] : memref<128x512xf32, #tpu.memory_space<vmem>>, vector<128x512xf32>
    %cst_292 = arith.constant dense<0.000000e+00> : vector<8x512xf32>
    %531 = tpu.matmul %529, %530, %cst_292 {dimension_numbers = #tpu.dot_dimension_numbers<[1], [0], [0], [1], [0, 0, 1, 1], [], []>} : vector<8x128xf32>, vector<128x512xf32>, vector<8x512xf32> -> vector<8x512xf32>
    %c0_293 = arith.constant 0 : index
    %c0_294 = arith.constant 0 : index
    %532 = vector.load %arg6[%c0_293, %c0_294] : memref<1x512xf32, #tpu.memory_space<vmem>>, vector<1x512xf32>
    %533 = vector.broadcast %532 : vector<1x512xf32> to vector<8x512xf32>
    %534 = arith.addf %531, %533 : vector<8x512xf32>
    %c8_i32_295 = arith.constant 8 : i32
    %535 = arith.muli %c7_i32, %c8_i32_295 : i32
    %536 = tpu.assume_multiple %535, 8 : i32
    %537 = arith.index_cast %536 : i32 to index
    %c0_296 = arith.constant 0 : index
    %538 = vector.load %arg8[%537, %c0_296] : memref<64x512xf32, #tpu.memory_space<vmem>>, vector<8x512xf32>
    %c0_297 = arith.constant 0 : index
    %c0_298 = arith.constant 0 : index
    %539 = vector.load %arg10[%c0_297, %c0_298] : memref<8x128xf32, #tpu.memory_space<vmem>>, vector<8x128xf32>
    %c0_299 = arith.constant 0 : index
    %c0_300 = arith.constant 0 : index
    %540 = vector.load %arg2[%c0_299, %c0_300] : memref<128x512xf32, #tpu.memory_space<vmem>>, vector<128x512xf32>
    %cst_301 = arith.constant dense<0.000000e+00> : vector<8x512xf32>
    %541 = tpu.matmul %539, %540, %cst_301 {dimension_numbers = #tpu.dot_dimension_numbers<[1], [0], [0], [1], [0, 0, 1, 1], [], []>} : vector<8x128xf32>, vector<128x512xf32>, vector<8x512xf32> -> vector<8x512xf32>
    %542 = arith.addf %538, %541 : vector<8x512xf32>
    %543 = vector.extract_strided_slice %542 {offsets = [0, 0], sizes = [8, 128], strides = [1, 1]} : vector<8x512xf32> to vector<8x128xf32>
    %544 = arith.negf %543 : vector<8x128xf32>
    %545 = math.exp %544 : vector<8x128xf32>
    %cst_302 = arith.constant 1.000000e+00 : f32
    %546 = vector.broadcast %cst_302 : f32 to vector<8x128xf32>
    %547 = arith.addf %546, %545 : vector<8x128xf32>
    %548 = arith.divf %546, %547 : vector<8x128xf32>
    %549 = vector.extract_strided_slice %542 {offsets = [0, 128], sizes = [8, 128], strides = [1, 1]} : vector<8x512xf32> to vector<8x128xf32>
    %550 = arith.negf %549 : vector<8x128xf32>
    %551 = math.exp %550 : vector<8x128xf32>
    %cst_303 = arith.constant 1.000000e+00 : f32
    %552 = vector.broadcast %cst_303 : f32 to vector<8x128xf32>
    %553 = arith.addf %552, %551 : vector<8x128xf32>
    %554 = arith.divf %552, %553 : vector<8x128xf32>
    %555 = vector.extract_strided_slice %542 {offsets = [0, 256], sizes = [8, 128], strides = [1, 1]} : vector<8x512xf32> to vector<8x128xf32>
    %556 = math.tanh %555 : vector<8x128xf32>
    %557 = vector.extract_strided_slice %542 {offsets = [0, 384], sizes = [8, 128], strides = [1, 1]} : vector<8x512xf32> to vector<8x128xf32>
    %558 = arith.negf %557 : vector<8x128xf32>
    %559 = math.exp %558 : vector<8x128xf32>
    %cst_304 = arith.constant 1.000000e+00 : f32
    %560 = vector.broadcast %cst_304 : f32 to vector<8x128xf32>
    %561 = arith.addf %560, %559 : vector<8x128xf32>
    %562 = arith.divf %560, %561 : vector<8x128xf32>
    %c0_305 = arith.constant 0 : index
    %c0_306 = arith.constant 0 : index
    %563 = vector.load %arg11[%c0_305, %c0_306] : memref<8x128xf32, #tpu.memory_space<vmem>>, vector<8x128xf32>
    %564 = arith.mulf %554, %563 : vector<8x128xf32>
    %565 = arith.mulf %548, %556 : vector<8x128xf32>
    %566 = arith.addf %564, %565 : vector<8x128xf32>
    %567 = math.tanh %566 : vector<8x128xf32>
    %568 = arith.mulf %562, %567 : vector<8x128xf32>
    %c0_307 = arith.constant 0 : index
    %c0_308 = arith.constant 0 : index
    %569 = vector.load %arg11[%c0_307, %c0_308] : memref<8x128xf32, #tpu.memory_space<vmem>>, vector<8x128xf32>
    tpu.vector_store %arg11[%c0_307, %c0_308], %566 {strides = array<i32>} : memref<8x128xf32, #tpu.memory_space<vmem>>, vector<8x128xf32>,
    %c0_309 = arith.constant 0 : index
    %c0_310 = arith.constant 0 : index
    %570 = vector.load %arg10[%c0_309, %c0_310] : memref<8x128xf32, #tpu.memory_space<vmem>>, vector<8x128xf32>
    tpu.vector_store %arg10[%c0_309, %c0_310], %568 {strides = array<i32>} : memref<8x128xf32, #tpu.memory_space<vmem>>, vector<8x128xf32>,
    %c1_i32_311 = arith.constant 1 : i32
    %571 = arith.subi %c7_i32, %c1_i32_311 : i32
    %c8_i32_312 = arith.constant 8 : i32
    %572 = arith.muli %571, %c8_i32_312 : i32
    %573 = tpu.assume_multiple %572, 8 : i32
    %c0_313 = arith.constant 0 : index
    %c0_314 = arith.constant 0 : index
    %574 = vector.load %arg12[%c0_313, %c0_314] : memref<8x128xf32, #tpu.memory_space<vmem>>, vector<8x128xf32>
    %c0_315 = arith.constant 0 : index
    %c0_316 = arith.constant 0 : index
    %575 = vector.load %arg5[%c0_315, %c0_316] : memref<128x512xf32, #tpu.memory_space<vmem>>, vector<128x512xf32>
    %cst_317 = arith.constant dense<0.000000e+00> : vector<8x512xf32>
    %576 = tpu.matmul %574, %575, %cst_317 {dimension_numbers = #tpu.dot_dimension_numbers<[1], [0], [0], [1], [0, 0, 1, 1], [], []>} : vector<8x128xf32>, vector<128x512xf32>, vector<8x512xf32> -> vector<8x512xf32>
    %577 = arith.addf %534, %576 : vector<8x512xf32>
    %578 = vector.extract_strided_slice %577 {offsets = [0, 0], sizes = [8, 128], strides = [1, 1]} : vector<8x512xf32> to vector<8x128xf32>
    %579 = arith.negf %578 : vector<8x128xf32>
    %580 = math.exp %579 : vector<8x128xf32>
    %cst_318 = arith.constant 1.000000e+00 : f32
    %581 = vector.broadcast %cst_318 : f32 to vector<8x128xf32>
    %582 = arith.addf %581, %580 : vector<8x128xf32>
    %583 = arith.divf %581, %582 : vector<8x128xf32>
    %584 = vector.extract_strided_slice %577 {offsets = [0, 128], sizes = [8, 128], strides = [1, 1]} : vector<8x512xf32> to vector<8x128xf32>
    %585 = arith.negf %584 : vector<8x128xf32>
    %586 = math.exp %585 : vector<8x128xf32>
    %cst_319 = arith.constant 1.000000e+00 : f32
    %587 = vector.broadcast %cst_319 : f32 to vector<8x128xf32>
    %588 = arith.addf %587, %586 : vector<8x128xf32>
    %589 = arith.divf %587, %588 : vector<8x128xf32>
    %590 = vector.extract_strided_slice %577 {offsets = [0, 256], sizes = [8, 128], strides = [1, 1]} : vector<8x512xf32> to vector<8x128xf32>
    %591 = math.tanh %590 : vector<8x128xf32>
    %592 = vector.extract_strided_slice %577 {offsets = [0, 384], sizes = [8, 128], strides = [1, 1]} : vector<8x512xf32> to vector<8x128xf32>
    %593 = arith.negf %592 : vector<8x128xf32>
    %594 = math.exp %593 : vector<8x128xf32>
    %cst_320 = arith.constant 1.000000e+00 : f32
    %595 = vector.broadcast %cst_320 : f32 to vector<8x128xf32>
    %596 = arith.addf %595, %594 : vector<8x128xf32>
    %597 = arith.divf %595, %596 : vector<8x128xf32>
    %c0_321 = arith.constant 0 : index
    %c0_322 = arith.constant 0 : index
    %598 = vector.load %arg13[%c0_321, %c0_322] : memref<8x128xf32, #tpu.memory_space<vmem>>, vector<8x128xf32>
    %599 = arith.mulf %589, %598 : vector<8x128xf32>
    %600 = arith.mulf %583, %591 : vector<8x128xf32>
    %601 = arith.addf %599, %600 : vector<8x128xf32>
    %602 = math.tanh %601 : vector<8x128xf32>
    %603 = arith.mulf %597, %602 : vector<8x128xf32>
    %c0_323 = arith.constant 0 : index
    %c0_324 = arith.constant 0 : index
    %604 = vector.load %arg13[%c0_323, %c0_324] : memref<8x128xf32, #tpu.memory_space<vmem>>, vector<8x128xf32>
    tpu.vector_store %arg13[%c0_323, %c0_324], %601 {strides = array<i32>} : memref<8x128xf32, #tpu.memory_space<vmem>>, vector<8x128xf32>,
    %c0_325 = arith.constant 0 : index
    %c0_326 = arith.constant 0 : index
    %605 = vector.load %arg12[%c0_325, %c0_326] : memref<8x128xf32, #tpu.memory_space<vmem>>, vector<8x128xf32>
    tpu.vector_store %arg12[%c0_325, %c0_326], %603 {strides = array<i32>} : memref<8x128xf32, #tpu.memory_space<vmem>>, vector<8x128xf32>,
    %606 = arith.index_cast %573 : i32 to index
    %c0_327 = arith.constant 0 : index
    %607 = vector.load %arg7[%606, %c0_327] : memref<64x128xf32, #tpu.memory_space<vmem>>, vector<8x128xf32>
    tpu.vector_store %arg7[%606, %c0_327], %603 {strides = array<i32>} : memref<64x128xf32, #tpu.memory_space<vmem>>, vector<8x128xf32>,
    %c0_328 = arith.constant 0 : index
    %c0_329 = arith.constant 0 : index
    %608 = vector.load %arg9[%c0_328, %c0_329] : memref<8x128xf32, #tpu.memory_space<vmem>>, vector<8x128xf32>
    tpu.vector_store %arg9[%c0_328, %c0_329], %568 {strides = array<i32>} : memref<8x128xf32, #tpu.memory_space<vmem>>, vector<8x128xf32>,
    %c7_i32_330 = arith.constant 7 : i32
    %c0_331 = arith.constant 0 : index
    %c0_332 = arith.constant 0 : index
    %609 = vector.load %arg9[%c0_331, %c0_332] : memref<8x128xf32, #tpu.memory_space<vmem>>, vector<8x128xf32>
    %c0_333 = arith.constant 0 : index
    %c0_334 = arith.constant 0 : index
    %610 = vector.load %arg4[%c0_333, %c0_334] : memref<128x512xf32, #tpu.memory_space<vmem>>, vector<128x512xf32>
    %cst_335 = arith.constant dense<0.000000e+00> : vector<8x512xf32>
    %611 = tpu.matmul %609, %610, %cst_335 {dimension_numbers = #tpu.dot_dimension_numbers<[1], [0], [0], [1], [0, 0, 1, 1], [], []>} : vector<8x128xf32>, vector<128x512xf32>, vector<8x512xf32> -> vector<8x512xf32>
    %c0_336 = arith.constant 0 : index
    %c0_337 = arith.constant 0 : index
    %612 = vector.load %arg6[%c0_336, %c0_337] : memref<1x512xf32, #tpu.memory_space<vmem>>, vector<1x512xf32>
    %613 = vector.broadcast %612 : vector<1x512xf32> to vector<8x512xf32>
    %614 = arith.addf %611, %613 : vector<8x512xf32>
    %c0_338 = arith.constant 0 : index
    %c0_339 = arith.constant 0 : index
    %615 = vector.load %arg12[%c0_338, %c0_339] : memref<8x128xf32, #tpu.memory_space<vmem>>, vector<8x128xf32>
    %c0_340 = arith.constant 0 : index
    %c0_341 = arith.constant 0 : index
    %616 = vector.load %arg5[%c0_340, %c0_341] : memref<128x512xf32, #tpu.memory_space<vmem>>, vector<128x512xf32>
    %cst_342 = arith.constant dense<0.000000e+00> : vector<8x512xf32>
    %617 = tpu.matmul %615, %616, %cst_342 {dimension_numbers = #tpu.dot_dimension_numbers<[1], [0], [0], [1], [0, 0, 1, 1], [], []>} : vector<8x128xf32>, vector<128x512xf32>, vector<8x512xf32> -> vector<8x512xf32>
    %618 = arith.addf %614, %617 : vector<8x512xf32>
    %619 = vector.extract_strided_slice %618 {offsets = [0, 0], sizes = [8, 128], strides = [1, 1]} : vector<8x512xf32> to vector<8x128xf32>
    %620 = arith.negf %619 : vector<8x128xf32>
    %621 = math.exp %620 : vector<8x128xf32>
    %cst_343 = arith.constant 1.000000e+00 : f32
    %622 = vector.broadcast %cst_343 : f32 to vector<8x128xf32>
    %623 = arith.addf %622, %621 : vector<8x128xf32>
    %624 = arith.divf %622, %623 : vector<8x128xf32>
    %625 = vector.extract_strided_slice %618 {offsets = [0, 128], sizes = [8, 128], strides = [1, 1]} : vector<8x512xf32> to vector<8x128xf32>
    %626 = arith.negf %625 : vector<8x128xf32>
    %627 = math.exp %626 : vector<8x128xf32>
    %cst_344 = arith.constant 1.000000e+00 : f32
    %628 = vector.broadcast %cst_344 : f32 to vector<8x128xf32>
    %629 = arith.addf %628, %627 : vector<8x128xf32>
    %630 = arith.divf %628, %629 : vector<8x128xf32>
    %631 = vector.extract_strided_slice %618 {offsets = [0, 256], sizes = [8, 128], strides = [1, 1]} : vector<8x512xf32> to vector<8x128xf32>
    %632 = math.tanh %631 : vector<8x128xf32>
    %633 = vector.extract_strided_slice %618 {offsets = [0, 384], sizes = [8, 128], strides = [1, 1]} : vector<8x512xf32> to vector<8x128xf32>
    %634 = arith.negf %633 : vector<8x128xf32>
    %635 = math.exp %634 : vector<8x128xf32>
    %cst_345 = arith.constant 1.000000e+00 : f32
    %636 = vector.broadcast %cst_345 : f32 to vector<8x128xf32>
    %637 = arith.addf %636, %635 : vector<8x128xf32>
    %638 = arith.divf %636, %637 : vector<8x128xf32>
    %c0_346 = arith.constant 0 : index
    %c0_347 = arith.constant 0 : index
    %639 = vector.load %arg13[%c0_346, %c0_347] : memref<8x128xf32, #tpu.memory_space<vmem>>, vector<8x128xf32>
    %640 = arith.mulf %630, %639 : vector<8x128xf32>
    %641 = arith.mulf %624, %632 : vector<8x128xf32>
    %642 = arith.addf %640, %641 : vector<8x128xf32>
    %643 = math.tanh %642 : vector<8x128xf32>
    %644 = arith.mulf %638, %643 : vector<8x128xf32>
    %c0_348 = arith.constant 0 : index
    %c0_349 = arith.constant 0 : index
    %645 = vector.load %arg13[%c0_348, %c0_349] : memref<8x128xf32, #tpu.memory_space<vmem>>, vector<8x128xf32>
    tpu.vector_store %arg13[%c0_348, %c0_349], %642 {strides = array<i32>} : memref<8x128xf32, #tpu.memory_space<vmem>>, vector<8x128xf32>,
    %c0_350 = arith.constant 0 : index
    %c0_351 = arith.constant 0 : index
    %646 = vector.load %arg12[%c0_350, %c0_351] : memref<8x128xf32, #tpu.memory_space<vmem>>, vector<8x128xf32>
    tpu.vector_store %arg12[%c0_350, %c0_351], %644 {strides = array<i32>} : memref<8x128xf32, #tpu.memory_space<vmem>>, vector<8x128xf32>,
    %c56 = arith.constant 56 : index
    %c0_352 = arith.constant 0 : index
    %647 = vector.load %arg7[%c56, %c0_352] : memref<64x128xf32, #tpu.memory_space<vmem>>, vector<8x128xf32>
    tpu.vector_store %arg7[%c56, %c0_352], %644 {strides = array<i32>} : memref<64x128xf32, #tpu.memory_space<vmem>>, vector<8x128xf32>,
    return
  }
}

</mosaic_0001>

<bundles_post_ra>
// kernel: autoencoder_forward.1
= control target key start
LH: loop header
LB: loop body
LE: loop exit
PB: predicated region body
PF: predicated region fallthrough
CT: control target
= control target key end

     0   :  { %v6581_v1 = vmov 0   ;;  %s12506_s1 = inlined_call_operand.vmem [shape: bf16[128,512], index: 1, kind: input, shape index: {}]   ;;  %s12507_s0 = inlined_call_operand.vmem [shape: bf16[64,128], index: 0, kind: input, shape index: {}]   ;;  %s12508_s2 = inlined_call_operand.vmem [shape: f32[128,512], index: 2, kind: input, shape index: {}]   ;;  %s12509_s4 = inlined_call_operand.vmem [shape: f32[128,512], index: 4, kind: input, shape index: {}]   ;;  %s12510_s3 = inlined_call_operand.vmem [shape: f32[1,512], index: 3, kind: input, shape index: {}]   ;;  %s12511_s5 = inlined_call_operand.vmem [shape: f32[128,512], index: 5, kind: input, shape index: {}]   ;;  %s12512_s6 = inlined_call_operand.vmem [shape: f32[1,512], index: 6, kind: input, shape index: {}]   ;;  %s12513_s7 = inlined_call_operand.vmem [shape: f32[64,128], index: 7, kind: output, shape index: {}]  }
   0x1   :  { %v6273_v0 = vld [vmem:[%s12506_s1 + $0xe4] ss:$16 sps:$4 sm:$0xff]   ;;  %305 = vmatprep.mubr.bf16.mxu0 %v6581_v1  ;;  %378 = vmatprep.mubr.bf16.mxu1 %v6581_v1  ;;  %v6275_v2 = vld [vmem:[%s12506_s1 + $0xec] ss:$16 sps:$4 sm:$0xff]   ;;  %v6277_v3 = vld [vmem:[%s12506_s1 + $0xe0] ss:$16 sps:$4 sm:$0xff]  }
   0x2   :  { %273 = vmatprep.subr.bf16.mxu0 %v6273_v0  ;;  %v6278_v4 = vld [vmem:[%s12506_s1 + $0xe8] ss:$16 sps:$4 sm:$0xff]   ;;  %346 = vmatprep.subr.bf16.mxu1 %v6275_v2  ;;  %v6279_v5 = vld [vmem:[%s12506_s1 + $0xc4] ss:$16 sps:$4 sm:$0xff]   ;;  %v6281_v6 = vld [vmem:[%s12506_s1 + $0xcc] ss:$16 sps:$4 sm:$0xff]  }
   0x3   :  { %274 = vmatpush1.bf16.msra.mxu0 %v6277_v3  ;;  %347 = vmatpush1.bf16.msra.mxu1 %v6278_v4  ;;  %v6283_v7 = vld [vmem:[%s12506_s1 + $0xc0] ss:$16 sps:$4 sm:$0xff]   ;;  %v6284_v8 = vld [vmem:[%s12506_s1 + $0xc8] ss:$16 sps:$4 sm:$0xff]   ;;  %v6285_v9 = vld [vmem:[%s12506_s1 + $0xa4] ss:$16 sps:$4 sm:$0xff]  }
   0x4   :  { %275 = vmatprep.subr.bf16.mxu0 %v6279_v5  ;;  %348 = vmatprep.subr.bf16.mxu1 %v6281_v6  ;;  %v6287_v10 = vld [vmem:[%s12506_s1 + $0xac] ss:$16 sps:$4 sm:$0xff]   ;;  %v6289_v11 = vld [vmem:[%s12506_s1 + $0xa0] ss:$16 sps:$4 sm:$0xff]   ;;  %v6290_v12 = vld [vmem:[%s12506_s1 + $0xa8] ss:$16 sps:$4 sm:$0xff]  }
   0x5   :  { %v6291_v13 = vld [vmem:[%s12506_s1 + $0x84] ss:$16 sps:$4 sm:$0xff]   ;;  %v6293_v14 = vld [vmem:[%s12506_s1 + $0x8c] ss:$16 sps:$4 sm:$0xff]   ;;  %v6295_v15 = vld [vmem:[%s12506_s1 + $0x80] ss:$16 sps:$4 sm:$0xff]  }
   0x6   :  { %v6296_v16 = vld [vmem:[%s12506_s1 + $0x88] ss:$16 sps:$4 sm:$0xff]   ;;  %v6297_v17 = vld [vmem:[%s12506_s1 + $0x64] ss:$16 sps:$4 sm:$0xff]   ;;  %v6299_v18 = vld [vmem:[%s12506_s1 + $0x6c] ss:$16 sps:$4 sm:$0xff]  }
   0x7   :  { %276 = vmatpush1.bf16.msra.mxu0 %v6283_v7  ;;  %349 = vmatpush1.bf16.msra.mxu1 %v6284_v8  ;;  %v6301_v19 = vld [vmem:[%s12506_s1 + $0x60] ss:$16 sps:$4 sm:$0xff]   ;;  %v6302_v20 = vld [vmem:[%s12506_s1 + $0x68] ss:$16 sps:$4 sm:$0xff]   ;;  %v6303_v21 = vld [vmem:[%s12506_s1 + $0x44] ss:$16 sps:$4 sm:$0xff]  }
   0x8   :  { %277 = vmatprep.subr.bf16.mxu0 %v6285_v9  ;;  %350 = vmatprep.subr.bf16.mxu1 %v6287_v10  ;;  %v6305_v22 = vld [vmem:[%s12506_s1 + $0x4c] ss:$16 sps:$4 sm:$0xff]   ;;  %v6307_v23 = vld [vmem:[%s12506_s1 + $0x40] ss:$16 sps:$4 sm:$0xff]   ;;  %v6308_v24 = vld [vmem:[%s12506_s1 + $0x48] ss:$16 sps:$4 sm:$0xff]  }
   0x9   :  { %v6309_v25 = vld [vmem:[%s12506_s1 + $0x24] ss:$16 sps:$4 sm:$0xff]   ;;  %v6311_v26 = vld [vmem:[%s12506_s1 + $0x2c] ss:$16 sps:$4 sm:$0xff]   ;;  %v6313_v27 = vld [vmem:[%s12506_s1 + $0x20] ss:$16 sps:$4 sm:$0xff]  }
   0xa   :  { %v6314_v28 = vld [vmem:[%s12506_s1 + $0x28] ss:$16 sps:$4 sm:$0xff]   ;;  %v6315_v29 = vld [vmem:[%s12506_s1 + $0x4] ss:$16 sps:$4 sm:$0xff]   ;;  %v6317_v30 = vld [vmem:[%s12506_s1 + $0xc] ss:$16 sps:$4 sm:$0xff]  }
   0xb   :  { %278 = vmatpush1.bf16.msra.mxu0 %v6289_v11  ;;  %351 = vmatpush1.bf16.msra.mxu1 %v6290_v12  ;;  %v6319_v31 = vld [vmem:[%s12506_s1] ss:$16 sps:$4 sm:$0xff]   ;;  %v6320_v32 = vld [vmem:[%s12506_s1 + $0x8] ss:$16 sps:$4 sm:$0xff]  }
   0xc   :  { %279 = vmatprep.subr.bf16.mxu0 %v6291_v13  ;;  %352 = vmatprep.subr.bf16.mxu1 %v6293_v14  ;;  %v6724_v33 = vld [vmem:[%s12508_s2 + $0x1e8] sm:$0xff]  ;;  %v6729_v34 = vld [vmem:[%s12508_s2 + $0x1f8] sm:$0xff]  ;;  %v6321_v35 = vld [vmem:[%s12507_s0] sm:$0xff]  }
   0xd   :  { %v6739_v36 = vld [vmem:[%s12508_s2 + $0x1e0] sm:$0xff]  ;;  %v6744_v37 = vld [vmem:[%s12508_s2 + $0x1f0] sm:$0xff]  ;;  %v6749_v38 = vld [vmem:[%s12508_s2 + $0x1c8] sm:$0xff] }
   0xe   :  { %v6754_v39 = vld [vmem:[%s12508_s2 + $0x1d8] sm:$0xff]  ;;  %v6759_v40 = vld [vmem:[%s12508_s2 + $0x1c0] sm:$0xff]  ;;  %v6764_v41 = vld [vmem:[%s12508_s2 + $0x1d0] sm:$0xff] }
   0xf   :  { %280 = vmatpush1.bf16.msra.mxu0 %v6295_v15  ;;  %353 = vmatpush1.bf16.msra.mxu1 %v6296_v16  ;;  %v6771_v42 = vld [vmem:[%s12508_s2 + $0x1a8] sm:$0xff]  ;;  %v6776_v43 = vld [vmem:[%s12508_s2 + $0x1b8] sm:$0xff]  ;;  %v6783_v44 = vld [vmem:[%s12508_s2 + $0x1a0] sm:$0xff] }
  0x10   :  { %281 = vmatprep.subr.bf16.mxu0 %v6297_v17  ;;  %354 = vmatprep.subr.bf16.mxu1 %v6299_v18  ;;  %v6788_v45 = vld [vmem:[%s12508_s2 + $0x1b0] sm:$0xff]  ;;  %v6795_v46 = vld [vmem:[%s12508_s2 + $0x188] sm:$0xff]  ;;  %v6800_v47 = vld [vmem:[%s12508_s2 + $0x198] sm:$0xff] }
  0x11   :  { %v6807_v48 = vld [vmem:[%s12508_s2 + $0x180] sm:$0xff]  ;;  %v6812_v49 = vld [vmem:[%s12508_s2 + $0x190] sm:$0xff]  ;;  %v6322_v50 = vld [vmem:[%s12507_s0 + $0x8] sm:$0xff]  }
  0x12   :  { %v6826_v51 = vld [vmem:[%s12508_s2 + $0x168] sm:$0xff]  ;;  %v6831_v52 = vld [vmem:[%s12508_s2 + $0x178] sm:$0xff]  ;;  %v6838_v53 = vld [vmem:[%s12508_s2 + $0x160] sm:$0xff] }
  0x13   :  { %282 = vmatpush1.bf16.msra.mxu0 %v6301_v19  ;;  %355 = vmatpush1.bf16.msra.mxu1 %v6302_v20  ;;  %v6843_v54 = vld [vmem:[%s12508_s2 + $0x170] sm:$0xff]  ;;  %v6848_v55 = vld [vmem:[%s12508_s2 + $0x148] sm:$0xff]  ;;  %v6853_v56 = vld [vmem:[%s12508_s2 + $0x158] sm:$0xff] }
  0x14   :  { %283 = vmatprep.subr.bf16.mxu0 %v6303_v21  ;;  %356 = vmatprep.subr.bf16.mxu1 %v6305_v22  ;;  %v6860_v57 = vld [vmem:[%s12508_s2 + $0x140] sm:$0xff]  ;;  %v6865_v58 = vld [vmem:[%s12508_s2 + $0x150] sm:$0xff]  ;;  %v6872_v59 = vld [vmem:[%s12508_s2 + $0x128] sm:$0xff] }
  0x15   :  { %v6877_v60 = vld [vmem:[%s12508_s2 + $0x138] sm:$0xff]  ;;  %v6884_v61 = vld [vmem:[%s12508_s2 + $0x120] sm:$0xff]  ;;  %v6889_v62 = vld [vmem:[%s12508_s2 + $0x130] sm:$0xff] }
  0x16   :  { %v6896_v63 = vld [vmem:[%s12508_s2 + $0x108] sm:$0xff]  ;;  %v6901_v0 = vld [vmem:[%s12508_s2 + $0x118] sm:$0xff]  ;;  %v6910_v2 = vld [vmem:[%s12508_s2 + $0x100] sm:$0xff] }
  0x17   :  { %284 = vmatpush1.bf16.msra.mxu0 %v6307_v23  ;;  %357 = vmatpush1.bf16.msra.mxu1 %v6308_v24  ;;  %v6915_v3 = vld [vmem:[%s12508_s2 + $0x110] sm:$0xff]  ;;  %v6927_v5 = vld [vmem:[%s12508_s2 + $0xe8] sm:$0xff]  ;;  %v6932_v6 = vld [vmem:[%s12508_s2 + $0xf8] sm:$0xff] }
  0x18   :  { %285 = vmatprep.subr.bf16.mxu0 %v6309_v25  ;;  %358 = vmatprep.subr.bf16.mxu1 %v6311_v26  ;;  %v6323_v4 = vld [vmem:[%s12507_s0 + $0x10] sm:$0xff]   ;;  %v6939_v7 = vld [vmem:[%s12508_s2 + $0xe0] sm:$0xff]  ;;  %v6949_v9 = vld [vmem:[%s12508_s2 + $0xc8] sm:$0xff] }
  0x19   :  { %v6944_v8 = vld [vmem:[%s12508_s2 + $0xf0] sm:$0xff]  ;;  %v6954_v10 = vld [vmem:[%s12508_s2 + $0xd8] sm:$0xff]  ;;  %v6961_v11 = vld [vmem:[%s12508_s2 + $0xc0] sm:$0xff] }
  0x1a   :  { %v6966_v12 = vld [vmem:[%s12508_s2 + $0xd0] sm:$0xff]  ;;  %v6973_v13 = vld [vmem:[%s12508_s2 + $0xa8] sm:$0xff]  ;;  %v6978_v14 = vld [vmem:[%s12508_s2 + $0xb8] sm:$0xff] }
  0x1b   :  { %286 = vmatpush1.bf16.msra.mxu0 %v6313_v27  ;;  %359 = vmatpush1.bf16.msra.mxu1 %v6314_v28  ;;  %v6985_v15 = vld [vmem:[%s12508_s2 + $0xa0] sm:$0xff]  ;;  %v6990_v16 = vld [vmem:[%s12508_s2 + $0xb0] sm:$0xff]  ;;  %v6997_v17 = vld [vmem:[%s12508_s2 + $0x88] sm:$0xff] }
  0x1c   :  { %287 = vmatprep.subr.bf16.mxu0 %v6315_v29  ;;  %360 = vmatprep.subr.bf16.mxu1 %v6317_v30  ;;  %13000 = vst [vmem:[#allocation8_spill] sm:$0xff] %v6997_v17  ;;  %v7002_v18 = vld [vmem:[%s12508_s2 + $0x98] sm:$0xff]  ;;  %v7011_v19 = vld [vmem:[%s12508_s2 + $0x80] sm:$0xff]  ;;  %v7016_v20 = vld [vmem:[%s12508_s2 + $0x90] sm:$0xff] }
  0x1d   :  { %13001 = vst [vmem:[#allocation9_spill] sm:$0xff] %v7002_v18  ;;  %13002 = vst [vmem:[#allocation10_spill] sm:$0xff] %v7011_v19  ;;  %v6324_v21 = vld [vmem:[%s12507_s0 + $0x18] sm:$0xff]   ;;  %v7028_v22 = vld [vmem:[%s12508_s2 + $0x68] sm:$0xff] }
  0x1e   :  { %13003 = vst [vmem:[#allocation11_spill] sm:$0xff] %v7016_v20  ;;  %13004 = vst [vmem:[#allocation12_spill] sm:$0xff] %v7028_v22  ;;  %v7033_v23 = vld [vmem:[%s12508_s2 + $0x78] sm:$0xff]  ;;  %v7040_v24 = vld [vmem:[%s12508_s2 + $0x60] sm:$0xff] }
  0x1f   :  { %288 = vmatpush1.bf16.msra.mxu0 %v6319_v31  ;;  %361 = vmatpush1.bf16.msra.mxu1 %v6320_v32  ;;  %13005 = vst [vmem:[#allocation13_spill] sm:$0xff] %v7033_v23  ;;  %13006 = vst [vmem:[#allocation14_spill] sm:$0xff] %v7040_v24  ;;  %v7050_v25 = vld [vmem:[%s12508_s2 + $0x48] sm:$0xff]  ;;  %v7055_v26 = vld [vmem:[%s12508_s2 + $0x58] sm:$0xff] }
  0x20   :  { %524 = vmatprep.subr.mxu0 %v6724_v33  ;;  %595 = vmatprep.subr.mxu1 %v6729_v34  ;;  %13008 = vst [vmem:[#allocation16_spill] sm:$0xff] %v7050_v25  ;;  %13009 = vst [vmem:[#allocation17_spill] sm:$0xff] %v7055_v26  ;;  %v7062_v27 = vld [vmem:[%s12508_s2 + $0x40] sm:$0xff]  ;;  %v7067_v28 = vld [vmem:[%s12508_s2 + $0x50] sm:$0xff] }
  0x21   :  { %13010 = vst [vmem:[#allocation18_spill] sm:$0xff] %v7062_v27  ;;  %13011 = vst [vmem:[#allocation19_spill] sm:$0xff] %v7067_v28  ;;  %v7074_v29 = vld [vmem:[%s12508_s2 + $0x28] sm:$0xff]  ;;  %v7079_v30 = vld [vmem:[%s12508_s2 + $0x38] sm:$0xff] }
  0x22   :  { %306 = vmatmul.mubr.bf16.vlgmr.msra.gmra.mxu0 %v6321_v35  ;;  %379 = vmatmul.mubr.bf16.vlgmr.msra.gmra.mxu1 %v6321_v35  ;;  %13012 = vst [vmem:[#allocation20_spill] sm:$0xff] %v7074_v29  ;;  %13013 = vst [vmem:[#allocation21_spill] sm:$0xff] %v7079_v30  ;;  %v7086_v31 = vld [vmem:[%s12508_s2 + $0x20] sm:$0xff]  ;;  %v7091_v32 = vld [vmem:[%s12508_s2 + $0x30] sm:$0xff] }
  0x23   :  { %525 = vmatpush1.msra.mxu0 %v6739_v36  ;;  %596 = vmatpush1.msra.mxu1 %v6744_v37  ;;  %13014 = vst [vmem:[#allocation22_spill] sm:$0xff] %v7086_v31  ;;  %13015 = vst [vmem:[#allocation23_spill] sm:$0xff] %v7091_v32  ;;  %v7098_v35 = vld [vmem:[%s12508_s2 + $0x8] sm:$0xff] }
  0x24   :  { %526 = vmatprep.subr.mxu0 %v6749_v38  ;;  %597 = vmatprep.subr.mxu1 %v6754_v39  ;;  %13016 = vst [vmem:[#allocation24_spill] sm:$0xff] %v7098_v35 }
  0x25   :  { %527 = vmatpush1.msra.mxu0 %v6759_v40  ;;  %598 = vmatpush1.msra.mxu1 %v6764_v41 }
  0x26   :  { %528 = vmatprep.subr.mxu0 %v6771_v42  ;;  %599 = vmatprep.subr.mxu1 %v6776_v43 }
  0x27   :  { %529 = vmatpush1.msra.mxu0 %v6783_v44  ;;  %600 = vmatpush1.msra.mxu1 %v6788_v45 }
  0x28   :  { %530 = vmatprep.subr.mxu0 %v6795_v46  ;;  %601 = vmatprep.subr.mxu1 %v6800_v47 }
  0x29   :  { %315 = vmatprep.mubr.bf16.mxu0 %v6581_v1  ;;  %388 = vmatprep.mubr.bf16.mxu1 %v6581_v1 }
  0x2a   :  { %531 = vmatpush1.msra.mxu0 %v6807_v48  ;;  %602 = vmatpush1.msra.mxu1 %v6812_v49 }
  0x2b   :  { %316 = vmatmul.mubr.bf16.gmra.mxu0 %v6322_v50  ;;  %389 = vmatmul.mubr.bf16.gmra.mxu1 %v6322_v50  ;;  %v7103_v50 = vld [vmem:[%s12508_s2 + $0x18] sm:$0xff] }
  0x2c   :  { %532 = vmatprep.subr.mxu0 %v6826_v51  ;;  %603 = vmatprep.subr.mxu1 %v6831_v52  ;;  %13017 = vst [vmem:[#allocation25_spill] sm:$0xff] %v7103_v50 }
  0x2d   :  { %533 = vmatpush1.msra.mxu0 %v6838_v53  ;;  %604 = vmatpush1.msra.mxu1 %v6843_v54 }
  0x2e   :  { %534 = vmatprep.subr.mxu0 %v6848_v55  ;;  %605 = vmatprep.subr.mxu1 %v6853_v56 }
  0x2f   :  { %535 = vmatpush1.msra.mxu0 %v6860_v57  ;;  %606 = vmatpush1.msra.mxu1 %v6865_v58 }
  0x30   :  { %536 = vmatprep.subr.mxu0 %v6872_v59  ;;  %607 = vmatprep.subr.mxu1 %v6877_v60 }
  0x31   :  { %537 = vmatpush1.msra.mxu0 %v6884_v61  ;;  %608 = vmatpush1.msra.mxu1 %v6889_v62 }
  0x32   :  { %538 = vmatprep.subr.mxu0 %v6896_v63  ;;  %609 = vmatprep.subr.mxu1 %v6901_v0 }
  0x33   :  { %325 = vmatprep.mubr.bf16.mxu0 %v6581_v1  ;;  %398 = vmatprep.mubr.bf16.mxu1 %v6581_v1 }
  0x34   :  { %539 = vmatpush1.msra.mxu0 %v6910_v2  ;;  %610 = vmatpush1.msra.mxu1 %v6915_v3 }
  0x35   :  { %326 = vmatmul.mubr.bf16.gmra.mxu0 %v6323_v4  ;;  %399 = vmatmul.mubr.bf16.gmra.mxu1 %v6323_v4  ;;  %v7110_v4 = vld [vmem:[%s12508_s2] sm:$0xff] }
  0x36   :  { %540 = vmatprep.subr.mxu0 %v6927_v5  ;;  %611 = vmatprep.subr.mxu1 %v6932_v6  ;;  %13018 = vst [vmem:[#allocation26_spill] sm:$0xff] %v7110_v4 }
  0x37   :  { %541 = vmatpush1.msra.mxu0 %v6939_v7  ;;  %612 = vmatpush1.msra.mxu1 %v6944_v8 }
  0x38   :  { %542 = vmatprep.subr.mxu0 %v6949_v9  ;;  %613 = vmatprep.subr.mxu1 %v6954_v10 }
  0x39   :  { %543 = vmatpush1.msra.mxu0 %v6961_v11  ;;  %614 = vmatpush1.msra.mxu1 %v6966_v12 }
  0x3a   :  { %544 = vmatprep.subr.mxu0 %v6973_v13  ;;  %615 = vmatprep.subr.mxu1 %v6978_v14 }
  0x3b   :  { %545 = vmatpush1.msra.mxu0 %v6985_v15  ;;  %616 = vmatpush1.msra.mxu1 %v6990_v16 }
  0x3c   :  { %546 = vmatprep.subr.mxu0 %v6997_v17  ;;  %617 = vmatprep.subr.mxu1 %v7002_v18 }
  0x3d   :  { %335 = vmatprep.mubr.bf16.mxu0 %v6581_v1  ;;  %408 = vmatprep.mubr.bf16.mxu1 %v6581_v1  ;;  %v7045_v1 = vld [vmem:[%s12508_s2 + $0x70] sm:$0xff] }
  0x3e   :  { %547 = vmatpush1.msra.mxu0 %v7011_v19  ;;  %618 = vmatpush1.msra.mxu1 %v7016_v20  ;;  %13007 = vst [vmem:[#allocation15_spill] sm:$0xff] %v7045_v1 }
  0x3f   :  { %336 = vmatmul.mubr.bf16.gmra.mxu0 %v6324_v21  ;;  %409 = vmatmul.mubr.bf16.gmra.mxu1 %v6324_v21  ;;  %v7117_v21 = vld [vmem:[%s12508_s2 + $0x10] sm:$0xff] }
  0x40   :  { %548 = vmatprep.subr.mxu0 %v7028_v22  ;;  %619 = vmatprep.subr.mxu1 %v7033_v23  ;;  %13019 = vst [vmem:[#allocation27_spill] sm:$0xff] %v7117_v21 }
  0x41   :  { %549 = vmatpush1.msra.mxu0 %v7040_v24  ;;  %620 = vmatpush1.msra.mxu1 %v7045_v1 }
  0x42   :  { %550 = vmatprep.subr.mxu0 %v7050_v25  ;;  %621 = vmatprep.subr.mxu1 %v7055_v26 }
  0x43   :  { %551 = vmatpush1.msra.mxu0 %v7062_v27  ;;  %622 = vmatpush1.msra.mxu1 %v7067_v28 }
  0x44   :  { %552 = vmatprep.subr.mxu0 %v7074_v29  ;;  %623 = vmatprep.subr.mxu1 %v7079_v30  ;;  %v12518_v30 = vmov 0.0   ;;  %v7397_v29 = vld [vmem:[%s12509_s4 + $0x98] sm:$0xff] }
  0x45   :  { %553 = vmatpush1.msra.mxu0 %v7086_v31  ;;  %624 = vmatpush1.msra.mxu1 %v7091_v32  ;;  %v7363_v32 = vld [vmem:[%s12509_s4 + $0xd0] sm:$0xff]  ;;  %v7380_v31 = vld [vmem:[%s12509_s4 + $0xa0] sm:$0xff]  ;;  %13065 = vst [vmem:[#allocation73_spill] sm:$0xff] %v7397_v29 }
  0x46   :  { %554 = vmatprep.subr.mxu0 %v7098_v35  ;;  %625 = vmatprep.subr.mxu1 %v7103_v50  ;;  %v7132_v50 = vld [vmem:[%s12509_s4 + $0x1e8] sm:$0xff]  ;;  %13059 = vst [vmem:[#allocation67_spill] sm:$0xff] %v7363_v32  ;;  %13062 = vst [vmem:[#allocation70_spill] sm:$0xff] %v7380_v31 }
  0x47   :  { %555 = vmatpush1.msra.mxu0 %v7110_v4  ;;  %588 = vmatprep.mubr.f32.mxu0 %v12518_v30  ;;  %13020 = vst [vmem:[#allocation28_spill] sm:$0xff] %v7132_v50  ;;  %v7137_v4 = vld [vmem:[%s12509_s4 + $0x1f8] sm:$0xff]  ;;  %v7346_v35 = vld [vmem:[%s12509_s4 + $0xc8] sm:$0xff] }
  0x48   :  { %626 = vmatpush1.msra.mxu1 %v7117_v21  ;;  %659 = vmatprep.mubr.f32.mxu1 %v12518_v30  ;;  %13021 = vst [vmem:[#allocation29_spill] sm:$0xff] %v7137_v4  ;;  %v7144_v21 = vld [vmem:[%s12509_s4 + $0x1e0] sm:$0xff]  ;;  %13056 = vst [vmem:[#allocation64_spill] sm:$0xff] %v7346_v35 }
  0x49   :  { %589 = vmatmul.mubr.f32.vlgmr.msra.gmra.mxu0 %v12518_v30  ;;  %660 = vmatmul.mubr.f32.vlgmr.msra.gmra.mxu1 %v12518_v30  ;;  %13022 = vst [vmem:[#allocation30_spill] sm:$0xff] %v7144_v21 }
  0x4a   :  { %849 = vmatprep.mubr.f32.mxu0 %v12518_v30  ;;  %920 = vmatprep.mubr.f32.mxu1 %v12518_v30  ;;  %v7149_v30 = vld [vmem:[%s12509_s4 + $0x1f0] sm:$0xff] }
  0x4b   :  { %785 = vmatprep.subr.mxu0 %v7132_v50  ;;  %856 = vmatprep.subr.mxu1 %v7137_v4  ;;  %13023 = vst [vmem:[#allocation31_spill] sm:$0xff] %v7149_v30  ;;  %v7156_v50 = vld [vmem:[%s12509_s4 + $0x1c8] sm:$0xff]  ;;  %v7161_v4 = vld [vmem:[%s12509_s4 + $0x1d8] sm:$0xff] }
  0x4c   :  { %786 = vmatpush1.msra.mxu0 %v7144_v21  ;;  %857 = vmatpush1.msra.mxu1 %v7149_v30  ;;  %13024 = vst [vmem:[#allocation32_spill] sm:$0xff] %v7156_v50  ;;  %13025 = vst [vmem:[#allocation33_spill] sm:$0xff] %v7161_v4  ;;  %v7168_v21 = vld [vmem:[%s12509_s4 + $0x1c0] sm:$0xff]  ;;  %v7173_v30 = vld [vmem:[%s12509_s4 + $0x1d0] sm:$0xff] }
  0x4d   :  { %787 = vmatprep.subr.mxu0 %v7156_v50  ;;  %858 = vmatprep.subr.mxu1 %v7161_v4  ;;  %13026 = vst [vmem:[#allocation34_spill] sm:$0xff] %v7168_v21  ;;  %13027 = vst [vmem:[#allocation35_spill] sm:$0xff] %v7173_v30  ;;  %v7180_v50 = vld [vmem:[%s12509_s4 + $0x1a8] sm:$0xff]  ;;  %v7185_v4 = vld [vmem:[%s12509_s4 + $0x1b8] sm:$0xff] }
  0x4e   :  { %788 = vmatpush1.msra.mxu0 %v7168_v21  ;;  %859 = vmatpush1.msra.mxu1 %v7173_v30  ;;  %13028 = vst [vmem:[#allocation36_spill] sm:$0xff] %v7180_v50  ;;  %13029 = vst [vmem:[#allocation37_spill] sm:$0xff] %v7185_v4  ;;  %v7192_v21 = vld [vmem:[%s12509_s4 + $0x1a0] sm:$0xff]  ;;  %v7197_v30 = vld [vmem:[%s12509_s4 + $0x1b0] sm:$0xff] }
  0x4f   :  { %789 = vmatprep.subr.mxu0 %v7180_v50  ;;  %860 = vmatprep.subr.mxu1 %v7185_v4  ;;  %13030 = vst [vmem:[#allocation38_spill] sm:$0xff] %v7192_v21  ;;  %13031 = vst [vmem:[#allocation39_spill] sm:$0xff] %v7197_v30  ;;  %v7204_v50 = vld [vmem:[%s12509_s4 + $0x188] sm:$0xff]  ;;  %v7209_v4 = vld [vmem:[%s12509_s4 + $0x198] sm:$0xff] }
  0x50   :  { %790 = vmatpush1.msra.mxu0 %v7192_v21  ;;  %861 = vmatpush1.msra.mxu1 %v7197_v30  ;;  %13032 = vst [vmem:[#allocation40_spill] sm:$0xff] %v7204_v50  ;;  %13033 = vst [vmem:[#allocation41_spill] sm:$0xff] %v7209_v4  ;;  %v7216_v21 = vld [vmem:[%s12509_s4 + $0x180] sm:$0xff]  ;;  %v7221_v30 = vld [vmem:[%s12509_s4 + $0x190] sm:$0xff] }
  0x51   :  { %791 = vmatprep.subr.mxu0 %v7204_v50  ;;  %862 = vmatprep.subr.mxu1 %v7209_v4  ;;  %13034 = vst [vmem:[#allocation42_spill] sm:$0xff] %v7216_v21  ;;  %13035 = vst [vmem:[#allocation43_spill] sm:$0xff] %v7221_v30  ;;  %v7228_v50 = vld [vmem:[%s12509_s4 + $0x168] sm:$0xff]  ;;  %v7233_v4 = vld [vmem:[%s12509_s4 + $0x178] sm:$0xff] }
  0x52   :  { %792 = vmatpush1.msra.mxu0 %v7216_v21  ;;  %863 = vmatpush1.msra.mxu1 %v7221_v30  ;;  %13036 = vst [vmem:[#allocation44_spill] sm:$0xff] %v7228_v50  ;;  %13037 = vst [vmem:[#allocation45_spill] sm:$0xff] %v7233_v4  ;;  %v7240_v21 = vld [vmem:[%s12509_s4 + $0x160] sm:$0xff]  ;;  %v7245_v30 = vld [vmem:[%s12509_s4 + $0x170] sm:$0xff] }
  0x53   :  { %793 = vmatprep.subr.mxu0 %v7228_v50  ;;  %864 = vmatprep.subr.mxu1 %v7233_v4  ;;  %13038 = vst [vmem:[#allocation46_spill] sm:$0xff] %v7240_v21  ;;  %13039 = vst [vmem:[#allocation47_spill] sm:$0xff] %v7245_v30  ;;  %v7252_v50 = vld [vmem:[%s12509_s4 + $0x148] sm:$0xff]  ;;  %v7257_v4 = vld [vmem:[%s12509_s4 + $0x158] sm:$0xff] }
  0x54   :  { %794 = vmatpush1.msra.mxu0 %v7240_v21  ;;  %865 = vmatpush1.msra.mxu1 %v7245_v30  ;;  %13040 = vst [vmem:[#allocation48_spill] sm:$0xff] %v7252_v50  ;;  %13041 = vst [vmem:[#allocation49_spill] sm:$0xff] %v7257_v4  ;;  %v7264_v21 = vld [vmem:[%s12509_s4 + $0x140] sm:$0xff]  ;;  %v7269_v30 = vld [vmem:[%s12509_s4 + $0x150] sm:$0xff] }
  0x55   :  { %795 = vmatprep.subr.mxu0 %v7252_v50  ;;  %866 = vmatprep.subr.mxu1 %v7257_v4  ;;  %13042 = vst [vmem:[#allocation50_spill] sm:$0xff] %v7264_v21  ;;  %13043 = vst [vmem:[#allocation51_spill] sm:$0xff] %v7269_v30  ;;  %v7276_v50 = vld [vmem:[%s12509_s4 + $0x128] sm:$0xff]  ;;  %v7281_v4 = vld [vmem:[%s12509_s4 + $0x138] sm:$0xff] }
  0x56   :  { %796 = vmatpush1.msra.mxu0 %v7264_v21  ;;  %867 = vmatpush1.msra.mxu1 %v7269_v30  ;;  %13044 = vst [vmem:[#allocation52_spill] sm:$0xff] %v7276_v50  ;;  %13045 = vst [vmem:[#allocation53_spill] sm:$0xff] %v7281_v4  ;;  %v7288_v21 = vld [vmem:[%s12509_s4 + $0x120] sm:$0xff]  ;;  %v7293_v30 = vld [vmem:[%s12509_s4 + $0x130] sm:$0xff] }
  0x57   :  { %797 = vmatprep.subr.mxu0 %v7276_v50  ;;  %868 = vmatprep.subr.mxu1 %v7281_v4  ;;  %13046 = vst [vmem:[#allocation54_spill] sm:$0xff] %v7288_v21  ;;  %13047 = vst [vmem:[#allocation55_spill] sm:$0xff] %v7293_v30  ;;  %v7300_v50 = vld [vmem:[%s12509_s4 + $0x108] sm:$0xff]  ;;  %v7305_v4 = vld [vmem:[%s12509_s4 + $0x118] sm:$0xff] }
  0x58   :  { %798 = vmatpush1.msra.mxu0 %v7288_v21  ;;  %869 = vmatpush1.msra.mxu1 %v7293_v30  ;;  %13048 = vst [vmem:[#allocation56_spill] sm:$0xff] %v7300_v50  ;;  %13049 = vst [vmem:[#allocation57_spill] sm:$0xff] %v7305_v4  ;;  %v7312_v21 = vld [vmem:[%s12509_s4 + $0x100] sm:$0xff]  ;;  %v7317_v30 = vld [vmem:[%s12509_s4 + $0x110] sm:$0xff] }
  0x59   :  { %799 = vmatprep.subr.mxu0 %v7300_v50  ;;  %870 = vmatprep.subr.mxu1 %v7305_v4  ;;  %13050 = vst [vmem:[#allocation58_spill] sm:$0xff] %v7312_v21  ;;  %13051 = vst [vmem:[#allocation59_spill] sm:$0xff] %v7317_v30  ;;  %v7324_v50 = vld [vmem:[%s12509_s4 + $0xe8] sm:$0xff]  ;;  %v7329_v4 = vld [vmem:[%s12509_s4 + $0xf8] sm:$0xff] }
  0x5a   :  { %800 = vmatpush1.msra.mxu0 %v7312_v21  ;;  %871 = vmatpush1.msra.mxu1 %v7317_v30  ;;  %13052 = vst [vmem:[#allocation60_spill] sm:$0xff] %v7324_v50  ;;  %13053 = vst [vmem:[#allocation61_spill] sm:$0xff] %v7329_v4  ;;  %v7336_v21 = vld [vmem:[%s12509_s4 + $0xe0] sm:$0xff]  ;;  %v7341_v30 = vld [vmem:[%s12509_s4 + $0xf0] sm:$0xff] }
  0x5b   :  { %801 = vmatprep.subr.mxu0 %v7324_v50  ;;  %872 = vmatprep.subr.mxu1 %v7329_v4  ;;  %13054 = vst [vmem:[#allocation62_spill] sm:$0xff] %v7336_v21  ;;  %13055 = vst [vmem:[#allocation63_spill] sm:$0xff] %v7341_v30  ;;  %v7353_v4 = vld [vmem:[%s12509_s4 + $0xd8] sm:$0xff]  ;;  %v7358_v50 = vld [vmem:[%s12509_s4 + $0xc0] sm:$0xff] }
  0x5c   :  { %802 = vmatpush1.msra.mxu0 %v7336_v21  ;;  %873 = vmatpush1.msra.mxu1 %v7341_v30  ;;  %13057 = vst [vmem:[#allocation65_spill] sm:$0xff] %v7353_v4  ;;  %13058 = vst [vmem:[#allocation66_spill] sm:$0xff] %v7358_v50  ;;  %v7370_v30 = vld [vmem:[%s12509_s4 + $0xa8] sm:$0xff]  ;;  %v7375_v21 = vld [vmem:[%s12509_s4 + $0xb8] sm:$0xff] }
  0x5d   :  { %803 = vmatprep.subr.mxu0 %v7346_v35  ;;  %874 = vmatprep.subr.mxu1 %v7353_v4  ;;  %13060 = vst [vmem:[#allocation68_spill] sm:$0xff] %v7370_v30  ;;  %13061 = vst [vmem:[#allocation69_spill] sm:$0xff] %v7375_v21  ;;  %v7387_v4 = vld [vmem:[%s12509_s4 + $0xb0] sm:$0xff]  ;;  %v7392_v35 = vld [vmem:[%s12509_s4 + $0x88] sm:$0xff] }
  0x5e   :  { %804 = vmatpush1.msra.mxu0 %v7358_v50  ;;  %875 = vmatpush1.msra.mxu1 %v7363_v32  ;;  %13063 = vst [vmem:[#allocation71_spill] sm:$0xff] %v7387_v4  ;;  %13064 = vst [vmem:[#allocation72_spill] sm:$0xff] %v7392_v35  ;;  %v7404_v32 = vld [vmem:[%s12509_s4 + $0x80] sm:$0xff]  ;;  %v7409_v50 = vld [vmem:[%s12509_s4 + $0x90] sm:$0xff] }
  0x5f   :  { %805 = vmatprep.subr.mxu0 %v7370_v30  ;;  %876 = vmatprep.subr.mxu1 %v7375_v21  ;;  %13066 = vst [vmem:[#allocation74_spill] sm:$0xff] %v7404_v32  ;;  %13067 = vst [vmem:[#allocation75_spill] sm:$0xff] %v7409_v50  ;;  %v7416_v30 = vld [vmem:[%s12509_s4 + $0x68] sm:$0xff]  ;;  %v7421_v21 = vld [vmem:[%s12509_s4 + $0x78] sm:$0xff] }
  0x60   :  { %806 = vmatpush1.msra.mxu0 %v7380_v31  ;;  %877 = vmatpush1.msra.mxu1 %v7387_v4  ;;  %13068 = vst [vmem:[#allocation76_spill] sm:$0xff] %v7416_v30  ;;  %13069 = vst [vmem:[#allocation77_spill] sm:$0xff] %v7421_v21  ;;  %v7428_v31 = vld [vmem:[%s12509_s4 + $0x60] sm:$0xff]  ;;  %v7433_v4 = vld [vmem:[%s12509_s4 + $0x70] sm:$0xff] }
  0x61   :  { %807 = vmatprep.subr.mxu0 %v7392_v35  ;;  %878 = vmatprep.subr.mxu1 %v7397_v29  ;;  %13070 = vst [vmem:[#allocation78_spill] sm:$0xff] %v7428_v31  ;;  %13071 = vst [vmem:[#allocation79_spill] sm:$0xff] %v7433_v4  ;;  %v7440_v35 = vld [vmem:[%s12509_s4 + $0x48] sm:$0xff]  ;;  %v7445_v29 = vld [vmem:[%s12509_s4 + $0x58] sm:$0xff] }
  0x62   :  { %808 = vmatpush1.msra.mxu0 %v7404_v32  ;;  %879 = vmatpush1.msra.mxu1 %v7409_v50  ;;  %13072 = vst [vmem:[#allocation80_spill] sm:$0xff] %v7440_v35  ;;  %13073 = vst [vmem:[#allocation81_spill] sm:$0xff] %v7445_v29  ;;  %v7452_v32 = vld [vmem:[%s12509_s4 + $0x40] sm:$0xff]  ;;  %v7457_v50 = vld [vmem:[%s12509_s4 + $0x50] sm:$0xff] }
  0x63   :  { %809 = vmatprep.subr.mxu0 %v7416_v30  ;;  %880 = vmatprep.subr.mxu1 %v7421_v21  ;;  %13074 = vst [vmem:[#allocation82_spill] sm:$0xff] %v7452_v32  ;;  %13075 = vst [vmem:[#allocation83_spill] sm:$0xff] %v7457_v50  ;;  %v7464_v30 = vld [vmem:[%s12509_s4 + $0x28] sm:$0xff]  ;;  %v7469_v21 = vld [vmem:[%s12509_s4 + $0x38] sm:$0xff] }
  0x64   :  { %810 = vmatpush1.msra.mxu0 %v7428_v31  ;;  %881 = vmatpush1.msra.mxu1 %v7433_v4  ;;  %13076 = vst [vmem:[#allocation84_spill] sm:$0xff] %v7464_v30  ;;  %13077 = vst [vmem:[#allocation85_spill] sm:$0xff] %v7469_v21  ;;  %v7476_v31 = vld [vmem:[%s12509_s4 + $0x20] sm:$0xff]  ;;  %v7481_v4 = vld [vmem:[%s12509_s4 + $0x30] sm:$0xff] }
  0x65   :  { %811 = vmatprep.subr.mxu0 %v7440_v35  ;;  %882 = vmatprep.subr.mxu1 %v7445_v29  ;;  %13078 = vst [vmem:[#allocation86_spill] sm:$0xff] %v7476_v31  ;;  %13079 = vst [vmem:[#allocation87_spill] sm:$0xff] %v7481_v4  ;;  %v7488_v35 = vld [vmem:[%s12509_s4 + $0x8] sm:$0xff]  ;;  %v7493_v29 = vld [vmem:[%s12509_s4 + $0x18] sm:$0xff] }
  0x66   :  { %812 = vmatpush1.msra.mxu0 %v7452_v32  ;;  %883 = vmatpush1.msra.mxu1 %v7457_v50  ;;  %13080 = vst [vmem:[#allocation88_spill] sm:$0xff] %v7488_v35  ;;  %13081 = vst [vmem:[#allocation89_spill] sm:$0xff] %v7493_v29  ;;  %v7500_v32 = vld [vmem:[%s12509_s4] sm:$0xff]  ;;  %v7505_v50 = vld [vmem:[%s12509_s4 + $0x10] sm:$0xff] }
  0x67   :  { %813 = vmatprep.subr.mxu0 %v7464_v30  ;;  %884 = vmatprep.subr.mxu1 %v7469_v21  ;;  %13082 = vst [vmem:[#allocation90_spill] sm:$0xff] %v7500_v32  ;;  %13083 = vst [vmem:[#allocation91_spill] sm:$0xff] %v7505_v50  ;;  %v69_v21 = vlaneseq }
  0x68   :  { %814 = vmatpush1.msra.mxu0 %v7476_v31  ;;  %885 = vmatpush1.msra.mxu1 %v7481_v4 }
  0x69   :  { %815 = vmatprep.subr.mxu0 %v7488_v35  ;;  %886 = vmatprep.subr.mxu1 %v7493_v29  ;;  %v70_v30 = vshrl.u32 %v69_v21, 7  ;;  %v67_v29 = vld [vmem:[%s12510_s3] sm:$0xf] }
  0x6a   :  { %816 = vmatpush1.msra.mxu0 %v7500_v32  ;;  %887 = vmatpush1.msra.mxu1 %v7505_v50 }
  0x6b   :  { %999 = vmatprep.subr.mxu0 %v6724_v33  ;;  %1070 = vmatprep.subr.mxu1 %v6729_v34  ;;  %v7515_v28 = vsub.s32 2, %v70_v30  ;;  %v7517_v27 = vsub.s32 0, %v70_v30  ;;  %v7519_v31 = vsub.s32 3, %v70_v30  ;;  %v7531_v34 = vsub.s32 1, %v70_v30 }
  0x6d   :  { %13084 = vst [vmem:[#allocation92_spill] sm:$0xff] %v7515_v28  ;;  %13085 = vst [vmem:[#allocation93_spill] sm:$0xff] %v7517_v27  ;;  %v7529_v33 = vrot.slane %v67_v29, %v7515_v28  ;;  %v72_v4 = vrot.slane %v67_v29, %v7517_v27  ;;  %v7539_v26 = vrot.slane %v67_v29, %v7519_v31 }
  0x6e   :  { %13086 = vst [vmem:[#allocation94_spill] sm:$0xff] %v7519_v31  ;;  %13087 = vst [vmem:[#allocation95_spill] sm:$0xff] %v7531_v34  ;;  %v76_v24 = vrot.slane %v67_v29, %v7531_v34 }
  0xe2   :  { %v7524_v35 = vpop.f32.mrf.mxu0  ;;  %v7526_v32 = vpop.f32.mrf.mxu1 }
  0xe4   :  { %v7533_v21 = vpop.f32.mrf.mxu0  ;;  %v7535_v50 = vpop.f32.mrf.mxu1 }
  0xe6   :  { %v311_v25 = vpop.f32.mrf.mxu0  ;;  %v384_v1 = vpop.f32.mrf.mxu1 }
  0xe7   :  { %v7542_v23 = vadd.f32 %v311_v25, %v72_v4  ;;  %v7545_v28 = vadd.f32 %v384_v1, %v7529_v33 }
  0xe8   :  { %v313_v30 = vpop.f32.mrf.mxu0  ;;  %v386_v22 = vpop.f32.mrf.mxu1 }
  0xe9   :  { %13088 = vst [vmem:[#allocation96_spill] sm:$0xff] %v7542_v23  ;;  %13089 = vst [vmem:[#allocation97_spill] sm:$0xff] %v7545_v28  ;;  %v7547_v20 = vadd.f32 %v313_v30, %v76_v24  ;;  %v7550_v19 = vadd.f32 %v386_v22, %v7539_v26 }
  0xeb   :  { %13090 = vst [vmem:[#allocation98_spill] sm:$0xff] %v7547_v20  ;;  %13091 = vst [vmem:[#allocation99_spill] sm:$0xff] %v7550_v19  ;;  %v317_v27 = vpop.f32.mrf.mxu0  ;;  %v390_v18 = vpop.f32.mrf.mxu1 }
  0xec   :  { %v7552_v31 = vadd.f32 %v317_v27, %v72_v4  ;;  %v7555_v17 = vadd.f32 %v390_v18, %v7529_v33 }
  0xed   :  { %v319_v29 = vpop.f32.mrf.mxu0  ;;  %v392_v25 = vpop.f32.mrf.mxu1 }
  0xee   :  { %13092 = vst [vmem:[#allocation100_spill] sm:$0xff] %v7552_v31  ;;  %13093 = vst [vmem:[#allocation101_spill] sm:$0xff] %v7555_v17  ;;  %v7557_v34 = vadd.f32 %v319_v29, %v76_v24  ;;  %v7560_v1 = vadd.f32 %v392_v25, %v7539_v26 }
  0xef   :  { %v321_v28 = vpop.f32.mrf.mxu0  ;;  %v394_v30 = vpop.f32.mrf.mxu1 }
  0xf0   :  { %13094 = vst [vmem:[#allocation102_spill] sm:$0xff] %v7557_v34  ;;  %13095 = vst [vmem:[#allocation103_spill] sm:$0xff] %v7560_v1  ;;  %v7562_v20 = vadd.f32 %v321_v28, %v72_v4  ;;  %v7565_v22 = vadd.f32 %v394_v30, %v7529_v33 }
  0xf1   :  { %v323_v19 = vpop.f32.mrf.mxu0  ;;  %v396_v27 = vpop.f32.mrf.mxu1 }
  0xf2   :  { %13096 = vst [vmem:[#allocation104_spill] sm:$0xff] %v7562_v20  ;;  %13097 = vst [vmem:[#allocation105_spill] sm:$0xff] %v7565_v22  ;;  %v7567_v31 = vadd.f32 %v323_v19, %v76_v24  ;;  %v7570_v18 = vadd.f32 %v396_v27, %v7539_v26 }
  0xf4   :  { %13098 = vst [vmem:[#allocation106_spill] sm:$0xff] %v7567_v31  ;;  %13099 = vst [vmem:[#allocation107_spill] sm:$0xff] %v7570_v18 }
  0xf5   :  { %v327_v17 = vpop.f32.mrf.mxu0  ;;  %v400_v29 = vpop.f32.mrf.mxu1 }
  0xf6   :  { %v7572_v34 = vadd.f32 %v327_v17, %v72_v4  ;;  %v7575_v25 = vadd.f32 %v400_v29, %v7529_v33 }
  0xf7   :  { %v329_v1 = vpop.f32.mrf.mxu0  ;;  %v402_v28 = vpop.f32.mrf.mxu1 }
  0xf8   :  { %13100 = vst [vmem:[#allocation108_spill] sm:$0xff] %v7572_v34  ;;  %13101 = vst [vmem:[#allocation109_spill] sm:$0xff] %v7575_v25  ;;  %v7577_v20 = vadd.f32 %v329_v1, %v76_v24  ;;  %v7580_v30 = vadd.f32 %v402_v28, %v7539_v26 }
  0xf9   :  { %v331_v22 = vpop.f32.mrf.mxu0  ;;  %v404_v19 = vpop.f32.mrf.mxu1 }
  0xfa   :  { %13102 = vst [vmem:[#allocation110_spill] sm:$0xff] %v7577_v20  ;;  %13103 = vst [vmem:[#allocation111_spill] sm:$0xff] %v7580_v30  ;;  %v7582_v31 = vadd.f32 %v331_v22, %v72_v4  ;;  %v7585_v27 = vadd.f32 %v404_v19, %v7529_v33 }
  0xfb   :  { %v333_v18 = vpop.f32.mrf.mxu0  ;;  %v406_v17 = vpop.f32.mrf.mxu1 }
  0xfc   :  { %13104 = vst [vmem:[#allocation112_spill] sm:$0xff] %v7582_v31  ;;  %13105 = vst [vmem:[#allocation113_spill] sm:$0xff] %v7585_v27  ;;  %v7587_v34 = vadd.f32 %v333_v18, %v76_v24  ;;  %v7590_v29 = vadd.f32 %v406_v17, %v7539_v26 }
  0xfe   :  { %13106 = vst [vmem:[#allocation114_spill] sm:$0xff] %v7587_v34  ;;  %13107 = vst [vmem:[#allocation115_spill] sm:$0xff] %v7590_v29 }
  0xff   :  { %v337_v25 = vpop.f32.mrf.mxu0  ;;  %v410_v1 = vpop.f32.mrf.mxu1 }
 0x100   :  { %v7592_v20 = vadd.f32 %v337_v25, %v72_v4  ;;  %v7595_v28 = vadd.f32 %v410_v1, %v7529_v33 }
 0x101   :  { %v339_v30 = vpop.f32.mrf.mxu0  ;;  %v412_v22 = vpop.f32.mrf.mxu1 }
 0x102   :  { %13108 = vst [vmem:[#allocation116_spill] sm:$0xff] %v7592_v20  ;;  %13109 = vst [vmem:[#allocation117_spill] sm:$0xff] %v7595_v28  ;;  %v7597_v31 = vadd.f32 %v339_v30, %v76_v24  ;;  %v7600_v19 = vadd.f32 %v412_v22, %v7539_v26  ;;  %v308_v30 = vadd.f32 %v7524_v35, %v72_v4 }
 0x103   :  { %v341_v27 = vpop.f32.mrf.mxu0  ;;  %v414_v18 = vpop.f32.mrf.mxu1  ;;  %v310_v22 = vadd.f32 %v7533_v21, %v76_v24 }
 0x104   :  { %13110 = vst [vmem:[#allocation118_spill] sm:$0xff] %v7597_v31  ;;  %13111 = vst [vmem:[#allocation119_spill] sm:$0xff] %v7600_v19  ;;  %v7602_v34 = vadd.f32 %v341_v27, %v72_v4  ;;  %v7605_v17 = vadd.f32 %v414_v18, %v7529_v33 }
 0x105   :  { %v343_v29 = vpop.f32.mrf.mxu0  ;;  %v416_v25 = vpop.f32.mrf.mxu1 }
 0x106   :  { %13112 = vst [vmem:[#allocation120_spill] sm:$0xff] %v7602_v34  ;;  %13113 = vst [vmem:[#allocation121_spill] sm:$0xff] %v7605_v17  ;;  %v7607_v20 = vadd.f32 %v343_v29, %v76_v24  ;;  %v7610_v1 = vadd.f32 %v416_v25, %v7539_v26  ;;  %v383_v29 = vadd.f32 %v7535_v50, %v7539_v26 }
 0x107   :  { %v381_v25 = vadd.f32 %v7526_v32, %v7529_v33 }
 0x108   :  { %13114 = vst [vmem:[#allocation122_spill] sm:$0xff] %v7607_v20  ;;  %13115 = vst [vmem:[#allocation123_spill] sm:$0xff] %v7610_v1 }
 0x109   :  { %v590_v28 = vpop.f32.mrf.mxu0  ;;  %v661_v34 = vpop.f32.mrf.mxu1 }
 0x10a   :  { %v666_v19 = vadd.f32 %v590_v28, %v308_v30  ;;  %v668_v1 = vadd.f32 %v661_v34, %v381_v25  ;;  %v7815_v34 = vld [vmem:[%s12511_s5 + $0x158] sm:$0xff]  ;;  %v7846_v25 = vld [vmem:[%s12511_s5 + $0x120] sm:$0xff] }
 0x10b   :  { %v592_v31 = vpop.f32.mrf.mxu0  ;;  %v663_v17 = vpop.f32.mrf.mxu1 }
 0x10c   :  { %v6217_v23 = vmul.f32 -1.442695, %v666_v19  ;;  %v667_v27 = vadd.f32 %v592_v31, %v310_v22  ;;  %v669_v20 = vadd.f32 %v663_v17, %v383_v29  ;;  %v7839_v29 = vld [vmem:[%s12511_s5 + $0x138] sm:$0xff] }
 0x10e   :  { %6325 = vpow2.f32 %v6217_v23  ;;  %v6218_v18 = vmul.f32 -1.442695, %v667_v27  ;;  %v6219_v35 = vmul.f32 -1.442695, %v669_v20  ;;  %v7827_v27 = vld [vmem:[%s12511_s5 + $0x150] sm:$0xff] }
 0x110   :  { %6327 = vpow2.f32 %v6218_v18  ;;  %v7834_v18 = vld [vmem:[%s12511_s5 + $0x128] sm:$0xff] }
 0x111   :  { %6329 = vpow2.f32 %v6219_v35  ;;  %v7851_v35 = vld [vmem:[%s12511_s5 + $0x130] sm:$0xff] }
 0x11b   :  { %v6326_v4 = vpop.eup %6325 }
 0x11c   :  { %v673_v24 = vadd.f32 1.0, %v6326_v4  ;;  %v7858_v4 = vld [vmem:[%s12511_s5 + $0x108] sm:$0xff] }
 0x11d   :  { %v6328_v21 = vpop.eup %6327 }
 0x11e   :  { %6331 = vrcp.f32 %v673_v24  ;;  %v679_v31 = vadd.f32 1.0, %v6328_v21  ;;  %v6330_v23 = vpop.eup %6329  ;;  %v7863_v24 = vld [vmem:[%s12511_s5 + $0x118] sm:$0xff]  ;;  %v7870_v21 = vld [vmem:[%s12511_s5 + $0x100] sm:$0xff] }
 0x11f   :  { %6333 = vtanh.f32 %v668_v1  ;;  %v686_v22 = vadd.f32 1.0, %v6330_v23  ;;  %v7822_v1 = vld [vmem:[%s12511_s5 + $0x140] sm:$0xff]  ;;  %v7882_v23 = vld [vmem:[%s12511_s5 + $0xe8] sm:$0xff] }
 0x120   :  { %6335 = vrcp.f32 %v679_v31  ;;  %v7875_v31 = vld [vmem:[%s12511_s5 + $0x110] sm:$0xff] }
 0x121   :  { %6337 = vrcp.f32 %v686_v22  ;;  %v7906_v22 = vld [vmem:[%s12511_s5 + $0xc8] sm:$0xff] }
 0x12b   :  { %v6332_v28 = vpop.eup %6331 }
 0x12c   :  { %v6334_v19 = vpop.eup %6333 }
 0x12d   :  { %v6336_v30 = vpop.eup %6335  ;;  %v691_v50 = vmul.f32 %v6334_v19, %v6332_v28  ;;  %v7887_v28 = vld [vmem:[%s12511_s5 + $0xf8] sm:$0xff]  ;;  %v7894_v19 = vld [vmem:[%s12511_s5 + $0xe0] sm:$0xff] }
 0x12e   :  { %v690_v26 = vmul.f32 0.0, %v6336_v30  ;;  %v6338_v20 = vpop.eup %6337  ;;  %v7899_v30 = vld [vmem:[%s12511_s5 + $0xf0] sm:$0xff] }
 0x130   :  { %v7618_v17 = vadd.f32 %v691_v50, %v690_v26  ;;  %v7911_v26 = vld [vmem:[%s12511_s5 + $0xd8] sm:$0xff]  ;;  %v7918_v50 = vld [vmem:[%s12511_s5 + $0xc0] sm:$0xff] }
 0x132   :  { %6339 = vtanh.f32 %v7618_v17 }
 0x13f   :  { %v6340_v32 = vpop.eup %6339 }
 0x140   :  { %v7621_v33 = vmul.f32 %v6340_v32, %v6338_v20  ;;  %v7923_v20 = vld [vmem:[%s12511_s5 + $0xd0] sm:$0xff]  ;;  %v7930_v32 = vld [vmem:[%s12511_s5 + $0xa8] sm:$0xff] }
 0x142   :  { %850 = vmatmul.mubr.f32.vlgmr.msra.gmra.mxu0 %v7621_v33  ;;  %921 = vmatmul.mubr.f32.vlgmr.msra.gmra.mxu1 %v7621_v33 }
 0x143   :  { %1000 = vmatpush1.msra.mxu0 %v6739_v36  ;;  %1071 = vmatpush1.msra.mxu1 %v6744_v37  ;;  %v13116_v36 = vld [vmem:[#allocation8_spill] sm:$0xff]  ;;  %v13117_v37 = vld [vmem:[#allocation9_spill] sm:$0xff] }
 0x144   :  { %1001 = vmatprep.subr.mxu0 %v6749_v38  ;;  %1072 = vmatprep.subr.mxu1 %v6754_v39  ;;  %v13118_v38 = vld [vmem:[#allocation10_spill] sm:$0xff]  ;;  %v13119_v39 = vld [vmem:[#allocation11_spill] sm:$0xff]  ;;  %13137 = vst [vmem:[#allocation8_spill] sm:$0xff] %v7911_v26  ;;  %13138 = vst [vmem:[#allocation9_spill] sm:$0xff] %v7918_v50 }
 0x145   :  { %1002 = vmatpush1.msra.mxu0 %v6759_v40  ;;  %1073 = vmatpush1.msra.mxu1 %v6764_v41  ;;  %v13120_v40 = vld [vmem:[#allocation12_spill] sm:$0xff]  ;;  %v13121_v41 = vld [vmem:[#allocation13_spill] sm:$0xff]  ;;  %13139 = vst [vmem:[#allocation10_spill] sm:$0xff] %v7923_v20  ;;  %13140 = vst [vmem:[#allocation11_spill] sm:$0xff] %v7930_v32 }
 0x146   :  { %1003 = vmatprep.subr.mxu0 %v6771_v42  ;;  %1074 = vmatprep.subr.mxu1 %v6776_v43  ;;  %v13122_v42 = vld [vmem:[#allocation14_spill] sm:$0xff]  ;;  %v13123_v43 = vld [vmem:[#allocation15_spill] sm:$0xff] }
 0x147   :  { %1004 = vmatpush1.msra.mxu0 %v6783_v44  ;;  %1075 = vmatpush1.msra.mxu1 %v6788_v45  ;;  %v13124_v44 = vld [vmem:[#allocation16_spill] sm:$0xff]  ;;  %v13125_v45 = vld [vmem:[#allocation17_spill] sm:$0xff] }
 0x148   :  { %1005 = vmatprep.subr.mxu0 %v6795_v46  ;;  %1076 = vmatprep.subr.mxu1 %v6800_v47  ;;  %v13126_v46 = vld [vmem:[#allocation18_spill] sm:$0xff]  ;;  %v13127_v47 = vld [vmem:[#allocation19_spill] sm:$0xff] }
 0x149   :  { %1006 = vmatpush1.msra.mxu0 %v6807_v48  ;;  %1077 = vmatpush1.msra.mxu1 %v6812_v49  ;;  %v13128_v48 = vld [vmem:[#allocation20_spill] sm:$0xff]  ;;  %v13129_v49 = vld [vmem:[#allocation21_spill] sm:$0xff] }
 0x14a   :  { %1007 = vmatprep.subr.mxu0 %v6826_v51  ;;  %1078 = vmatprep.subr.mxu1 %v6831_v52  ;;  %v13130_v51 = vld [vmem:[#allocation22_spill] sm:$0xff]  ;;  %v13131_v52 = vld [vmem:[#allocation23_spill] sm:$0xff] }
 0x14b   :  { %1008 = vmatpush1.msra.mxu0 %v6838_v53  ;;  %1079 = vmatpush1.msra.mxu1 %v6843_v54  ;;  %v13132_v53 = vld [vmem:[#allocation24_spill] sm:$0xff]  ;;  %v13133_v54 = vld [vmem:[#allocation25_spill] sm:$0xff] }
 0x14c   :  { %1009 = vmatprep.subr.mxu0 %v6848_v55  ;;  %1080 = vmatprep.subr.mxu1 %v6853_v56  ;;  %v13134_v55 = vld [vmem:[#allocation26_spill] sm:$0xff]  ;;  %v13135_v56 = vmov 0.0  }
 0x14d   :  { %1010 = vmatpush1.msra.mxu0 %v6860_v57  ;;  %1081 = vmatpush1.msra.mxu1 %v6865_v58  ;;  %v7690_v57 = vld [vmem:[%s12511_s5 + $0x1e8] sm:$0xff]  ;;  %v7695_v58 = vld [vmem:[%s12511_s5 + $0x1f8] sm:$0xff] }
 0x14e   :  { %1011 = vmatprep.subr.mxu0 %v6872_v59  ;;  %1082 = vmatprep.subr.mxu1 %v6877_v60  ;;  %v13136_v59 = vld [vmem:[#allocation27_spill] sm:$0xff]  ;;  %v7702_v60 = vld [vmem:[%s12511_s5 + $0x1e0] sm:$0xff] }
 0x14f   :  { %1012 = vmatpush1.msra.mxu0 %v6884_v61  ;;  %1083 = vmatpush1.msra.mxu1 %v6889_v62  ;;  %v7707_v61 = vld [vmem:[%s12511_s5 + $0x1f0] sm:$0xff]  ;;  %v7714_v62 = vld [vmem:[%s12511_s5 + $0x1c8] sm:$0xff] }
 0x150   :  { %1013 = vmatprep.subr.mxu0 %v6896_v63  ;;  %1084 = vmatprep.subr.mxu1 %v6901_v0  ;;  %v7719_v63 = vld [vmem:[%s12511_s5 + $0x1d8] sm:$0xff]  ;;  %v7726_v0 = vld [vmem:[%s12511_s5 + $0x1c0] sm:$0xff] }
 0x151   :  { %1014 = vmatpush1.msra.mxu0 %v6910_v2  ;;  %1085 = vmatpush1.msra.mxu1 %v6915_v3  ;;  %v7731_v2 = vld [vmem:[%s12511_s5 + $0x1d0] sm:$0xff]  ;;  %v7738_v3 = vld [vmem:[%s12511_s5 + $0x1a8] sm:$0xff] }
 0x152   :  { %1015 = vmatprep.subr.mxu0 %v6927_v5  ;;  %1086 = vmatprep.subr.mxu1 %v6932_v6  ;;  %v7743_v5 = vld [vmem:[%s12511_s5 + $0x1b8] sm:$0xff]  ;;  %v7750_v6 = vld [vmem:[%s12511_s5 + $0x1a0] sm:$0xff] }
 0x153   :  { %1016 = vmatpush1.msra.mxu0 %v6939_v7  ;;  %1087 = vmatpush1.msra.mxu1 %v6944_v8  ;;  %v7755_v7 = vld [vmem:[%s12511_s5 + $0x1b0] sm:$0xff]  ;;  %v7762_v8 = vld [vmem:[%s12511_s5 + $0x188] sm:$0xff] }
 0x154   :  { %1017 = vmatprep.subr.mxu0 %v6949_v9  ;;  %1088 = vmatprep.subr.mxu1 %v6954_v10  ;;  %v7767_v9 = vld [vmem:[%s12511_s5 + $0x198] sm:$0xff]  ;;  %v7774_v10 = vld [vmem:[%s12511_s5 + $0x180] sm:$0xff] }
 0x155   :  { %1018 = vmatpush1.msra.mxu0 %v6961_v11  ;;  %1089 = vmatpush1.msra.mxu1 %v6966_v12  ;;  %v7779_v11 = vld [vmem:[%s12511_s5 + $0x190] sm:$0xff]  ;;  %v7786_v12 = vld [vmem:[%s12511_s5 + $0x168] sm:$0xff] }
 0x156   :  { %1019 = vmatprep.subr.mxu0 %v6973_v13  ;;  %1090 = vmatprep.subr.mxu1 %v6978_v14  ;;  %v7791_v13 = vld [vmem:[%s12511_s5 + $0x178] sm:$0xff]  ;;  %v7798_v14 = vld [vmem:[%s12511_s5 + $0x160] sm:$0xff] }
 0x157   :  { %1020 = vmatpush1.msra.mxu0 %v6985_v15  ;;  %1091 = vmatpush1.msra.mxu1 %v6990_v16  ;;  %v7803_v15 = vld [vmem:[%s12511_s5 + $0x170] sm:$0xff]  ;;  %v7810_v16 = vld [vmem:[%s12511_s5 + $0x148] sm:$0xff] }
 0x158   :  { %1021 = vmatprep.subr.mxu0 %v13116_v36  ;;  %1092 = vmatprep.subr.mxu1 %v13117_v37  ;;  %v7942_v36 = vld [vmem:[%s12511_s5 + $0xa0] sm:$0xff]  ;;  %v7947_v37 = vld [vmem:[%s12511_s5 + $0xb0] sm:$0xff] }
 0x159   :  { %1022 = vmatpush1.msra.mxu0 %v13118_v38  ;;  %1093 = vmatpush1.msra.mxu1 %v13119_v39  ;;  %13142 = vst [vmem:[#allocation13_spill] sm:$0xff] %v7942_v36  ;;  %13143 = vst [vmem:[#allocation14_spill] sm:$0xff] %v7947_v37  ;;  %v7954_v38 = vld [vmem:[%s12511_s5 + $0x88] sm:$0xff]  ;;  %v7959_v39 = vld [vmem:[%s12511_s5 + $0x98] sm:$0xff] }
 0x15a   :  { %1023 = vmatprep.subr.mxu0 %v13120_v40  ;;  %1094 = vmatprep.subr.mxu1 %v13121_v41  ;;  %13144 = vst [vmem:[#allocation15_spill] sm:$0xff] %v7954_v38  ;;  %13145 = vst [vmem:[#allocation16_spill] sm:$0xff] %v7959_v39  ;;  %v7966_v40 = vld [vmem:[%s12511_s5 + $0x80] sm:$0xff]  ;;  %v7971_v41 = vld [vmem:[%s12511_s5 + $0x90] sm:$0xff] }
 0x15b   :  { %1024 = vmatpush1.msra.mxu0 %v13122_v42  ;;  %1095 = vmatpush1.msra.mxu1 %v13123_v43  ;;  %13146 = vst [vmem:[#allocation17_spill] sm:$0xff] %v7966_v40  ;;  %13147 = vst [vmem:[#allocation18_spill] sm:$0xff] %v7971_v41  ;;  %v7978_v42 = vld [vmem:[%s12511_s5 + $0x68] sm:$0xff]  ;;  %v7983_v43 = vld [vmem:[%s12511_s5 + $0x78] sm:$0xff] }
 0x15c   :  { %1025 = vmatprep.subr.mxu0 %v13124_v44  ;;  %1096 = vmatprep.subr.mxu1 %v13125_v45  ;;  %13148 = vst [vmem:[#allocation19_spill] sm:$0xff] %v7978_v42  ;;  %13149 = vst [vmem:[#allocation20_spill] sm:$0xff] %v7983_v43  ;;  %v7990_v44 = vld [vmem:[%s12511_s5 + $0x60] sm:$0xff]  ;;  %v7995_v45 = vld [vmem:[%s12511_s5 + $0x70] sm:$0xff] }
 0x15d   :  { %1026 = vmatpush1.msra.mxu0 %v13126_v46  ;;  %1097 = vmatpush1.msra.mxu1 %v13127_v47  ;;  %13150 = vst [vmem:[#allocation21_spill] sm:$0xff] %v7990_v44  ;;  %13151 = vst [vmem:[#allocation22_spill] sm:$0xff] %v7995_v45  ;;  %v8002_v46 = vld [vmem:[%s12511_s5 + $0x48] sm:$0xff]  ;;  %v8007_v47 = vld [vmem:[%s12511_s5 + $0x58] sm:$0xff] }
 0x15e   :  { %1027 = vmatprep.subr.mxu0 %v13128_v48  ;;  %1098 = vmatprep.subr.mxu1 %v13129_v49  ;;  %13152 = vst [vmem:[#allocation23_spill] sm:$0xff] %v8002_v46  ;;  %13153 = vst [vmem:[#allocation24_spill] sm:$0xff] %v8007_v47  ;;  %v8014_v48 = vld [vmem:[%s12511_s5 + $0x40] sm:$0xff]  ;;  %v8019_v49 = vld [vmem:[%s12511_s5 + $0x50] sm:$0xff] }
 0x15f   :  { %1028 = vmatpush1.msra.mxu0 %v13130_v51  ;;  %1099 = vmatpush1.msra.mxu1 %v13131_v52  ;;  %13154 = vst [vmem:[#allocation25_spill] sm:$0xff] %v8014_v48  ;;  %13155 = vst [vmem:[#allocation26_spill] sm:$0xff] %v8019_v49  ;;  %v8026_v51 = vld [vmem:[%s12511_s5 + $0x28] sm:$0xff]  ;;  %v8031_v52 = vld [vmem:[%s12511_s5 + $0x38] sm:$0xff] }
 0x160   :  { %1029 = vmatprep.subr.mxu0 %v13132_v53  ;;  %1100 = vmatprep.subr.mxu1 %v13133_v54  ;;  %13156 = vst [vmem:[#allocation27_spill] sm:$0xff] %v8026_v51  ;;  %13157 = vst [vmem:[#allocation124_spill] sm:$0xff] %v8031_v52  ;;  %v8038_v53 = vld [vmem:[%s12511_s5 + $0x20] sm:$0xff]  ;;  %v8043_v54 = vld [vmem:[%s12511_s5 + $0x30] sm:$0xff] }
 0x161   :  { %1030 = vmatpush1.msra.mxu0 %v13134_v55  ;;  %1063 = vmatprep.mubr.f32.mxu0 %v13135_v56  ;;  %13158 = vst [vmem:[#allocation125_spill] sm:$0xff] %v8038_v53  ;;  %13159 = vst [vmem:[#allocation126_spill] sm:$0xff] %v8043_v54  ;;  %v8050_v55 = vld [vmem:[%s12511_s5 + $0x8] sm:$0xff] }
 0x162   :  { %1101 = vmatpush1.msra.mxu1 %v13136_v59  ;;  %1134 = vmatprep.mubr.f32.mxu1 %v13135_v56  ;;  %13160 = vst [vmem:[#allocation127_spill] sm:$0xff] %v8050_v55  ;;  %v8055_v59 = vld [vmem:[%s12511_s5 + $0x18] sm:$0xff] }
 0x163   :  { %1064 = vmatmul.mubr.f32.vlgmr.msra.gmra.mxu0 %v7621_v33  ;;  %1135 = vmatmul.mubr.f32.vlgmr.msra.gmra.mxu1 %v7621_v33  ;;  %v7935_v33 = vld [vmem:[%s12511_s5 + $0xb8] sm:$0xff]  ;;  %13161 = vst [vmem:[#allocation128_spill] sm:$0xff] %v8055_v59 }
 0x164   :  { %1237 = vmatprep.subr.mxu0 %v7690_v57  ;;  %1308 = vmatprep.subr.mxu1 %v7695_v58  ;;  %13141 = vst [vmem:[#allocation12_spill] sm:$0xff] %v7935_v33 }
 0x165   :  { %1238 = vmatpush1.msra.mxu0 %v7702_v60  ;;  %1309 = vmatpush1.msra.mxu1 %v7707_v61 }
 0x166   :  { %1239 = vmatprep.subr.mxu0 %v7714_v62  ;;  %1310 = vmatprep.subr.mxu1 %v7719_v63 }
 0x167   :  { %1240 = vmatpush1.msra.mxu0 %v7726_v0  ;;  %1311 = vmatpush1.msra.mxu1 %v7731_v2 }
 0x168   :  { %1241 = vmatprep.subr.mxu0 %v7738_v3  ;;  %1312 = vmatprep.subr.mxu1 %v7743_v5 }
 0x169   :  { %1242 = vmatpush1.msra.mxu0 %v7750_v6  ;;  %1313 = vmatpush1.msra.mxu1 %v7755_v7 }
 0x16a   :  { %1243 = vmatprep.subr.mxu0 %v7762_v8  ;;  %1314 = vmatprep.subr.mxu1 %v7767_v9 }
 0x16b   :  { %1244 = vmatpush1.msra.mxu0 %v7774_v10  ;;  %1315 = vmatpush1.msra.mxu1 %v7779_v11 }
 0x16c   :  { %1245 = vmatprep.subr.mxu0 %v7786_v12  ;;  %1316 = vmatprep.subr.mxu1 %v7791_v13 }
 0x16d   :  { %1246 = vmatpush1.msra.mxu0 %v7798_v14  ;;  %1317 = vmatpush1.msra.mxu1 %v7803_v15 }
 0x16e   :  { %1247 = vmatprep.subr.mxu0 %v7810_v16  ;;  %1318 = vmatprep.subr.mxu1 %v7815_v34 }
 0x16f   :  { %1248 = vmatpush1.msra.mxu0 %v7822_v1  ;;  %1319 = vmatpush1.msra.mxu1 %v7827_v27 }
 0x170   :  { %1249 = vmatprep.subr.mxu0 %v7834_v18  ;;  %1320 = vmatprep.subr.mxu1 %v7839_v29 }
 0x171   :  { %1250 = vmatpush1.msra.mxu0 %v7846_v25  ;;  %1321 = vmatpush1.msra.mxu1 %v7851_v35 }
 0x172   :  { %1251 = vmatprep.subr.mxu0 %v7858_v4  ;;  %1322 = vmatprep.subr.mxu1 %v7863_v24 }
 0x173   :  { %1252 = vmatpush1.msra.mxu0 %v7870_v21  ;;  %1323 = vmatpush1.msra.mxu1 %v7875_v31 }
 0x174   :  { %1253 = vmatprep.subr.mxu0 %v7882_v23  ;;  %1324 = vmatprep.subr.mxu1 %v7887_v28 }
 0x175   :  { %1254 = vmatpush1.msra.mxu0 %v7894_v19  ;;  %1325 = vmatpush1.msra.mxu1 %v7899_v30 }
 0x176   :  { %1255 = vmatprep.subr.mxu0 %v7906_v22  ;;  %1326 = vmatprep.subr.mxu1 %v7911_v26  ;;  %v13236_v26 = vld [vmem:[#allocation94_spill] sm:$0xff] }
 0x177   :  { %1256 = vmatpush1.msra.mxu0 %v7918_v50  ;;  %1327 = vmatpush1.msra.mxu1 %v7923_v20 }
 0x178   :  { %1257 = vmatprep.subr.mxu0 %v7930_v32  ;;  %1328 = vmatprep.subr.mxu1 %v7935_v33 }
 0x179   :  { %1258 = vmatpush1.msra.mxu0 %v7942_v36  ;;  %1329 = vmatpush1.msra.mxu1 %v7947_v37 }
 0x17a   :  { %1259 = vmatprep.subr.mxu0 %v7954_v38  ;;  %1330 = vmatprep.subr.mxu1 %v7959_v39  ;;  %v13232_v39 = vld [vmem:[#allocation99_spill] sm:$0xff]  ;;  %v13233_v38 = vld [vmem:[#allocation97_spill] sm:$0xff] }
 0x17b   :  { %1260 = vmatpush1.msra.mxu0 %v7966_v40  ;;  %1331 = vmatpush1.msra.mxu1 %v7971_v41 }
 0x17c   :  { %1261 = vmatprep.subr.mxu0 %v7978_v42  ;;  %1332 = vmatprep.subr.mxu1 %v7983_v43 }
 0x17d   :  { %1262 = vmatpush1.msra.mxu0 %v7990_v44  ;;  %1333 = vmatpush1.msra.mxu1 %v7995_v45  ;;  %v13174_v45 = vld [vmem:[#allocation38_spill] sm:$0xff] }
 0x17e   :  { %1263 = vmatprep.subr.mxu0 %v8002_v46  ;;  %1334 = vmatprep.subr.mxu1 %v8007_v47  ;;  %v13172_v47 = vld [vmem:[#allocation36_spill] sm:$0xff]  ;;  %v13173_v46 = vld [vmem:[#allocation37_spill] sm:$0xff] }
 0x17f   :  { %1264 = vmatpush1.msra.mxu0 %v8014_v48  ;;  %1335 = vmatpush1.msra.mxu1 %v8019_v49  ;;  %v8062_v48 = vld [vmem:[%s12511_s5] sm:$0xff]  ;;  %v8069_v49 = vld [vmem:[%s12511_s5 + $0x10] sm:$0xff] }
 0x180   :  { %1265 = vmatprep.subr.mxu0 %v8026_v51  ;;  %1336 = vmatprep.subr.mxu1 %v8031_v52  ;;  %13162 = vst [vmem:[#allocation129_spill] sm:$0xff] %v8062_v48  ;;  %13163 = vst [vmem:[#allocation130_spill] sm:$0xff] %v8069_v49  ;;  %v13166_v52 = vld [vmem:[#allocation30_spill] sm:$0xff] }
 0x181   :  { %1266 = vmatpush1.msra.mxu0 %v8038_v53  ;;  %1337 = vmatpush1.msra.mxu1 %v8043_v54  ;;  %v13164_v54 = vld [vmem:[#allocation28_spill] sm:$0xff]  ;;  %v13165_v53 = vld [vmem:[#allocation29_spill] sm:$0xff]  ;;  %v13170_v51 = vld [vmem:[#allocation34_spill] sm:$0xff] }
 0x182   :  { %1267 = vmatprep.subr.mxu0 %v8050_v55  ;;  %1338 = vmatprep.subr.mxu1 %v8055_v59  ;;  %v13167_v55 = vld [vmem:[#allocation31_spill] sm:$0xff]  ;;  %v13168_v59 = vld [vmem:[#allocation32_spill] sm:$0xff] }
 0x183   :  { %1268 = vmatpush1.msra.mxu0 %v8062_v48  ;;  %1301 = vmatprep.mubr.f32.mxu0 %v13135_v56  ;;  %v13169_v48 = vld [vmem:[#allocation33_spill] sm:$0xff] }
 0x184   :  { %1339 = vmatpush1.msra.mxu1 %v8069_v49  ;;  %1372 = vmatprep.mubr.f32.mxu1 %v13135_v56  ;;  %v13171_v49 = vld [vmem:[#allocation35_spill] sm:$0xff] }
 0x185   :  { %1302 = vmatmul.mubr.f32.vlgmr.msra.gmra.mxu0 %v13135_v56  ;;  %1373 = vmatmul.mubr.f32.vlgmr.msra.gmra.mxu1 %v13135_v56 }
 0x186   :  { %1499 = vmatprep.subr.mxu0 %v13164_v54  ;;  %1570 = vmatprep.subr.mxu1 %v13165_v53  ;;  %v13175_v54 = vld [vmem:[#allocation39_spill] sm:$0xff]  ;;  %v13176_v53 = vld [vmem:[#allocation40_spill] sm:$0xff] }
 0x187   :  { %1500 = vmatpush1.msra.mxu0 %v13166_v52  ;;  %1571 = vmatpush1.msra.mxu1 %v13167_v55  ;;  %v13177_v52 = vld [vmem:[#allocation41_spill] sm:$0xff]  ;;  %v13178_v55 = vld [vmem:[#allocation42_spill] sm:$0xff] }
 0x188   :  { %1501 = vmatprep.subr.mxu0 %v13168_v59  ;;  %1572 = vmatprep.subr.mxu1 %v13169_v48  ;;  %v13179_v59 = vld [vmem:[#allocation43_spill] sm:$0xff]  ;;  %v13180_v48 = vld [vmem:[#allocation44_spill] sm:$0xff] }
 0x189   :  { %1502 = vmatpush1.msra.mxu0 %v13170_v51  ;;  %1573 = vmatpush1.msra.mxu1 %v13171_v49  ;;  %v13181_v51 = vld [vmem:[#allocation45_spill] sm:$0xff]  ;;  %v13182_v49 = vld [vmem:[#allocation46_spill] sm:$0xff] }
 0x18a   :  { %1503 = vmatprep.subr.mxu0 %v13172_v47  ;;  %1574 = vmatprep.subr.mxu1 %v13173_v46  ;;  %v13183_v47 = vld [vmem:[#allocation47_spill] sm:$0xff]  ;;  %v13184_v46 = vld [vmem:[#allocation48_spill] sm:$0xff] }
 0x18b   :  { %1504 = vmatpush1.msra.mxu0 %v13174_v45  ;;  %1575 = vmatpush1.msra.mxu1 %v13175_v54  ;;  %v13185_v45 = vld [vmem:[#allocation49_spill] sm:$0xff]  ;;  %v13186_v54 = vld [vmem:[#allocation50_spill] sm:$0xff] }
 0x18c   :  { %1505 = vmatprep.subr.mxu0 %v13176_v53  ;;  %1576 = vmatprep.subr.mxu1 %v13177_v52  ;;  %v13187_v53 = vld [vmem:[#allocation51_spill] sm:$0xff]  ;;  %v13188_v52 = vld [vmem:[#allocation52_spill] sm:$0xff] }
 0x18d   :  { %1506 = vmatpush1.msra.mxu0 %v13178_v55  ;;  %1577 = vmatpush1.msra.mxu1 %v13179_v59  ;;  %v13189_v55 = vld [vmem:[#allocation53_spill] sm:$0xff]  ;;  %v13190_v59 = vld [vmem:[#allocation54_spill] sm:$0xff] }
 0x18e   :  { %1507 = vmatprep.subr.mxu0 %v13180_v48  ;;  %1578 = vmatprep.subr.mxu1 %v13181_v51  ;;  %v13191_v48 = vld [vmem:[#allocation55_spill] sm:$0xff]  ;;  %v13192_v51 = vld [vmem:[#allocation56_spill] sm:$0xff] }
 0x18f   :  { %1508 = vmatpush1.msra.mxu0 %v13182_v49  ;;  %1579 = vmatpush1.msra.mxu1 %v13183_v47  ;;  %v13193_v49 = vld [vmem:[#allocation57_spill] sm:$0xff]  ;;  %v13194_v47 = vld [vmem:[#allocation58_spill] sm:$0xff] }
 0x190   :  { %1509 = vmatprep.subr.mxu0 %v13184_v46  ;;  %1580 = vmatprep.subr.mxu1 %v13185_v45  ;;  %v13195_v46 = vld [vmem:[#allocation59_spill] sm:$0xff]  ;;  %v13196_v45 = vld [vmem:[#allocation60_spill] sm:$0xff] }
 0x191   :  { %1510 = vmatpush1.msra.mxu0 %v13186_v54  ;;  %1581 = vmatpush1.msra.mxu1 %v13187_v53  ;;  %v13197_v54 = vld [vmem:[#allocation61_spill] sm:$0xff]  ;;  %v13198_v53 = vld [vmem:[#allocation62_spill] sm:$0xff] }
 0x192   :  { %1511 = vmatprep.subr.mxu0 %v13188_v52  ;;  %1582 = vmatprep.subr.mxu1 %v13189_v55  ;;  %v13199_v52 = vld [vmem:[#allocation63_spill] sm:$0xff]  ;;  %v13200_v55 = vld [vmem:[#allocation64_spill] sm:$0xff] }
 0x193   :  { %1512 = vmatpush1.msra.mxu0 %v13190_v59  ;;  %1583 = vmatpush1.msra.mxu1 %v13191_v48  ;;  %v13201_v59 = vld [vmem:[#allocation65_spill] sm:$0xff]  ;;  %v13202_v48 = vld [vmem:[#allocation66_spill] sm:$0xff] }
 0x194   :  { %1513 = vmatprep.subr.mxu0 %v13192_v51  ;;  %1584 = vmatprep.subr.mxu1 %v13193_v49  ;;  %v13203_v51 = vld [vmem:[#allocation67_spill] sm:$0xff]  ;;  %v13204_v49 = vld [vmem:[#allocation68_spill] sm:$0xff] }
 0x195   :  { %1514 = vmatpush1.msra.mxu0 %v13194_v47  ;;  %1585 = vmatpush1.msra.mxu1 %v13195_v46  ;;  %v13205_v47 = vld [vmem:[#allocation69_spill] sm:$0xff]  ;;  %v13206_v46 = vld [vmem:[#allocation70_spill] sm:$0xff] }
 0x196   :  { %1515 = vmatprep.subr.mxu0 %v13196_v45  ;;  %1586 = vmatprep.subr.mxu1 %v13197_v54  ;;  %v13207_v45 = vld [vmem:[#allocation71_spill] sm:$0xff]  ;;  %v13208_v54 = vld [vmem:[#allocation72_spill] sm:$0xff] }
 0x197   :  { %1516 = vmatpush1.msra.mxu0 %v13198_v53  ;;  %1587 = vmatpush1.msra.mxu1 %v13199_v52  ;;  %v13209_v53 = vld [vmem:[#allocation73_spill] sm:$0xff]  ;;  %v13210_v52 = vld [vmem:[#allocation74_spill] sm:$0xff] }
 0x198   :  { %1517 = vmatprep.subr.mxu0 %v13200_v55  ;;  %1588 = vmatprep.subr.mxu1 %v13201_v59  ;;  %v13211_v55 = vld [vmem:[#allocation75_spill] sm:$0xff]  ;;  %v13212_v59 = vld [vmem:[#allocation76_spill] sm:$0xff] }
 0x199   :  { %1518 = vmatpush1.msra.mxu0 %v13202_v48  ;;  %1589 = vmatpush1.msra.mxu1 %v13203_v51  ;;  %v13213_v48 = vld [vmem:[#allocation77_spill] sm:$0xff]  ;;  %v13214_v51 = vld [vmem:[#allocation78_spill] sm:$0xff] }
 0x19a   :  { %1519 = vmatprep.subr.mxu0 %v13204_v49  ;;  %1590 = vmatprep.subr.mxu1 %v13205_v47  ;;  %v13215_v49 = vld [vmem:[#allocation79_spill] sm:$0xff]  ;;  %v13216_v47 = vld [vmem:[#allocation80_spill] sm:$0xff] }
 0x19b   :  { %1520 = vmatpush1.msra.mxu0 %v13206_v46  ;;  %1591 = vmatpush1.msra.mxu1 %v13207_v45  ;;  %v13217_v46 = vld [vmem:[#allocation81_spill] sm:$0xff]  ;;  %v13218_v45 = vld [vmem:[#allocation82_spill] sm:$0xff] }
 0x19c   :  { %1521 = vmatprep.subr.mxu0 %v13208_v54  ;;  %1592 = vmatprep.subr.mxu1 %v13209_v53  ;;  %v13219_v54 = vld [vmem:[#allocation83_spill] sm:$0xff]  ;;  %v13220_v53 = vld [vmem:[#allocation84_spill] sm:$0xff] }
 0x19d   :  { %1522 = vmatpush1.msra.mxu0 %v13210_v52  ;;  %1593 = vmatpush1.msra.mxu1 %v13211_v55  ;;  %v13221_v52 = vld [vmem:[#allocation85_spill] sm:$0xff]  ;;  %v13222_v55 = vld [vmem:[#allocation86_spill] sm:$0xff] }
 0x19e   :  { %1523 = vmatprep.subr.mxu0 %v13212_v59  ;;  %1594 = vmatprep.subr.mxu1 %v13213_v48  ;;  %v13223_v59 = vld [vmem:[#allocation87_spill] sm:$0xff]  ;;  %v13224_v48 = vld [vmem:[#allocation88_spill] sm:$0xff] }
 0x19f   :  { %1524 = vmatpush1.msra.mxu0 %v13214_v51  ;;  %1595 = vmatpush1.msra.mxu1 %v13215_v49  ;;  %v13225_v51 = vld [vmem:[#allocation89_spill] sm:$0xff]  ;;  %v13226_v49 = vld [vmem:[#allocation90_spill] sm:$0xff] }
 0x1a0   :  { %1525 = vmatprep.subr.mxu0 %v13216_v47  ;;  %1596 = vmatprep.subr.mxu1 %v13217_v46  ;;  %v13227_v47 = vld [vmem:[#allocation91_spill] sm:$0xff]  ;;  %v8148_v46 = vld [vmem:[%s12508_s2 + $0x1e8] sm:$0xff] }
 0x1a1   :  { %1526 = vmatpush1.msra.mxu0 %v13218_v45  ;;  %1597 = vmatpush1.msra.mxu1 %v13219_v54  ;;  %13228 = vst [vmem:[#allocation28_spill] sm:$0xff] %v8148_v46  ;;  %v8153_v45 = vld [vmem:[%s12508_s2 + $0x1f8] sm:$0xff] }
 0x1a2   :  { %1527 = vmatprep.subr.mxu0 %v13220_v53  ;;  %1598 = vmatprep.subr.mxu1 %v13221_v52  ;;  %13229 = vst [vmem:[#allocation29_spill] sm:$0xff] %v8153_v45 }
 0x1a3   :  { %1528 = vmatpush1.msra.mxu0 %v13222_v55  ;;  %1599 = vmatpush1.msra.mxu1 %v13223_v59  ;;  %v13230_v59 = vld [vmem:[#allocation96_spill] sm:$0xff] }
 0x1a4   :  { %1529 = vmatprep.subr.mxu0 %v13224_v48  ;;  %1600 = vmatprep.subr.mxu1 %v13225_v51 }
 0x1a5   :  { %1530 = vmatpush1.msra.mxu0 %v13226_v49  ;;  %1601 = vmatpush1.msra.mxu1 %v13227_v47  ;;  %v13231_v47 = vld [vmem:[#allocation98_spill] sm:$0xff] }
 0x1a6   :  { %1563 = vmatprep.mubr.f32.mxu0 %v13135_v56  ;;  %1634 = vmatprep.mubr.f32.mxu1 %v13135_v56 }
 0x1a7   :  { %1713 = vmatprep.subr.mxu0 %v8148_v46  ;;  %1784 = vmatprep.subr.mxu1 %v8153_v45 }
 0x202   :  { %v851_v54 = vpop.f32.mrf.mxu0  ;;  %v922_v55 = vpop.f32.mrf.mxu1 }
 0x204   :  { %v853_v53 = vpop.f32.mrf.mxu0  ;;  %v924_v43 = vpop.f32.mrf.mxu1 }
 0x223   :  { %v1065_v52 = vpop.f32.mrf.mxu0  ;;  %v1136_v41 = vpop.f32.mrf.mxu1 }
 0x224   :  { %v1141_v48 = vadd.f32 %v1065_v52, %v13230_v59  ;;  %v1143_v45 = vadd.f32 %v1136_v41, %v13233_v38  ;;  %v13234_v59 = vld [vmem:[#allocation93_spill] sm:$0xff] }
 0x225   :  { %v1067_v51 = vpop.f32.mrf.mxu0  ;;  %v1138_v40 = vpop.f32.mrf.mxu1 }
 0x226   :  { %v6220_v49 = vmul.f32 -1.442695, %v1141_v48  ;;  %v1142_v44 = vadd.f32 %v1067_v51, %v13231_v47  ;;  %v1144_v46 = vadd.f32 %v1138_v40, %v13232_v39  ;;  %v13235_v48 = vld [vmem:[#allocation95_spill] sm:$0xff] }
 0x228   :  { %6341 = vpow2.f32 %v6220_v49  ;;  %v6221_v42 = vmul.f32 -1.442695, %v1142_v44  ;;  %v6222_v36 = vmul.f32 -1.442695, %v1144_v46  ;;  %v763_v44 = vld [vmem:[%s12512_s6] sm:$0xf] }
 0x229   :  { %v772_v51 = vrot.slane %v763_v44, %v13235_v48 }
 0x22a   :  { %6343 = vpow2.f32 %v6221_v42  ;;  %v768_v42 = vrot.slane %v763_v44, %v13234_v59 }
 0x22b   :  { %6345 = vtanh.f32 %v1143_v45 }
 0x22c   :  { %v852_v40 = vadd.f32 %v851_v54, %v768_v42  ;;  %v780_v54 = vrot.slane %v763_v44, %v13236_v26 }
 0x235   :  { %v6342_v37 = vpop.eup %6341 }
 0x236   :  { %v1148_v33 = vadd.f32 1.0, %v6342_v37  ;;  %v854_v37 = vadd.f32 %v853_v53, %v772_v51  ;;  %v925_v53 = vadd.f32 %v924_v43, %v780_v54  ;;  %v13237_v51 = vld [vmem:[#allocation92_spill] sm:$0xff] }
 0x237   :  { %v6344_v32 = vpop.eup %6343  ;;  %v8177_v43 = vld [vmem:[%s12508_s2 + $0x1e0] sm:$0xff] }
 0x238   :  { %6347 = vrcp.f32 %v1148_v33  ;;  %v1154_v52 = vadd.f32 1.0, %v6344_v32  ;;  %v6346_v39 = vpop.eup %6345  ;;  %v8223_v54 = vld [vmem:[%s12508_s2 + $0x1a0] sm:$0xff] }
 0x239   :  { %6349 = vpow2.f32 %v6222_v36  ;;  %13239 = vst [vmem:[#allocation31_spill] sm:$0xff] %v8223_v54 }
 0x23a   :  { %6351 = vrcp.f32 %v1154_v52 }
 0x245   :  { %v6348_v38 = vpop.eup %6347  ;;  %v1303_v41 = vpop.f32.mrf.mxu0 }
 0x246   :  { %v6350_v46 = vpop.eup %6349  ;;  %v1166_v49 = vmul.f32 %v6348_v38, %v6346_v39  ;;  %v1379_v45 = vadd.f32 %v1303_v41, %v852_v40  ;;  %v1374_v59 = vpop.f32.mrf.mxu1  ;;  %v776_v39 = vrot.slane %v763_v44, %v13237_v51  ;;  %v8187_v44 = vld [vmem:[%s12508_s2 + $0x1c8] sm:$0xff] }
 0x247   :  { %v6352_v33 = vpop.eup %6351  ;;  %v1305_v32 = vpop.f32.mrf.mxu0  ;;  %v1161_v20 = vadd.f32 1.0, %v6350_v46 }
 0x248   :  { %v1165_v36 = vmul.f32 %v6352_v33, %v7618_v17  ;;  %v6223_v47 = vmul.f32 -1.442695, %v1379_v45  ;;  %v1380_v52 = vadd.f32 %v1305_v32, %v854_v37  ;;  %v1376_v42 = vpop.f32.mrf.mxu1  ;;  %v923_v17 = vadd.f32 %v922_v55, %v776_v39  ;;  %v8182_v55 = vld [vmem:[%s12508_s2 + $0x1f0] sm:$0xff]  ;;  %v8240_v39 = vld [vmem:[%s12508_s2 + $0x198] sm:$0xff] }
 0x249   :  { %v1382_v40 = vadd.f32 %v1376_v42, %v925_v53  ;;  %v8228_v42 = vld [vmem:[%s12508_s2 + $0x1b0] sm:$0xff]  ;;  %v8235_v53 = vld [vmem:[%s12508_s2 + $0x188] sm:$0xff]  ;;  %13242 = vst [vmem:[#allocation34_spill] sm:$0xff] %v8240_v39 }
 0x24a   :  { %v8167_v50 = vadd.f32 %v1166_v49, %v1165_v36  ;;  %6353 = vpow2.f32 %v6223_v47  ;;  %v6224_v48 = vmul.f32 -1.442695, %v1380_v52  ;;  %v1381_v46 = vadd.f32 %v1374_v59, %v923_v17  ;;  %v8192_v59 = vld [vmem:[%s12508_s2 + $0x1d8] sm:$0xff]  ;;  %v8204_v36 = vld [vmem:[%s12508_s2 + $0x1d0] sm:$0xff]  ;;  %v8211_v47 = vld [vmem:[%s12508_s2 + $0x1a8] sm:$0xff]  ;;  %13240 = vst [vmem:[#allocation32_spill] sm:$0xff] %v8228_v42 }
 0x24b   :  { %v6225_v38 = vmul.f32 -1.442695, %v1382_v40  ;;  %v8216_v52 = vld [vmem:[%s12508_s2 + $0x1b8] sm:$0xff]  ;;  %13241 = vst [vmem:[#allocation33_spill] sm:$0xff] %v8235_v53  ;;  %v8247_v40 = vld [vmem:[%s12508_s2 + $0x180] sm:$0xff]  ;;  %v8252_v17 = vld [vmem:[%s12508_s2 + $0x190] sm:$0xff] }
 0x24c   :  { %6355 = vpow2.f32 %v6224_v48  ;;  %v8199_v48 = vld [vmem:[%s12508_s2 + $0x1c0] sm:$0xff]  ;;  %13238 = vst [vmem:[#allocation30_spill] sm:$0xff] %v8216_v52  ;;  %13243 = vst [vmem:[#allocation35_spill] sm:$0xff] %v8247_v40 }
 0x24d   :  { %6357 = vrcp.f32 %v1161_v20  ;;  %13244 = vst [vmem:[#allocation36_spill] sm:$0xff] %v8252_v17 }
 0x24e   :  { %6359 = vtanh.f32 %v8167_v50 }
 0x24f   :  { %6361 = vpow2.f32 %v6225_v38  ;;  %v8259_v38 = vld [vmem:[%s12508_s2 + $0x168] sm:$0xff] }
 0x250   :  { %13245 = vst [vmem:[#allocation37_spill] sm:$0xff] %v8259_v38 }
 0x257   :  { %v6354_v41 = vpop.eup %6353 }
 0x258   :  { %v1386_v37 = vadd.f32 1.0, %v6354_v41  ;;  %v8264_v41 = vld [vmem:[%s12508_s2 + $0x178] sm:$0xff] }
 0x259   :  { %v6356_v49 = vpop.eup %6355  ;;  %13246 = vst [vmem:[#allocation38_spill] sm:$0xff] %v8264_v41 }
 0x25a   :  { %v6358_v45 = vpop.eup %6357  ;;  %6363 = vrcp.f32 %v1386_v37  ;;  %v1392_v33 = vadd.f32 1.0, %v6356_v49  ;;  %v8276_v37 = vld [vmem:[%s12508_s2 + $0x170] sm:$0xff]  ;;  %v8283_v49 = vld [vmem:[%s12508_s2 + $0x148] sm:$0xff] }
 0x25b   :  { %v6360_v32 = vpop.eup %6359  ;;  %6365 = vtanh.f32 %v1381_v46  ;;  %v8271_v46 = vld [vmem:[%s12508_s2 + $0x160] sm:$0xff]  ;;  %13248 = vst [vmem:[#allocation40_spill] sm:$0xff] %v8276_v37  ;;  %13249 = vst [vmem:[#allocation41_spill] sm:$0xff] %v8283_v49 }
 0x25c   :  { %6367 = vrcp.f32 %v1392_v33  ;;  %v8172_v20 = vmul.f32 %v6360_v32, %v6358_v45  ;;  %13247 = vst [vmem:[#allocation39_spill] sm:$0xff] %v8271_v46  ;;  %v8288_v45 = vld [vmem:[%s12508_s2 + $0x158] sm:$0xff]  ;;  %v6362_v33 = vpop.eup %6361  ;;  %v8295_v32 = vld [vmem:[%s12508_s2 + $0x140] sm:$0xff] }
 0x25d   :  { %13250 = vst [vmem:[#allocation42_spill] sm:$0xff] %v8288_v45 }
 0x25e   :  { %1564 = vmatmul.mubr.f32.vlgmr.msra.gmra.mxu0 %v8172_v20  ;;  %1635 = vmatmul.mubr.f32.vlgmr.msra.gmra.mxu1 %v8172_v20 }
 0x25f   :  { %1714 = vmatpush1.msra.mxu0 %v8177_v43  ;;  %1785 = vmatpush1.msra.mxu1 %v8182_v55 }
 0x260   :  { %1715 = vmatprep.subr.mxu0 %v8187_v44  ;;  %1786 = vmatprep.subr.mxu1 %v8192_v59 }
 0x261   :  { %1716 = vmatpush1.msra.mxu0 %v8199_v48  ;;  %1787 = vmatpush1.msra.mxu1 %v8204_v36 }
 0x262   :  { %1717 = vmatprep.subr.mxu0 %v8211_v47  ;;  %1788 = vmatprep.subr.mxu1 %v8216_v52 }
 0x263   :  { %1718 = vmatpush1.msra.mxu0 %v8223_v54  ;;  %1789 = vmatpush1.msra.mxu1 %v8228_v42  ;;  %v1399_v42 = vadd.f32 1.0, %v6362_v33  ;;  %v8343_v33 = vld [vmem:[%s12508_s2 + $0x100] sm:$0xff] }
 0x264   :  { %1719 = vmatprep.subr.mxu0 %v8235_v53  ;;  %1790 = vmatprep.subr.mxu1 %v8240_v39  ;;  %13255 = vst [vmem:[#allocation47_spill] sm:$0xff] %v8343_v33 }
 0x265   :  { %1720 = vmatpush1.msra.mxu0 %v8247_v40  ;;  %1791 = vmatpush1.msra.mxu1 %v8252_v17  ;;  %v8300_v17 = vld [vmem:[%s12508_s2 + $0x150] sm:$0xff]  ;;  %6369 = vrcp.f32 %v1399_v42  ;;  %v8394_v42 = vld [vmem:[%s12508_s2 + $0xc0] sm:$0xff] }
 0x266   :  { %1721 = vmatprep.subr.mxu0 %v8259_v38  ;;  %1792 = vmatprep.subr.mxu1 %v8264_v41  ;;  %13251 = vst [vmem:[#allocation43_spill] sm:$0xff] %v8300_v17  ;;  %v8307_v38 = vld [vmem:[%s12508_s2 + $0x128] sm:$0xff]  ;;  %v8312_v41 = vld [vmem:[%s12508_s2 + $0x138] sm:$0xff]  ;;  %13263 = vst [vmem:[#allocation55_spill] sm:$0xff] %v8394_v42 }
 0x267   :  { %v6364_v40 = vpop.eup %6363  ;;  %1722 = vmatpush1.msra.mxu0 %v8271_v46  ;;  %1793 = vmatpush1.msra.mxu1 %v8276_v37  ;;  %v8319_v46 = vld [vmem:[%s12508_s2 + $0x120] sm:$0xff]  ;;  %v8324_v37 = vld [vmem:[%s12508_s2 + $0x130] sm:$0xff] }
 0x268   :  { %v6366_v39 = vpop.eup %6365  ;;  %1723 = vmatprep.subr.mxu0 %v8283_v49  ;;  %1794 = vmatprep.subr.mxu1 %v8288_v45  ;;  %13252 = vst [vmem:[#allocation44_spill] sm:$0xff] %v8319_v46  ;;  %13253 = vst [vmem:[#allocation45_spill] sm:$0xff] %v8324_v37  ;;  %v8331_v45 = vld [vmem:[%s12508_s2 + $0x108] sm:$0xff]  ;;  %v8336_v49 = vld [vmem:[%s12508_s2 + $0x118] sm:$0xff] }
 0x269   :  { %v6368_v53 = vpop.eup %6367  ;;  %1724 = vmatpush1.msra.mxu0 %v8295_v32  ;;  %1795 = vmatpush1.msra.mxu1 %v8300_v17  ;;  %13254 = vst [vmem:[#allocation46_spill] sm:$0xff] %v8336_v49  ;;  %v1404_v52 = vmul.f32 %v6366_v39, %v6364_v40  ;;  %v8348_v17 = vld [vmem:[%s12508_s2 + $0x110] sm:$0xff]  ;;  %v8360_v39 = vld [vmem:[%s12508_s2 + $0xf8] sm:$0xff] }
 0x26a   :  { %v1403_v54 = vmul.f32 0.0, %v6368_v53  ;;  %1725 = vmatprep.subr.mxu0 %v8307_v38  ;;  %1796 = vmatprep.subr.mxu1 %v8312_v41  ;;  %13256 = vst [vmem:[#allocation48_spill] sm:$0xff] %v8348_v17  ;;  %v8355_v53 = vld [vmem:[%s12508_s2 + $0xe8] sm:$0xff]  ;;  %13258 = vst [vmem:[#allocation50_spill] sm:$0xff] %v8360_v39 }
 0x26b   :  { %1726 = vmatpush1.msra.mxu0 %v8319_v46  ;;  %1797 = vmatpush1.msra.mxu1 %v8324_v37  ;;  %13257 = vst [vmem:[#allocation49_spill] sm:$0xff] %v8355_v53  ;;  %v8369_v37 = vld [vmem:[%s12508_s2 + $0xe0] sm:$0xff]  ;;  %v8374_v46 = vld [vmem:[%s12508_s2 + $0xf0] sm:$0xff] }
 0x26c   :  { %v8362_v40 = vadd.f32 %v1404_v52, %v1403_v54  ;;  %1727 = vmatprep.subr.mxu0 %v8331_v45  ;;  %1798 = vmatprep.subr.mxu1 %v8336_v49  ;;  %13259 = vst [vmem:[#allocation51_spill] sm:$0xff] %v8369_v37  ;;  %13260 = vst [vmem:[#allocation52_spill] sm:$0xff] %v8374_v46  ;;  %v8381_v52 = vld [vmem:[%s12508_s2 + $0xc8] sm:$0xff]  ;;  %v8386_v54 = vld [vmem:[%s12508_s2 + $0xd8] sm:$0xff] }
 0x26d   :  { %1728 = vmatpush1.msra.mxu0 %v8343_v33  ;;  %1799 = vmatpush1.msra.mxu1 %v8348_v17  ;;  %13261 = vst [vmem:[#allocation53_spill] sm:$0xff] %v8381_v52  ;;  %13262 = vst [vmem:[#allocation54_spill] sm:$0xff] %v8386_v54  ;;  %v8399_v17 = vld [vmem:[%s12508_s2 + $0xd0] sm:$0xff] }
 0x26e   :  { %6371 = vtanh.f32 %v8362_v40  ;;  %1729 = vmatprep.subr.mxu0 %v8355_v53  ;;  %1800 = vmatprep.subr.mxu1 %v8360_v39  ;;  %13264 = vst [vmem:[#allocation56_spill] sm:$0xff] %v8399_v17  ;;  %v8406_v53 = vld [vmem:[%s12508_s2 + $0xa8] sm:$0xff]  ;;  %v8411_v39 = vld [vmem:[%s12508_s2 + $0xb8] sm:$0xff]  ;;  %v8545_v49 = vld [vmem:[%s12508_s2 + $0x10] sm:$0xff] }
 0x26f   :  { %1730 = vmatpush1.msra.mxu0 %v8369_v37  ;;  %1801 = vmatpush1.msra.mxu1 %v8374_v46  ;;  %13265 = vst [vmem:[#allocation57_spill] sm:$0xff] %v8406_v53  ;;  %13266 = vst [vmem:[#allocation58_spill] sm:$0xff] %v8411_v39  ;;  %v8418_v37 = vld [vmem:[%s12508_s2 + $0xa0] sm:$0xff]  ;;  %v8423_v46 = vld [vmem:[%s12508_s2 + $0xb0] sm:$0xff] }
 0x270   :  { %1731 = vmatprep.subr.mxu0 %v8381_v52  ;;  %1802 = vmatprep.subr.mxu1 %v8386_v54  ;;  %13267 = vst [vmem:[#allocation59_spill] sm:$0xff] %v8418_v37  ;;  %13268 = vst [vmem:[#allocation60_spill] sm:$0xff] %v8423_v46  ;;  %v8430_v52 = vld [vmem:[%s12508_s2 + $0x88] sm:$0xff]  ;;  %v8435_v54 = vld [vmem:[%s12508_s2 + $0x98] sm:$0xff] }
 0x271   :  { %1732 = vmatpush1.msra.mxu0 %v8394_v42  ;;  %1803 = vmatpush1.msra.mxu1 %v8399_v17  ;;  %13269 = vst [vmem:[#allocation61_spill] sm:$0xff] %v8430_v52  ;;  %13270 = vst [vmem:[#allocation62_spill] sm:$0xff] %v8435_v54  ;;  %v8442_v42 = vld [vmem:[%s12508_s2 + $0x80] sm:$0xff]  ;;  %v8447_v17 = vld [vmem:[%s12508_s2 + $0x90] sm:$0xff] }
 0x272   :  { %1733 = vmatprep.subr.mxu0 %v8406_v53  ;;  %1804 = vmatprep.subr.mxu1 %v8411_v39  ;;  %13271 = vst [vmem:[#allocation63_spill] sm:$0xff] %v8442_v42  ;;  %13272 = vst [vmem:[#allocation64_spill] sm:$0xff] %v8447_v17  ;;  %v8454_v53 = vld [vmem:[%s12508_s2 + $0x68] sm:$0xff]  ;;  %v8459_v39 = vld [vmem:[%s12508_s2 + $0x78] sm:$0xff]  ;;  %v6370_v33 = vpop.eup %6369 }
 0x273   :  { %1734 = vmatpush1.msra.mxu0 %v8418_v37  ;;  %1805 = vmatpush1.msra.mxu1 %v8423_v46  ;;  %13273 = vst [vmem:[#allocation65_spill] sm:$0xff] %v8454_v53  ;;  %13274 = vst [vmem:[#allocation66_spill] sm:$0xff] %v8459_v39  ;;  %v8466_v37 = vld [vmem:[%s12508_s2 + $0x60] sm:$0xff]  ;;  %v8471_v46 = vld [vmem:[%s12508_s2 + $0x70] sm:$0xff] }
 0x274   :  { %1735 = vmatprep.subr.mxu0 %v8430_v52  ;;  %1806 = vmatprep.subr.mxu1 %v8435_v54  ;;  %13275 = vst [vmem:[#allocation67_spill] sm:$0xff] %v8466_v37  ;;  %13276 = vst [vmem:[#allocation68_spill] sm:$0xff] %v8471_v46  ;;  %v8478_v52 = vld [vmem:[%s12508_s2 + $0x48] sm:$0xff]  ;;  %v8483_v54 = vld [vmem:[%s12508_s2 + $0x58] sm:$0xff] }
 0x275   :  { %1736 = vmatpush1.msra.mxu0 %v8442_v42  ;;  %1807 = vmatpush1.msra.mxu1 %v8447_v17  ;;  %13277 = vst [vmem:[#allocation69_spill] sm:$0xff] %v8478_v52  ;;  %13278 = vst [vmem:[#allocation70_spill] sm:$0xff] %v8483_v54  ;;  %v8490_v42 = vld [vmem:[%s12508_s2 + $0x40] sm:$0xff]  ;;  %v8495_v17 = vld [vmem:[%s12508_s2 + $0x50] sm:$0xff] }
 0x276   :  { %1737 = vmatprep.subr.mxu0 %v8454_v53  ;;  %1808 = vmatprep.subr.mxu1 %v8459_v39  ;;  %13279 = vst [vmem:[#allocation71_spill] sm:$0xff] %v8490_v42  ;;  %13280 = vst [vmem:[#allocation72_spill] sm:$0xff] %v8495_v17  ;;  %v8502_v53 = vld [vmem:[%s12508_s2 + $0x28] sm:$0xff]  ;;  %v8507_v39 = vld [vmem:[%s12508_s2 + $0x38] sm:$0xff] }
 0x277   :  { %1738 = vmatpush1.msra.mxu0 %v8466_v37  ;;  %1809 = vmatpush1.msra.mxu1 %v8471_v46  ;;  %13281 = vst [vmem:[#allocation73_spill] sm:$0xff] %v8507_v39  ;;  %v8514_v37 = vld [vmem:[%s12508_s2 + $0x20] sm:$0xff]  ;;  %v8519_v46 = vld [vmem:[%s12508_s2 + $0x30] sm:$0xff] }
 0x278   :  { %1739 = vmatprep.subr.mxu0 %v8478_v52  ;;  %1810 = vmatprep.subr.mxu1 %v8483_v54  ;;  %v8526_v52 = vld [vmem:[%s12508_s2 + $0x8] sm:$0xff]  ;;  %v8531_v54 = vld [vmem:[%s12508_s2 + $0x18] sm:$0xff] }
 0x279   :  { %1740 = vmatpush1.msra.mxu0 %v8490_v42  ;;  %1811 = vmatpush1.msra.mxu1 %v8495_v17  ;;  %v8538_v42 = vld [vmem:[%s12508_s2] sm:$0xff] }
 0x27a   :  { %1741 = vmatprep.subr.mxu0 %v8502_v53  ;;  %1812 = vmatprep.subr.mxu1 %v8507_v39 }
 0x27b   :  { %v6372_v17 = vpop.eup %6371  ;;  %1742 = vmatpush1.msra.mxu0 %v8514_v37  ;;  %1813 = vmatpush1.msra.mxu1 %v8519_v46 }
 0x27c   :  { %1743 = vmatprep.subr.mxu0 %v8526_v52  ;;  %1814 = vmatprep.subr.mxu1 %v8531_v54  ;;  %v8549_v39 = vmul.f32 %v6372_v17, %v6370_v33  ;;  %v8699_v17 = vld [vmem:[%s12509_s4 + $0x1b0] sm:$0xff]  ;;  %v8706_v33 = vld [vmem:[%s12509_s4 + $0x188] sm:$0xff] }
 0x27d   :  { %1744 = vmatpush1.msra.mxu0 %v8538_v42  ;;  %1777 = vmatprep.mubr.f32.mxu0 %v13135_v56 }
 0x27e   :  { %1815 = vmatpush1.msra.mxu1 %v8545_v49  ;;  %1848 = vmatprep.mubr.f32.mxu1 %v13135_v56  ;;  %1410 = vst [vmem:[%s12513_s7] sm:$0xff] %v8549_v39 }
 0x27f   :  { %1778 = vmatmul.mubr.f32.vlgmr.msra.gmra.mxu0 %v8172_v20  ;;  %1849 = vmatmul.mubr.f32.vlgmr.msra.gmra.mxu1 %v8172_v20  ;;  %v8694_v20 = vld [vmem:[%s12509_s4 + $0x1a0] sm:$0xff] }
 0x280   :  { %1951 = vmatprep.subr.mxu0 %v7690_v57  ;;  %2022 = vmatprep.subr.mxu1 %v7695_v58  ;;  %v13282_v57 = vld [vmem:[#allocation8_spill] sm:$0xff]  ;;  %v13283_v58 = vld [vmem:[#allocation9_spill] sm:$0xff] }
 0x281   :  { %1952 = vmatpush1.msra.mxu0 %v7702_v60  ;;  %2023 = vmatpush1.msra.mxu1 %v7707_v61  ;;  %v13284_v60 = vld [vmem:[#allocation10_spill] sm:$0xff]  ;;  %v13285_v61 = vld [vmem:[#allocation11_spill] sm:$0xff] }
 0x282   :  { %1953 = vmatprep.subr.mxu0 %v7714_v62  ;;  %2024 = vmatprep.subr.mxu1 %v7719_v63  ;;  %v13286_v62 = vld [vmem:[#allocation12_spill] sm:$0xff]  ;;  %v13287_v63 = vld [vmem:[#allocation13_spill] sm:$0xff] }
 0x283   :  { %1954 = vmatpush1.msra.mxu0 %v7726_v0  ;;  %2025 = vmatpush1.msra.mxu1 %v7731_v2  ;;  %v13288_v0 = vld [vmem:[#allocation14_spill] sm:$0xff]  ;;  %v13289_v2 = vld [vmem:[#allocation15_spill] sm:$0xff] }
 0x284   :  { %1955 = vmatprep.subr.mxu0 %v7738_v3  ;;  %2026 = vmatprep.subr.mxu1 %v7743_v5  ;;  %v13290_v3 = vld [vmem:[#allocation16_spill] sm:$0xff]  ;;  %v13291_v5 = vld [vmem:[#allocation17_spill] sm:$0xff] }
 0x285   :  { %1956 = vmatpush1.msra.mxu0 %v7750_v6  ;;  %2027 = vmatpush1.msra.mxu1 %v7755_v7  ;;  %v13292_v6 = vld [vmem:[#allocation18_spill] sm:$0xff]  ;;  %v13293_v7 = vld [vmem:[#allocation19_spill] sm:$0xff] }
 0x286   :  { %1957 = vmatprep.subr.mxu0 %v7762_v8  ;;  %2028 = vmatprep.subr.mxu1 %v7767_v9  ;;  %v13294_v8 = vld [vmem:[#allocation20_spill] sm:$0xff]  ;;  %v13295_v9 = vld [vmem:[#allocation21_spill] sm:$0xff] }
 0x287   :  { %1958 = vmatpush1.msra.mxu0 %v7774_v10  ;;  %2029 = vmatpush1.msra.mxu1 %v7779_v11  ;;  %v13296_v10 = vld [vmem:[#allocation22_spill] sm:$0xff]  ;;  %v13297_v11 = vld [vmem:[#allocation23_spill] sm:$0xff] }
 0x288   :  { %1959 = vmatprep.subr.mxu0 %v7786_v12  ;;  %2030 = vmatprep.subr.mxu1 %v7791_v13  ;;  %v13298_v12 = vld [vmem:[#allocation24_spill] sm:$0xff]  ;;  %v13299_v13 = vld [vmem:[#allocation25_spill] sm:$0xff] }
 0x289   :  { %1960 = vmatpush1.msra.mxu0 %v7798_v14  ;;  %2031 = vmatpush1.msra.mxu1 %v7803_v15  ;;  %v13300_v14 = vld [vmem:[#allocation26_spill] sm:$0xff]  ;;  %v13301_v15 = vld [vmem:[#allocation27_spill] sm:$0xff] }
 0x28a   :  { %1961 = vmatprep.subr.mxu0 %v7810_v16  ;;  %2032 = vmatprep.subr.mxu1 %v7815_v34  ;;  %v13302_v16 = vld [vmem:[#allocation124_spill] sm:$0xff]  ;;  %v13303_v34 = vld [vmem:[#allocation125_spill] sm:$0xff] }
 0x28b   :  { %1962 = vmatpush1.msra.mxu0 %v7822_v1  ;;  %2033 = vmatpush1.msra.mxu1 %v7827_v27  ;;  %v13304_v1 = vld [vmem:[#allocation126_spill] sm:$0xff]  ;;  %v13305_v27 = vld [vmem:[#allocation127_spill] sm:$0xff] }
 0x28c   :  { %1963 = vmatprep.subr.mxu0 %v7834_v18  ;;  %2034 = vmatprep.subr.mxu1 %v7839_v29  ;;  %v13306_v18 = vld [vmem:[#allocation128_spill] sm:$0xff]  ;;  %v13307_v29 = vld [vmem:[#allocation129_spill] sm:$0xff] }
 0x28d   :  { %1964 = vmatpush1.msra.mxu0 %v7846_v25  ;;  %2035 = vmatpush1.msra.mxu1 %v7851_v35  ;;  %v13308_v25 = vld [vmem:[#allocation130_spill] sm:$0xff]  ;;  %v8634_v35 = vld [vmem:[%s12509_s4 + $0x1e8] sm:$0xff] }
 0x28e   :  { %1965 = vmatprep.subr.mxu0 %v7858_v4  ;;  %2036 = vmatprep.subr.mxu1 %v7863_v24  ;;  %v8639_v4 = vld [vmem:[%s12509_s4 + $0x1f8] sm:$0xff]  ;;  %v8646_v24 = vld [vmem:[%s12509_s4 + $0x1e0] sm:$0xff] }
 0x28f   :  { %1966 = vmatpush1.msra.mxu0 %v7870_v21  ;;  %2037 = vmatpush1.msra.mxu1 %v7875_v31  ;;  %v8651_v21 = vld [vmem:[%s12509_s4 + $0x1f0] sm:$0xff]  ;;  %v8658_v31 = vld [vmem:[%s12509_s4 + $0x1c8] sm:$0xff] }
 0x290   :  { %1967 = vmatprep.subr.mxu0 %v7882_v23  ;;  %2038 = vmatprep.subr.mxu1 %v7887_v28  ;;  %v8663_v23 = vld [vmem:[%s12509_s4 + $0x1d8] sm:$0xff]  ;;  %v8670_v28 = vld [vmem:[%s12509_s4 + $0x1c0] sm:$0xff] }
 0x291   :  { %1968 = vmatpush1.msra.mxu0 %v7894_v19  ;;  %2039 = vmatpush1.msra.mxu1 %v7899_v30  ;;  %v8675_v19 = vld [vmem:[%s12509_s4 + $0x1d0] sm:$0xff]  ;;  %v8682_v30 = vld [vmem:[%s12509_s4 + $0x1a8] sm:$0xff] }
 0x292   :  { %1969 = vmatprep.subr.mxu0 %v7906_v22  ;;  %2040 = vmatprep.subr.mxu1 %v13282_v57  ;;  %v8687_v22 = vld [vmem:[%s12509_s4 + $0x1b8] sm:$0xff]  ;;  %v8718_v57 = vld [vmem:[%s12509_s4 + $0x180] sm:$0xff] }
 0x293   :  { %1970 = vmatpush1.msra.mxu0 %v13283_v58  ;;  %2041 = vmatpush1.msra.mxu1 %v13284_v60  ;;  %v8723_v58 = vld [vmem:[%s12509_s4 + $0x190] sm:$0xff]  ;;  %v8730_v60 = vld [vmem:[%s12509_s4 + $0x168] sm:$0xff] }
 0x294   :  { %1971 = vmatprep.subr.mxu0 %v13285_v61  ;;  %2042 = vmatprep.subr.mxu1 %v13286_v62  ;;  %v8735_v61 = vld [vmem:[%s12509_s4 + $0x178] sm:$0xff]  ;;  %v8742_v62 = vld [vmem:[%s12509_s4 + $0x160] sm:$0xff] }
 0x295   :  { %1972 = vmatpush1.msra.mxu0 %v13287_v63  ;;  %2043 = vmatpush1.msra.mxu1 %v13288_v0  ;;  %13309 = vst [vmem:[#allocation74_spill] sm:$0xff] %v8735_v61  ;;  %13310 = vst [vmem:[#allocation75_spill] sm:$0xff] %v8742_v62  ;;  %v8747_v63 = vld [vmem:[%s12509_s4 + $0x170] sm:$0xff]  ;;  %v8754_v0 = vld [vmem:[%s12509_s4 + $0x148] sm:$0xff] }
 0x296   :  { %1973 = vmatprep.subr.mxu0 %v13289_v2  ;;  %2044 = vmatprep.subr.mxu1 %v13290_v3  ;;  %13311 = vst [vmem:[#allocation76_spill] sm:$0xff] %v8747_v63  ;;  %13312 = vst [vmem:[#allocation77_spill] sm:$0xff] %v8754_v0  ;;  %v8759_v2 = vld [vmem:[%s12509_s4 + $0x158] sm:$0xff]  ;;  %v8766_v3 = vld [vmem:[%s12509_s4 + $0x140] sm:$0xff] }
 0x297   :  { %1974 = vmatpush1.msra.mxu0 %v13291_v5  ;;  %2045 = vmatpush1.msra.mxu1 %v13292_v6  ;;  %13313 = vst [vmem:[#allocation78_spill] sm:$0xff] %v8759_v2  ;;  %13314 = vst [vmem:[#allocation79_spill] sm:$0xff] %v8766_v3  ;;  %v8771_v5 = vld [vmem:[%s12509_s4 + $0x150] sm:$0xff]  ;;  %v8778_v6 = vld [vmem:[%s12509_s4 + $0x128] sm:$0xff] }
 0x298   :  { %1975 = vmatprep.subr.mxu0 %v13293_v7  ;;  %2046 = vmatprep.subr.mxu1 %v13294_v8  ;;  %13315 = vst [vmem:[#allocation80_spill] sm:$0xff] %v8771_v5  ;;  %13316 = vst [vmem:[#allocation81_spill] sm:$0xff] %v8778_v6  ;;  %v8783_v7 = vld [vmem:[%s12509_s4 + $0x138] sm:$0xff]  ;;  %v8790_v8 = vld [vmem:[%s12509_s4 + $0x120] sm:$0xff] }
 0x299   :  { %1976 = vmatpush1.msra.mxu0 %v13295_v9  ;;  %2047 = vmatpush1.msra.mxu1 %v13296_v10  ;;  %13317 = vst [vmem:[#allocation82_spill] sm:$0xff] %v8783_v7  ;;  %13318 = vst [vmem:[#allocation83_spill] sm:$0xff] %v8790_v8  ;;  %v8795_v9 = vld [vmem:[%s12509_s4 + $0x130] sm:$0xff]  ;;  %v8802_v10 = vld [vmem:[%s12509_s4 + $0x108] sm:$0xff] }
 0x29a   :  { %1977 = vmatprep.subr.mxu0 %v13297_v11  ;;  %2048 = vmatprep.subr.mxu1 %v13298_v12  ;;  %13319 = vst [vmem:[#allocation84_spill] sm:$0xff] %v8795_v9  ;;  %13320 = vst [vmem:[#allocation85_spill] sm:$0xff] %v8802_v10  ;;  %v8807_v11 = vld [vmem:[%s12509_s4 + $0x118] sm:$0xff]  ;;  %v8814_v12 = vld [vmem:[%s12509_s4 + $0x100] sm:$0xff] }
 0x29b   :  { %1978 = vmatpush1.msra.mxu0 %v13299_v13  ;;  %2049 = vmatpush1.msra.mxu1 %v13300_v14  ;;  %13321 = vst [vmem:[#allocation86_spill] sm:$0xff] %v8807_v11  ;;  %13322 = vst [vmem:[#allocation87_spill] sm:$0xff] %v8814_v12  ;;  %v8819_v13 = vld [vmem:[%s12509_s4 + $0x110] sm:$0xff]  ;;  %v8826_v14 = vld [vmem:[%s12509_s4 + $0xe8] sm:$0xff] }
 0x29c   :  { %1979 = vmatprep.subr.mxu0 %v13301_v15  ;;  %2050 = vmatprep.subr.mxu1 %v13302_v16  ;;  %13323 = vst [vmem:[#allocation88_spill] sm:$0xff] %v8819_v13  ;;  %13324 = vst [vmem:[#allocation89_spill] sm:$0xff] %v8826_v14  ;;  %v8831_v15 = vld [vmem:[%s12509_s4 + $0xf8] sm:$0xff]  ;;  %v8838_v16 = vld [vmem:[%s12509_s4 + $0xe0] sm:$0xff] }
 0x29d   :  { %1980 = vmatpush1.msra.mxu0 %v13303_v34  ;;  %2051 = vmatpush1.msra.mxu1 %v13304_v1  ;;  %13325 = vst [vmem:[#allocation90_spill] sm:$0xff] %v8831_v15  ;;  %13326 = vst [vmem:[#allocation91_spill] sm:$0xff] %v8838_v16  ;;  %v8843_v34 = vld [vmem:[%s12509_s4 + $0xf0] sm:$0xff]  ;;  %v8850_v1 = vld [vmem:[%s12509_s4 + $0xc8] sm:$0xff] }
 0x29e   :  { %1981 = vmatprep.subr.mxu0 %v13305_v27  ;;  %2052 = vmatprep.subr.mxu1 %v13306_v18  ;;  %13327 = vst [vmem:[#allocation96_spill] sm:$0xff] %v8843_v34  ;;  %13328 = vst [vmem:[#allocation98_spill] sm:$0xff] %v8850_v1  ;;  %v8855_v27 = vld [vmem:[%s12509_s4 + $0xd8] sm:$0xff]  ;;  %v8862_v18 = vld [vmem:[%s12509_s4 + $0xc0] sm:$0xff] }
 0x29f   :  { %1982 = vmatpush1.msra.mxu0 %v13307_v29  ;;  %2015 = vmatprep.mubr.f32.mxu0 %v13135_v56  ;;  %13329 = vst [vmem:[#allocation99_spill] sm:$0xff] %v8855_v27  ;;  %13330 = vst [vmem:[#allocation97_spill] sm:$0xff] %v8862_v18  ;;  %v8867_v29 = vld [vmem:[%s12509_s4 + $0xd0] sm:$0xff] }
 0x2a0   :  { %2053 = vmatpush1.msra.mxu1 %v13308_v25  ;;  %2086 = vmatprep.mubr.f32.mxu1 %v13135_v56  ;;  %13331 = vst [vmem:[#allocation94_spill] sm:$0xff] %v8867_v29  ;;  %v8874_v25 = vld [vmem:[%s12509_s4 + $0xa8] sm:$0xff] }
 0x2a1   :  { %2016 = vmatmul.mubr.f32.vlgmr.msra.gmra.mxu0 %v8549_v39  ;;  %2087 = vmatmul.mubr.f32.vlgmr.msra.gmra.mxu1 %v8549_v39  ;;  %v8711_v39 = vld [vmem:[%s12509_s4 + $0x198] sm:$0xff]  ;;  %13332 = vst [vmem:[#allocation92_spill] sm:$0xff] %v8874_v25 }
 0x2a2   :  { %2278 = vmatprep.mubr.f32.mxu0 %v13135_v56  ;;  %2349 = vmatprep.mubr.f32.mxu1 %v13135_v56 }
 0x2a3   :  { %2214 = vmatprep.subr.mxu0 %v8634_v35  ;;  %2285 = vmatprep.subr.mxu1 %v8639_v4 }
 0x2a4   :  { %2215 = vmatpush1.msra.mxu0 %v8646_v24  ;;  %2286 = vmatpush1.msra.mxu1 %v8651_v21 }
 0x2a5   :  { %2216 = vmatprep.subr.mxu0 %v8658_v31  ;;  %2287 = vmatprep.subr.mxu1 %v8663_v23 }
 0x2a6   :  { %2217 = vmatpush1.msra.mxu0 %v8670_v28  ;;  %2288 = vmatpush1.msra.mxu1 %v8675_v19 }
 0x2a7   :  { %2218 = vmatprep.subr.mxu0 %v8682_v30  ;;  %2289 = vmatprep.subr.mxu1 %v8687_v22 }
 0x2a8   :  { %2219 = vmatpush1.msra.mxu0 %v8694_v20  ;;  %2290 = vmatpush1.msra.mxu1 %v8699_v17 }
 0x2a9   :  { %2220 = vmatprep.subr.mxu0 %v8706_v33  ;;  %2291 = vmatprep.subr.mxu1 %v8711_v39 }
 0x2aa   :  { %2221 = vmatpush1.msra.mxu0 %v8718_v57  ;;  %2292 = vmatpush1.msra.mxu1 %v8723_v58 }
 0x2ab   :  { %2222 = vmatprep.subr.mxu0 %v8730_v60  ;;  %2293 = vmatprep.subr.mxu1 %v8735_v61 }
 0x2ac   :  { %2223 = vmatpush1.msra.mxu0 %v8742_v62  ;;  %2294 = vmatpush1.msra.mxu1 %v8747_v63 }
 0x2ad   :  { %2224 = vmatprep.subr.mxu0 %v8754_v0  ;;  %2295 = vmatprep.subr.mxu1 %v8759_v2 }
 0x2ae   :  { %2225 = vmatpush1.msra.mxu0 %v8766_v3  ;;  %2296 = vmatpush1.msra.mxu1 %v8771_v5  ;;  %v13361_v5 = vld [vmem:[#allocation101_spill] sm:$0xff] }
 0x2af   :  { %2226 = vmatprep.subr.mxu0 %v8778_v6  ;;  %2297 = vmatprep.subr.mxu1 %v8783_v7  ;;  %v13360_v6 = vld [vmem:[#allocation103_spill] sm:$0xff] }
 0x2b0   :  { %2227 = vmatpush1.msra.mxu0 %v8790_v8  ;;  %2298 = vmatpush1.msra.mxu1 %v8795_v9 }
 0x2b1   :  { %2228 = vmatprep.subr.mxu0 %v8802_v10  ;;  %2299 = vmatprep.subr.mxu1 %v8807_v11  ;;  %v13359_v10 = vld [vmem:[#allocation102_spill] sm:$0xff] }
 0x2b2   :  { %2229 = vmatpush1.msra.mxu0 %v8814_v12  ;;  %2300 = vmatpush1.msra.mxu1 %v8819_v13 }
 0x2b3   :  { %2230 = vmatprep.subr.mxu0 %v8826_v14  ;;  %2301 = vmatprep.subr.mxu1 %v8831_v15  ;;  %v13358_v14 = vld [vmem:[#allocation100_spill] sm:$0xff] }
 0x2b4   :  { %2231 = vmatpush1.msra.mxu0 %v8838_v16  ;;  %2302 = vmatpush1.msra.mxu1 %v8843_v34  ;;  %v13357_v34 = vld [vmem:[#allocation29_spill] sm:$0xff] }
 0x2b5   :  { %2232 = vmatprep.subr.mxu0 %v8850_v1  ;;  %2303 = vmatprep.subr.mxu1 %v8855_v27  ;;  %v8879_v27 = vld [vmem:[%s12509_s4 + $0xb8] sm:$0xff]  ;;  %v13356_v1 = vld [vmem:[#allocation28_spill] sm:$0xff] }
 0x2b6   :  { %2233 = vmatpush1.msra.mxu0 %v8862_v18  ;;  %2304 = vmatpush1.msra.mxu1 %v8867_v29  ;;  %13333 = vst [vmem:[#allocation8_spill] sm:$0xff] %v8879_v27  ;;  %v8886_v18 = vld [vmem:[%s12509_s4 + $0xa0] sm:$0xff]  ;;  %v8891_v29 = vld [vmem:[%s12509_s4 + $0xb0] sm:$0xff] }
 0x2b7   :  { %2234 = vmatprep.subr.mxu0 %v8874_v25  ;;  %2305 = vmatprep.subr.mxu1 %v8879_v27  ;;  %13334 = vst [vmem:[#allocation9_spill] sm:$0xff] %v8886_v18  ;;  %13335 = vst [vmem:[#allocation10_spill] sm:$0xff] %v8891_v29  ;;  %v8898_v25 = vld [vmem:[%s12509_s4 + $0x88] sm:$0xff]  ;;  %v8903_v27 = vld [vmem:[%s12509_s4 + $0x98] sm:$0xff] }
 0x2b8   :  { %2235 = vmatpush1.msra.mxu0 %v8886_v18  ;;  %2306 = vmatpush1.msra.mxu1 %v8891_v29  ;;  %13336 = vst [vmem:[#allocation11_spill] sm:$0xff] %v8898_v25  ;;  %13337 = vst [vmem:[#allocation12_spill] sm:$0xff] %v8903_v27  ;;  %v8910_v18 = vld [vmem:[%s12509_s4 + $0x80] sm:$0xff]  ;;  %v8915_v29 = vld [vmem:[%s12509_s4 + $0x90] sm:$0xff] }
 0x2b9   :  { %2236 = vmatprep.subr.mxu0 %v8898_v25  ;;  %2307 = vmatprep.subr.mxu1 %v8903_v27  ;;  %13338 = vst [vmem:[#allocation13_spill] sm:$0xff] %v8910_v18  ;;  %13339 = vst [vmem:[#allocation14_spill] sm:$0xff] %v8915_v29  ;;  %v8922_v25 = vld [vmem:[%s12509_s4 + $0x68] sm:$0xff]  ;;  %v8927_v27 = vld [vmem:[%s12509_s4 + $0x78] sm:$0xff] }
 0x2ba   :  { %2237 = vmatpush1.msra.mxu0 %v8910_v18  ;;  %2308 = vmatpush1.msra.mxu1 %v8915_v29  ;;  %13340 = vst [vmem:[#allocation15_spill] sm:$0xff] %v8922_v25  ;;  %13341 = vst [vmem:[#allocation16_spill] sm:$0xff] %v8927_v27  ;;  %v8934_v18 = vld [vmem:[%s12509_s4 + $0x60] sm:$0xff]  ;;  %v8939_v29 = vld [vmem:[%s12509_s4 + $0x70] sm:$0xff] }
 0x2bb   :  { %2238 = vmatprep.subr.mxu0 %v8922_v25  ;;  %2309 = vmatprep.subr.mxu1 %v8927_v27  ;;  %13342 = vst [vmem:[#allocation17_spill] sm:$0xff] %v8934_v18  ;;  %13343 = vst [vmem:[#allocation18_spill] sm:$0xff] %v8939_v29  ;;  %v8946_v25 = vld [vmem:[%s12509_s4 + $0x48] sm:$0xff]  ;;  %v8951_v27 = vld [vmem:[%s12509_s4 + $0x58] sm:$0xff] }
 0x2bc   :  { %2239 = vmatpush1.msra.mxu0 %v8934_v18  ;;  %2310 = vmatpush1.msra.mxu1 %v8939_v29  ;;  %13344 = vst [vmem:[#allocation19_spill] sm:$0xff] %v8946_v25  ;;  %13345 = vst [vmem:[#allocation20_spill] sm:$0xff] %v8951_v27  ;;  %v8958_v18 = vld [vmem:[%s12509_s4 + $0x40] sm:$0xff]  ;;  %v8963_v29 = vld [vmem:[%s12509_s4 + $0x50] sm:$0xff] }
 0x2bd   :  { %2240 = vmatprep.subr.mxu0 %v8946_v25  ;;  %2311 = vmatprep.subr.mxu1 %v8951_v27  ;;  %13346 = vst [vmem:[#allocation21_spill] sm:$0xff] %v8958_v18  ;;  %13347 = vst [vmem:[#allocation22_spill] sm:$0xff] %v8963_v29  ;;  %v8970_v25 = vld [vmem:[%s12509_s4 + $0x28] sm:$0xff]  ;;  %v8975_v27 = vld [vmem:[%s12509_s4 + $0x38] sm:$0xff] }
 0x2be   :  { %2241 = vmatpush1.msra.mxu0 %v8958_v18  ;;  %2312 = vmatpush1.msra.mxu1 %v8963_v29  ;;  %13348 = vst [vmem:[#allocation23_spill] sm:$0xff] %v8970_v25  ;;  %13349 = vst [vmem:[#allocation24_spill] sm:$0xff] %v8975_v27  ;;  %v8982_v18 = vld [vmem:[%s12509_s4 + $0x20] sm:$0xff]  ;;  %v8987_v29 = vld [vmem:[%s12509_s4 + $0x30] sm:$0xff] }
 0x2bf   :  { %2242 = vmatprep.subr.mxu0 %v8970_v25  ;;  %2313 = vmatprep.subr.mxu1 %v8975_v27  ;;  %13350 = vst [vmem:[#allocation25_spill] sm:$0xff] %v8982_v18  ;;  %13351 = vst [vmem:[#allocation26_spill] sm:$0xff] %v8987_v29  ;;  %v8994_v25 = vld [vmem:[%s12509_s4 + $0x8] sm:$0xff]  ;;  %v8999_v27 = vld [vmem:[%s12509_s4 + $0x18] sm:$0xff] }
 0x2c0   :  { %2243 = vmatpush1.msra.mxu0 %v8982_v18  ;;  %2314 = vmatpush1.msra.mxu1 %v8987_v29  ;;  %13352 = vst [vmem:[#allocation27_spill] sm:$0xff] %v8994_v25  ;;  %13353 = vst [vmem:[#allocation124_spill] sm:$0xff] %v8999_v27  ;;  %v9006_v18 = vld [vmem:[%s12509_s4] sm:$0xff]  ;;  %v9011_v29 = vld [vmem:[%s12509_s4 + $0x10] sm:$0xff] }
 0x2c1   :  { %2244 = vmatprep.subr.mxu0 %v8994_v25  ;;  %2315 = vmatprep.subr.mxu1 %v8999_v27  ;;  %13354 = vst [vmem:[#allocation125_spill] sm:$0xff] %v9006_v18  ;;  %13355 = vst [vmem:[#allocation126_spill] sm:$0xff] %v9011_v29 }
 0x2c2   :  { %2245 = vmatpush1.msra.mxu0 %v9006_v18  ;;  %2316 = vmatpush1.msra.mxu1 %v9011_v29 }
 0x2c3   :  { %2428 = vmatprep.subr.mxu0 %v13356_v1  ;;  %2499 = vmatprep.subr.mxu1 %v13357_v34 }
 0x31e   :  { %v1565_v25 = vpop.f32.mrf.mxu0  ;;  %v1636_v15 = vpop.f32.mrf.mxu1 }
 0x320   :  { %v1567_v27 = vpop.f32.mrf.mxu0  ;;  %v1638_v8 = vpop.f32.mrf.mxu1 }
 0x33f   :  { %v1779_v16 = vpop.f32.mrf.mxu0  ;;  %v1850_v18 = vpop.f32.mrf.mxu1 }
 0x340   :  { %v1855_v13 = vadd.f32 %v1779_v16, %v13358_v14  ;;  %v1857_v34 = vadd.f32 %v1850_v18, %v13361_v5 }
 0x341   :  { %v1781_v12 = vpop.f32.mrf.mxu0  ;;  %v1852_v29 = vpop.f32.mrf.mxu1 }
 0x342   :  { %v6226_v11 = vmul.f32 -1.442695, %v1855_v13  ;;  %v1856_v9 = vadd.f32 %v1781_v12, %v13359_v10  ;;  %v1858_v1 = vadd.f32 %v1852_v29, %v13360_v6  ;;  %v13362_v10 = vld [vmem:[#allocation93_spill] sm:$0xff] }
 0x344   :  { %6373 = vpow2.f32 %v6226_v11  ;;  %v6227_v7 = vmul.f32 -1.442695, %v1856_v9  ;;  %v6228_v2 = vmul.f32 -1.442695, %v1858_v1  ;;  %v1477_v9 = vld [vmem:[%s12512_s6] sm:$0xf] }
 0x345   :  { %v13363_v11 = vld [vmem:[#allocation95_spill] sm:$0xff] }
 0x346   :  { %6375 = vpow2.f32 %v6227_v7  ;;  %v1482_v7 = vrot.slane %v1477_v9, %v13362_v10  ;;  %v1486_v12 = vrot.slane %v1477_v9, %v13363_v11 }
 0x347   :  { %6377 = vtanh.f32 %v1857_v34 }
 0x348   :  { %v1566_v13 = vadd.f32 %v1565_v25, %v1482_v7  ;;  %v1494_v25 = vrot.slane %v1477_v9, %v13236_v26 }
 0x351   :  { %v6374_v3 = vpop.eup %6373 }
 0x352   :  { %v1862_v0 = vadd.f32 1.0, %v6374_v3  ;;  %v1568_v3 = vadd.f32 %v1567_v27, %v1486_v12  ;;  %v1639_v27 = vadd.f32 %v1638_v8, %v1494_v25  ;;  %v1490_v12 = vrot.slane %v1477_v9, %v13237_v51  ;;  %v13364_v8 = vld [vmem:[#allocation30_spill] sm:$0xff]  ;;  %v13366_v9 = vld [vmem:[#allocation32_spill] sm:$0xff] }
 0x353   :  { %v6376_v63 = vpop.eup %6375 }
 0x354   :  { %6379 = vrcp.f32 %v1862_v0  ;;  %v1868_v14 = vadd.f32 1.0, %v6376_v63  ;;  %v6378_v6 = vpop.eup %6377 }
 0x355   :  { %6381 = vpow2.f32 %v6228_v2 }
 0x356   :  { %6383 = vrcp.f32 %v1868_v14 }
 0x361   :  { %v6380_v5 = vpop.eup %6379  ;;  %v2017_v16 = vpop.f32.mrf.mxu0 }
 0x362   :  { %v6382_v18 = vpop.eup %6381  ;;  %v1880_v29 = vmul.f32 %v6380_v5, %v6378_v6  ;;  %v2093_v1 = vadd.f32 %v2017_v16, %v1566_v13  ;;  %v2088_v10 = vpop.f32.mrf.mxu1 }
 0x363   :  { %v6384_v0 = vpop.eup %6383  ;;  %v2019_v63 = vpop.f32.mrf.mxu0  ;;  %v1875_v62 = vadd.f32 1.0, %v6382_v18 }
 0x364   :  { %v1879_v2 = vmul.f32 %v6384_v0, %v8167_v50  ;;  %v6229_v34 = vmul.f32 -1.442695, %v2093_v1  ;;  %v2094_v14 = vadd.f32 %v2019_v63, %v1568_v3  ;;  %v2090_v7 = vpop.f32.mrf.mxu1  ;;  %v1637_v50 = vadd.f32 %v1636_v15, %v1490_v12  ;;  %v13365_v15 = vld [vmem:[#allocation31_spill] sm:$0xff]  ;;  %v13374_v63 = vld [vmem:[#allocation40_spill] sm:$0xff] }
 0x365   :  { %v2096_v6 = vadd.f32 %v2090_v7, %v1639_v27  ;;  %v13377_v27 = vld [vmem:[#allocation43_spill] sm:$0xff] }
 0x366   :  { %v9027_v61 = vadd.f32 %v1880_v29, %v1879_v2  ;;  %6385 = vpow2.f32 %v6229_v34  ;;  %v6230_v11 = vmul.f32 -1.442695, %v2094_v14  ;;  %v2095_v16 = vadd.f32 %v2088_v10, %v1637_v50  ;;  %v13367_v10 = vld [vmem:[#allocation33_spill] sm:$0xff]  ;;  %v13376_v14 = vld [vmem:[#allocation42_spill] sm:$0xff]  ;;  %v13378_v50 = vld [vmem:[#allocation44_spill] sm:$0xff] }
 0x367   :  { %v6231_v13 = vmul.f32 -1.442695, %v2096_v6  ;;  %v13375_v34 = vld [vmem:[#allocation41_spill] sm:$0xff] }
 0x368   :  { %6387 = vpow2.f32 %v6230_v11  ;;  %v13373_v11 = vld [vmem:[#allocation39_spill] sm:$0xff] }
 0x369   :  { %6389 = vrcp.f32 %v1875_v62 }
 0x36a   :  { %6391 = vtanh.f32 %v9027_v61 }
 0x36b   :  { %6393 = vpow2.f32 %v6231_v13  ;;  %v13379_v13 = vld [vmem:[#allocation45_spill] sm:$0xff] }
 0x373   :  { %v6386_v5 = vpop.eup %6385 }
 0x374   :  { %v2100_v18 = vadd.f32 1.0, %v6386_v5 }
 0x375   :  { %v6388_v3 = vpop.eup %6387 }
 0x376   :  { %v6390_v29 = vpop.eup %6389  ;;  %6395 = vrcp.f32 %v2100_v18  ;;  %v2106_v1 = vadd.f32 1.0, %v6388_v3  ;;  %v13382_v18 = vld [vmem:[#allocation48_spill] sm:$0xff] }
 0x377   :  { %v6392_v0 = vpop.eup %6391  ;;  %6397 = vtanh.f32 %v2095_v16  ;;  %v13380_v16 = vld [vmem:[#allocation46_spill] sm:$0xff]  ;;  %v13386_v3 = vld [vmem:[#allocation52_spill] sm:$0xff] }
 0x378   :  { %6399 = vrcp.f32 %v2106_v1  ;;  %v9032_v62 = vmul.f32 %v6392_v0, %v6390_v29  ;;  %v13387_v29 = vld [vmem:[#allocation53_spill] sm:$0xff]  ;;  %v13389_v1 = vld [vmem:[#allocation55_spill] sm:$0xff]  ;;  %v13390_v0 = vld [vmem:[#allocation56_spill] sm:$0xff] }
 0x37a   :  { %2279 = vmatmul.mubr.f32.vlgmr.msra.gmra.mxu0 %v9032_v62  ;;  %2350 = vmatmul.mubr.f32.vlgmr.msra.gmra.mxu1 %v9032_v62 }
 0x37b   :  { %2429 = vmatpush1.msra.mxu0 %v8177_v43  ;;  %2500 = vmatpush1.msra.mxu1 %v8182_v55  ;;  %v13368_v43 = vld [vmem:[#allocation34_spill] sm:$0xff]  ;;  %v13369_v55 = vld [vmem:[#allocation35_spill] sm:$0xff] }
 0x37c   :  { %2430 = vmatprep.subr.mxu0 %v8187_v44  ;;  %2501 = vmatprep.subr.mxu1 %v8192_v59  ;;  %v13370_v44 = vld [vmem:[#allocation36_spill] sm:$0xff]  ;;  %v6394_v59 = vpop.eup %6393 }
 0x37d   :  { %2431 = vmatpush1.msra.mxu0 %v8199_v48  ;;  %2502 = vmatpush1.msra.mxu1 %v8204_v36  ;;  %v13371_v48 = vld [vmem:[#allocation37_spill] sm:$0xff]  ;;  %v13372_v36 = vld [vmem:[#allocation38_spill] sm:$0xff]  ;;  %v2113_v7 = vadd.f32 1.0, %v6394_v59  ;;  %v13398_v59 = vld [vmem:[#allocation64_spill] sm:$0xff] }
 0x37e   :  { %2432 = vmatprep.subr.mxu0 %v8211_v47  ;;  %2503 = vmatprep.subr.mxu1 %v13364_v8  ;;  %v13391_v8 = vld [vmem:[#allocation57_spill] sm:$0xff] }
 0x37f   :  { %2433 = vmatpush1.msra.mxu0 %v13365_v15  ;;  %2504 = vmatpush1.msra.mxu1 %v13366_v9  ;;  %6401 = vrcp.f32 %v2113_v7  ;;  %v13392_v15 = vld [vmem:[#allocation58_spill] sm:$0xff]  ;;  %v13393_v9 = vld [vmem:[#allocation59_spill] sm:$0xff]  ;;  %v13407_v7 = vld [vmem:[#allocation73_spill] sm:$0xff] }
 0x380   :  { %2434 = vmatprep.subr.mxu0 %v13367_v10  ;;  %2505 = vmatprep.subr.mxu1 %v13368_v43  ;;  %v13394_v10 = vld [vmem:[#allocation60_spill] sm:$0xff]  ;;  %v13395_v43 = vld [vmem:[#allocation61_spill] sm:$0xff] }
 0x381   :  { %2435 = vmatpush1.msra.mxu0 %v13369_v55  ;;  %2506 = vmatpush1.msra.mxu1 %v13370_v44  ;;  %v13396_v55 = vld [vmem:[#allocation62_spill] sm:$0xff]  ;;  %v13397_v44 = vld [vmem:[#allocation63_spill] sm:$0xff] }
 0x382   :  { %2436 = vmatprep.subr.mxu0 %v13371_v48  ;;  %2507 = vmatprep.subr.mxu1 %v13372_v36  ;;  %v13399_v48 = vld [vmem:[#allocation65_spill] sm:$0xff]  ;;  %v13400_v36 = vld [vmem:[#allocation66_spill] sm:$0xff] }
 0x383   :  { %v6396_v47 = vpop.eup %6395  ;;  %2437 = vmatpush1.msra.mxu0 %v13373_v11  ;;  %2508 = vmatpush1.msra.mxu1 %v13374_v63  ;;  %v13402_v11 = vld [vmem:[#allocation68_spill] sm:$0xff]  ;;  %v13403_v63 = vld [vmem:[#allocation69_spill] sm:$0xff] }
 0x384   :  { %v6398_v2 = vpop.eup %6397  ;;  %2438 = vmatprep.subr.mxu0 %v13375_v34  ;;  %2509 = vmatprep.subr.mxu1 %v13376_v14  ;;  %v13405_v34 = vld [vmem:[#allocation71_spill] sm:$0xff]  ;;  %v13406_v14 = vld [vmem:[#allocation72_spill] sm:$0xff] }
 0x385   :  { %v6400_v25 = vpop.eup %6399  ;;  %2439 = vmatpush1.msra.mxu0 %v8295_v32  ;;  %2510 = vmatpush1.msra.mxu1 %v13377_v27  ;;  %v2118_v12 = vmul.f32 %v6398_v2, %v6396_v47  ;;  %v13381_v32 = vld [vmem:[#allocation47_spill] sm:$0xff]  ;;  %v13404_v2 = vld [vmem:[#allocation70_spill] sm:$0xff] }
 0x386   :  { %v2117_v6 = vmul.f32 %v6400_v25, %v8362_v40  ;;  %2440 = vmatprep.subr.mxu0 %v8307_v38  ;;  %2511 = vmatprep.subr.mxu1 %v8312_v41  ;;  %v13383_v40 = vld [vmem:[#allocation49_spill] sm:$0xff]  ;;  %v13384_v38 = vld [vmem:[#allocation50_spill] sm:$0xff]  ;;  %v13385_v41 = vld [vmem:[#allocation51_spill] sm:$0xff] }
 0x387   :  { %2441 = vmatpush1.msra.mxu0 %v13378_v50  ;;  %2512 = vmatpush1.msra.mxu1 %v13379_v13  ;;  %v13401_v47 = vld [vmem:[#allocation67_spill] sm:$0xff]  ;;  %v9171_v13 = vld [vmem:[%s12511_s5 + $0x1a0] sm:$0xff] }
 0x388   :  { %v9063_v5 = vadd.f32 %v2118_v12, %v2117_v6  ;;  %2442 = vmatprep.subr.mxu0 %v8331_v45  ;;  %2513 = vmatprep.subr.mxu1 %v13380_v16  ;;  %v13388_v45 = vld [vmem:[#allocation54_spill] sm:$0xff]  ;;  %v9159_v6 = vld [vmem:[%s12511_s5 + $0x1a8] sm:$0xff]  ;;  %v9164_v50 = vld [vmem:[%s12511_s5 + $0x1b8] sm:$0xff] }
 0x389   :  { %2443 = vmatpush1.msra.mxu0 %v13381_v32  ;;  %2514 = vmatpush1.msra.mxu1 %v13382_v18  ;;  %v9176_v16 = vld [vmem:[%s12511_s5 + $0x1b0] sm:$0xff]  ;;  %v9183_v32 = vld [vmem:[%s12511_s5 + $0x188] sm:$0xff]  ;;  %v9188_v18 = vld [vmem:[%s12511_s5 + $0x198] sm:$0xff] }
 0x38a   :  { %2444 = vmatprep.subr.mxu0 %v13383_v40  ;;  %2515 = vmatprep.subr.mxu1 %v13384_v38  ;;  %6403 = vtanh.f32 %v9063_v5  ;;  %v9195_v40 = vld [vmem:[%s12511_s5 + $0x180] sm:$0xff]  ;;  %v9200_v38 = vld [vmem:[%s12511_s5 + $0x190] sm:$0xff] }
 0x38b   :  { %2445 = vmatpush1.msra.mxu0 %v13385_v41  ;;  %2516 = vmatpush1.msra.mxu1 %v13386_v3  ;;  %v9207_v41 = vld [vmem:[%s12511_s5 + $0x168] sm:$0xff]  ;;  %v9212_v3 = vld [vmem:[%s12511_s5 + $0x178] sm:$0xff] }
 0x38c   :  { %2446 = vmatprep.subr.mxu0 %v13387_v29  ;;  %2517 = vmatprep.subr.mxu1 %v13388_v45  ;;  %v6402_v25 = vpop.eup %6401  ;;  %v9219_v29 = vld [vmem:[%s12511_s5 + $0x160] sm:$0xff]  ;;  %v9224_v45 = vld [vmem:[%s12511_s5 + $0x170] sm:$0xff] }
 0x38d   :  { %2447 = vmatpush1.msra.mxu0 %v13389_v1  ;;  %2518 = vmatpush1.msra.mxu1 %v13390_v0  ;;  %v9231_v1 = vld [vmem:[%s12511_s5 + $0x148] sm:$0xff]  ;;  %v9236_v0 = vld [vmem:[%s12511_s5 + $0x158] sm:$0xff] }
 0x38e   :  { %2448 = vmatprep.subr.mxu0 %v13391_v8  ;;  %2519 = vmatprep.subr.mxu1 %v13392_v15  ;;  %v9243_v8 = vld [vmem:[%s12511_s5 + $0x140] sm:$0xff]  ;;  %v9248_v15 = vld [vmem:[%s12511_s5 + $0x150] sm:$0xff] }
 0x38f   :  { %2449 = vmatpush1.msra.mxu0 %v13393_v9  ;;  %2520 = vmatpush1.msra.mxu1 %v13394_v10  ;;  %v9255_v9 = vld [vmem:[%s12511_s5 + $0x128] sm:$0xff]  ;;  %v9260_v10 = vld [vmem:[%s12511_s5 + $0x138] sm:$0xff] }
 0x390   :  { %2450 = vmatprep.subr.mxu0 %v13395_v43  ;;  %2521 = vmatprep.subr.mxu1 %v13396_v55  ;;  %v9267_v43 = vld [vmem:[%s12511_s5 + $0x120] sm:$0xff]  ;;  %v9272_v55 = vld [vmem:[%s12511_s5 + $0x130] sm:$0xff] }
 0x391   :  { %2451 = vmatpush1.msra.mxu0 %v13397_v44  ;;  %2522 = vmatpush1.msra.mxu1 %v13398_v59  ;;  %v9279_v44 = vld [vmem:[%s12511_s5 + $0x108] sm:$0xff]  ;;  %v9284_v59 = vld [vmem:[%s12511_s5 + $0x118] sm:$0xff] }
 0x392   :  { %2452 = vmatprep.subr.mxu0 %v13399_v48  ;;  %2523 = vmatprep.subr.mxu1 %v13400_v36  ;;  %v9291_v48 = vld [vmem:[%s12511_s5 + $0x100] sm:$0xff]  ;;  %v9296_v36 = vld [vmem:[%s12511_s5 + $0x110] sm:$0xff] }
 0x393   :  { %2453 = vmatpush1.msra.mxu0 %v13401_v47  ;;  %2524 = vmatpush1.msra.mxu1 %v13402_v11  ;;  %v9303_v47 = vld [vmem:[%s12511_s5 + $0xe8] sm:$0xff]  ;;  %v9308_v11 = vld [vmem:[%s12511_s5 + $0xf8] sm:$0xff] }
 0x394   :  { %2454 = vmatprep.subr.mxu0 %v13403_v63  ;;  %2525 = vmatprep.subr.mxu1 %v13404_v2  ;;  %13408 = vst [vmem:[#allocation127_spill] sm:$0xff] %v9308_v11  ;;  %v9315_v63 = vld [vmem:[%s12511_s5 + $0xe0] sm:$0xff]  ;;  %v9320_v2 = vld [vmem:[%s12511_s5 + $0xf0] sm:$0xff] }
 0x395   :  { %2455 = vmatpush1.msra.mxu0 %v13405_v34  ;;  %2526 = vmatpush1.msra.mxu1 %v13406_v14  ;;  %13409 = vst [vmem:[#allocation128_spill] sm:$0xff] %v9315_v63  ;;  %13410 = vst [vmem:[#allocation129_spill] sm:$0xff] %v9320_v2  ;;  %v9327_v34 = vld [vmem:[%s12511_s5 + $0xc8] sm:$0xff]  ;;  %v9332_v14 = vld [vmem:[%s12511_s5 + $0xd8] sm:$0xff] }
 0x396   :  { %2456 = vmatprep.subr.mxu0 %v8502_v53  ;;  %2527 = vmatprep.subr.mxu1 %v13407_v7  ;;  %v9107_v53 = vld [vmem:[%s12511_s5 + $0x1e8] sm:$0xff]  ;;  %13411 = vst [vmem:[#allocation130_spill] sm:$0xff] %v9327_v34  ;;  %13412 = vst [vmem:[#allocation28_spill] sm:$0xff] %v9332_v14  ;;  %v9344_v7 = vld [vmem:[%s12511_s5 + $0xd0] sm:$0xff] }
 0x397   :  { %v6404_v27 = vpop.eup %6403  ;;  %2457 = vmatpush1.msra.mxu0 %v8514_v37  ;;  %2528 = vmatpush1.msra.mxu1 %v8519_v46  ;;  %v9112_v37 = vld [vmem:[%s12511_s5 + $0x1f8] sm:$0xff]  ;;  %v9119_v46 = vld [vmem:[%s12511_s5 + $0x1e0] sm:$0xff]  ;;  %13414 = vst [vmem:[#allocation100_spill] sm:$0xff] %v9344_v7 }
 0x398   :  { %2458 = vmatprep.subr.mxu0 %v8526_v52  ;;  %2529 = vmatprep.subr.mxu1 %v8531_v54  ;;  %v9100_v12 = vmul.f32 %v6404_v27, %v6402_v25  ;;  %v9124_v52 = vld [vmem:[%s12511_s5 + $0x1f0] sm:$0xff]  ;;  %v9140_v54 = vld [vmem:[%s12511_s5 + $0x1d8] sm:$0xff]  ;;  %v9339_v25 = vld [vmem:[%s12511_s5 + $0xc0] sm:$0xff] }
 0x399   :  { %2459 = vmatpush1.msra.mxu0 %v8538_v42  ;;  %2492 = vmatprep.mubr.f32.mxu0 %v13135_v56  ;;  %v9147_v42 = vld [vmem:[%s12511_s5 + $0x1c0] sm:$0xff]  ;;  %13413 = vst [vmem:[#allocation29_spill] sm:$0xff] %v9339_v25  ;;  %v9351_v27 = vld [vmem:[%s12511_s5 + $0xa8] sm:$0xff] }
 0x39a   :  { %2530 = vmatpush1.msra.mxu1 %v8545_v49  ;;  %2563 = vmatprep.mubr.f32.mxu1 %v13135_v56  ;;  %6232 = vst [vmem:[%s12513_s7 + $0x8] sm:$0xff] %v9100_v12  ;;  %v9135_v49 = vld [vmem:[%s12511_s5 + $0x1c8] sm:$0xff]  ;;  %13415 = vst [vmem:[#allocation102_spill] sm:$0xff] %v9351_v27 }
 0x39b   :  { %2493 = vmatmul.mubr.f32.vlgmr.msra.gmra.mxu0 %v9032_v62  ;;  %2564 = vmatmul.mubr.f32.vlgmr.msra.gmra.mxu1 %v9032_v62  ;;  %v9152_v62 = vld [vmem:[%s12511_s5 + $0x1d0] sm:$0xff] }
 0x39c   :  { %2666 = vmatprep.subr.mxu0 %v9107_v53  ;;  %2737 = vmatprep.subr.mxu1 %v9112_v37 }
 0x39d   :  { %2667 = vmatpush1.msra.mxu0 %v9119_v46  ;;  %2738 = vmatpush1.msra.mxu1 %v9124_v52 }
 0x39e   :  { %2668 = vmatprep.subr.mxu0 %v9135_v49  ;;  %2739 = vmatprep.subr.mxu1 %v9140_v54 }
 0x39f   :  { %2669 = vmatpush1.msra.mxu0 %v9147_v42  ;;  %2740 = vmatpush1.msra.mxu1 %v9152_v62 }
 0x3a0   :  { %2670 = vmatprep.subr.mxu0 %v9159_v6  ;;  %2741 = vmatprep.subr.mxu1 %v9164_v50 }
 0x3a1   :  { %2671 = vmatpush1.msra.mxu0 %v9171_v13  ;;  %2742 = vmatpush1.msra.mxu1 %v9176_v16 }
 0x3a2   :  { %2672 = vmatprep.subr.mxu0 %v9183_v32  ;;  %2743 = vmatprep.subr.mxu1 %v9188_v18 }
 0x3a3   :  { %2673 = vmatpush1.msra.mxu0 %v9195_v40  ;;  %2744 = vmatpush1.msra.mxu1 %v9200_v38 }
 0x3a4   :  { %2674 = vmatprep.subr.mxu0 %v9207_v41  ;;  %2745 = vmatprep.subr.mxu1 %v9212_v3 }
 0x3a5   :  { %2675 = vmatpush1.msra.mxu0 %v9219_v29  ;;  %2746 = vmatpush1.msra.mxu1 %v9224_v45 }
 0x3a6   :  { %2676 = vmatprep.subr.mxu0 %v9231_v1  ;;  %2747 = vmatprep.subr.mxu1 %v9236_v0 }
 0x3a7   :  { %2677 = vmatpush1.msra.mxu0 %v9243_v8  ;;  %2748 = vmatpush1.msra.mxu1 %v9248_v15 }
 0x3a8   :  { %2678 = vmatprep.subr.mxu0 %v9255_v9  ;;  %2749 = vmatprep.subr.mxu1 %v9260_v10 }
 0x3a9   :  { %2679 = vmatpush1.msra.mxu0 %v9267_v43  ;;  %2750 = vmatpush1.msra.mxu1 %v9272_v55 }
 0x3aa   :  { %2680 = vmatprep.subr.mxu0 %v9279_v44  ;;  %2751 = vmatprep.subr.mxu1 %v9284_v59 }
 0x3ab   :  { %2681 = vmatpush1.msra.mxu0 %v9291_v48  ;;  %2752 = vmatpush1.msra.mxu1 %v9296_v36 }
 0x3ac   :  { %2682 = vmatprep.subr.mxu0 %v9303_v47  ;;  %2753 = vmatprep.subr.mxu1 %v9308_v11  ;;  %v9356_v11 = vld [vmem:[%s12511_s5 + $0xb8] sm:$0xff] }
 0x3ad   :  { %2683 = vmatpush1.msra.mxu0 %v9315_v63  ;;  %2754 = vmatpush1.msra.mxu1 %v9320_v2  ;;  %13416 = vst [vmem:[#allocation103_spill] sm:$0xff] %v9356_v11  ;;  %v9363_v63 = vld [vmem:[%s12511_s5 + $0xa0] sm:$0xff]  ;;  %v9368_v2 = vld [vmem:[%s12511_s5 + $0xb0] sm:$0xff] }
 0x3ae   :  { %2684 = vmatprep.subr.mxu0 %v9327_v34  ;;  %2755 = vmatprep.subr.mxu1 %v9332_v14  ;;  %13417 = vst [vmem:[#allocation101_spill] sm:$0xff] %v9363_v63  ;;  %13418 = vst [vmem:[#allocation30_spill] sm:$0xff] %v9368_v2  ;;  %v9375_v34 = vld [vmem:[%s12511_s5 + $0x88] sm:$0xff]  ;;  %v9380_v14 = vld [vmem:[%s12511_s5 + $0x98] sm:$0xff] }
 0x3af   :  { %2685 = vmatpush1.msra.mxu0 %v9339_v25  ;;  %2756 = vmatpush1.msra.mxu1 %v9344_v7  ;;  %13419 = vst [vmem:[#allocation31_spill] sm:$0xff] %v9375_v34  ;;  %13420 = vst [vmem:[#allocation32_spill] sm:$0xff] %v9380_v14  ;;  %v9387_v25 = vld [vmem:[%s12511_s5 + $0x80] sm:$0xff]  ;;  %v9392_v7 = vld [vmem:[%s12511_s5 + $0x90] sm:$0xff] }
 0x3b0   :  { %2686 = vmatprep.subr.mxu0 %v9351_v27  ;;  %2757 = vmatprep.subr.mxu1 %v9356_v11  ;;  %13421 = vst [vmem:[#allocation33_spill] sm:$0xff] %v9387_v25  ;;  %13422 = vst [vmem:[#allocation34_spill] sm:$0xff] %v9392_v7  ;;  %v9399_v27 = vld [vmem:[%s12511_s5 + $0x68] sm:$0xff]  ;;  %v9404_v11 = vld [vmem:[%s12511_s5 + $0x78] sm:$0xff] }
 0x3b1   :  { %2687 = vmatpush1.msra.mxu0 %v9363_v63  ;;  %2758 = vmatpush1.msra.mxu1 %v9368_v2  ;;  %13423 = vst [vmem:[#allocation35_spill] sm:$0xff] %v9399_v27  ;;  %13424 = vst [vmem:[#allocation36_spill] sm:$0xff] %v9404_v11  ;;  %v9411_v63 = vld [vmem:[%s12511_s5 + $0x60] sm:$0xff]  ;;  %v9416_v2 = vld [vmem:[%s12511_s5 + $0x70] sm:$0xff] }
 0x3b2   :  { %2688 = vmatprep.subr.mxu0 %v9375_v34  ;;  %2759 = vmatprep.subr.mxu1 %v9380_v14  ;;  %13425 = vst [vmem:[#allocation37_spill] sm:$0xff] %v9411_v63  ;;  %13426 = vst [vmem:[#allocation38_spill] sm:$0xff] %v9416_v2  ;;  %v9423_v34 = vld [vmem:[%s12511_s5 + $0x48] sm:$0xff]  ;;  %v9428_v14 = vld [vmem:[%s12511_s5 + $0x58] sm:$0xff] }
 0x3b3   :  { %2689 = vmatpush1.msra.mxu0 %v9387_v25  ;;  %2760 = vmatpush1.msra.mxu1 %v9392_v7  ;;  %13427 = vst [vmem:[#allocation39_spill] sm:$0xff] %v9423_v34  ;;  %13428 = vst [vmem:[#allocation40_spill] sm:$0xff] %v9428_v14  ;;  %v9435_v25 = vld [vmem:[%s12511_s5 + $0x40] sm:$0xff]  ;;  %v9440_v7 = vld [vmem:[%s12511_s5 + $0x50] sm:$0xff] }
 0x3b4   :  { %2690 = vmatprep.subr.mxu0 %v9399_v27  ;;  %2761 = vmatprep.subr.mxu1 %v9404_v11  ;;  %13429 = vst [vmem:[#allocation41_spill] sm:$0xff] %v9435_v25  ;;  %13430 = vst [vmem:[#allocation42_spill] sm:$0xff] %v9440_v7  ;;  %v9447_v27 = vld [vmem:[%s12511_s5 + $0x28] sm:$0xff]  ;;  %v9452_v11 = vld [vmem:[%s12511_s5 + $0x38] sm:$0xff] }
 0x3b5   :  { %2691 = vmatpush1.msra.mxu0 %v9411_v63  ;;  %2762 = vmatpush1.msra.mxu1 %v9416_v2  ;;  %v9459_v63 = vld [vmem:[%s12511_s5 + $0x20] sm:$0xff]  ;;  %v9464_v2 = vld [vmem:[%s12511_s5 + $0x30] sm:$0xff] }
 0x3b6   :  { %2692 = vmatprep.subr.mxu0 %v9423_v34  ;;  %2763 = vmatprep.subr.mxu1 %v9428_v14  ;;  %13431 = vst [vmem:[#allocation43_spill] sm:$0xff] %v9459_v63  ;;  %13432 = vst [vmem:[#allocation44_spill] sm:$0xff] %v9464_v2  ;;  %v9471_v34 = vld [vmem:[%s12511_s5 + $0x8] sm:$0xff]  ;;  %v9476_v14 = vld [vmem:[%s12511_s5 + $0x18] sm:$0xff] }
 0x3b7   :  { %2693 = vmatpush1.msra.mxu0 %v9435_v25  ;;  %2764 = vmatpush1.msra.mxu1 %v9440_v7  ;;  %13433 = vst [vmem:[#allocation45_spill] sm:$0xff] %v9471_v34  ;;  %13434 = vst [vmem:[#allocation46_spill] sm:$0xff] %v9476_v14  ;;  %v9483_v25 = vld [vmem:[%s12511_s5] sm:$0xff]  ;;  %v9490_v7 = vld [vmem:[%s12511_s5 + $0x10] sm:$0xff] }
 0x3b8   :  { %2694 = vmatprep.subr.mxu0 %v9447_v27  ;;  %2765 = vmatprep.subr.mxu1 %v9452_v11  ;;  %13435 = vst [vmem:[#allocation47_spill] sm:$0xff] %v9483_v25  ;;  %13436 = vst [vmem:[#allocation48_spill] sm:$0xff] %v9490_v7 }
 0x3b9   :  { %2695 = vmatpush1.msra.mxu0 %v9459_v63  ;;  %2766 = vmatpush1.msra.mxu1 %v9464_v2 }
 0x3ba   :  { %2696 = vmatprep.subr.mxu0 %v9471_v34  ;;  %2767 = vmatprep.subr.mxu1 %v9476_v14 }
 0x3bb   :  { %2697 = vmatpush1.msra.mxu0 %v9483_v25  ;;  %2730 = vmatprep.mubr.f32.mxu0 %v13135_v56 }
 0x3bc   :  { %2768 = vmatpush1.msra.mxu1 %v9490_v7  ;;  %2801 = vmatprep.mubr.f32.mxu1 %v13135_v56 }
 0x3bd   :  { %2731 = vmatmul.mubr.f32.vlgmr.msra.gmra.mxu0 %v9100_v12  ;;  %2802 = vmatmul.mubr.f32.vlgmr.msra.gmra.mxu1 %v9100_v12  ;;  %v13454_v12 = vld [vmem:[#allocation91_spill] sm:$0xff] }
 0x3be   :  { %2929 = vmatprep.subr.mxu0 %v8634_v35  ;;  %3000 = vmatprep.subr.mxu1 %v8639_v4  ;;  %v13437_v35 = vld [vmem:[#allocation74_spill] sm:$0xff]  ;;  %v13438_v4 = vld [vmem:[#allocation75_spill] sm:$0xff] }
 0x3bf   :  { %2930 = vmatpush1.msra.mxu0 %v8646_v24  ;;  %3001 = vmatpush1.msra.mxu1 %v8651_v21  ;;  %v13439_v24 = vld [vmem:[#allocation76_spill] sm:$0xff]  ;;  %v13440_v21 = vld [vmem:[#allocation77_spill] sm:$0xff] }
 0x3c0   :  { %2931 = vmatprep.subr.mxu0 %v8658_v31  ;;  %3002 = vmatprep.subr.mxu1 %v8663_v23  ;;  %v13441_v31 = vld [vmem:[#allocation78_spill] sm:$0xff]  ;;  %v13442_v23 = vld [vmem:[#allocation79_spill] sm:$0xff] }
 0x3c1   :  { %2932 = vmatpush1.msra.mxu0 %v8670_v28  ;;  %3003 = vmatpush1.msra.mxu1 %v8675_v19  ;;  %v13443_v28 = vld [vmem:[#allocation80_spill] sm:$0xff]  ;;  %v13444_v19 = vld [vmem:[#allocation81_spill] sm:$0xff] }
 0x3c2   :  { %2933 = vmatprep.subr.mxu0 %v8682_v30  ;;  %3004 = vmatprep.subr.mxu1 %v8687_v22  ;;  %v13445_v30 = vld [vmem:[#allocation82_spill] sm:$0xff]  ;;  %v13446_v22 = vld [vmem:[#allocation83_spill] sm:$0xff] }
 0x3c3   :  { %2934 = vmatpush1.msra.mxu0 %v8694_v20  ;;  %3005 = vmatpush1.msra.mxu1 %v8699_v17  ;;  %v13447_v20 = vld [vmem:[#allocation84_spill] sm:$0xff]  ;;  %v13448_v17 = vld [vmem:[#allocation85_spill] sm:$0xff] }
 0x3c4   :  { %2935 = vmatprep.subr.mxu0 %v8706_v33  ;;  %3006 = vmatprep.subr.mxu1 %v8711_v39  ;;  %v13449_v33 = vld [vmem:[#allocation86_spill] sm:$0xff]  ;;  %v13450_v39 = vld [vmem:[#allocation87_spill] sm:$0xff] }
 0x3c5   :  { %2936 = vmatpush1.msra.mxu0 %v8718_v57  ;;  %3007 = vmatpush1.msra.mxu1 %v8723_v58  ;;  %v13451_v57 = vld [vmem:[#allocation88_spill] sm:$0xff]  ;;  %v13452_v58 = vld [vmem:[#allocation89_spill] sm:$0xff] }
 0x3c6   :  { %2937 = vmatprep.subr.mxu0 %v8730_v60  ;;  %3008 = vmatprep.subr.mxu1 %v13437_v35  ;;  %v13453_v60 = vld [vmem:[#allocation90_spill] sm:$0xff]  ;;  %v13455_v35 = vld [vmem:[#allocation96_spill] sm:$0xff] }
 0x3c7   :  { %2938 = vmatpush1.msra.mxu0 %v13438_v4  ;;  %3009 = vmatpush1.msra.mxu1 %v13439_v24  ;;  %v13456_v4 = vld [vmem:[#allocation98_spill] sm:$0xff]  ;;  %v13457_v24 = vld [vmem:[#allocation99_spill] sm:$0xff] }
 0x3c8   :  { %2939 = vmatprep.subr.mxu0 %v13440_v21  ;;  %3010 = vmatprep.subr.mxu1 %v13441_v31  ;;  %v13458_v21 = vld [vmem:[#allocation97_spill] sm:$0xff]  ;;  %v13459_v31 = vld [vmem:[#allocation94_spill] sm:$0xff] }
 0x3c9   :  { %2940 = vmatpush1.msra.mxu0 %v13442_v23  ;;  %3011 = vmatpush1.msra.mxu1 %v13443_v28  ;;  %v13460_v23 = vld [vmem:[#allocation92_spill] sm:$0xff] }
 0x3ca   :  { %2941 = vmatprep.subr.mxu0 %v13444_v19  ;;  %3012 = vmatprep.subr.mxu1 %v13445_v30  ;;  %v13461_v28 = vld [vmem:[#allocation8_spill] sm:$0xff]  ;;  %v13462_v19 = vld [vmem:[#allocation9_spill] sm:$0xff]  ;;  %v13463_v30 = vld [vmem:[#allocation10_spill] sm:$0xff] }
 0x3cb   :  { %2942 = vmatpush1.msra.mxu0 %v13446_v22  ;;  %3013 = vmatpush1.msra.mxu1 %v13447_v20  ;;  %v13464_v22 = vld [vmem:[#allocation11_spill] sm:$0xff]  ;;  %v13465_v20 = vld [vmem:[#allocation12_spill] sm:$0xff] }
 0x3cc   :  { %2943 = vmatprep.subr.mxu0 %v13448_v17  ;;  %3014 = vmatprep.subr.mxu1 %v13449_v33  ;;  %v13466_v17 = vld [vmem:[#allocation13_spill] sm:$0xff]  ;;  %v13467_v33 = vld [vmem:[#allocation14_spill] sm:$0xff] }
 0x3cd   :  { %2944 = vmatpush1.msra.mxu0 %v13450_v39  ;;  %3015 = vmatpush1.msra.mxu1 %v13451_v57  ;;  %v13468_v39 = vld [vmem:[#allocation15_spill] sm:$0xff]  ;;  %v13469_v57 = vld [vmem:[#allocation16_spill] sm:$0xff] }
 0x3ce   :  { %2945 = vmatprep.subr.mxu0 %v13452_v58  ;;  %3016 = vmatprep.subr.mxu1 %v13453_v60  ;;  %v13470_v58 = vld [vmem:[#allocation17_spill] sm:$0xff]  ;;  %v13471_v60 = vld [vmem:[#allocation18_spill] sm:$0xff] }
 0x3cf   :  { %2946 = vmatpush1.msra.mxu0 %v13454_v12  ;;  %3017 = vmatpush1.msra.mxu1 %v13455_v35  ;;  %v13472_v12 = vld [vmem:[#allocation19_spill] sm:$0xff]  ;;  %v13473_v35 = vld [vmem:[#allocation20_spill] sm:$0xff] }
 0x3d0   :  { %2947 = vmatprep.subr.mxu0 %v13456_v4  ;;  %3018 = vmatprep.subr.mxu1 %v13457_v24  ;;  %v13474_v4 = vld [vmem:[#allocation21_spill] sm:$0xff]  ;;  %v13475_v24 = vld [vmem:[#allocation22_spill] sm:$0xff] }
 0x3d1   :  { %2948 = vmatpush1.msra.mxu0 %v13458_v21  ;;  %3019 = vmatpush1.msra.mxu1 %v13459_v31  ;;  %v13476_v21 = vld [vmem:[#allocation23_spill] sm:$0xff]  ;;  %v13477_v31 = vld [vmem:[#allocation24_spill] sm:$0xff] }
 0x3d2   :  { %2949 = vmatprep.subr.mxu0 %v13460_v23  ;;  %3020 = vmatprep.subr.mxu1 %v13461_v28  ;;  %v13478_v23 = vld [vmem:[#allocation25_spill] sm:$0xff]  ;;  %v13479_v28 = vld [vmem:[#allocation26_spill] sm:$0xff] }
 0x3d3   :  { %2950 = vmatpush1.msra.mxu0 %v13462_v19  ;;  %3021 = vmatpush1.msra.mxu1 %v13463_v30  ;;  %v13480_v19 = vld [vmem:[#allocation27_spill] sm:$0xff]  ;;  %v13481_v30 = vld [vmem:[#allocation124_spill] sm:$0xff] }
 0x3d4   :  { %2951 = vmatprep.subr.mxu0 %v13464_v22  ;;  %3022 = vmatprep.subr.mxu1 %v13465_v20  ;;  %v13482_v22 = vld [vmem:[#allocation125_spill] sm:$0xff]  ;;  %v13483_v20 = vld [vmem:[#allocation126_spill] sm:$0xff] }
 0x3d5   :  { %2952 = vmatpush1.msra.mxu0 %v13466_v17  ;;  %3023 = vmatpush1.msra.mxu1 %v13467_v33  ;;  %v9569_v17 = vld [vmem:[%s12508_s2 + $0x1e8] sm:$0xff]  ;;  %v9574_v33 = vld [vmem:[%s12508_s2 + $0x1f8] sm:$0xff] }
 0x3d6   :  { %2953 = vmatprep.subr.mxu0 %v13468_v39  ;;  %3024 = vmatprep.subr.mxu1 %v13469_v57  ;;  %13484 = vst [vmem:[#allocation49_spill] sm:$0xff] %v9569_v17  ;;  %13485 = vst [vmem:[#allocation50_spill] sm:$0xff] %v9574_v33 }
 0x3d7   :  { %2954 = vmatpush1.msra.mxu0 %v13470_v58  ;;  %3025 = vmatpush1.msra.mxu1 %v13471_v60 }
 0x3d8   :  { %2955 = vmatprep.subr.mxu0 %v13472_v12  ;;  %3026 = vmatprep.subr.mxu1 %v13473_v35  ;;  %v13486_v12 = vld [vmem:[#allocation104_spill] sm:$0xff] }
 0x3d9   :  { %2956 = vmatpush1.msra.mxu0 %v13474_v4  ;;  %3027 = vmatpush1.msra.mxu1 %v13475_v24 }
 0x3da   :  { %2957 = vmatprep.subr.mxu0 %v13476_v21  ;;  %3028 = vmatprep.subr.mxu1 %v13477_v31  ;;  %v13487_v21 = vld [vmem:[#allocation106_spill] sm:$0xff] }
 0x3db   :  { %2958 = vmatpush1.msra.mxu0 %v13478_v23  ;;  %3029 = vmatpush1.msra.mxu1 %v13479_v28 }
 0x3dc   :  { %2959 = vmatprep.subr.mxu0 %v13480_v19  ;;  %3030 = vmatprep.subr.mxu1 %v13481_v30 }
 0x3dd   :  { %2960 = vmatpush1.msra.mxu0 %v13482_v22  ;;  %3031 = vmatpush1.msra.mxu1 %v13483_v20  ;;  %v13488_v22 = vld [vmem:[#allocation107_spill] sm:$0xff] }
 0x3de   :  { %2993 = vmatprep.mubr.f32.mxu0 %v13135_v56  ;;  %3064 = vmatprep.mubr.f32.mxu1 %v13135_v56 }
 0x3df   :  { %3143 = vmatprep.subr.mxu0 %v9569_v17  ;;  %3214 = vmatprep.subr.mxu1 %v9574_v33  ;;  %v13489_v17 = vld [vmem:[#allocation105_spill] sm:$0xff] }
 0x43a   :  { %v2280_v39 = vpop.f32.mrf.mxu0  ;;  %v2351_v60 = vpop.f32.mrf.mxu1 }
 0x43c   :  { %v2282_v57 = vpop.f32.mrf.mxu0  ;;  %v2353_v23 = vpop.f32.mrf.mxu1 }
 0x45b   :  { %v2494_v58 = vpop.f32.mrf.mxu0  ;;  %v2565_v19 = vpop.f32.mrf.mxu1 }
 0x45c   :  { %v2570_v35 = vadd.f32 %v2494_v58, %v13486_v12  ;;  %v2572_v33 = vadd.f32 %v2565_v19, %v13489_v17  ;;  %v2192_v12 = vld [vmem:[%s12512_s6] sm:$0xf] }
 0x45d   :  { %v2496_v4 = vpop.f32.mrf.mxu0  ;;  %v2567_v30 = vpop.f32.mrf.mxu1 }
 0x45e   :  { %v6233_v24 = vmul.f32 -1.442695, %v2570_v35  ;;  %v2571_v31 = vadd.f32 %v2496_v4, %v13487_v21  ;;  %v2573_v20 = vadd.f32 %v2567_v30, %v13488_v22  ;;  %v13490_v35 = vld [vmem:[#allocation93_spill] sm:$0xff] }
 0x45f   :  { %v2197_v4 = vrot.slane %v2192_v12, %v13490_v35 }
 0x460   :  { %6405 = vpow2.f32 %v6233_v24  ;;  %v6234_v28 = vmul.f32 -1.442695, %v2571_v31  ;;  %v6235_v25 = vmul.f32 -1.442695, %v2573_v20  ;;  %v13491_v24 = vld [vmem:[#allocation95_spill] sm:$0xff] }
 0x461   :  { %v2201_v21 = vrot.slane %v2192_v12, %v13491_v24 }
 0x462   :  { %6407 = vpow2.f32 %v6234_v28  ;;  %v2281_v28 = vadd.f32 %v2280_v39, %v2197_v4  ;;  %v2209_v39 = vrot.slane %v2192_v12, %v13236_v26 }
 0x463   :  { %6409 = vtanh.f32 %v2572_v33 }
 0x46d   :  { %v6406_v7 = vpop.eup %6405 }
 0x46e   :  { %v2577_v14 = vadd.f32 1.0, %v6406_v7  ;;  %v2283_v7 = vadd.f32 %v2282_v57, %v2201_v21  ;;  %v2354_v57 = vadd.f32 %v2353_v23, %v2209_v39  ;;  %v2205_v21 = vrot.slane %v2192_v12, %v13237_v51  ;;  %v9598_v23 = vld [vmem:[%s12508_s2 + $0x1e0] sm:$0xff]  ;;  %v9608_v12 = vld [vmem:[%s12508_s2 + $0x1c8] sm:$0xff]  ;;  %v9649_v39 = vld [vmem:[%s12508_s2 + $0x1b0] sm:$0xff] }
 0x46f   :  { %v6408_v34 = vpop.eup %6407  ;;  %13493 = vst [vmem:[#allocation52_spill] sm:$0xff] %v9649_v39 }
 0x470   :  { %6411 = vrcp.f32 %v2577_v14  ;;  %v2583_v58 = vadd.f32 1.0, %v6408_v34  ;;  %v6410_v31 = vpop.eup %6409 }
 0x471   :  { %6413 = vpow2.f32 %v6235_v25 }
 0x472   :  { %6415 = vrcp.f32 %v2583_v58 }
 0x47d   :  { %v6412_v17 = vpop.eup %6411  ;;  %v2732_v19 = vpop.f32.mrf.mxu0 }
 0x47e   :  { %v6414_v30 = vpop.eup %6413  ;;  %v2595_v22 = vmul.f32 %v6412_v17, %v6410_v31  ;;  %v2808_v33 = vadd.f32 %v2732_v19, %v2281_v28  ;;  %v2803_v35 = vpop.f32.mrf.mxu1 }
 0x47f   :  { %v6416_v14 = vpop.eup %6415  ;;  %v2734_v34 = vpop.f32.mrf.mxu0  ;;  %v2590_v2 = vadd.f32 1.0, %v6414_v30 }
 0x480   :  { %v2594_v25 = vmul.f32 %v6416_v14, %v9027_v61  ;;  %v6236_v20 = vmul.f32 -1.442695, %v2808_v33  ;;  %v2809_v58 = vadd.f32 %v2734_v34, %v2283_v7  ;;  %v2805_v4 = vpop.f32.mrf.mxu1  ;;  %v2352_v61 = vadd.f32 %v2351_v60, %v2205_v21  ;;  %v9603_v60 = vld [vmem:[%s12508_s2 + $0x1f0] sm:$0xff]  ;;  %v9668_v21 = vld [vmem:[%s12508_s2 + $0x180] sm:$0xff] }
 0x481   :  { %v2811_v31 = vadd.f32 %v2805_v4, %v2354_v57  ;;  %v9625_v34 = vld [vmem:[%s12508_s2 + $0x1d0] sm:$0xff]  ;;  %v9656_v4 = vld [vmem:[%s12508_s2 + $0x188] sm:$0xff]  ;;  %v9661_v57 = vld [vmem:[%s12508_s2 + $0x198] sm:$0xff]  ;;  %13496 = vst [vmem:[#allocation55_spill] sm:$0xff] %v9668_v21 }
 0x482   :  { %v9588_v63 = vadd.f32 %v2595_v22, %v2594_v25  ;;  %6417 = vpow2.f32 %v6236_v20  ;;  %v6237_v24 = vmul.f32 -1.442695, %v2809_v58  ;;  %v2810_v19 = vadd.f32 %v2803_v35, %v2352_v61  ;;  %v9613_v35 = vld [vmem:[%s12508_s2 + $0x1d8] sm:$0xff]  ;;  %v9632_v25 = vld [vmem:[%s12508_s2 + $0x1a8] sm:$0xff]  ;;  %v9644_v58 = vld [vmem:[%s12508_s2 + $0x1a0] sm:$0xff]  ;;  %13494 = vst [vmem:[#allocation53_spill] sm:$0xff] %v9656_v4 }
 0x483   :  { %v6238_v28 = vmul.f32 -1.442695, %v2811_v31  ;;  %v9637_v20 = vld [vmem:[%s12508_s2 + $0x1b8] sm:$0xff]  ;;  %13492 = vst [vmem:[#allocation51_spill] sm:$0xff] %v9644_v58  ;;  %13495 = vst [vmem:[#allocation54_spill] sm:$0xff] %v9661_v57  ;;  %v9673_v31 = vld [vmem:[%s12508_s2 + $0x190] sm:$0xff] }
 0x484   :  { %6419 = vpow2.f32 %v6237_v24  ;;  %v9620_v24 = vld [vmem:[%s12508_s2 + $0x1c0] sm:$0xff]  ;;  %13497 = vst [vmem:[#allocation56_spill] sm:$0xff] %v9673_v31  ;;  %v9680_v61 = vld [vmem:[%s12508_s2 + $0x168] sm:$0xff] }
 0x485   :  { %6421 = vrcp.f32 %v2590_v2  ;;  %13498 = vst [vmem:[#allocation57_spill] sm:$0xff] %v9680_v61 }
 0x486   :  { %6423 = vtanh.f32 %v9588_v63 }
 0x487   :  { %6425 = vpow2.f32 %v6238_v28  ;;  %v9685_v28 = vld [vmem:[%s12508_s2 + $0x178] sm:$0xff] }
 0x488   :  { %13499 = vst [vmem:[#allocation58_spill] sm:$0xff] %v9685_v28 }
 0x48f   :  { %v6418_v17 = vpop.eup %6417 }
 0x490   :  { %v2815_v30 = vadd.f32 1.0, %v6418_v17  ;;  %v9692_v17 = vld [vmem:[%s12508_s2 + $0x160] sm:$0xff] }
 0x491   :  { %v6420_v7 = vpop.eup %6419  ;;  %13500 = vst [vmem:[#allocation59_spill] sm:$0xff] %v9692_v17 }
 0x492   :  { %v6422_v22 = vpop.eup %6421  ;;  %6427 = vrcp.f32 %v2815_v30  ;;  %v2821_v33 = vadd.f32 1.0, %v6420_v7  ;;  %v9704_v30 = vld [vmem:[%s12508_s2 + $0x148] sm:$0xff]  ;;  %v9709_v7 = vld [vmem:[%s12508_s2 + $0x158] sm:$0xff] }
 0x493   :  { %v6424_v14 = vpop.eup %6423  ;;  %6429 = vtanh.f32 %v2810_v19  ;;  %v9697_v19 = vld [vmem:[%s12508_s2 + $0x170] sm:$0xff]  ;;  %13502 = vst [vmem:[#allocation61_spill] sm:$0xff] %v9704_v30  ;;  %13503 = vst [vmem:[#allocation62_spill] sm:$0xff] %v9709_v7 }
 0x494   :  { %6431 = vrcp.f32 %v2821_v33  ;;  %v9593_v2 = vmul.f32 %v6424_v14, %v6422_v22  ;;  %13501 = vst [vmem:[#allocation60_spill] sm:$0xff] %v9697_v19  ;;  %v6426_v22 = vpop.eup %6425  ;;  %v9716_v33 = vld [vmem:[%s12508_s2 + $0x140] sm:$0xff]  ;;  %v9721_v14 = vld [vmem:[%s12508_s2 + $0x150] sm:$0xff] }
 0x495   :  { %13504 = vst [vmem:[#allocation63_spill] sm:$0xff] %v9721_v14 }
 0x496   :  { %2994 = vmatmul.mubr.f32.vlgmr.msra.gmra.mxu0 %v9593_v2  ;;  %3065 = vmatmul.mubr.f32.vlgmr.msra.gmra.mxu1 %v9593_v2 }
 0x497   :  { %3144 = vmatpush1.msra.mxu0 %v9598_v23  ;;  %3215 = vmatpush1.msra.mxu1 %v9603_v60 }
 0x498   :  { %3145 = vmatprep.subr.mxu0 %v9608_v12  ;;  %3216 = vmatprep.subr.mxu1 %v9613_v35 }
 0x499   :  { %3146 = vmatpush1.msra.mxu0 %v9620_v24  ;;  %3217 = vmatpush1.msra.mxu1 %v9625_v34 }
 0x49a   :  { %3147 = vmatprep.subr.mxu0 %v9632_v25  ;;  %3218 = vmatprep.subr.mxu1 %v9637_v20 }
 0x49b   :  { %3148 = vmatpush1.msra.mxu0 %v9644_v58  ;;  %3219 = vmatpush1.msra.mxu1 %v9649_v39 }
 0x49c   :  { %3149 = vmatprep.subr.mxu0 %v9656_v4  ;;  %3220 = vmatprep.subr.mxu1 %v9661_v57  ;;  %v2828_v4 = vadd.f32 1.0, %v6426_v22  ;;  %v9765_v22 = vld [vmem:[%s12508_s2 + $0x100] sm:$0xff] }
 0x49d   :  { %3150 = vmatpush1.msra.mxu0 %v9668_v21  ;;  %3221 = vmatpush1.msra.mxu1 %v9673_v31  ;;  %13507 = vst [vmem:[#allocation66_spill] sm:$0xff] %v9765_v22 }
 0x49e   :  { %3151 = vmatprep.subr.mxu0 %v9680_v61  ;;  %3222 = vmatprep.subr.mxu1 %v9685_v28  ;;  %v9728_v61 = vld [vmem:[%s12508_s2 + $0x128] sm:$0xff]  ;;  %v9733_v28 = vld [vmem:[%s12508_s2 + $0x138] sm:$0xff]  ;;  %6433 = vrcp.f32 %v2828_v4  ;;  %v9815_v4 = vld [vmem:[%s12508_s2 + $0xc0] sm:$0xff] }
 0x49f   :  { %v6428_v31 = vpop.eup %6427  ;;  %3152 = vmatpush1.msra.mxu0 %v9692_v17  ;;  %3223 = vmatpush1.msra.mxu1 %v9697_v19  ;;  %v9740_v17 = vld [vmem:[%s12508_s2 + $0x120] sm:$0xff]  ;;  %v9745_v19 = vld [vmem:[%s12508_s2 + $0x130] sm:$0xff]  ;;  %13515 = vst [vmem:[#allocation74_spill] sm:$0xff] %v9815_v4 }
 0x4a0   :  { %v6430_v21 = vpop.eup %6429  ;;  %3153 = vmatprep.subr.mxu0 %v9704_v30  ;;  %3224 = vmatprep.subr.mxu1 %v9709_v7  ;;  %13505 = vst [vmem:[#allocation64_spill] sm:$0xff] %v9745_v19  ;;  %v9752_v7 = vld [vmem:[%s12508_s2 + $0x108] sm:$0xff]  ;;  %v9757_v30 = vld [vmem:[%s12508_s2 + $0x118] sm:$0xff] }
 0x4a1   :  { %v6432_v57 = vpop.eup %6431  ;;  %3154 = vmatpush1.msra.mxu0 %v9716_v33  ;;  %3225 = vmatpush1.msra.mxu1 %v9721_v14  ;;  %13506 = vst [vmem:[#allocation65_spill] sm:$0xff] %v9757_v30  ;;  %v2833_v39 = vmul.f32 %v6430_v21, %v6428_v31  ;;  %v9770_v14 = vld [vmem:[%s12508_s2 + $0x110] sm:$0xff]  ;;  %v9791_v31 = vld [vmem:[%s12508_s2 + $0xe0] sm:$0xff] }
 0x4a2   :  { %v2832_v58 = vmul.f32 %v6432_v57, %v9063_v5  ;;  %3155 = vmatprep.subr.mxu0 %v9728_v61  ;;  %3226 = vmatprep.subr.mxu1 %v9733_v28  ;;  %13508 = vst [vmem:[#allocation67_spill] sm:$0xff] %v9770_v14  ;;  %v9777_v5 = vld [vmem:[%s12508_s2 + $0xe8] sm:$0xff]  ;;  %v9782_v57 = vld [vmem:[%s12508_s2 + $0xf8] sm:$0xff]  ;;  %13511 = vst [vmem:[#allocation70_spill] sm:$0xff] %v9791_v31 }
 0x4a3   :  { %3156 = vmatpush1.msra.mxu0 %v9740_v17  ;;  %3227 = vmatpush1.msra.mxu1 %v9745_v19  ;;  %13509 = vst [vmem:[#allocation68_spill] sm:$0xff] %v9777_v5  ;;  %13510 = vst [vmem:[#allocation69_spill] sm:$0xff] %v9782_v57  ;;  %v9796_v19 = vld [vmem:[%s12508_s2 + $0xf0] sm:$0xff] }
 0x4a4   :  { %v9784_v21 = vadd.f32 %v2833_v39, %v2832_v58  ;;  %3157 = vmatprep.subr.mxu0 %v9752_v7  ;;  %3228 = vmatprep.subr.mxu1 %v9757_v30  ;;  %13512 = vst [vmem:[#allocation71_spill] sm:$0xff] %v9796_v19  ;;  %v9803_v58 = vld [vmem:[%s12508_s2 + $0xc8] sm:$0xff]  ;;  %v9808_v39 = vld [vmem:[%s12508_s2 + $0xd8] sm:$0xff]  ;;  %v9967_v30 = vld [vmem:[%s12508_s2 + $0x10] sm:$0xff] }
 0x4a5   :  { %3158 = vmatpush1.msra.mxu0 %v9765_v22  ;;  %3229 = vmatpush1.msra.mxu1 %v9770_v14  ;;  %13513 = vst [vmem:[#allocation72_spill] sm:$0xff] %v9803_v58  ;;  %13514 = vst [vmem:[#allocation73_spill] sm:$0xff] %v9808_v39  ;;  %v9820_v14 = vld [vmem:[%s12508_s2 + $0xd0] sm:$0xff] }
 0x4a6   :  { %3159 = vmatprep.subr.mxu0 %v9777_v5  ;;  %3230 = vmatprep.subr.mxu1 %v9782_v57  ;;  %13516 = vst [vmem:[#allocation75_spill] sm:$0xff] %v9820_v14  ;;  %6435 = vtanh.f32 %v9784_v21  ;;  %v9828_v57 = vld [vmem:[%s12508_s2 + $0xa8] sm:$0xff]  ;;  %v9833_v5 = vld [vmem:[%s12508_s2 + $0xb8] sm:$0xff] }
 0x4a7   :  { %3160 = vmatpush1.msra.mxu0 %v9791_v31  ;;  %3231 = vmatpush1.msra.mxu1 %v9796_v19  ;;  %13517 = vst [vmem:[#allocation76_spill] sm:$0xff] %v9828_v57  ;;  %13518 = vst [vmem:[#allocation77_spill] sm:$0xff] %v9833_v5  ;;  %v9840_v31 = vld [vmem:[%s12508_s2 + $0xa0] sm:$0xff]  ;;  %v9845_v19 = vld [vmem:[%s12508_s2 + $0xb0] sm:$0xff] }
 0x4a8   :  { %3161 = vmatprep.subr.mxu0 %v9803_v58  ;;  %3232 = vmatprep.subr.mxu1 %v9808_v39  ;;  %13519 = vst [vmem:[#allocation78_spill] sm:$0xff] %v9840_v31  ;;  %13520 = vst [vmem:[#allocation79_spill] sm:$0xff] %v9845_v19  ;;  %v9852_v58 = vld [vmem:[%s12508_s2 + $0x88] sm:$0xff]  ;;  %v9857_v39 = vld [vmem:[%s12508_s2 + $0x98] sm:$0xff] }
 0x4a9   :  { %3162 = vmatpush1.msra.mxu0 %v9815_v4  ;;  %3233 = vmatpush1.msra.mxu1 %v9820_v14  ;;  %13521 = vst [vmem:[#allocation80_spill] sm:$0xff] %v9852_v58  ;;  %13522 = vst [vmem:[#allocation81_spill] sm:$0xff] %v9857_v39  ;;  %v9864_v4 = vld [vmem:[%s12508_s2 + $0x80] sm:$0xff]  ;;  %v9869_v14 = vld [vmem:[%s12508_s2 + $0x90] sm:$0xff] }
 0x4aa   :  { %3163 = vmatprep.subr.mxu0 %v9828_v57  ;;  %3234 = vmatprep.subr.mxu1 %v9833_v5  ;;  %13523 = vst [vmem:[#allocation82_spill] sm:$0xff] %v9864_v4  ;;  %13524 = vst [vmem:[#allocation83_spill] sm:$0xff] %v9869_v14  ;;  %v9876_v57 = vld [vmem:[%s12508_s2 + $0x68] sm:$0xff]  ;;  %v9881_v5 = vld [vmem:[%s12508_s2 + $0x78] sm:$0xff] }
 0x4ab   :  { %3164 = vmatpush1.msra.mxu0 %v9840_v31  ;;  %3235 = vmatpush1.msra.mxu1 %v9845_v19  ;;  %13525 = vst [vmem:[#allocation84_spill] sm:$0xff] %v9876_v57  ;;  %13526 = vst [vmem:[#allocation85_spill] sm:$0xff] %v9881_v5  ;;  %v9888_v31 = vld [vmem:[%s12508_s2 + $0x60] sm:$0xff]  ;;  %v9893_v19 = vld [vmem:[%s12508_s2 + $0x70] sm:$0xff]  ;;  %v6434_v22 = vpop.eup %6433 }
 0x4ac   :  { %3165 = vmatprep.subr.mxu0 %v9852_v58  ;;  %3236 = vmatprep.subr.mxu1 %v9857_v39  ;;  %13527 = vst [vmem:[#allocation86_spill] sm:$0xff] %v9888_v31  ;;  %13528 = vst [vmem:[#allocation87_spill] sm:$0xff] %v9893_v19  ;;  %v9900_v58 = vld [vmem:[%s12508_s2 + $0x48] sm:$0xff]  ;;  %v9905_v39 = vld [vmem:[%s12508_s2 + $0x58] sm:$0xff] }
 0x4ad   :  { %3166 = vmatpush1.msra.mxu0 %v9864_v4  ;;  %3237 = vmatpush1.msra.mxu1 %v9869_v14  ;;  %13529 = vst [vmem:[#allocation88_spill] sm:$0xff] %v9900_v58  ;;  %13530 = vst [vmem:[#allocation89_spill] sm:$0xff] %v9905_v39  ;;  %v9912_v4 = vld [vmem:[%s12508_s2 + $0x40] sm:$0xff]  ;;  %v9917_v14 = vld [vmem:[%s12508_s2 + $0x50] sm:$0xff] }
 0x4ae   :  { %3167 = vmatprep.subr.mxu0 %v9876_v57  ;;  %3238 = vmatprep.subr.mxu1 %v9881_v5  ;;  %13531 = vst [vmem:[#allocation90_spill] sm:$0xff] %v9912_v4  ;;  %13532 = vst [vmem:[#allocation91_spill] sm:$0xff] %v9917_v14  ;;  %v9924_v57 = vld [vmem:[%s12508_s2 + $0x28] sm:$0xff]  ;;  %v9929_v5 = vld [vmem:[%s12508_s2 + $0x38] sm:$0xff] }
 0x4af   :  { %3168 = vmatpush1.msra.mxu0 %v9888_v31  ;;  %3239 = vmatpush1.msra.mxu1 %v9893_v19  ;;  %13533 = vst [vmem:[#allocation96_spill] sm:$0xff] %v9929_v5  ;;  %v9936_v31 = vld [vmem:[%s12508_s2 + $0x20] sm:$0xff]  ;;  %v9941_v19 = vld [vmem:[%s12508_s2 + $0x30] sm:$0xff] }
 0x4b0   :  { %3169 = vmatprep.subr.mxu0 %v9900_v58  ;;  %3240 = vmatprep.subr.mxu1 %v9905_v39  ;;  %v9948_v58 = vld [vmem:[%s12508_s2 + $0x8] sm:$0xff]  ;;  %v9953_v39 = vld [vmem:[%s12508_s2 + $0x18] sm:$0xff] }
 0x4b1   :  { %3170 = vmatpush1.msra.mxu0 %v9912_v4  ;;  %3241 = vmatpush1.msra.mxu1 %v9917_v14  ;;  %v9960_v4 = vld [vmem:[%s12508_s2] sm:$0xff] }
 0x4b2   :  { %3171 = vmatprep.subr.mxu0 %v9924_v57  ;;  %3242 = vmatprep.subr.mxu1 %v9929_v5 }
 0x4b3   :  { %v6436_v14 = vpop.eup %6435  ;;  %3172 = vmatpush1.msra.mxu0 %v9936_v31  ;;  %3243 = vmatpush1.msra.mxu1 %v9941_v19 }
 0x4b4   :  { %3173 = vmatprep.subr.mxu0 %v9948_v58  ;;  %3244 = vmatprep.subr.mxu1 %v9953_v39  ;;  %v9971_v5 = vmul.f32 %v6436_v14, %v6434_v22  ;;  %v10097_v14 = vld [vmem:[%s12509_s4 + $0x1d0] sm:$0xff]  ;;  %v10104_v22 = vld [vmem:[%s12509_s4 + $0x1a8] sm:$0xff] }
 0x4b5   :  { %3174 = vmatpush1.msra.mxu0 %v9960_v4  ;;  %3207 = vmatprep.mubr.f32.mxu0 %v13135_v56 }
 0x4b6   :  { %3245 = vmatpush1.msra.mxu1 %v9967_v30  ;;  %3278 = vmatprep.mubr.f32.mxu1 %v13135_v56  ;;  %6239 = vst [vmem:[%s12513_s7 + $0x10] sm:$0xff] %v9971_v5 }
 0x4b7   :  { %3208 = vmatmul.mubr.f32.vlgmr.msra.gmra.mxu0 %v9593_v2  ;;  %3279 = vmatmul.mubr.f32.vlgmr.msra.gmra.mxu1 %v9593_v2  ;;  %v10092_v2 = vld [vmem:[%s12509_s4 + $0x1c0] sm:$0xff] }
 0x4b8   :  { %3381 = vmatprep.subr.mxu0 %v9107_v53  ;;  %3452 = vmatprep.subr.mxu1 %v9112_v37  ;;  %v13534_v53 = vld [vmem:[#allocation127_spill] sm:$0xff]  ;;  %v13535_v37 = vld [vmem:[#allocation128_spill] sm:$0xff] }
 0x4b9   :  { %3382 = vmatpush1.msra.mxu0 %v9119_v46  ;;  %3453 = vmatpush1.msra.mxu1 %v9124_v52  ;;  %v13536_v46 = vld [vmem:[#allocation129_spill] sm:$0xff]  ;;  %v13537_v52 = vld [vmem:[#allocation130_spill] sm:$0xff] }
 0x4ba   :  { %3383 = vmatprep.subr.mxu0 %v9135_v49  ;;  %3454 = vmatprep.subr.mxu1 %v9140_v54  ;;  %v13538_v49 = vld [vmem:[#allocation28_spill] sm:$0xff]  ;;  %v13539_v54 = vld [vmem:[#allocation29_spill] sm:$0xff] }
 0x4bb   :  { %3384 = vmatpush1.msra.mxu0 %v9147_v42  ;;  %3455 = vmatpush1.msra.mxu1 %v9152_v62  ;;  %v13540_v42 = vld [vmem:[#allocation100_spill] sm:$0xff]  ;;  %v13541_v62 = vld [vmem:[#allocation102_spill] sm:$0xff] }
 0x4bc   :  { %3385 = vmatprep.subr.mxu0 %v9159_v6  ;;  %3456 = vmatprep.subr.mxu1 %v9164_v50  ;;  %v13542_v6 = vld [vmem:[#allocation103_spill] sm:$0xff]  ;;  %v13543_v50 = vld [vmem:[#allocation101_spill] sm:$0xff] }
 0x4bd   :  { %3386 = vmatpush1.msra.mxu0 %v9171_v13  ;;  %3457 = vmatpush1.msra.mxu1 %v9176_v16  ;;  %v13544_v13 = vld [vmem:[#allocation30_spill] sm:$0xff]  ;;  %v13545_v16 = vld [vmem:[#allocation31_spill] sm:$0xff] }
 0x4be   :  { %3387 = vmatprep.subr.mxu0 %v9183_v32  ;;  %3458 = vmatprep.subr.mxu1 %v9188_v18  ;;  %v13546_v32 = vld [vmem:[#allocation32_spill] sm:$0xff]  ;;  %v13547_v18 = vld [vmem:[#allocation33_spill] sm:$0xff] }
 0x4bf   :  { %3388 = vmatpush1.msra.mxu0 %v9195_v40  ;;  %3459 = vmatpush1.msra.mxu1 %v9200_v38  ;;  %v13548_v40 = vld [vmem:[#allocation34_spill] sm:$0xff]  ;;  %v13549_v38 = vld [vmem:[#allocation35_spill] sm:$0xff] }
 0x4c0   :  { %3389 = vmatprep.subr.mxu0 %v9207_v41  ;;  %3460 = vmatprep.subr.mxu1 %v9212_v3  ;;  %v13550_v41 = vld [vmem:[#allocation36_spill] sm:$0xff]  ;;  %v13551_v3 = vld [vmem:[#allocation37_spill] sm:$0xff] }
 0x4c1   :  { %3390 = vmatpush1.msra.mxu0 %v9219_v29  ;;  %3461 = vmatpush1.msra.mxu1 %v9224_v45  ;;  %v13552_v29 = vld [vmem:[#allocation38_spill] sm:$0xff]  ;;  %v13553_v45 = vld [vmem:[#allocation39_spill] sm:$0xff] }
 0x4c2   :  { %3391 = vmatprep.subr.mxu0 %v9231_v1  ;;  %3462 = vmatprep.subr.mxu1 %v9236_v0  ;;  %v13554_v1 = vld [vmem:[#allocation40_spill] sm:$0xff]  ;;  %v13555_v0 = vld [vmem:[#allocation41_spill] sm:$0xff] }
 0x4c3   :  { %3392 = vmatpush1.msra.mxu0 %v9243_v8  ;;  %3463 = vmatpush1.msra.mxu1 %v9248_v15  ;;  %v13556_v8 = vld [vmem:[#allocation42_spill] sm:$0xff]  ;;  %v13557_v15 = vld [vmem:[#allocation43_spill] sm:$0xff] }
 0x4c4   :  { %3393 = vmatprep.subr.mxu0 %v9255_v9  ;;  %3464 = vmatprep.subr.mxu1 %v9260_v10  ;;  %v13558_v9 = vld [vmem:[#allocation44_spill] sm:$0xff]  ;;  %v13559_v10 = vld [vmem:[#allocation45_spill] sm:$0xff] }
 0x4c5   :  { %3394 = vmatpush1.msra.mxu0 %v9267_v43  ;;  %3465 = vmatpush1.msra.mxu1 %v9272_v55  ;;  %v13560_v43 = vld [vmem:[#allocation46_spill] sm:$0xff]  ;;  %v13561_v55 = vld [vmem:[#allocation47_spill] sm:$0xff] }
 0x4c6   :  { %3395 = vmatprep.subr.mxu0 %v9279_v44  ;;  %3466 = vmatprep.subr.mxu1 %v9284_v59  ;;  %v13562_v44 = vld [vmem:[#allocation48_spill] sm:$0xff]  ;;  %v10056_v59 = vld [vmem:[%s12509_s4 + $0x1e8] sm:$0xff] }
 0x4c7   :  { %3396 = vmatpush1.msra.mxu0 %v9291_v48  ;;  %3467 = vmatpush1.msra.mxu1 %v9296_v36  ;;  %v10061_v48 = vld [vmem:[%s12509_s4 + $0x1f8] sm:$0xff]  ;;  %v10068_v36 = vld [vmem:[%s12509_s4 + $0x1e0] sm:$0xff] }
 0x4c8   :  { %3397 = vmatprep.subr.mxu0 %v9303_v47  ;;  %3468 = vmatprep.subr.mxu1 %v13534_v53  ;;  %v10073_v47 = vld [vmem:[%s12509_s4 + $0x1f0] sm:$0xff]  ;;  %v10116_v53 = vld [vmem:[%s12509_s4 + $0x1a0] sm:$0xff] }
 0x4c9   :  { %3398 = vmatpush1.msra.mxu0 %v13535_v37  ;;  %3469 = vmatpush1.msra.mxu1 %v13536_v46  ;;  %v10121_v37 = vld [vmem:[%s12509_s4 + $0x1b0] sm:$0xff]  ;;  %v10128_v46 = vld [vmem:[%s12509_s4 + $0x188] sm:$0xff] }
 0x4ca   :  { %3399 = vmatprep.subr.mxu0 %v13537_v52  ;;  %3470 = vmatprep.subr.mxu1 %v13538_v49  ;;  %v10133_v52 = vld [vmem:[%s12509_s4 + $0x198] sm:$0xff]  ;;  %v10140_v49 = vld [vmem:[%s12509_s4 + $0x180] sm:$0xff] }
 0x4cb   :  { %3400 = vmatpush1.msra.mxu0 %v13539_v54  ;;  %3471 = vmatpush1.msra.mxu1 %v13540_v42  ;;  %v10145_v54 = vld [vmem:[%s12509_s4 + $0x190] sm:$0xff]  ;;  %v10152_v42 = vld [vmem:[%s12509_s4 + $0x168] sm:$0xff] }
 0x4cc   :  { %3401 = vmatprep.subr.mxu0 %v13541_v62  ;;  %3472 = vmatprep.subr.mxu1 %v13542_v6  ;;  %13563 = vst [vmem:[#allocation98_spill] sm:$0xff] %v10145_v54  ;;  %13564 = vst [vmem:[#allocation99_spill] sm:$0xff] %v10152_v42  ;;  %v10157_v62 = vld [vmem:[%s12509_s4 + $0x178] sm:$0xff]  ;;  %v10164_v6 = vld [vmem:[%s12509_s4 + $0x160] sm:$0xff] }
 0x4cd   :  { %3402 = vmatpush1.msra.mxu0 %v13543_v50  ;;  %3473 = vmatpush1.msra.mxu1 %v13544_v13  ;;  %13565 = vst [vmem:[#allocation97_spill] sm:$0xff] %v10157_v62  ;;  %13566 = vst [vmem:[#allocation94_spill] sm:$0xff] %v10164_v6  ;;  %v10169_v50 = vld [vmem:[%s12509_s4 + $0x170] sm:$0xff]  ;;  %v10176_v13 = vld [vmem:[%s12509_s4 + $0x148] sm:$0xff] }
 0x4ce   :  { %3403 = vmatprep.subr.mxu0 %v13545_v16  ;;  %3474 = vmatprep.subr.mxu1 %v13546_v32  ;;  %13567 = vst [vmem:[#allocation92_spill] sm:$0xff] %v10169_v50  ;;  %13568 = vst [vmem:[#allocation8_spill] sm:$0xff] %v10176_v13  ;;  %v10181_v16 = vld [vmem:[%s12509_s4 + $0x158] sm:$0xff]  ;;  %v10188_v32 = vld [vmem:[%s12509_s4 + $0x140] sm:$0xff] }
 0x4cf   :  { %3404 = vmatpush1.msra.mxu0 %v13547_v18  ;;  %3475 = vmatpush1.msra.mxu1 %v13548_v40  ;;  %13569 = vst [vmem:[#allocation9_spill] sm:$0xff] %v10181_v16  ;;  %13570 = vst [vmem:[#allocation10_spill] sm:$0xff] %v10188_v32  ;;  %v10193_v18 = vld [vmem:[%s12509_s4 + $0x150] sm:$0xff]  ;;  %v10200_v40 = vld [vmem:[%s12509_s4 + $0x128] sm:$0xff] }
 0x4d0   :  { %3405 = vmatprep.subr.mxu0 %v13549_v38  ;;  %3476 = vmatprep.subr.mxu1 %v13550_v41  ;;  %13571 = vst [vmem:[#allocation11_spill] sm:$0xff] %v10193_v18  ;;  %13572 = vst [vmem:[#allocation12_spill] sm:$0xff] %v10200_v40  ;;  %v10205_v38 = vld [vmem:[%s12509_s4 + $0x138] sm:$0xff]  ;;  %v10212_v41 = vld [vmem:[%s12509_s4 + $0x120] sm:$0xff] }
 0x4d1   :  { %3406 = vmatpush1.msra.mxu0 %v13551_v3  ;;  %3477 = vmatpush1.msra.mxu1 %v13552_v29  ;;  %13573 = vst [vmem:[#allocation13_spill] sm:$0xff] %v10205_v38  ;;  %13574 = vst [vmem:[#allocation14_spill] sm:$0xff] %v10212_v41  ;;  %v10217_v3 = vld [vmem:[%s12509_s4 + $0x130] sm:$0xff]  ;;  %v10224_v29 = vld [vmem:[%s12509_s4 + $0x108] sm:$0xff] }
 0x4d2   :  { %3407 = vmatprep.subr.mxu0 %v13553_v45  ;;  %3478 = vmatprep.subr.mxu1 %v13554_v1  ;;  %13575 = vst [vmem:[#allocation15_spill] sm:$0xff] %v10217_v3  ;;  %13576 = vst [vmem:[#allocation16_spill] sm:$0xff] %v10224_v29  ;;  %v10229_v45 = vld [vmem:[%s12509_s4 + $0x118] sm:$0xff]  ;;  %v10236_v1 = vld [vmem:[%s12509_s4 + $0x100] sm:$0xff] }
 0x4d3   :  { %3408 = vmatpush1.msra.mxu0 %v13555_v0  ;;  %3479 = vmatpush1.msra.mxu1 %v13556_v8  ;;  %13577 = vst [vmem:[#allocation17_spill] sm:$0xff] %v10229_v45  ;;  %13578 = vst [vmem:[#allocation18_spill] sm:$0xff] %v10236_v1  ;;  %v10241_v0 = vld [vmem:[%s12509_s4 + $0x110] sm:$0xff]  ;;  %v10248_v8 = vld [vmem:[%s12509_s4 + $0xe8] sm:$0xff] }
 0x4d4   :  { %3409 = vmatprep.subr.mxu0 %v9447_v27  ;;  %3480 = vmatprep.subr.mxu1 %v9452_v11  ;;  %v10080_v11 = vld [vmem:[%s12509_s4 + $0x1c8] sm:$0xff]  ;;  %v10085_v27 = vld [vmem:[%s12509_s4 + $0x1d8] sm:$0xff]  ;;  %13579 = vst [vmem:[#allocation19_spill] sm:$0xff] %v10241_v0  ;;  %13580 = vst [vmem:[#allocation20_spill] sm:$0xff] %v10248_v8 }
 0x4d5   :  { %3410 = vmatpush1.msra.mxu0 %v13557_v15  ;;  %3481 = vmatpush1.msra.mxu1 %v13558_v9  ;;  %v10253_v15 = vld [vmem:[%s12509_s4 + $0xf8] sm:$0xff]  ;;  %v10260_v9 = vld [vmem:[%s12509_s4 + $0xe0] sm:$0xff] }
 0x4d6   :  { %3411 = vmatprep.subr.mxu0 %v13559_v10  ;;  %3482 = vmatprep.subr.mxu1 %v13560_v43  ;;  %13581 = vst [vmem:[#allocation21_spill] sm:$0xff] %v10253_v15  ;;  %13582 = vst [vmem:[#allocation22_spill] sm:$0xff] %v10260_v9  ;;  %v10265_v10 = vld [vmem:[%s12509_s4 + $0xf0] sm:$0xff]  ;;  %v10272_v43 = vld [vmem:[%s12509_s4 + $0xc8] sm:$0xff] }
 0x4d7   :  { %3412 = vmatpush1.msra.mxu0 %v13561_v55  ;;  %3445 = vmatprep.mubr.f32.mxu0 %v13135_v56  ;;  %13583 = vst [vmem:[#allocation23_spill] sm:$0xff] %v10265_v10  ;;  %13584 = vst [vmem:[#allocation24_spill] sm:$0xff] %v10272_v43  ;;  %v10277_v55 = vld [vmem:[%s12509_s4 + $0xd8] sm:$0xff] }
 0x4d8   :  { %3483 = vmatpush1.msra.mxu1 %v13562_v44  ;;  %3516 = vmatprep.mubr.f32.mxu1 %v13135_v56  ;;  %13585 = vst [vmem:[#allocation25_spill] sm:$0xff] %v10277_v55  ;;  %v10284_v44 = vld [vmem:[%s12509_s4 + $0xc0] sm:$0xff] }
 0x4d9   :  { %3446 = vmatmul.mubr.f32.vlgmr.msra.gmra.mxu0 %v9971_v5  ;;  %3517 = vmatmul.mubr.f32.vlgmr.msra.gmra.mxu1 %v9971_v5  ;;  %v10109_v5 = vld [vmem:[%s12509_s4 + $0x1b8] sm:$0xff]  ;;  %13586 = vst [vmem:[#allocation26_spill] sm:$0xff] %v10284_v44 }
 0x4da   :  { %3708 = vmatprep.mubr.f32.mxu0 %v13135_v56  ;;  %3779 = vmatprep.mubr.f32.mxu1 %v13135_v56 }
 0x4db   :  { %3644 = vmatprep.subr.mxu0 %v10056_v59  ;;  %3715 = vmatprep.subr.mxu1 %v10061_v48 }
 0x4dc   :  { %3645 = vmatpush1.msra.mxu0 %v10068_v36  ;;  %3716 = vmatpush1.msra.mxu1 %v10073_v47 }
 0x4dd   :  { %3646 = vmatprep.subr.mxu0 %v10080_v11  ;;  %3717 = vmatprep.subr.mxu1 %v10085_v27 }
 0x4de   :  { %3647 = vmatpush1.msra.mxu0 %v10092_v2  ;;  %3718 = vmatpush1.msra.mxu1 %v10097_v14 }
 0x4df   :  { %3648 = vmatprep.subr.mxu0 %v10104_v22  ;;  %3719 = vmatprep.subr.mxu1 %v10109_v5 }
 0x4e0   :  { %3649 = vmatpush1.msra.mxu0 %v10116_v53  ;;  %3720 = vmatpush1.msra.mxu1 %v10121_v37 }
 0x4e1   :  { %3650 = vmatprep.subr.mxu0 %v10128_v46  ;;  %3721 = vmatprep.subr.mxu1 %v10133_v52 }
 0x4e2   :  { %3651 = vmatpush1.msra.mxu0 %v10140_v49  ;;  %3722 = vmatpush1.msra.mxu1 %v10145_v54 }
 0x4e3   :  { %3652 = vmatprep.subr.mxu0 %v10152_v42  ;;  %3723 = vmatprep.subr.mxu1 %v10157_v62 }
 0x4e4   :  { %3653 = vmatpush1.msra.mxu0 %v10164_v6  ;;  %3724 = vmatpush1.msra.mxu1 %v10169_v50 }
 0x4e5   :  { %3654 = vmatprep.subr.mxu0 %v10176_v13  ;;  %3725 = vmatprep.subr.mxu1 %v10181_v16  ;;  %v13617_v16 = vld [vmem:[#allocation109_spill] sm:$0xff] }
 0x4e6   :  { %3655 = vmatpush1.msra.mxu0 %v10188_v32  ;;  %3726 = vmatpush1.msra.mxu1 %v10193_v18  ;;  %v13616_v32 = vld [vmem:[#allocation111_spill] sm:$0xff] }
 0x4e7   :  { %3656 = vmatprep.subr.mxu0 %v10200_v40  ;;  %3727 = vmatprep.subr.mxu1 %v10205_v38 }
 0x4e8   :  { %3657 = vmatpush1.msra.mxu0 %v10212_v41  ;;  %3728 = vmatpush1.msra.mxu1 %v10217_v3  ;;  %v13615_v41 = vld [vmem:[#allocation110_spill] sm:$0xff] }
 0x4e9   :  { %3658 = vmatprep.subr.mxu0 %v10224_v29  ;;  %3729 = vmatprep.subr.mxu1 %v10229_v45 }
 0x4ea   :  { %3659 = vmatpush1.msra.mxu0 %v10236_v1  ;;  %3730 = vmatpush1.msra.mxu1 %v10241_v0  ;;  %v13614_v1 = vld [vmem:[#allocation108_spill] sm:$0xff] }
 0x4eb   :  { %3660 = vmatprep.subr.mxu0 %v10248_v8  ;;  %3731 = vmatprep.subr.mxu1 %v10253_v15  ;;  %v13613_v15 = vld [vmem:[#allocation50_spill] sm:$0xff] }
 0x4ec   :  { %3661 = vmatpush1.msra.mxu0 %v10260_v9  ;;  %3732 = vmatpush1.msra.mxu1 %v10265_v10  ;;  %v10289_v10 = vld [vmem:[%s12509_s4 + $0xd0] sm:$0xff]  ;;  %v13612_v9 = vld [vmem:[#allocation49_spill] sm:$0xff] }
 0x4ed   :  { %3662 = vmatprep.subr.mxu0 %v10272_v43  ;;  %3733 = vmatprep.subr.mxu1 %v10277_v55  ;;  %13587 = vst [vmem:[#allocation27_spill] sm:$0xff] %v10289_v10  ;;  %v10296_v43 = vld [vmem:[%s12509_s4 + $0xa8] sm:$0xff]  ;;  %v10301_v55 = vld [vmem:[%s12509_s4 + $0xb8] sm:$0xff] }
 0x4ee   :  { %3663 = vmatpush1.msra.mxu0 %v10284_v44  ;;  %3734 = vmatpush1.msra.mxu1 %v10289_v10  ;;  %13588 = vst [vmem:[#allocation124_spill] sm:$0xff] %v10296_v43  ;;  %13589 = vst [vmem:[#allocation125_spill] sm:$0xff] %v10301_v55  ;;  %v10308_v44 = vld [vmem:[%s12509_s4 + $0xa0] sm:$0xff]  ;;  %v10313_v10 = vld [vmem:[%s12509_s4 + $0xb0] sm:$0xff] }
 0x4ef   :  { %3664 = vmatprep.subr.mxu0 %v10296_v43  ;;  %3735 = vmatprep.subr.mxu1 %v10301_v55  ;;  %13590 = vst [vmem:[#allocation126_spill] sm:$0xff] %v10308_v44  ;;  %13591 = vst [vmem:[#allocation104_spill] sm:$0xff] %v10313_v10  ;;  %v10320_v43 = vld [vmem:[%s12509_s4 + $0x88] sm:$0xff]  ;;  %v10325_v55 = vld [vmem:[%s12509_s4 + $0x98] sm:$0xff] }
 0x4f0   :  { %3665 = vmatpush1.msra.mxu0 %v10308_v44  ;;  %3736 = vmatpush1.msra.mxu1 %v10313_v10  ;;  %13592 = vst [vmem:[#allocation106_spill] sm:$0xff] %v10320_v43  ;;  %13593 = vst [vmem:[#allocation107_spill] sm:$0xff] %v10325_v55  ;;  %v10332_v44 = vld [vmem:[%s12509_s4 + $0x80] sm:$0xff]  ;;  %v10337_v10 = vld [vmem:[%s12509_s4 + $0x90] sm:$0xff] }
 0x4f1   :  { %3666 = vmatprep.subr.mxu0 %v10320_v43  ;;  %3737 = vmatprep.subr.mxu1 %v10325_v55  ;;  %13594 = vst [vmem:[#allocation105_spill] sm:$0xff] %v10332_v44  ;;  %13595 = vst [vmem:[#allocation127_spill] sm:$0xff] %v10337_v10  ;;  %v10344_v43 = vld [vmem:[%s12509_s4 + $0x68] sm:$0xff]  ;;  %v10349_v55 = vld [vmem:[%s12509_s4 + $0x78] sm:$0xff] }
 0x4f2   :  { %3667 = vmatpush1.msra.mxu0 %v10332_v44  ;;  %3738 = vmatpush1.msra.mxu1 %v10337_v10  ;;  %13596 = vst [vmem:[#allocation128_spill] sm:$0xff] %v10344_v43  ;;  %13597 = vst [vmem:[#allocation129_spill] sm:$0xff] %v10349_v55  ;;  %v10356_v44 = vld [vmem:[%s12509_s4 + $0x60] sm:$0xff]  ;;  %v10361_v10 = vld [vmem:[%s12509_s4 + $0x70] sm:$0xff] }
 0x4f3   :  { %3668 = vmatprep.subr.mxu0 %v10344_v43  ;;  %3739 = vmatprep.subr.mxu1 %v10349_v55  ;;  %13598 = vst [vmem:[#allocation130_spill] sm:$0xff] %v10356_v44  ;;  %13599 = vst [vmem:[#allocation28_spill] sm:$0xff] %v10361_v10  ;;  %v10368_v43 = vld [vmem:[%s12509_s4 + $0x48] sm:$0xff]  ;;  %v10373_v55 = vld [vmem:[%s12509_s4 + $0x58] sm:$0xff] }
 0x4f4   :  { %3669 = vmatpush1.msra.mxu0 %v10356_v44  ;;  %3740 = vmatpush1.msra.mxu1 %v10361_v10  ;;  %13600 = vst [vmem:[#allocation29_spill] sm:$0xff] %v10368_v43  ;;  %13601 = vst [vmem:[#allocation100_spill] sm:$0xff] %v10373_v55  ;;  %v10380_v44 = vld [vmem:[%s12509_s4 + $0x40] sm:$0xff]  ;;  %v10385_v10 = vld [vmem:[%s12509_s4 + $0x50] sm:$0xff] }
 0x4f5   :  { %3670 = vmatprep.subr.mxu0 %v10368_v43  ;;  %3741 = vmatprep.subr.mxu1 %v10373_v55  ;;  %13602 = vst [vmem:[#allocation102_spill] sm:$0xff] %v10380_v44  ;;  %13603 = vst [vmem:[#allocation103_spill] sm:$0xff] %v10385_v10  ;;  %v10392_v43 = vld [vmem:[%s12509_s4 + $0x28] sm:$0xff]  ;;  %v10397_v55 = vld [vmem:[%s12509_s4 + $0x38] sm:$0xff] }
 0x4f6   :  { %3671 = vmatpush1.msra.mxu0 %v10380_v44  ;;  %3742 = vmatpush1.msra.mxu1 %v10385_v10  ;;  %13604 = vst [vmem:[#allocation101_spill] sm:$0xff] %v10392_v43  ;;  %13605 = vst [vmem:[#allocation30_spill] sm:$0xff] %v10397_v55  ;;  %v10404_v44 = vld [vmem:[%s12509_s4 + $0x20] sm:$0xff]  ;;  %v10409_v10 = vld [vmem:[%s12509_s4 + $0x30] sm:$0xff] }
 0x4f7   :  { %3672 = vmatprep.subr.mxu0 %v10392_v43  ;;  %3743 = vmatprep.subr.mxu1 %v10397_v55  ;;  %13606 = vst [vmem:[#allocation31_spill] sm:$0xff] %v10404_v44  ;;  %13607 = vst [vmem:[#allocation32_spill] sm:$0xff] %v10409_v10  ;;  %v10416_v43 = vld [vmem:[%s12509_s4 + $0x8] sm:$0xff]  ;;  %v10421_v55 = vld [vmem:[%s12509_s4 + $0x18] sm:$0xff] }
 0x4f8   :  { %3673 = vmatpush1.msra.mxu0 %v10404_v44  ;;  %3744 = vmatpush1.msra.mxu1 %v10409_v10  ;;  %13608 = vst [vmem:[#allocation33_spill] sm:$0xff] %v10416_v43  ;;  %13609 = vst [vmem:[#allocation34_spill] sm:$0xff] %v10421_v55  ;;  %v10428_v44 = vld [vmem:[%s12509_s4] sm:$0xff]  ;;  %v10433_v10 = vld [vmem:[%s12509_s4 + $0x10] sm:$0xff] }
 0x4f9   :  { %3674 = vmatprep.subr.mxu0 %v10416_v43  ;;  %3745 = vmatprep.subr.mxu1 %v10421_v55  ;;  %13610 = vst [vmem:[#allocation35_spill] sm:$0xff] %v10428_v44  ;;  %13611 = vst [vmem:[#allocation36_spill] sm:$0xff] %v10433_v10 }
 0x4fa   :  { %3675 = vmatpush1.msra.mxu0 %v10428_v44  ;;  %3746 = vmatpush1.msra.mxu1 %v10433_v10 }
 0x4fb   :  { %3858 = vmatprep.subr.mxu0 %v13612_v9  ;;  %3929 = vmatprep.subr.mxu1 %v13613_v15 }
 0x556   :  { %v2995_v43 = vpop.f32.mrf.mxu0  ;;  %v3066_v0 = vpop.f32.mrf.mxu1 }
 0x558   :  { %v2997_v55 = vpop.f32.mrf.mxu0  ;;  %v3068_v40 = vpop.f32.mrf.mxu1 }
 0x577   :  { %v3209_v8 = vpop.f32.mrf.mxu0  ;;  %v3280_v44 = vpop.f32.mrf.mxu1 }
 0x578   :  { %v3285_v45 = vadd.f32 %v3209_v8, %v13614_v1  ;;  %v3287_v15 = vadd.f32 %v3280_v44, %v13617_v16 }
 0x579   :  { %v3211_v29 = vpop.f32.mrf.mxu0  ;;  %v3282_v10 = vpop.f32.mrf.mxu1 }
 0x57a   :  { %v6240_v3 = vmul.f32 -1.442695, %v3285_v45  ;;  %v3286_v38 = vadd.f32 %v3211_v29, %v13615_v41  ;;  %v3288_v9 = vadd.f32 %v3282_v10, %v13616_v32  ;;  %v13618_v41 = vld [vmem:[#allocation93_spill] sm:$0xff] }
 0x57c   :  { %6437 = vpow2.f32 %v6240_v3  ;;  %v6241_v18 = vmul.f32 -1.442695, %v3286_v38  ;;  %v6242_v50 = vmul.f32 -1.442695, %v3288_v9  ;;  %v2907_v38 = vld [vmem:[%s12512_s6] sm:$0xf] }
 0x57d   :  { %v13619_v3 = vld [vmem:[#allocation95_spill] sm:$0xff] }
 0x57e   :  { %6439 = vpow2.f32 %v6241_v18  ;;  %v2912_v18 = vrot.slane %v2907_v38, %v13618_v41  ;;  %v2916_v29 = vrot.slane %v2907_v38, %v13619_v3 }
 0x57f   :  { %6441 = vtanh.f32 %v3287_v15 }
 0x580   :  { %v2996_v45 = vadd.f32 %v2995_v43, %v2912_v18  ;;  %v2924_v43 = vrot.slane %v2907_v38, %v13236_v26 }
 0x589   :  { %v6438_v13 = vpop.eup %6437 }
 0x58a   :  { %v3292_v6 = vadd.f32 1.0, %v6438_v13  ;;  %v2998_v13 = vadd.f32 %v2997_v55, %v2916_v29  ;;  %v3069_v55 = vadd.f32 %v3068_v40, %v2924_v43  ;;  %v2920_v29 = vrot.slane %v2907_v38, %v13237_v51  ;;  %v13620_v40 = vld [vmem:[#allocation51_spill] sm:$0xff]  ;;  %v13622_v38 = vld [vmem:[#allocation53_spill] sm:$0xff] }
 0x58b   :  { %v6440_v62 = vpop.eup %6439  ;;  %v13632_v43 = vld [vmem:[#allocation63_spill] sm:$0xff] }
 0x58c   :  { %6443 = vrcp.f32 %v3292_v6  ;;  %v3298_v1 = vadd.f32 1.0, %v6440_v62  ;;  %v6442_v32 = vpop.eup %6441 }
 0x58d   :  { %6445 = vpow2.f32 %v6242_v50 }
 0x58e   :  { %6447 = vrcp.f32 %v3298_v1 }
 0x599   :  { %v6444_v16 = vpop.eup %6443  ;;  %v3447_v8 = vpop.f32.mrf.mxu0 }
 0x59a   :  { %v6446_v10 = vpop.eup %6445  ;;  %v3310_v44 = vmul.f32 %v6444_v16, %v6442_v32  ;;  %v3523_v9 = vadd.f32 %v3447_v8, %v2996_v45  ;;  %v3518_v41 = vpop.f32.mrf.mxu1 }
 0x59b   :  { %v6448_v6 = vpop.eup %6447  ;;  %v3449_v62 = vpop.f32.mrf.mxu0  ;;  %v3305_v42 = vadd.f32 1.0, %v6446_v10 }
 0x59c   :  { %v3309_v50 = vmul.f32 %v6448_v6, %v9588_v63  ;;  %v6243_v15 = vmul.f32 -1.442695, %v3523_v9  ;;  %v3524_v1 = vadd.f32 %v3449_v62, %v2998_v13  ;;  %v3520_v18 = vpop.f32.mrf.mxu1  ;;  %v3067_v63 = vadd.f32 %v3066_v0, %v2920_v29  ;;  %v13621_v0 = vld [vmem:[#allocation52_spill] sm:$0xff]  ;;  %v13630_v62 = vld [vmem:[#allocation61_spill] sm:$0xff] }
 0x59d   :  { %v3526_v32 = vadd.f32 %v3520_v18, %v3069_v55  ;;  %v13633_v29 = vld [vmem:[#allocation64_spill] sm:$0xff] }
 0x59e   :  { %v10449_v54 = vadd.f32 %v3310_v44, %v3309_v50  ;;  %6449 = vpow2.f32 %v6243_v15  ;;  %v6244_v3 = vmul.f32 -1.442695, %v3524_v1  ;;  %v3525_v8 = vadd.f32 %v3518_v41, %v3067_v63  ;;  %v13628_v41 = vld [vmem:[#allocation59_spill] sm:$0xff]  ;;  %v13631_v50 = vld [vmem:[#allocation62_spill] sm:$0xff]  ;;  %v13634_v63 = vld [vmem:[#allocation65_spill] sm:$0xff] }
 0x59f   :  { %v6245_v45 = vmul.f32 -1.442695, %v3526_v32 }
 0x5a0   :  { %6451 = vpow2.f32 %v6244_v3 }
 0x5a1   :  { %6453 = vrcp.f32 %v3305_v42 }
 0x5a2   :  { %6455 = vtanh.f32 %v10449_v54 }
 0x5a3   :  { %6457 = vpow2.f32 %v6245_v45  ;;  %v13636_v45 = vld [vmem:[#allocation67_spill] sm:$0xff] }
 0x5ab   :  { %v6450_v16 = vpop.eup %6449 }
 0x5ac   :  { %v3530_v10 = vadd.f32 1.0, %v6450_v16  ;;  %v13641_v16 = vld [vmem:[#allocation72_spill] sm:$0xff] }
 0x5ad   :  { %v6452_v13 = vpop.eup %6451 }
 0x5ae   :  { %v6454_v44 = vpop.eup %6453  ;;  %6459 = vrcp.f32 %v3530_v10  ;;  %v3536_v9 = vadd.f32 1.0, %v6452_v13  ;;  %v13644_v10 = vld [vmem:[#allocation75_spill] sm:$0xff]  ;;  %v13645_v13 = vld [vmem:[#allocation76_spill] sm:$0xff] }
 0x5af   :  { %v6456_v6 = vpop.eup %6455  ;;  %6461 = vtanh.f32 %v3525_v8  ;;  %v13643_v8 = vld [vmem:[#allocation74_spill] sm:$0xff] }
 0x5b0   :  { %6463 = vrcp.f32 %v3536_v9  ;;  %v10454_v42 = vmul.f32 %v6456_v6, %v6454_v44  ;;  %v13646_v44 = vld [vmem:[#allocation77_spill] sm:$0xff]  ;;  %v13647_v9 = vld [vmem:[#allocation78_spill] sm:$0xff]  ;;  %v13648_v6 = vld [vmem:[#allocation79_spill] sm:$0xff] }
 0x5b2   :  { %3709 = vmatmul.mubr.f32.vlgmr.msra.gmra.mxu0 %v10454_v42  ;;  %3780 = vmatmul.mubr.f32.vlgmr.msra.gmra.mxu1 %v10454_v42 }
 0x5b3   :  { %3859 = vmatpush1.msra.mxu0 %v9598_v23  ;;  %3930 = vmatpush1.msra.mxu1 %v9603_v60  ;;  %v13623_v23 = vld [vmem:[#allocation54_spill] sm:$0xff]  ;;  %v13624_v60 = vld [vmem:[#allocation55_spill] sm:$0xff] }
 0x5b4   :  { %3860 = vmatprep.subr.mxu0 %v9608_v12  ;;  %3931 = vmatprep.subr.mxu1 %v9613_v35  ;;  %v13625_v12 = vld [vmem:[#allocation56_spill] sm:$0xff]  ;;  %v6458_v35 = vpop.eup %6457 }
 0x5b5   :  { %3861 = vmatpush1.msra.mxu0 %v9620_v24  ;;  %3932 = vmatpush1.msra.mxu1 %v9625_v34  ;;  %v13626_v24 = vld [vmem:[#allocation57_spill] sm:$0xff]  ;;  %v13627_v34 = vld [vmem:[#allocation58_spill] sm:$0xff]  ;;  %v3543_v1 = vadd.f32 1.0, %v6458_v35 }
 0x5b6   :  { %3862 = vmatprep.subr.mxu0 %v9632_v25  ;;  %3933 = vmatprep.subr.mxu1 %v9637_v20  ;;  %v13629_v20 = vld [vmem:[#allocation60_spill] sm:$0xff]  ;;  %v13655_v35 = vld [vmem:[#allocation86_spill] sm:$0xff] }
 0x5b7   :  { %3863 = vmatpush1.msra.mxu0 %v13620_v40  ;;  %3934 = vmatpush1.msra.mxu1 %v13621_v0  ;;  %6465 = vrcp.f32 %v3543_v1  ;;  %v13649_v40 = vld [vmem:[#allocation80_spill] sm:$0xff]  ;;  %v13650_v0 = vld [vmem:[#allocation81_spill] sm:$0xff] }
 0x5b8   :  { %3864 = vmatprep.subr.mxu0 %v13622_v38  ;;  %3935 = vmatprep.subr.mxu1 %v13623_v23  ;;  %v13651_v38 = vld [vmem:[#allocation82_spill] sm:$0xff]  ;;  %v13652_v23 = vld [vmem:[#allocation83_spill] sm:$0xff]  ;;  %v10581_v1 = vld [vmem:[%s12511_s5 + $0x1a8] sm:$0xff] }
 0x5b9   :  { %3865 = vmatpush1.msra.mxu0 %v13624_v60  ;;  %3936 = vmatpush1.msra.mxu1 %v13625_v12  ;;  %v13653_v60 = vld [vmem:[#allocation84_spill] sm:$0xff]  ;;  %v13654_v12 = vld [vmem:[#allocation85_spill] sm:$0xff] }
 0x5ba   :  { %3866 = vmatprep.subr.mxu0 %v13626_v24  ;;  %3937 = vmatprep.subr.mxu1 %v13627_v34  ;;  %v13656_v24 = vld [vmem:[#allocation87_spill] sm:$0xff]  ;;  %v13657_v34 = vld [vmem:[#allocation88_spill] sm:$0xff] }
 0x5bb   :  { %v6460_v25 = vpop.eup %6459  ;;  %3867 = vmatpush1.msra.mxu0 %v13628_v41  ;;  %3938 = vmatpush1.msra.mxu1 %v13629_v20  ;;  %v13659_v41 = vld [vmem:[#allocation90_spill] sm:$0xff]  ;;  %v13660_v20 = vld [vmem:[#allocation91_spill] sm:$0xff] }
 0x5bc   :  { %v6462_v3 = vpop.eup %6461  ;;  %3868 = vmatprep.subr.mxu0 %v13630_v62  ;;  %3939 = vmatprep.subr.mxu1 %v13631_v50  ;;  %v13661_v62 = vld [vmem:[#allocation96_spill] sm:$0xff] }
 0x5bd   :  { %v6464_v15 = vpop.eup %6463  ;;  %3869 = vmatpush1.msra.mxu0 %v9716_v33  ;;  %3940 = vmatpush1.msra.mxu1 %v13632_v43  ;;  %v3548_v18 = vmul.f32 %v6462_v3, %v6460_v25  ;;  %v13635_v33 = vld [vmem:[#allocation66_spill] sm:$0xff]  ;;  %v13658_v25 = vld [vmem:[#allocation89_spill] sm:$0xff]  ;;  %v10586_v43 = vld [vmem:[%s12511_s5 + $0x1b8] sm:$0xff] }
 0x5be   :  { %v3547_v55 = vmul.f32 %v6464_v15, %v9784_v21  ;;  %3870 = vmatprep.subr.mxu0 %v9728_v61  ;;  %3941 = vmatprep.subr.mxu1 %v9733_v28  ;;  %v13637_v21 = vld [vmem:[#allocation68_spill] sm:$0xff]  ;;  %v13638_v61 = vld [vmem:[#allocation69_spill] sm:$0xff]  ;;  %v13639_v28 = vld [vmem:[#allocation70_spill] sm:$0xff] }
 0x5bf   :  { %3871 = vmatpush1.msra.mxu0 %v9740_v17  ;;  %3942 = vmatpush1.msra.mxu1 %v13633_v29  ;;  %v13640_v17 = vld [vmem:[#allocation71_spill] sm:$0xff]  ;;  %v10605_v29 = vld [vmem:[%s12511_s5 + $0x188] sm:$0xff] }
 0x5c0   :  { %v10485_v32 = vadd.f32 %v3548_v18, %v3547_v55  ;;  %3872 = vmatprep.subr.mxu0 %v9752_v7  ;;  %3943 = vmatprep.subr.mxu1 %v13634_v63  ;;  %v13642_v7 = vld [vmem:[#allocation73_spill] sm:$0xff]  ;;  %v10593_v18 = vld [vmem:[%s12511_s5 + $0x1a0] sm:$0xff]  ;;  %v10598_v55 = vld [vmem:[%s12511_s5 + $0x1b0] sm:$0xff] }
 0x5c1   :  { %3873 = vmatpush1.msra.mxu0 %v13635_v33  ;;  %3944 = vmatpush1.msra.mxu1 %v13636_v45  ;;  %v10610_v63 = vld [vmem:[%s12511_s5 + $0x198] sm:$0xff]  ;;  %v10617_v33 = vld [vmem:[%s12511_s5 + $0x180] sm:$0xff]  ;;  %v10622_v45 = vld [vmem:[%s12511_s5 + $0x190] sm:$0xff] }
 0x5c2   :  { %3874 = vmatprep.subr.mxu0 %v13637_v21  ;;  %3945 = vmatprep.subr.mxu1 %v13638_v61  ;;  %6467 = vtanh.f32 %v10485_v32  ;;  %v10629_v21 = vld [vmem:[%s12511_s5 + $0x168] sm:$0xff]  ;;  %v10634_v61 = vld [vmem:[%s12511_s5 + $0x178] sm:$0xff] }
 0x5c3   :  { %3875 = vmatpush1.msra.mxu0 %v13639_v28  ;;  %3946 = vmatpush1.msra.mxu1 %v13640_v17  ;;  %v10641_v28 = vld [vmem:[%s12511_s5 + $0x160] sm:$0xff]  ;;  %v10646_v17 = vld [vmem:[%s12511_s5 + $0x170] sm:$0xff] }
 0x5c4   :  { %3876 = vmatprep.subr.mxu0 %v13641_v16  ;;  %3947 = vmatprep.subr.mxu1 %v13642_v7  ;;  %v6466_v3 = vpop.eup %6465  ;;  %v10653_v16 = vld [vmem:[%s12511_s5 + $0x148] sm:$0xff]  ;;  %v10658_v7 = vld [vmem:[%s12511_s5 + $0x158] sm:$0xff] }
 0x5c5   :  { %3877 = vmatpush1.msra.mxu0 %v13643_v8  ;;  %3948 = vmatpush1.msra.mxu1 %v13644_v10  ;;  %v10665_v8 = vld [vmem:[%s12511_s5 + $0x140] sm:$0xff]  ;;  %v10670_v10 = vld [vmem:[%s12511_s5 + $0x150] sm:$0xff] }
 0x5c6   :  { %3878 = vmatprep.subr.mxu0 %v13645_v13  ;;  %3949 = vmatprep.subr.mxu1 %v13646_v44  ;;  %v10677_v13 = vld [vmem:[%s12511_s5 + $0x128] sm:$0xff]  ;;  %v10682_v44 = vld [vmem:[%s12511_s5 + $0x138] sm:$0xff] }
 0x5c7   :  { %3879 = vmatpush1.msra.mxu0 %v13647_v9  ;;  %3950 = vmatpush1.msra.mxu1 %v13648_v6  ;;  %v10689_v9 = vld [vmem:[%s12511_s5 + $0x120] sm:$0xff]  ;;  %v10694_v6 = vld [vmem:[%s12511_s5 + $0x130] sm:$0xff] }
 0x5c8   :  { %3880 = vmatprep.subr.mxu0 %v13649_v40  ;;  %3951 = vmatprep.subr.mxu1 %v13650_v0  ;;  %v10701_v40 = vld [vmem:[%s12511_s5 + $0x108] sm:$0xff]  ;;  %v10706_v0 = vld [vmem:[%s12511_s5 + $0x118] sm:$0xff] }
 0x5c9   :  { %3881 = vmatpush1.msra.mxu0 %v13651_v38  ;;  %3952 = vmatpush1.msra.mxu1 %v13652_v23  ;;  %v10713_v38 = vld [vmem:[%s12511_s5 + $0x100] sm:$0xff]  ;;  %v10718_v23 = vld [vmem:[%s12511_s5 + $0x110] sm:$0xff] }
 0x5ca   :  { %3882 = vmatprep.subr.mxu0 %v13653_v60  ;;  %3953 = vmatprep.subr.mxu1 %v13654_v12  ;;  %v10725_v60 = vld [vmem:[%s12511_s5 + $0xe8] sm:$0xff]  ;;  %v10730_v12 = vld [vmem:[%s12511_s5 + $0xf8] sm:$0xff] }
 0x5cb   :  { %3883 = vmatpush1.msra.mxu0 %v13655_v35  ;;  %3954 = vmatpush1.msra.mxu1 %v13656_v24  ;;  %v10737_v35 = vld [vmem:[%s12511_s5 + $0xe0] sm:$0xff]  ;;  %v10742_v24 = vld [vmem:[%s12511_s5 + $0xf0] sm:$0xff] }
 0x5cc   :  { %3884 = vmatprep.subr.mxu0 %v13657_v34  ;;  %3955 = vmatprep.subr.mxu1 %v13658_v25  ;;  %13662 = vst [vmem:[#allocation37_spill] sm:$0xff] %v10742_v24  ;;  %v10749_v34 = vld [vmem:[%s12511_s5 + $0xc8] sm:$0xff]  ;;  %v10754_v25 = vld [vmem:[%s12511_s5 + $0xd8] sm:$0xff] }
 0x5cd   :  { %3885 = vmatpush1.msra.mxu0 %v13659_v41  ;;  %3956 = vmatpush1.msra.mxu1 %v13660_v20  ;;  %13663 = vst [vmem:[#allocation38_spill] sm:$0xff] %v10749_v34  ;;  %13664 = vst [vmem:[#allocation39_spill] sm:$0xff] %v10754_v25  ;;  %v10761_v41 = vld [vmem:[%s12511_s5 + $0xc0] sm:$0xff]  ;;  %v10766_v20 = vld [vmem:[%s12511_s5 + $0xd0] sm:$0xff] }
 0x5ce   :  { %3886 = vmatprep.subr.mxu0 %v9924_v57  ;;  %3957 = vmatprep.subr.mxu1 %v13661_v62  ;;  %v10529_v57 = vld [vmem:[%s12511_s5 + $0x1e8] sm:$0xff]  ;;  %13665 = vst [vmem:[#allocation40_spill] sm:$0xff] %v10761_v41  ;;  %13666 = vst [vmem:[#allocation41_spill] sm:$0xff] %v10766_v20  ;;  %v10778_v62 = vld [vmem:[%s12511_s5 + $0xb8] sm:$0xff] }
 0x5cf   :  { %v6468_v50 = vpop.eup %6467  ;;  %3887 = vmatpush1.msra.mxu0 %v9936_v31  ;;  %3958 = vmatpush1.msra.mxu1 %v9941_v19  ;;  %v10534_v31 = vld [vmem:[%s12511_s5 + $0x1f8] sm:$0xff]  ;;  %v10541_v19 = vld [vmem:[%s12511_s5 + $0x1e0] sm:$0xff]  ;;  %13668 = vst [vmem:[#allocation43_spill] sm:$0xff] %v10778_v62 }
 0x5d0   :  { %3888 = vmatprep.subr.mxu0 %v9948_v58  ;;  %3959 = vmatprep.subr.mxu1 %v9953_v39  ;;  %v10522_v15 = vmul.f32 %v6468_v50, %v6466_v3  ;;  %v10546_v58 = vld [vmem:[%s12511_s5 + $0x1f0] sm:$0xff]  ;;  %v10562_v39 = vld [vmem:[%s12511_s5 + $0x1d8] sm:$0xff]  ;;  %v10773_v3 = vld [vmem:[%s12511_s5 + $0xa8] sm:$0xff] }
 0x5d1   :  { %3889 = vmatpush1.msra.mxu0 %v9960_v4  ;;  %3922 = vmatprep.mubr.f32.mxu0 %v13135_v56  ;;  %v10569_v4 = vld [vmem:[%s12511_s5 + $0x1c0] sm:$0xff]  ;;  %13667 = vst [vmem:[#allocation42_spill] sm:$0xff] %v10773_v3 }
 0x5d2   :  { %3960 = vmatpush1.msra.mxu1 %v9967_v30  ;;  %3993 = vmatprep.mubr.f32.mxu1 %v13135_v56  ;;  %6246 = vst [vmem:[%s12513_s7 + $0x18] sm:$0xff] %v10522_v15  ;;  %v10557_v30 = vld [vmem:[%s12511_s5 + $0x1c8] sm:$0xff]  ;;  %v10785_v50 = vld [vmem:[%s12511_s5 + $0xa0] sm:$0xff] }
 0x5d3   :  { %3923 = vmatmul.mubr.f32.vlgmr.msra.gmra.mxu0 %v10454_v42  ;;  %3994 = vmatmul.mubr.f32.vlgmr.msra.gmra.mxu1 %v10454_v42  ;;  %v10574_v42 = vld [vmem:[%s12511_s5 + $0x1d0] sm:$0xff]  ;;  %13669 = vst [vmem:[#allocation44_spill] sm:$0xff] %v10785_v50 }
 0x5d4   :  { %4096 = vmatprep.subr.mxu0 %v10529_v57  ;;  %4167 = vmatprep.subr.mxu1 %v10534_v31 }
 0x5d5   :  { %4097 = vmatpush1.msra.mxu0 %v10541_v19  ;;  %4168 = vmatpush1.msra.mxu1 %v10546_v58 }
 0x5d6   :  { %4098 = vmatprep.subr.mxu0 %v10557_v30  ;;  %4169 = vmatprep.subr.mxu1 %v10562_v39 }
 0x5d7   :  { %4099 = vmatpush1.msra.mxu0 %v10569_v4  ;;  %4170 = vmatpush1.msra.mxu1 %v10574_v42 }
 0x5d8   :  { %4100 = vmatprep.subr.mxu0 %v10581_v1  ;;  %4171 = vmatprep.subr.mxu1 %v10586_v43 }
 0x5d9   :  { %4101 = vmatpush1.msra.mxu0 %v10593_v18  ;;  %4172 = vmatpush1.msra.mxu1 %v10598_v55 }
 0x5da   :  { %4102 = vmatprep.subr.mxu0 %v10605_v29  ;;  %4173 = vmatprep.subr.mxu1 %v10610_v63 }
 0x5db   :  { %4103 = vmatpush1.msra.mxu0 %v10617_v33  ;;  %4174 = vmatpush1.msra.mxu1 %v10622_v45 }
 0x5dc   :  { %4104 = vmatprep.subr.mxu0 %v10629_v21  ;;  %4175 = vmatprep.subr.mxu1 %v10634_v61 }
 0x5dd   :  { %4105 = vmatpush1.msra.mxu0 %v10641_v28  ;;  %4176 = vmatpush1.msra.mxu1 %v10646_v17 }
 0x5de   :  { %4106 = vmatprep.subr.mxu0 %v10653_v16  ;;  %4177 = vmatprep.subr.mxu1 %v10658_v7 }
 0x5df   :  { %4107 = vmatpush1.msra.mxu0 %v10665_v8  ;;  %4178 = vmatpush1.msra.mxu1 %v10670_v10 }
 0x5e0   :  { %4108 = vmatprep.subr.mxu0 %v10677_v13  ;;  %4179 = vmatprep.subr.mxu1 %v10682_v44 }
 0x5e1   :  { %4109 = vmatpush1.msra.mxu0 %v10689_v9  ;;  %4180 = vmatpush1.msra.mxu1 %v10694_v6 }
 0x5e2   :  { %4110 = vmatprep.subr.mxu0 %v10701_v40  ;;  %4181 = vmatprep.subr.mxu1 %v10706_v0 }
 0x5e3   :  { %4111 = vmatpush1.msra.mxu0 %v10713_v38  ;;  %4182 = vmatpush1.msra.mxu1 %v10718_v23 }
 0x5e4   :  { %4112 = vmatprep.subr.mxu0 %v10725_v60  ;;  %4183 = vmatprep.subr.mxu1 %v10730_v12 }
 0x5e5   :  { %4113 = vmatpush1.msra.mxu0 %v10737_v35  ;;  %4184 = vmatpush1.msra.mxu1 %v10742_v24  ;;  %v10790_v24 = vld [vmem:[%s12511_s5 + $0xb0] sm:$0xff] }
 0x5e6   :  { %4114 = vmatprep.subr.mxu0 %v10749_v34  ;;  %4185 = vmatprep.subr.mxu1 %v10754_v25  ;;  %13670 = vst [vmem:[#allocation45_spill] sm:$0xff] %v10790_v24  ;;  %v10797_v34 = vld [vmem:[%s12511_s5 + $0x88] sm:$0xff]  ;;  %v10802_v25 = vld [vmem:[%s12511_s5 + $0x98] sm:$0xff] }
 0x5e7   :  { %4115 = vmatpush1.msra.mxu0 %v10761_v41  ;;  %4186 = vmatpush1.msra.mxu1 %v10766_v20  ;;  %13671 = vst [vmem:[#allocation46_spill] sm:$0xff] %v10797_v34  ;;  %13672 = vst [vmem:[#allocation47_spill] sm:$0xff] %v10802_v25  ;;  %v10809_v41 = vld [vmem:[%s12511_s5 + $0x80] sm:$0xff]  ;;  %v10814_v20 = vld [vmem:[%s12511_s5 + $0x90] sm:$0xff] }
 0x5e8   :  { %4116 = vmatprep.subr.mxu0 %v10773_v3  ;;  %4187 = vmatprep.subr.mxu1 %v10778_v62  ;;  %13673 = vst [vmem:[#allocation48_spill] sm:$0xff] %v10809_v41  ;;  %13674 = vst [vmem:[#allocation49_spill] sm:$0xff] %v10814_v20  ;;  %v10821_v3 = vld [vmem:[%s12511_s5 + $0x68] sm:$0xff]  ;;  %v10826_v62 = vld [vmem:[%s12511_s5 + $0x78] sm:$0xff] }
 0x5e9   :  { %4117 = vmatpush1.msra.mxu0 %v10785_v50  ;;  %4188 = vmatpush1.msra.mxu1 %v10790_v24  ;;  %13675 = vst [vmem:[#allocation50_spill] sm:$0xff] %v10821_v3  ;;  %13676 = vst [vmem:[#allocation108_spill] sm:$0xff] %v10826_v62  ;;  %v10833_v50 = vld [vmem:[%s12511_s5 + $0x60] sm:$0xff]  ;;  %v10838_v24 = vld [vmem:[%s12511_s5 + $0x70] sm:$0xff] }
 0x5ea   :  { %4118 = vmatprep.subr.mxu0 %v10797_v34  ;;  %4189 = vmatprep.subr.mxu1 %v10802_v25  ;;  %13677 = vst [vmem:[#allocation110_spill] sm:$0xff] %v10833_v50  ;;  %13678 = vst [vmem:[#allocation111_spill] sm:$0xff] %v10838_v24  ;;  %v10845_v34 = vld [vmem:[%s12511_s5 + $0x48] sm:$0xff]  ;;  %v10850_v25 = vld [vmem:[%s12511_s5 + $0x58] sm:$0xff] }
 0x5eb   :  { %4119 = vmatpush1.msra.mxu0 %v10809_v41  ;;  %4190 = vmatpush1.msra.mxu1 %v10814_v20  ;;  %13679 = vst [vmem:[#allocation109_spill] sm:$0xff] %v10845_v34  ;;  %13680 = vst [vmem:[#allocation51_spill] sm:$0xff] %v10850_v25  ;;  %v10857_v41 = vld [vmem:[%s12511_s5 + $0x40] sm:$0xff]  ;;  %v10862_v20 = vld [vmem:[%s12511_s5 + $0x50] sm:$0xff] }
 0x5ec   :  { %4120 = vmatprep.subr.mxu0 %v10821_v3  ;;  %4191 = vmatprep.subr.mxu1 %v10826_v62  ;;  %13681 = vst [vmem:[#allocation52_spill] sm:$0xff] %v10857_v41  ;;  %13682 = vst [vmem:[#allocation53_spill] sm:$0xff] %v10862_v20  ;;  %v10869_v3 = vld [vmem:[%s12511_s5 + $0x28] sm:$0xff]  ;;  %v10874_v62 = vld [vmem:[%s12511_s5 + $0x38] sm:$0xff] }
 0x5ed   :  { %4121 = vmatpush1.msra.mxu0 %v10833_v50  ;;  %4192 = vmatpush1.msra.mxu1 %v10838_v24  ;;  %13683 = vst [vmem:[#allocation54_spill] sm:$0xff] %v10869_v3  ;;  %13684 = vst [vmem:[#allocation55_spill] sm:$0xff] %v10874_v62  ;;  %v10881_v50 = vld [vmem:[%s12511_s5 + $0x20] sm:$0xff]  ;;  %v10886_v24 = vld [vmem:[%s12511_s5 + $0x30] sm:$0xff] }
 0x5ee   :  { %4122 = vmatprep.subr.mxu0 %v10845_v34  ;;  %4193 = vmatprep.subr.mxu1 %v10850_v25  ;;  %13685 = vst [vmem:[#allocation56_spill] sm:$0xff] %v10881_v50  ;;  %13686 = vst [vmem:[#allocation57_spill] sm:$0xff] %v10886_v24  ;;  %v10893_v34 = vld [vmem:[%s12511_s5 + $0x8] sm:$0xff]  ;;  %v10898_v25 = vld [vmem:[%s12511_s5 + $0x18] sm:$0xff] }
 0x5ef   :  { %4123 = vmatpush1.msra.mxu0 %v10857_v41  ;;  %4194 = vmatpush1.msra.mxu1 %v10862_v20  ;;  %13687 = vst [vmem:[#allocation58_spill] sm:$0xff] %v10893_v34  ;;  %13688 = vst [vmem:[#allocation59_spill] sm:$0xff] %v10898_v25  ;;  %v10905_v41 = vld [vmem:[%s12511_s5] sm:$0xff]  ;;  %v10912_v20 = vld [vmem:[%s12511_s5 + $0x10] sm:$0xff] }
 0x5f0   :  { %4124 = vmatprep.subr.mxu0 %v10869_v3  ;;  %4195 = vmatprep.subr.mxu1 %v10874_v62  ;;  %13689 = vst [vmem:[#allocation60_spill] sm:$0xff] %v10905_v41  ;;  %13690 = vst [vmem:[#allocation61_spill] sm:$0xff] %v10912_v20 }
 0x5f1   :  { %4125 = vmatpush1.msra.mxu0 %v10881_v50  ;;  %4196 = vmatpush1.msra.mxu1 %v10886_v24 }
 0x5f2   :  { %4126 = vmatprep.subr.mxu0 %v10893_v34  ;;  %4197 = vmatprep.subr.mxu1 %v10898_v25 }
 0x5f3   :  { %4127 = vmatpush1.msra.mxu0 %v10905_v41  ;;  %4160 = vmatprep.mubr.f32.mxu0 %v13135_v56  ;;  %v13745_v41 = vld [vmem:[#allocation113_spill] sm:$0xff] }
 0x5f4   :  { %4198 = vmatpush1.msra.mxu1 %v10912_v20  ;;  %4231 = vmatprep.mubr.f32.mxu1 %v13135_v56  ;;  %v13744_v20 = vld [vmem:[#allocation115_spill] sm:$0xff] }
 0x5f5   :  { %4161 = vmatmul.mubr.f32.vlgmr.msra.gmra.mxu0 %v10522_v15  ;;  %4232 = vmatmul.mubr.f32.vlgmr.msra.gmra.mxu1 %v10522_v15  ;;  %v13706_v15 = vld [vmem:[#allocation18_spill] sm:$0xff] }
 0x5f6   :  { %4359 = vmatprep.subr.mxu0 %v10056_v59  ;;  %4430 = vmatprep.subr.mxu1 %v10061_v48  ;;  %v13691_v59 = vld [vmem:[#allocation98_spill] sm:$0xff]  ;;  %v13692_v48 = vld [vmem:[#allocation99_spill] sm:$0xff] }
 0x5f7   :  { %4360 = vmatpush1.msra.mxu0 %v10068_v36  ;;  %4431 = vmatpush1.msra.mxu1 %v10073_v47  ;;  %v13693_v36 = vld [vmem:[#allocation97_spill] sm:$0xff]  ;;  %v13694_v47 = vld [vmem:[#allocation94_spill] sm:$0xff] }
 0x5f8   :  { %4361 = vmatprep.subr.mxu0 %v10080_v11  ;;  %4432 = vmatprep.subr.mxu1 %v10085_v27  ;;  %v13695_v11 = vld [vmem:[#allocation92_spill] sm:$0xff] }
 0x5f9   :  { %4362 = vmatpush1.msra.mxu0 %v10092_v2  ;;  %4433 = vmatpush1.msra.mxu1 %v10097_v14  ;;  %v13696_v27 = vld [vmem:[#allocation8_spill] sm:$0xff]  ;;  %v13697_v2 = vld [vmem:[#allocation9_spill] sm:$0xff]  ;;  %v13698_v14 = vld [vmem:[#allocation10_spill] sm:$0xff] }
 0x5fa   :  { %4363 = vmatprep.subr.mxu0 %v10104_v22  ;;  %4434 = vmatprep.subr.mxu1 %v10109_v5  ;;  %v13699_v22 = vld [vmem:[#allocation11_spill] sm:$0xff]  ;;  %v13700_v5 = vld [vmem:[#allocation12_spill] sm:$0xff] }
 0x5fb   :  { %4364 = vmatpush1.msra.mxu0 %v10116_v53  ;;  %4435 = vmatpush1.msra.mxu1 %v10121_v37  ;;  %v13701_v53 = vld [vmem:[#allocation13_spill] sm:$0xff]  ;;  %v13702_v37 = vld [vmem:[#allocation14_spill] sm:$0xff] }
 0x5fc   :  { %4365 = vmatprep.subr.mxu0 %v10128_v46  ;;  %4436 = vmatprep.subr.mxu1 %v10133_v52  ;;  %v13703_v46 = vld [vmem:[#allocation15_spill] sm:$0xff]  ;;  %v13704_v52 = vld [vmem:[#allocation16_spill] sm:$0xff] }
 0x5fd   :  { %4366 = vmatpush1.msra.mxu0 %v10140_v49  ;;  %4437 = vmatpush1.msra.mxu1 %v13691_v59  ;;  %v13705_v49 = vld [vmem:[#allocation17_spill] sm:$0xff]  ;;  %v13707_v59 = vld [vmem:[#allocation19_spill] sm:$0xff] }
 0x5fe   :  { %4367 = vmatprep.subr.mxu0 %v13692_v48  ;;  %4438 = vmatprep.subr.mxu1 %v13693_v36  ;;  %v13708_v48 = vld [vmem:[#allocation20_spill] sm:$0xff]  ;;  %v13709_v36 = vld [vmem:[#allocation21_spill] sm:$0xff] }
 0x5ff   :  { %4368 = vmatpush1.msra.mxu0 %v13694_v47  ;;  %4439 = vmatpush1.msra.mxu1 %v13695_v11  ;;  %v13710_v47 = vld [vmem:[#allocation22_spill] sm:$0xff]  ;;  %v13711_v11 = vld [vmem:[#allocation23_spill] sm:$0xff] }
 0x600   :  { %4369 = vmatprep.subr.mxu0 %v13696_v27  ;;  %4440 = vmatprep.subr.mxu1 %v13697_v2  ;;  %v13712_v27 = vld [vmem:[#allocation24_spill] sm:$0xff]  ;;  %v13713_v2 = vld [vmem:[#allocation25_spill] sm:$0xff] }
 0x601   :  { %4370 = vmatpush1.msra.mxu0 %v13698_v14  ;;  %4441 = vmatpush1.msra.mxu1 %v13699_v22  ;;  %v13714_v14 = vld [vmem:[#allocation26_spill] sm:$0xff]  ;;  %v13715_v22 = vld [vmem:[#allocation27_spill] sm:$0xff] }
 0x602   :  { %4371 = vmatprep.subr.mxu0 %v13700_v5  ;;  %4442 = vmatprep.subr.mxu1 %v13701_v53  ;;  %v13716_v5 = vld [vmem:[#allocation124_spill] sm:$0xff]  ;;  %v13717_v53 = vld [vmem:[#allocation125_spill] sm:$0xff] }
 0x603   :  { %4372 = vmatpush1.msra.mxu0 %v13702_v37  ;;  %4443 = vmatpush1.msra.mxu1 %v13703_v46  ;;  %v13718_v37 = vld [vmem:[#allocation126_spill] sm:$0xff]  ;;  %v13719_v46 = vld [vmem:[#allocation104_spill] sm:$0xff] }
 0x604   :  { %4373 = vmatprep.subr.mxu0 %v13704_v52  ;;  %4444 = vmatprep.subr.mxu1 %v13705_v49  ;;  %v13720_v52 = vld [vmem:[#allocation106_spill] sm:$0xff]  ;;  %v13721_v49 = vld [vmem:[#allocation107_spill] sm:$0xff] }
 0x605   :  { %4374 = vmatpush1.msra.mxu0 %v13706_v15  ;;  %4445 = vmatpush1.msra.mxu1 %v13707_v59  ;;  %v13722_v15 = vld [vmem:[#allocation105_spill] sm:$0xff]  ;;  %v13723_v59 = vld [vmem:[#allocation127_spill] sm:$0xff] }
 0x606   :  { %4375 = vmatprep.subr.mxu0 %v13708_v48  ;;  %4446 = vmatprep.subr.mxu1 %v13709_v36  ;;  %v13724_v48 = vld [vmem:[#allocation128_spill] sm:$0xff]  ;;  %v13725_v36 = vld [vmem:[#allocation129_spill] sm:$0xff] }
 0x607   :  { %4376 = vmatpush1.msra.mxu0 %v13710_v47  ;;  %4447 = vmatpush1.msra.mxu1 %v13711_v11  ;;  %v13726_v47 = vld [vmem:[#allocation130_spill] sm:$0xff]  ;;  %v13727_v11 = vld [vmem:[#allocation28_spill] sm:$0xff] }
 0x608   :  { %4377 = vmatprep.subr.mxu0 %v13712_v27  ;;  %4448 = vmatprep.subr.mxu1 %v13713_v2  ;;  %v13728_v27 = vld [vmem:[#allocation29_spill] sm:$0xff]  ;;  %v13729_v2 = vld [vmem:[#allocation100_spill] sm:$0xff] }
 0x609   :  { %4378 = vmatpush1.msra.mxu0 %v13714_v14  ;;  %4449 = vmatpush1.msra.mxu1 %v13715_v22  ;;  %v13730_v14 = vld [vmem:[#allocation102_spill] sm:$0xff]  ;;  %v13731_v22 = vld [vmem:[#allocation103_spill] sm:$0xff] }
 0x60a   :  { %4379 = vmatprep.subr.mxu0 %v13716_v5  ;;  %4450 = vmatprep.subr.mxu1 %v13717_v53  ;;  %v13732_v5 = vld [vmem:[#allocation101_spill] sm:$0xff]  ;;  %v13733_v53 = vld [vmem:[#allocation30_spill] sm:$0xff] }
 0x60b   :  { %4380 = vmatpush1.msra.mxu0 %v13718_v37  ;;  %4451 = vmatpush1.msra.mxu1 %v13719_v46  ;;  %v13734_v37 = vld [vmem:[#allocation31_spill] sm:$0xff]  ;;  %v13735_v46 = vld [vmem:[#allocation32_spill] sm:$0xff] }
 0x60c   :  { %4381 = vmatprep.subr.mxu0 %v13720_v52  ;;  %4452 = vmatprep.subr.mxu1 %v13721_v49  ;;  %v13736_v52 = vld [vmem:[#allocation33_spill] sm:$0xff]  ;;  %v13737_v49 = vld [vmem:[#allocation34_spill] sm:$0xff] }
 0x60d   :  { %4382 = vmatpush1.msra.mxu0 %v13722_v15  ;;  %4453 = vmatpush1.msra.mxu1 %v13723_v59  ;;  %v13738_v15 = vld [vmem:[#allocation35_spill] sm:$0xff]  ;;  %v13739_v59 = vld [vmem:[#allocation36_spill] sm:$0xff] }
 0x60e   :  { %4383 = vmatprep.subr.mxu0 %v13724_v48  ;;  %4454 = vmatprep.subr.mxu1 %v13725_v36  ;;  %v10991_v48 = vld [vmem:[%s12508_s2 + $0x1e8] sm:$0xff]  ;;  %v10996_v36 = vld [vmem:[%s12508_s2 + $0x1f8] sm:$0xff] }
 0x60f   :  { %4384 = vmatpush1.msra.mxu0 %v13726_v47  ;;  %4455 = vmatpush1.msra.mxu1 %v13727_v11  ;;  %13740 = vst [vmem:[#allocation62_spill] sm:$0xff] %v10991_v48  ;;  %13741 = vst [vmem:[#allocation63_spill] sm:$0xff] %v10996_v36 }
 0x610   :  { %4385 = vmatprep.subr.mxu0 %v13728_v27  ;;  %4456 = vmatprep.subr.mxu1 %v13729_v2 }
 0x611   :  { %4386 = vmatpush1.msra.mxu0 %v13730_v14  ;;  %4457 = vmatpush1.msra.mxu1 %v13731_v22  ;;  %v13742_v14 = vld [vmem:[#allocation112_spill] sm:$0xff] }
 0x612   :  { %4387 = vmatprep.subr.mxu0 %v13732_v5  ;;  %4458 = vmatprep.subr.mxu1 %v13733_v53 }
 0x613   :  { %4388 = vmatpush1.msra.mxu0 %v13734_v37  ;;  %4459 = vmatpush1.msra.mxu1 %v13735_v46  ;;  %v13743_v37 = vld [vmem:[#allocation114_spill] sm:$0xff] }
 0x614   :  { %4389 = vmatprep.subr.mxu0 %v13736_v52  ;;  %4460 = vmatprep.subr.mxu1 %v13737_v49 }
 0x615   :  { %4390 = vmatpush1.msra.mxu0 %v13738_v15  ;;  %4461 = vmatpush1.msra.mxu1 %v13739_v59 }
 0x616   :  { %4423 = vmatprep.mubr.f32.mxu0 %v13135_v56  ;;  %4494 = vmatprep.mubr.f32.mxu1 %v13135_v56 }
 0x617   :  { %4573 = vmatprep.subr.mxu0 %v10991_v48  ;;  %4644 = vmatprep.subr.mxu1 %v10996_v36 }
 0x672   :  { %v3710_v47 = vpop.f32.mrf.mxu0  ;;  %v3781_v2 = vpop.f32.mrf.mxu1 }
 0x674   :  { %v3712_v11 = vpop.f32.mrf.mxu0  ;;  %v3783_v52 = vpop.f32.mrf.mxu1 }
 0x693   :  { %v3924_v27 = vpop.f32.mrf.mxu0  ;;  %v3995_v15 = vpop.f32.mrf.mxu1 }
 0x694   :  { %v4000_v22 = vadd.f32 %v3924_v27, %v13742_v14  ;;  %v4002_v36 = vadd.f32 %v3995_v15, %v13745_v41  ;;  %v3622_v14 = vld [vmem:[%s12512_s6] sm:$0xf] }
 0x695   :  { %v3926_v5 = vpop.f32.mrf.mxu0  ;;  %v3997_v59 = vpop.f32.mrf.mxu1 }
 0x696   :  { %v6247_v53 = vmul.f32 -1.442695, %v4000_v22  ;;  %v4001_v46 = vadd.f32 %v3926_v5, %v13743_v37  ;;  %v4003_v48 = vadd.f32 %v3997_v59, %v13744_v20  ;;  %v13746_v22 = vld [vmem:[#allocation93_spill] sm:$0xff] }
 0x697   :  { %v3627_v5 = vrot.slane %v3622_v14, %v13746_v22 }
 0x698   :  { %6469 = vpow2.f32 %v6247_v53  ;;  %v6248_v49 = vmul.f32 -1.442695, %v4001_v46  ;;  %v6249_v34 = vmul.f32 -1.442695, %v4003_v48  ;;  %v13747_v53 = vld [vmem:[#allocation95_spill] sm:$0xff] }
 0x699   :  { %v3631_v37 = vrot.slane %v3622_v14, %v13747_v53  ;;  %v3711_v46 = vadd.f32 %v3710_v47, %v3627_v5  ;;  %v3639_v47 = vrot.slane %v3622_v14, %v13236_v26 }
 0x69a   :  { %6471 = vpow2.f32 %v6248_v49 }
 0x69b   :  { %6473 = vtanh.f32 %v4002_v36 }
 0x6a5   :  { %v6470_v25 = vpop.eup %6469 }
 0x6a6   :  { %v4007_v24 = vadd.f32 1.0, %v6470_v25  ;;  %v3713_v25 = vadd.f32 %v3712_v11, %v3631_v37  ;;  %v3784_v11 = vadd.f32 %v3783_v52, %v3639_v47  ;;  %v3635_v37 = vrot.slane %v3622_v14, %v13237_v51  ;;  %v11020_v52 = vld [vmem:[%s12508_s2 + $0x1e0] sm:$0xff]  ;;  %v11030_v14 = vld [vmem:[%s12508_s2 + $0x1c8] sm:$0xff]  ;;  %v11071_v47 = vld [vmem:[%s12508_s2 + $0x1b0] sm:$0xff] }
 0x6a7   :  { %v6472_v50 = vpop.eup %6471  ;;  %13749 = vst [vmem:[#allocation65_spill] sm:$0xff] %v11071_v47 }
 0x6a8   :  { %6475 = vrcp.f32 %v4007_v24  ;;  %v4013_v27 = vadd.f32 1.0, %v6472_v50  ;;  %v6474_v20 = vpop.eup %6473 }
 0x6a9   :  { %6477 = vpow2.f32 %v6249_v34 }
 0x6aa   :  { %6479 = vrcp.f32 %v4013_v27 }
 0x6b5   :  { %v6476_v41 = vpop.eup %6475  ;;  %v4162_v49 = vpop.f32.mrf.mxu0 }
 0x6b6   :  { %v6478_v48 = vpop.eup %6477  ;;  %v4025_v15 = vmul.f32 %v6476_v41, %v6474_v20  ;;  %v4238_v36 = vadd.f32 %v4162_v49, %v3711_v46  ;;  %v4233_v22 = vpop.f32.mrf.mxu1 }
 0x6b7   :  { %v6480_v24 = vpop.eup %6479  ;;  %v4164_v50 = vpop.f32.mrf.mxu0  ;;  %v4020_v62 = vadd.f32 1.0, %v6478_v48 }
 0x6b8   :  { %v4024_v34 = vmul.f32 %v6480_v24, %v10449_v54  ;;  %v6250_v59 = vmul.f32 -1.442695, %v4238_v36  ;;  %v4239_v27 = vadd.f32 %v4164_v50, %v3713_v25  ;;  %v4235_v5 = vpop.f32.mrf.mxu1  ;;  %v3782_v54 = vadd.f32 %v3781_v2, %v3635_v37  ;;  %v11025_v2 = vld [vmem:[%s12508_s2 + $0x1f0] sm:$0xff]  ;;  %v11090_v37 = vld [vmem:[%s12508_s2 + $0x180] sm:$0xff] }
 0x6b9   :  { %v4241_v20 = vadd.f32 %v4235_v5, %v3784_v11  ;;  %v11047_v50 = vld [vmem:[%s12508_s2 + $0x1d0] sm:$0xff]  ;;  %v11078_v5 = vld [vmem:[%s12508_s2 + $0x188] sm:$0xff]  ;;  %v11083_v11 = vld [vmem:[%s12508_s2 + $0x198] sm:$0xff]  ;;  %13752 = vst [vmem:[#allocation68_spill] sm:$0xff] %v11090_v37 }
 0x6ba   :  { %v11010_v3 = vadd.f32 %v4025_v15, %v4024_v34  ;;  %6481 = vpow2.f32 %v6250_v59  ;;  %v6251_v53 = vmul.f32 -1.442695, %v4239_v27  ;;  %v4240_v49 = vadd.f32 %v4233_v22, %v3782_v54  ;;  %v11035_v22 = vld [vmem:[%s12508_s2 + $0x1d8] sm:$0xff]  ;;  %v11054_v34 = vld [vmem:[%s12508_s2 + $0x1a8] sm:$0xff]  ;;  %v11066_v27 = vld [vmem:[%s12508_s2 + $0x1a0] sm:$0xff]  ;;  %13750 = vst [vmem:[#allocation66_spill] sm:$0xff] %v11078_v5 }
 0x6bb   :  { %v6252_v46 = vmul.f32 -1.442695, %v4241_v20  ;;  %v11059_v59 = vld [vmem:[%s12508_s2 + $0x1b8] sm:$0xff]  ;;  %13748 = vst [vmem:[#allocation64_spill] sm:$0xff] %v11066_v27  ;;  %13751 = vst [vmem:[#allocation67_spill] sm:$0xff] %v11083_v11  ;;  %v11095_v20 = vld [vmem:[%s12508_s2 + $0x190] sm:$0xff] }
 0x6bc   :  { %6483 = vpow2.f32 %v6251_v53  ;;  %v11042_v53 = vld [vmem:[%s12508_s2 + $0x1c0] sm:$0xff]  ;;  %13753 = vst [vmem:[#allocation69_spill] sm:$0xff] %v11095_v20  ;;  %v11102_v54 = vld [vmem:[%s12508_s2 + $0x168] sm:$0xff] }
 0x6bd   :  { %6485 = vrcp.f32 %v4020_v62  ;;  %13754 = vst [vmem:[#allocation70_spill] sm:$0xff] %v11102_v54 }
 0x6be   :  { %6487 = vtanh.f32 %v11010_v3 }
 0x6bf   :  { %6489 = vpow2.f32 %v6252_v46  ;;  %v11107_v46 = vld [vmem:[%s12508_s2 + $0x178] sm:$0xff] }
 0x6c0   :  { %13755 = vst [vmem:[#allocation71_spill] sm:$0xff] %v11107_v46 }
 0x6c7   :  { %v6482_v41 = vpop.eup %6481 }
 0x6c8   :  { %v4245_v48 = vadd.f32 1.0, %v6482_v41  ;;  %v11114_v41 = vld [vmem:[%s12508_s2 + $0x160] sm:$0xff] }
 0x6c9   :  { %v6484_v25 = vpop.eup %6483  ;;  %13756 = vst [vmem:[#allocation72_spill] sm:$0xff] %v11114_v41 }
 0x6ca   :  { %v6486_v15 = vpop.eup %6485  ;;  %6491 = vrcp.f32 %v4245_v48  ;;  %v4251_v36 = vadd.f32 1.0, %v6484_v25  ;;  %v11126_v48 = vld [vmem:[%s12508_s2 + $0x148] sm:$0xff]  ;;  %v11131_v25 = vld [vmem:[%s12508_s2 + $0x158] sm:$0xff] }
 0x6cb   :  { %v6488_v24 = vpop.eup %6487  ;;  %6493 = vtanh.f32 %v4240_v49  ;;  %v11119_v49 = vld [vmem:[%s12508_s2 + $0x170] sm:$0xff]  ;;  %13758 = vst [vmem:[#allocation74_spill] sm:$0xff] %v11126_v48  ;;  %13759 = vst [vmem:[#allocation75_spill] sm:$0xff] %v11131_v25 }
 0x6cc   :  { %6495 = vrcp.f32 %v4251_v36  ;;  %v11015_v62 = vmul.f32 %v6488_v24, %v6486_v15  ;;  %13757 = vst [vmem:[#allocation73_spill] sm:$0xff] %v11119_v49  ;;  %v6490_v15 = vpop.eup %6489  ;;  %v11138_v36 = vld [vmem:[%s12508_s2 + $0x140] sm:$0xff]  ;;  %v11143_v24 = vld [vmem:[%s12508_s2 + $0x150] sm:$0xff] }
 0x6cd   :  { %13760 = vst [vmem:[#allocation76_spill] sm:$0xff] %v11143_v24 }
 0x6ce   :  { %4424 = vmatmul.mubr.f32.vlgmr.msra.gmra.mxu0 %v11015_v62  ;;  %4495 = vmatmul.mubr.f32.vlgmr.msra.gmra.mxu1 %v11015_v62 }
 0x6cf   :  { %4574 = vmatpush1.msra.mxu0 %v11020_v52  ;;  %4645 = vmatpush1.msra.mxu1 %v11025_v2 }
 0x6d0   :  { %4575 = vmatprep.subr.mxu0 %v11030_v14  ;;  %4646 = vmatprep.subr.mxu1 %v11035_v22 }
 0x6d1   :  { %4576 = vmatpush1.msra.mxu0 %v11042_v53  ;;  %4647 = vmatpush1.msra.mxu1 %v11047_v50 }
 0x6d2   :  { %4577 = vmatprep.subr.mxu0 %v11054_v34  ;;  %4648 = vmatprep.subr.mxu1 %v11059_v59 }
 0x6d3   :  { %4578 = vmatpush1.msra.mxu0 %v11066_v27  ;;  %4649 = vmatpush1.msra.mxu1 %v11071_v47 }
 0x6d4   :  { %4579 = vmatprep.subr.mxu0 %v11078_v5  ;;  %4650 = vmatprep.subr.mxu1 %v11083_v11  ;;  %v4258_v5 = vadd.f32 1.0, %v6490_v15  ;;  %v11187_v15 = vld [vmem:[%s12508_s2 + $0x100] sm:$0xff] }
 0x6d5   :  { %4580 = vmatpush1.msra.mxu0 %v11090_v37  ;;  %4651 = vmatpush1.msra.mxu1 %v11095_v20  ;;  %13763 = vst [vmem:[#allocation79_spill] sm:$0xff] %v11187_v15 }
 0x6d6   :  { %4581 = vmatprep.subr.mxu0 %v11102_v54  ;;  %4652 = vmatprep.subr.mxu1 %v11107_v46  ;;  %v11150_v54 = vld [vmem:[%s12508_s2 + $0x128] sm:$0xff]  ;;  %v11155_v46 = vld [vmem:[%s12508_s2 + $0x138] sm:$0xff]  ;;  %6497 = vrcp.f32 %v4258_v5  ;;  %v11237_v5 = vld [vmem:[%s12508_s2 + $0xc0] sm:$0xff] }
 0x6d7   :  { %v6492_v20 = vpop.eup %6491  ;;  %4582 = vmatpush1.msra.mxu0 %v11114_v41  ;;  %4653 = vmatpush1.msra.mxu1 %v11119_v49  ;;  %v11162_v41 = vld [vmem:[%s12508_s2 + $0x120] sm:$0xff]  ;;  %v11167_v49 = vld [vmem:[%s12508_s2 + $0x130] sm:$0xff]  ;;  %13771 = vst [vmem:[#allocation87_spill] sm:$0xff] %v11237_v5 }
 0x6d8   :  { %v6494_v37 = vpop.eup %6493  ;;  %4583 = vmatprep.subr.mxu0 %v11126_v48  ;;  %4654 = vmatprep.subr.mxu1 %v11131_v25  ;;  %13761 = vst [vmem:[#allocation77_spill] sm:$0xff] %v11167_v49  ;;  %v11174_v25 = vld [vmem:[%s12508_s2 + $0x108] sm:$0xff]  ;;  %v11179_v48 = vld [vmem:[%s12508_s2 + $0x118] sm:$0xff] }
 0x6d9   :  { %v6496_v11 = vpop.eup %6495  ;;  %4584 = vmatpush1.msra.mxu0 %v11138_v36  ;;  %4655 = vmatpush1.msra.mxu1 %v11143_v24  ;;  %13762 = vst [vmem:[#allocation78_spill] sm:$0xff] %v11179_v48  ;;  %v4263_v47 = vmul.f32 %v6494_v37, %v6492_v20  ;;  %v11192_v24 = vld [vmem:[%s12508_s2 + $0x110] sm:$0xff]  ;;  %v11213_v20 = vld [vmem:[%s12508_s2 + $0xe0] sm:$0xff] }
 0x6da   :  { %v4262_v27 = vmul.f32 %v6496_v11, %v10485_v32  ;;  %4585 = vmatprep.subr.mxu0 %v11150_v54  ;;  %4656 = vmatprep.subr.mxu1 %v11155_v46  ;;  %13764 = vst [vmem:[#allocation80_spill] sm:$0xff] %v11192_v24  ;;  %v11199_v32 = vld [vmem:[%s12508_s2 + $0xe8] sm:$0xff]  ;;  %v11204_v11 = vld [vmem:[%s12508_s2 + $0xf8] sm:$0xff]  ;;  %13767 = vst [vmem:[#allocation83_spill] sm:$0xff] %v11213_v20 }
 0x6db   :  { %4586 = vmatpush1.msra.mxu0 %v11162_v41  ;;  %4657 = vmatpush1.msra.mxu1 %v11167_v49  ;;  %13765 = vst [vmem:[#allocation81_spill] sm:$0xff] %v11199_v32  ;;  %13766 = vst [vmem:[#allocation82_spill] sm:$0xff] %v11204_v11  ;;  %v11218_v49 = vld [vmem:[%s12508_s2 + $0xf0] sm:$0xff] }
 0x6dc   :  { %v11206_v37 = vadd.f32 %v4263_v47, %v4262_v27  ;;  %4587 = vmatprep.subr.mxu0 %v11174_v25  ;;  %4658 = vmatprep.subr.mxu1 %v11179_v48  ;;  %13768 = vst [vmem:[#allocation84_spill] sm:$0xff] %v11218_v49  ;;  %v11225_v27 = vld [vmem:[%s12508_s2 + $0xc8] sm:$0xff]  ;;  %v11230_v47 = vld [vmem:[%s12508_s2 + $0xd8] sm:$0xff]  ;;  %v11389_v48 = vld [vmem:[%s12508_s2 + $0x10] sm:$0xff] }
 0x6dd   :  { %4588 = vmatpush1.msra.mxu0 %v11187_v15  ;;  %4659 = vmatpush1.msra.mxu1 %v11192_v24  ;;  %13769 = vst [vmem:[#allocation85_spill] sm:$0xff] %v11225_v27  ;;  %13770 = vst [vmem:[#allocation86_spill] sm:$0xff] %v11230_v47  ;;  %v11242_v24 = vld [vmem:[%s12508_s2 + $0xd0] sm:$0xff] }
 0x6de   :  { %4589 = vmatprep.subr.mxu0 %v11199_v32  ;;  %4660 = vmatprep.subr.mxu1 %v11204_v11  ;;  %13772 = vst [vmem:[#allocation88_spill] sm:$0xff] %v11242_v24  ;;  %6499 = vtanh.f32 %v11206_v37  ;;  %v11250_v11 = vld [vmem:[%s12508_s2 + $0xa8] sm:$0xff]  ;;  %v11255_v32 = vld [vmem:[%s12508_s2 + $0xb8] sm:$0xff] }
 0x6df   :  { %4590 = vmatpush1.msra.mxu0 %v11213_v20  ;;  %4661 = vmatpush1.msra.mxu1 %v11218_v49  ;;  %13773 = vst [vmem:[#allocation89_spill] sm:$0xff] %v11250_v11  ;;  %13774 = vst [vmem:[#allocation90_spill] sm:$0xff] %v11255_v32  ;;  %v11262_v20 = vld [vmem:[%s12508_s2 + $0xa0] sm:$0xff]  ;;  %v11267_v49 = vld [vmem:[%s12508_s2 + $0xb0] sm:$0xff] }
 0x6e0   :  { %4591 = vmatprep.subr.mxu0 %v11225_v27  ;;  %4662 = vmatprep.subr.mxu1 %v11230_v47  ;;  %13775 = vst [vmem:[#allocation91_spill] sm:$0xff] %v11262_v20  ;;  %13776 = vst [vmem:[#allocation96_spill] sm:$0xff] %v11267_v49  ;;  %v11274_v27 = vld [vmem:[%s12508_s2 + $0x88] sm:$0xff]  ;;  %v11279_v47 = vld [vmem:[%s12508_s2 + $0x98] sm:$0xff] }
 0x6e1   :  { %4592 = vmatpush1.msra.mxu0 %v11237_v5  ;;  %4663 = vmatpush1.msra.mxu1 %v11242_v24  ;;  %13777 = vst [vmem:[#allocation98_spill] sm:$0xff] %v11274_v27  ;;  %13778 = vst [vmem:[#allocation99_spill] sm:$0xff] %v11279_v47  ;;  %v11286_v5 = vld [vmem:[%s12508_s2 + $0x80] sm:$0xff]  ;;  %v11291_v24 = vld [vmem:[%s12508_s2 + $0x90] sm:$0xff] }
 0x6e2   :  { %4593 = vmatprep.subr.mxu0 %v11250_v11  ;;  %4664 = vmatprep.subr.mxu1 %v11255_v32  ;;  %13779 = vst [vmem:[#allocation97_spill] sm:$0xff] %v11286_v5  ;;  %13780 = vst [vmem:[#allocation94_spill] sm:$0xff] %v11291_v24  ;;  %v11298_v11 = vld [vmem:[%s12508_s2 + $0x68] sm:$0xff]  ;;  %v11303_v32 = vld [vmem:[%s12508_s2 + $0x78] sm:$0xff] }
 0x6e3   :  { %4594 = vmatpush1.msra.mxu0 %v11262_v20  ;;  %4665 = vmatpush1.msra.mxu1 %v11267_v49  ;;  %13781 = vst [vmem:[#allocation92_spill] sm:$0xff] %v11298_v11  ;;  %13782 = vst [vmem:[#allocation8_spill] sm:$0xff] %v11303_v32  ;;  %v11310_v20 = vld [vmem:[%s12508_s2 + $0x60] sm:$0xff]  ;;  %v11315_v49 = vld [vmem:[%s12508_s2 + $0x70] sm:$0xff]  ;;  %v6498_v15 = vpop.eup %6497 }
 0x6e4   :  { %4595 = vmatprep.subr.mxu0 %v11274_v27  ;;  %4666 = vmatprep.subr.mxu1 %v11279_v47  ;;  %13783 = vst [vmem:[#allocation9_spill] sm:$0xff] %v11310_v20  ;;  %13784 = vst [vmem:[#allocation10_spill] sm:$0xff] %v11315_v49  ;;  %v11322_v27 = vld [vmem:[%s12508_s2 + $0x48] sm:$0xff]  ;;  %v11327_v47 = vld [vmem:[%s12508_s2 + $0x58] sm:$0xff] }
 0x6e5   :  { %4596 = vmatpush1.msra.mxu0 %v11286_v5  ;;  %4667 = vmatpush1.msra.mxu1 %v11291_v24  ;;  %13785 = vst [vmem:[#allocation11_spill] sm:$0xff] %v11322_v27  ;;  %13786 = vst [vmem:[#allocation12_spill] sm:$0xff] %v11327_v47  ;;  %v11334_v5 = vld [vmem:[%s12508_s2 + $0x40] sm:$0xff]  ;;  %v11339_v24 = vld [vmem:[%s12508_s2 + $0x50] sm:$0xff] }
 0x6e6   :  { %4597 = vmatprep.subr.mxu0 %v11298_v11  ;;  %4668 = vmatprep.subr.mxu1 %v11303_v32  ;;  %13787 = vst [vmem:[#allocation13_spill] sm:$0xff] %v11334_v5  ;;  %13788 = vst [vmem:[#allocation14_spill] sm:$0xff] %v11339_v24  ;;  %v11346_v11 = vld [vmem:[%s12508_s2 + $0x28] sm:$0xff]  ;;  %v11351_v32 = vld [vmem:[%s12508_s2 + $0x38] sm:$0xff] }
 0x6e7   :  { %4598 = vmatpush1.msra.mxu0 %v11310_v20  ;;  %4669 = vmatpush1.msra.mxu1 %v11315_v49  ;;  %13789 = vst [vmem:[#allocation15_spill] sm:$0xff] %v11351_v32  ;;  %v11358_v20 = vld [vmem:[%s12508_s2 + $0x20] sm:$0xff]  ;;  %v11363_v49 = vld [vmem:[%s12508_s2 + $0x30] sm:$0xff] }
 0x6e8   :  { %4599 = vmatprep.subr.mxu0 %v11322_v27  ;;  %4670 = vmatprep.subr.mxu1 %v11327_v47  ;;  %v11370_v27 = vld [vmem:[%s12508_s2 + $0x8] sm:$0xff]  ;;  %v11375_v47 = vld [vmem:[%s12508_s2 + $0x18] sm:$0xff] }
 0x6e9   :  { %4600 = vmatpush1.msra.mxu0 %v11334_v5  ;;  %4671 = vmatpush1.msra.mxu1 %v11339_v24  ;;  %v11382_v5 = vld [vmem:[%s12508_s2] sm:$0xff] }
 0x6ea   :  { %4601 = vmatprep.subr.mxu0 %v11346_v11  ;;  %4672 = vmatprep.subr.mxu1 %v11351_v32 }
 0x6eb   :  { %v6500_v24 = vpop.eup %6499  ;;  %4602 = vmatpush1.msra.mxu0 %v11358_v20  ;;  %4673 = vmatpush1.msra.mxu1 %v11363_v49 }
 0x6ec   :  { %4603 = vmatprep.subr.mxu0 %v11370_v27  ;;  %4674 = vmatprep.subr.mxu1 %v11375_v47  ;;  %v11393_v32 = vmul.f32 %v6500_v24, %v6498_v15  ;;  %v11519_v24 = vld [vmem:[%s12509_s4 + $0x1d0] sm:$0xff]  ;;  %v11526_v15 = vld [vmem:[%s12509_s4 + $0x1a8] sm:$0xff] }
 0x6ed   :  { %4604 = vmatpush1.msra.mxu0 %v11382_v5  ;;  %4637 = vmatprep.mubr.f32.mxu0 %v13135_v56 }
 0x6ee   :  { %4675 = vmatpush1.msra.mxu1 %v11389_v48  ;;  %4708 = vmatprep.mubr.f32.mxu1 %v13135_v56  ;;  %6253 = vst [vmem:[%s12513_s7 + $0x20] sm:$0xff] %v11393_v32 }
 0x6ef   :  { %4638 = vmatmul.mubr.f32.vlgmr.msra.gmra.mxu0 %v11015_v62  ;;  %4709 = vmatmul.mubr.f32.vlgmr.msra.gmra.mxu1 %v11015_v62  ;;  %v11514_v62 = vld [vmem:[%s12509_s4 + $0x1c0] sm:$0xff] }
 0x6f0   :  { %4811 = vmatprep.subr.mxu0 %v10529_v57  ;;  %4882 = vmatprep.subr.mxu1 %v10534_v31  ;;  %v13790_v57 = vld [vmem:[#allocation37_spill] sm:$0xff]  ;;  %v13791_v31 = vld [vmem:[#allocation38_spill] sm:$0xff] }
 0x6f1   :  { %4812 = vmatpush1.msra.mxu0 %v10541_v19  ;;  %4883 = vmatpush1.msra.mxu1 %v10546_v58  ;;  %v13792_v19 = vld [vmem:[#allocation39_spill] sm:$0xff]  ;;  %v13793_v58 = vld [vmem:[#allocation40_spill] sm:$0xff] }
 0x6f2   :  { %4813 = vmatprep.subr.mxu0 %v10557_v30  ;;  %4884 = vmatprep.subr.mxu1 %v10562_v39  ;;  %v13794_v30 = vld [vmem:[#allocation41_spill] sm:$0xff]  ;;  %v13795_v39 = vld [vmem:[#allocation42_spill] sm:$0xff] }
 0x6f3   :  { %4814 = vmatpush1.msra.mxu0 %v10569_v4  ;;  %4885 = vmatpush1.msra.mxu1 %v10574_v42  ;;  %v13796_v4 = vld [vmem:[#allocation43_spill] sm:$0xff]  ;;  %v13797_v42 = vld [vmem:[#allocation44_spill] sm:$0xff] }
 0x6f4   :  { %4815 = vmatprep.subr.mxu0 %v10581_v1  ;;  %4886 = vmatprep.subr.mxu1 %v10586_v43  ;;  %v13798_v1 = vld [vmem:[#allocation45_spill] sm:$0xff]  ;;  %v13799_v43 = vld [vmem:[#allocation46_spill] sm:$0xff] }
 0x6f5   :  { %4816 = vmatpush1.msra.mxu0 %v10593_v18  ;;  %4887 = vmatpush1.msra.mxu1 %v10598_v55  ;;  %v13800_v18 = vld [vmem:[#allocation47_spill] sm:$0xff]  ;;  %v13801_v55 = vld [vmem:[#allocation48_spill] sm:$0xff] }
 0x6f6   :  { %4817 = vmatprep.subr.mxu0 %v10605_v29  ;;  %4888 = vmatprep.subr.mxu1 %v10610_v63  ;;  %v13802_v29 = vld [vmem:[#allocation49_spill] sm:$0xff]  ;;  %v13803_v63 = vld [vmem:[#allocation50_spill] sm:$0xff] }
 0x6f7   :  { %4818 = vmatpush1.msra.mxu0 %v10617_v33  ;;  %4889 = vmatpush1.msra.mxu1 %v10622_v45  ;;  %v13804_v33 = vld [vmem:[#allocation108_spill] sm:$0xff]  ;;  %v13805_v45 = vld [vmem:[#allocation110_spill] sm:$0xff] }
 0x6f8   :  { %4819 = vmatprep.subr.mxu0 %v10629_v21  ;;  %4890 = vmatprep.subr.mxu1 %v10634_v61  ;;  %v13806_v21 = vld [vmem:[#allocation111_spill] sm:$0xff]  ;;  %v13807_v61 = vld [vmem:[#allocation109_spill] sm:$0xff] }
 0x6f9   :  { %4820 = vmatpush1.msra.mxu0 %v10641_v28  ;;  %4891 = vmatpush1.msra.mxu1 %v10646_v17  ;;  %v13808_v28 = vld [vmem:[#allocation51_spill] sm:$0xff]  ;;  %v13809_v17 = vld [vmem:[#allocation52_spill] sm:$0xff] }
 0x6fa   :  { %4821 = vmatprep.subr.mxu0 %v10653_v16  ;;  %4892 = vmatprep.subr.mxu1 %v10658_v7  ;;  %v13810_v16 = vld [vmem:[#allocation53_spill] sm:$0xff]  ;;  %v13811_v7 = vld [vmem:[#allocation54_spill] sm:$0xff] }
 0x6fb   :  { %4822 = vmatpush1.msra.mxu0 %v10665_v8  ;;  %4893 = vmatpush1.msra.mxu1 %v10670_v10  ;;  %v13812_v8 = vld [vmem:[#allocation55_spill] sm:$0xff]  ;;  %v13813_v10 = vld [vmem:[#allocation56_spill] sm:$0xff] }
 0x6fc   :  { %4823 = vmatprep.subr.mxu0 %v10677_v13  ;;  %4894 = vmatprep.subr.mxu1 %v10682_v44  ;;  %v13814_v13 = vld [vmem:[#allocation57_spill] sm:$0xff]  ;;  %v13815_v44 = vld [vmem:[#allocation58_spill] sm:$0xff] }
 0x6fd   :  { %4824 = vmatpush1.msra.mxu0 %v10689_v9  ;;  %4895 = vmatpush1.msra.mxu1 %v10694_v6  ;;  %v13816_v9 = vld [vmem:[#allocation59_spill] sm:$0xff]  ;;  %v13817_v6 = vld [vmem:[#allocation60_spill] sm:$0xff] }
 0x6fe   :  { %4825 = vmatprep.subr.mxu0 %v10701_v40  ;;  %4896 = vmatprep.subr.mxu1 %v10706_v0  ;;  %v13818_v40 = vld [vmem:[#allocation61_spill] sm:$0xff] }
 0x6ff   :  { %4826 = vmatpush1.msra.mxu0 %v10713_v38  ;;  %4897 = vmatpush1.msra.mxu1 %v10718_v23  ;;  %v11478_v0 = vld [vmem:[%s12509_s4 + $0x1e8] sm:$0xff]  ;;  %v11483_v38 = vld [vmem:[%s12509_s4 + $0x1f8] sm:$0xff]  ;;  %v11490_v23 = vld [vmem:[%s12509_s4 + $0x1e0] sm:$0xff] }
 0x700   :  { %4827 = vmatprep.subr.mxu0 %v10725_v60  ;;  %4898 = vmatprep.subr.mxu1 %v10730_v12  ;;  %v11495_v60 = vld [vmem:[%s12509_s4 + $0x1f0] sm:$0xff]  ;;  %v11502_v12 = vld [vmem:[%s12509_s4 + $0x1c8] sm:$0xff] }
 0x701   :  { %4828 = vmatpush1.msra.mxu0 %v10737_v35  ;;  %4899 = vmatpush1.msra.mxu1 %v13790_v57  ;;  %v11507_v35 = vld [vmem:[%s12509_s4 + $0x1d8] sm:$0xff]  ;;  %v11538_v57 = vld [vmem:[%s12509_s4 + $0x1a0] sm:$0xff] }
 0x702   :  { %4829 = vmatprep.subr.mxu0 %v13791_v31  ;;  %4900 = vmatprep.subr.mxu1 %v13792_v19  ;;  %v11543_v31 = vld [vmem:[%s12509_s4 + $0x1b0] sm:$0xff]  ;;  %v11550_v19 = vld [vmem:[%s12509_s4 + $0x188] sm:$0xff] }
 0x703   :  { %4830 = vmatpush1.msra.mxu0 %v13793_v58  ;;  %4901 = vmatpush1.msra.mxu1 %v13794_v30  ;;  %v11555_v58 = vld [vmem:[%s12509_s4 + $0x198] sm:$0xff]  ;;  %v11562_v30 = vld [vmem:[%s12509_s4 + $0x180] sm:$0xff] }
 0x704   :  { %4831 = vmatprep.subr.mxu0 %v13795_v39  ;;  %4902 = vmatprep.subr.mxu1 %v13796_v4  ;;  %v11567_v39 = vld [vmem:[%s12509_s4 + $0x190] sm:$0xff]  ;;  %v11574_v4 = vld [vmem:[%s12509_s4 + $0x168] sm:$0xff] }
 0x705   :  { %4832 = vmatpush1.msra.mxu0 %v13797_v42  ;;  %4903 = vmatpush1.msra.mxu1 %v13798_v1  ;;  %13819 = vst [vmem:[#allocation16_spill] sm:$0xff] %v11567_v39  ;;  %13820 = vst [vmem:[#allocation17_spill] sm:$0xff] %v11574_v4  ;;  %v11579_v42 = vld [vmem:[%s12509_s4 + $0x178] sm:$0xff]  ;;  %v11586_v1 = vld [vmem:[%s12509_s4 + $0x160] sm:$0xff] }
 0x706   :  { %4833 = vmatprep.subr.mxu0 %v13799_v43  ;;  %4904 = vmatprep.subr.mxu1 %v13800_v18  ;;  %13821 = vst [vmem:[#allocation18_spill] sm:$0xff] %v11579_v42  ;;  %13822 = vst [vmem:[#allocation19_spill] sm:$0xff] %v11586_v1  ;;  %v11591_v43 = vld [vmem:[%s12509_s4 + $0x170] sm:$0xff]  ;;  %v11598_v18 = vld [vmem:[%s12509_s4 + $0x148] sm:$0xff] }
 0x707   :  { %4834 = vmatpush1.msra.mxu0 %v13801_v55  ;;  %4905 = vmatpush1.msra.mxu1 %v13802_v29  ;;  %13823 = vst [vmem:[#allocation20_spill] sm:$0xff] %v11591_v43  ;;  %13824 = vst [vmem:[#allocation21_spill] sm:$0xff] %v11598_v18  ;;  %v11603_v55 = vld [vmem:[%s12509_s4 + $0x158] sm:$0xff]  ;;  %v11610_v29 = vld [vmem:[%s12509_s4 + $0x140] sm:$0xff] }
 0x708   :  { %4835 = vmatprep.subr.mxu0 %v13803_v63  ;;  %4906 = vmatprep.subr.mxu1 %v13804_v33  ;;  %13825 = vst [vmem:[#allocation22_spill] sm:$0xff] %v11603_v55  ;;  %13826 = vst [vmem:[#allocation23_spill] sm:$0xff] %v11610_v29  ;;  %v11615_v63 = vld [vmem:[%s12509_s4 + $0x150] sm:$0xff]  ;;  %v11622_v33 = vld [vmem:[%s12509_s4 + $0x128] sm:$0xff] }
 0x709   :  { %4836 = vmatpush1.msra.mxu0 %v13805_v45  ;;  %4907 = vmatpush1.msra.mxu1 %v13806_v21  ;;  %13827 = vst [vmem:[#allocation24_spill] sm:$0xff] %v11615_v63  ;;  %13828 = vst [vmem:[#allocation25_spill] sm:$0xff] %v11622_v33  ;;  %v11627_v45 = vld [vmem:[%s12509_s4 + $0x138] sm:$0xff]  ;;  %v11634_v21 = vld [vmem:[%s12509_s4 + $0x120] sm:$0xff] }
 0x70a   :  { %4837 = vmatprep.subr.mxu0 %v13807_v61  ;;  %4908 = vmatprep.subr.mxu1 %v13808_v28  ;;  %13829 = vst [vmem:[#allocation26_spill] sm:$0xff] %v11627_v45  ;;  %13830 = vst [vmem:[#allocation27_spill] sm:$0xff] %v11634_v21  ;;  %v11639_v61 = vld [vmem:[%s12509_s4 + $0x130] sm:$0xff]  ;;  %v11646_v28 = vld [vmem:[%s12509_s4 + $0x108] sm:$0xff] }
 0x70b   :  { %4838 = vmatpush1.msra.mxu0 %v13809_v17  ;;  %4909 = vmatpush1.msra.mxu1 %v13810_v16  ;;  %13831 = vst [vmem:[#allocation124_spill] sm:$0xff] %v11639_v61  ;;  %13832 = vst [vmem:[#allocation125_spill] sm:$0xff] %v11646_v28  ;;  %v11651_v17 = vld [vmem:[%s12509_s4 + $0x118] sm:$0xff]  ;;  %v11658_v16 = vld [vmem:[%s12509_s4 + $0x100] sm:$0xff] }
 0x70c   :  { %4839 = vmatprep.subr.mxu0 %v13811_v7  ;;  %4910 = vmatprep.subr.mxu1 %v13812_v8  ;;  %13833 = vst [vmem:[#allocation126_spill] sm:$0xff] %v11651_v17  ;;  %13834 = vst [vmem:[#allocation104_spill] sm:$0xff] %v11658_v16  ;;  %v11663_v7 = vld [vmem:[%s12509_s4 + $0x110] sm:$0xff]  ;;  %v11670_v8 = vld [vmem:[%s12509_s4 + $0xe8] sm:$0xff] }
 0x70d   :  { %4840 = vmatpush1.msra.mxu0 %v13813_v10  ;;  %4911 = vmatpush1.msra.mxu1 %v13814_v13  ;;  %13835 = vst [vmem:[#allocation106_spill] sm:$0xff] %v11663_v7  ;;  %13836 = vst [vmem:[#allocation107_spill] sm:$0xff] %v11670_v8  ;;  %v11675_v10 = vld [vmem:[%s12509_s4 + $0xf8] sm:$0xff]  ;;  %v11682_v13 = vld [vmem:[%s12509_s4 + $0xe0] sm:$0xff] }
 0x70e   :  { %4841 = vmatprep.subr.mxu0 %v13815_v44  ;;  %4912 = vmatprep.subr.mxu1 %v13816_v9  ;;  %13837 = vst [vmem:[#allocation105_spill] sm:$0xff] %v11675_v10  ;;  %13838 = vst [vmem:[#allocation127_spill] sm:$0xff] %v11682_v13  ;;  %v11687_v44 = vld [vmem:[%s12509_s4 + $0xf0] sm:$0xff]  ;;  %v11694_v9 = vld [vmem:[%s12509_s4 + $0xc8] sm:$0xff] }
 0x70f   :  { %4842 = vmatpush1.msra.mxu0 %v13817_v6  ;;  %4875 = vmatprep.mubr.f32.mxu0 %v13135_v56  ;;  %13839 = vst [vmem:[#allocation128_spill] sm:$0xff] %v11687_v44  ;;  %13840 = vst [vmem:[#allocation129_spill] sm:$0xff] %v11694_v9  ;;  %v11699_v6 = vld [vmem:[%s12509_s4 + $0xd8] sm:$0xff] }
 0x710   :  { %4913 = vmatpush1.msra.mxu1 %v13818_v40  ;;  %4946 = vmatprep.mubr.f32.mxu1 %v13135_v56  ;;  %13841 = vst [vmem:[#allocation130_spill] sm:$0xff] %v11699_v6  ;;  %v11706_v40 = vld [vmem:[%s12509_s4 + $0xc0] sm:$0xff] }
 0x711   :  { %4876 = vmatmul.mubr.f32.vlgmr.msra.gmra.mxu0 %v11393_v32  ;;  %4947 = vmatmul.mubr.f32.vlgmr.msra.gmra.mxu1 %v11393_v32  ;;  %v11531_v32 = vld [vmem:[%s12509_s4 + $0x1b8] sm:$0xff]  ;;  %13842 = vst [vmem:[#allocation28_spill] sm:$0xff] %v11706_v40 }
 0x712   :  { %5138 = vmatprep.mubr.f32.mxu0 %v13135_v56  ;;  %5209 = vmatprep.mubr.f32.mxu1 %v13135_v56 }
 0x713   :  { %5074 = vmatprep.subr.mxu0 %v11478_v0  ;;  %5145 = vmatprep.subr.mxu1 %v11483_v38 }
 0x714   :  { %5075 = vmatpush1.msra.mxu0 %v11490_v23  ;;  %5146 = vmatpush1.msra.mxu1 %v11495_v60 }
 0x715   :  { %5076 = vmatprep.subr.mxu0 %v11502_v12  ;;  %5147 = vmatprep.subr.mxu1 %v11507_v35 }
 0x716   :  { %5077 = vmatpush1.msra.mxu0 %v11514_v62  ;;  %5148 = vmatpush1.msra.mxu1 %v11519_v24 }
 0x717   :  { %5078 = vmatprep.subr.mxu0 %v11526_v15  ;;  %5149 = vmatprep.subr.mxu1 %v11531_v32 }
 0x718   :  { %5079 = vmatpush1.msra.mxu0 %v11538_v57  ;;  %5150 = vmatpush1.msra.mxu1 %v11543_v31 }
 0x719   :  { %5080 = vmatprep.subr.mxu0 %v11550_v19  ;;  %5151 = vmatprep.subr.mxu1 %v11555_v58 }
 0x71a   :  { %5081 = vmatpush1.msra.mxu0 %v11562_v30  ;;  %5152 = vmatpush1.msra.mxu1 %v11567_v39 }
 0x71b   :  { %5082 = vmatprep.subr.mxu0 %v11574_v4  ;;  %5153 = vmatprep.subr.mxu1 %v11579_v42 }
 0x71c   :  { %5083 = vmatpush1.msra.mxu0 %v11586_v1  ;;  %5154 = vmatpush1.msra.mxu1 %v11591_v43 }
 0x71d   :  { %5084 = vmatprep.subr.mxu0 %v11598_v18  ;;  %5155 = vmatprep.subr.mxu1 %v11603_v55  ;;  %v13873_v55 = vld [vmem:[#allocation117_spill] sm:$0xff] }
 0x71e   :  { %5085 = vmatpush1.msra.mxu0 %v11610_v29  ;;  %5156 = vmatpush1.msra.mxu1 %v11615_v63  ;;  %v13872_v29 = vld [vmem:[#allocation119_spill] sm:$0xff] }
 0x71f   :  { %5086 = vmatprep.subr.mxu0 %v11622_v33  ;;  %5157 = vmatprep.subr.mxu1 %v11627_v45 }
 0x720   :  { %5087 = vmatpush1.msra.mxu0 %v11634_v21  ;;  %5158 = vmatpush1.msra.mxu1 %v11639_v61  ;;  %v13871_v21 = vld [vmem:[#allocation118_spill] sm:$0xff] }
 0x721   :  { %5088 = vmatprep.subr.mxu0 %v11646_v28  ;;  %5159 = vmatprep.subr.mxu1 %v11651_v17 }
 0x722   :  { %5089 = vmatpush1.msra.mxu0 %v11658_v16  ;;  %5160 = vmatpush1.msra.mxu1 %v11663_v7  ;;  %v13870_v16 = vld [vmem:[#allocation116_spill] sm:$0xff] }
 0x723   :  { %5090 = vmatprep.subr.mxu0 %v11670_v8  ;;  %5161 = vmatprep.subr.mxu1 %v11675_v10  ;;  %v13869_v10 = vld [vmem:[#allocation63_spill] sm:$0xff] }
 0x724   :  { %5091 = vmatpush1.msra.mxu0 %v11682_v13  ;;  %5162 = vmatpush1.msra.mxu1 %v11687_v44  ;;  %v11711_v44 = vld [vmem:[%s12509_s4 + $0xd0] sm:$0xff] }
 0x725   :  { %5092 = vmatprep.subr.mxu0 %v11694_v9  ;;  %5163 = vmatprep.subr.mxu1 %v11699_v6  ;;  %13843 = vst [vmem:[#allocation29_spill] sm:$0xff] %v11711_v44  ;;  %v11718_v9 = vld [vmem:[%s12509_s4 + $0xa8] sm:$0xff]  ;;  %v11723_v6 = vld [vmem:[%s12509_s4 + $0xb8] sm:$0xff]  ;;  %v13868_v13 = vld [vmem:[#allocation62_spill] sm:$0xff] }
 0x726   :  { %5093 = vmatpush1.msra.mxu0 %v11706_v40  ;;  %5164 = vmatpush1.msra.mxu1 %v11711_v44  ;;  %13844 = vst [vmem:[#allocation100_spill] sm:$0xff] %v11718_v9  ;;  %13845 = vst [vmem:[#allocation102_spill] sm:$0xff] %v11723_v6  ;;  %v11730_v40 = vld [vmem:[%s12509_s4 + $0xa0] sm:$0xff]  ;;  %v11735_v44 = vld [vmem:[%s12509_s4 + $0xb0] sm:$0xff] }
 0x727   :  { %5094 = vmatprep.subr.mxu0 %v11718_v9  ;;  %5165 = vmatprep.subr.mxu1 %v11723_v6  ;;  %13846 = vst [vmem:[#allocation103_spill] sm:$0xff] %v11730_v40  ;;  %13847 = vst [vmem:[#allocation101_spill] sm:$0xff] %v11735_v44  ;;  %v11742_v9 = vld [vmem:[%s12509_s4 + $0x88] sm:$0xff]  ;;  %v11747_v6 = vld [vmem:[%s12509_s4 + $0x98] sm:$0xff] }
 0x728   :  { %5095 = vmatpush1.msra.mxu0 %v11730_v40  ;;  %5166 = vmatpush1.msra.mxu1 %v11735_v44  ;;  %13848 = vst [vmem:[#allocation30_spill] sm:$0xff] %v11742_v9  ;;  %13849 = vst [vmem:[#allocation31_spill] sm:$0xff] %v11747_v6  ;;  %v11754_v40 = vld [vmem:[%s12509_s4 + $0x80] sm:$0xff]  ;;  %v11759_v44 = vld [vmem:[%s12509_s4 + $0x90] sm:$0xff] }
 0x729   :  { %5096 = vmatprep.subr.mxu0 %v11742_v9  ;;  %5167 = vmatprep.subr.mxu1 %v11747_v6  ;;  %13850 = vst [vmem:[#allocation32_spill] sm:$0xff] %v11754_v40  ;;  %13851 = vst [vmem:[#allocation33_spill] sm:$0xff] %v11759_v44  ;;  %v11766_v9 = vld [vmem:[%s12509_s4 + $0x68] sm:$0xff]  ;;  %v11771_v6 = vld [vmem:[%s12509_s4 + $0x78] sm:$0xff] }
 0x72a   :  { %5097 = vmatpush1.msra.mxu0 %v11754_v40  ;;  %5168 = vmatpush1.msra.mxu1 %v11759_v44  ;;  %13852 = vst [vmem:[#allocation34_spill] sm:$0xff] %v11766_v9  ;;  %13853 = vst [vmem:[#allocation35_spill] sm:$0xff] %v11771_v6  ;;  %v11778_v40 = vld [vmem:[%s12509_s4 + $0x60] sm:$0xff]  ;;  %v11783_v44 = vld [vmem:[%s12509_s4 + $0x70] sm:$0xff] }
 0x72b   :  { %5098 = vmatprep.subr.mxu0 %v11766_v9  ;;  %5169 = vmatprep.subr.mxu1 %v11771_v6  ;;  %13854 = vst [vmem:[#allocation36_spill] sm:$0xff] %v11778_v40  ;;  %13855 = vst [vmem:[#allocation112_spill] sm:$0xff] %v11783_v44  ;;  %v11790_v9 = vld [vmem:[%s12509_s4 + $0x48] sm:$0xff]  ;;  %v11795_v6 = vld [vmem:[%s12509_s4 + $0x58] sm:$0xff] }
 0x72c   :  { %5099 = vmatpush1.msra.mxu0 %v11778_v40  ;;  %5170 = vmatpush1.msra.mxu1 %v11783_v44  ;;  %13856 = vst [vmem:[#allocation114_spill] sm:$0xff] %v11790_v9  ;;  %13857 = vst [vmem:[#allocation115_spill] sm:$0xff] %v11795_v6  ;;  %v11802_v40 = vld [vmem:[%s12509_s4 + $0x40] sm:$0xff]  ;;  %v11807_v44 = vld [vmem:[%s12509_s4 + $0x50] sm:$0xff] }
 0x72d   :  { %5100 = vmatprep.subr.mxu0 %v11790_v9  ;;  %5171 = vmatprep.subr.mxu1 %v11795_v6  ;;  %13858 = vst [vmem:[#allocation113_spill] sm:$0xff] %v11802_v40  ;;  %13859 = vst [vmem:[#allocation37_spill] sm:$0xff] %v11807_v44  ;;  %v11814_v9 = vld [vmem:[%s12509_s4 + $0x28] sm:$0xff]  ;;  %v11819_v6 = vld [vmem:[%s12509_s4 + $0x38] sm:$0xff] }
 0x72e   :  { %5101 = vmatpush1.msra.mxu0 %v11802_v40  ;;  %5172 = vmatpush1.msra.mxu1 %v11807_v44  ;;  %13860 = vst [vmem:[#allocation38_spill] sm:$0xff] %v11814_v9  ;;  %13861 = vst [vmem:[#allocation39_spill] sm:$0xff] %v11819_v6  ;;  %v11826_v40 = vld [vmem:[%s12509_s4 + $0x20] sm:$0xff]  ;;  %v11831_v44 = vld [vmem:[%s12509_s4 + $0x30] sm:$0xff] }
 0x72f   :  { %5102 = vmatprep.subr.mxu0 %v11814_v9  ;;  %5173 = vmatprep.subr.mxu1 %v11819_v6  ;;  %13862 = vst [vmem:[#allocation40_spill] sm:$0xff] %v11826_v40  ;;  %13863 = vst [vmem:[#allocation41_spill] sm:$0xff] %v11831_v44  ;;  %v11838_v9 = vld [vmem:[%s12509_s4 + $0x8] sm:$0xff]  ;;  %v11843_v6 = vld [vmem:[%s12509_s4 + $0x18] sm:$0xff] }
 0x730   :  { %5103 = vmatpush1.msra.mxu0 %v11826_v40  ;;  %5174 = vmatpush1.msra.mxu1 %v11831_v44  ;;  %13864 = vst [vmem:[#allocation42_spill] sm:$0xff] %v11838_v9  ;;  %13865 = vst [vmem:[#allocation43_spill] sm:$0xff] %v11843_v6  ;;  %v11850_v40 = vld [vmem:[%s12509_s4] sm:$0xff]  ;;  %v11855_v44 = vld [vmem:[%s12509_s4 + $0x10] sm:$0xff] }
 0x731   :  { %5104 = vmatprep.subr.mxu0 %v11838_v9  ;;  %5175 = vmatprep.subr.mxu1 %v11843_v6  ;;  %13866 = vst [vmem:[#allocation44_spill] sm:$0xff] %v11850_v40  ;;  %13867 = vst [vmem:[#allocation45_spill] sm:$0xff] %v11855_v44 }
 0x732   :  { %5105 = vmatpush1.msra.mxu0 %v11850_v40  ;;  %5176 = vmatpush1.msra.mxu1 %v11855_v44 }
 0x733   :  { %5288 = vmatprep.subr.mxu0 %v13868_v13  ;;  %5359 = vmatprep.subr.mxu1 %v13869_v10 }
 0x78e   :  { %v4425_v9 = vpop.f32.mrf.mxu0  ;;  %v4496_v7 = vpop.f32.mrf.mxu1 }
 0x790   :  { %v4427_v6 = vpop.f32.mrf.mxu0  ;;  %v4498_v33 = vpop.f32.mrf.mxu1 }
 0x7af   :  { %v4639_v8 = vpop.f32.mrf.mxu0  ;;  %v4710_v40 = vpop.f32.mrf.mxu1 }
 0x7b0   :  { %v4715_v17 = vadd.f32 %v4639_v8, %v13870_v16  ;;  %v4717_v10 = vadd.f32 %v4710_v40, %v13873_v55 }
 0x7b1   :  { %v4641_v28 = vpop.f32.mrf.mxu0  ;;  %v4712_v44 = vpop.f32.mrf.mxu1 }
 0x7b2   :  { %v6254_v61 = vmul.f32 -1.442695, %v4715_v17  ;;  %v4716_v45 = vadd.f32 %v4641_v28, %v13871_v21  ;;  %v4718_v13 = vadd.f32 %v4712_v44, %v13872_v29  ;;  %v13874_v21 = vld [vmem:[#allocation93_spill] sm:$0xff] }
 0x7b4   :  { %6501 = vpow2.f32 %v6254_v61  ;;  %v6255_v63 = vmul.f32 -1.442695, %v4716_v45  ;;  %v6256_v43 = vmul.f32 -1.442695, %v4718_v13  ;;  %v4337_v45 = vld [vmem:[%s12512_s6] sm:$0xf] }
 0x7b5   :  { %v13875_v61 = vld [vmem:[#allocation95_spill] sm:$0xff] }
 0x7b6   :  { %6503 = vpow2.f32 %v6255_v63  ;;  %v4342_v63 = vrot.slane %v4337_v45, %v13874_v21  ;;  %v4346_v28 = vrot.slane %v4337_v45, %v13875_v61 }
 0x7b7   :  { %6505 = vtanh.f32 %v4717_v10 }
 0x7b8   :  { %v4426_v17 = vadd.f32 %v4425_v9, %v4342_v63  ;;  %v4354_v9 = vrot.slane %v4337_v45, %v13236_v26 }
 0x7c1   :  { %v6502_v18 = vpop.eup %6501 }
 0x7c2   :  { %v4722_v1 = vadd.f32 1.0, %v6502_v18  ;;  %v4428_v18 = vadd.f32 %v4427_v6, %v4346_v28  ;;  %v4499_v6 = vadd.f32 %v4498_v33, %v4354_v9  ;;  %v4350_v28 = vrot.slane %v4337_v45, %v13237_v51  ;;  %v13876_v33 = vld [vmem:[#allocation64_spill] sm:$0xff]  ;;  %v13878_v45 = vld [vmem:[#allocation66_spill] sm:$0xff] }
 0x7c3   :  { %v6504_v42 = vpop.eup %6503  ;;  %v13888_v9 = vld [vmem:[#allocation76_spill] sm:$0xff] }
 0x7c4   :  { %6507 = vrcp.f32 %v4722_v1  ;;  %v4728_v16 = vadd.f32 1.0, %v6504_v42  ;;  %v6506_v29 = vpop.eup %6505 }
 0x7c5   :  { %6509 = vpow2.f32 %v6256_v43 }
 0x7c6   :  { %6511 = vrcp.f32 %v4728_v16 }
 0x7d1   :  { %v6508_v55 = vpop.eup %6507  ;;  %v4877_v8 = vpop.f32.mrf.mxu0 }
 0x7d2   :  { %v6510_v44 = vpop.eup %6509  ;;  %v4740_v40 = vmul.f32 %v6508_v55, %v6506_v29  ;;  %v4953_v13 = vadd.f32 %v4877_v8, %v4426_v17  ;;  %v4948_v21 = vpop.f32.mrf.mxu1 }
 0x7d3   :  { %v6512_v1 = vpop.eup %6511  ;;  %v4879_v42 = vpop.f32.mrf.mxu0  ;;  %v4735_v4 = vadd.f32 1.0, %v6510_v44 }
 0x7d4   :  { %v4739_v43 = vmul.f32 %v6512_v1, %v11010_v3  ;;  %v6257_v10 = vmul.f32 -1.442695, %v4953_v13  ;;  %v4954_v16 = vadd.f32 %v4879_v42, %v4428_v18  ;;  %v4950_v63 = vpop.f32.mrf.mxu1  ;;  %v4497_v3 = vadd.f32 %v4496_v7, %v4350_v28  ;;  %v13877_v7 = vld [vmem:[#allocation65_spill] sm:$0xff]  ;;  %v13886_v42 = vld [vmem:[#allocation74_spill] sm:$0xff] }
 0x7d5   :  { %v4956_v29 = vadd.f32 %v4950_v63, %v4499_v6  ;;  %v13889_v28 = vld [vmem:[#allocation77_spill] sm:$0xff] }
 0x7d6   :  { %v11871_v39 = vadd.f32 %v4740_v40, %v4739_v43  ;;  %6513 = vpow2.f32 %v6257_v10  ;;  %v6258_v61 = vmul.f32 -1.442695, %v4954_v16  ;;  %v4955_v8 = vadd.f32 %v4948_v21, %v4497_v3  ;;  %v13884_v21 = vld [vmem:[#allocation72_spill] sm:$0xff]  ;;  %v13887_v43 = vld [vmem:[#allocation75_spill] sm:$0xff]  ;;  %v13890_v3 = vld [vmem:[#allocation78_spill] sm:$0xff] }
 0x7d7   :  { %v6259_v17 = vmul.f32 -1.442695, %v4956_v29 }
 0x7d8   :  { %6515 = vpow2.f32 %v6258_v61 }
 0x7d9   :  { %6517 = vrcp.f32 %v4735_v4 }
 0x7da   :  { %6519 = vtanh.f32 %v11871_v39 }
 0x7db   :  { %6521 = vpow2.f32 %v6259_v17  ;;  %v13892_v17 = vld [vmem:[#allocation80_spill] sm:$0xff] }
 0x7e3   :  { %v6514_v55 = vpop.eup %6513 }
 0x7e4   :  { %v4960_v44 = vadd.f32 1.0, %v6514_v55  ;;  %v13897_v55 = vld [vmem:[#allocation85_spill] sm:$0xff] }
 0x7e5   :  { %v6516_v18 = vpop.eup %6515 }
 0x7e6   :  { %v6518_v40 = vpop.eup %6517  ;;  %6523 = vrcp.f32 %v4960_v44  ;;  %v4966_v13 = vadd.f32 1.0, %v6516_v18  ;;  %v13900_v44 = vld [vmem:[#allocation88_spill] sm:$0xff]  ;;  %v13901_v18 = vld [vmem:[#allocation89_spill] sm:$0xff] }
 0x7e7   :  { %v6520_v1 = vpop.eup %6519  ;;  %6525 = vtanh.f32 %v4955_v8  ;;  %v13899_v8 = vld [vmem:[#allocation87_spill] sm:$0xff] }
 0x7e8   :  { %6527 = vrcp.f32 %v4966_v13  ;;  %v11876_v4 = vmul.f32 %v6520_v1, %v6518_v40  ;;  %v13902_v40 = vld [vmem:[#allocation90_spill] sm:$0xff]  ;;  %v13903_v13 = vld [vmem:[#allocation91_spill] sm:$0xff]  ;;  %v13904_v1 = vld [vmem:[#allocation96_spill] sm:$0xff] }
 0x7ea   :  { %5139 = vmatmul.mubr.f32.vlgmr.msra.gmra.mxu0 %v11876_v4  ;;  %5210 = vmatmul.mubr.f32.vlgmr.msra.gmra.mxu1 %v11876_v4 }
 0x7eb   :  { %5289 = vmatpush1.msra.mxu0 %v11020_v52  ;;  %5360 = vmatpush1.msra.mxu1 %v11025_v2  ;;  %v13879_v52 = vld [vmem:[#allocation67_spill] sm:$0xff]  ;;  %v13880_v2 = vld [vmem:[#allocation68_spill] sm:$0xff] }
 0x7ec   :  { %5290 = vmatprep.subr.mxu0 %v11030_v14  ;;  %5361 = vmatprep.subr.mxu1 %v11035_v22  ;;  %v13881_v14 = vld [vmem:[#allocation69_spill] sm:$0xff]  ;;  %v6522_v22 = vpop.eup %6521 }
 0x7ed   :  { %5291 = vmatpush1.msra.mxu0 %v11042_v53  ;;  %5362 = vmatpush1.msra.mxu1 %v11047_v50  ;;  %v13882_v53 = vld [vmem:[#allocation70_spill] sm:$0xff]  ;;  %v13883_v50 = vld [vmem:[#allocation71_spill] sm:$0xff]  ;;  %v4973_v16 = vadd.f32 1.0, %v6522_v22  ;;  %v13911_v22 = vld [vmem:[#allocation9_spill] sm:$0xff] }
 0x7ee   :  { %5292 = vmatprep.subr.mxu0 %v11054_v34  ;;  %5363 = vmatprep.subr.mxu1 %v11059_v59  ;;  %v13885_v59 = vld [vmem:[#allocation73_spill] sm:$0xff] }
 0x7ef   :  { %5293 = vmatpush1.msra.mxu0 %v13876_v33  ;;  %5364 = vmatpush1.msra.mxu1 %v13877_v7  ;;  %6529 = vrcp.f32 %v4973_v16  ;;  %v13905_v33 = vld [vmem:[#allocation98_spill] sm:$0xff]  ;;  %v13906_v7 = vld [vmem:[#allocation99_spill] sm:$0xff]  ;;  %v12003_v16 = vld [vmem:[%s12511_s5 + $0x1a8] sm:$0xff] }
 0x7f0   :  { %5294 = vmatprep.subr.mxu0 %v13878_v45  ;;  %5365 = vmatprep.subr.mxu1 %v13879_v52  ;;  %v13907_v45 = vld [vmem:[#allocation97_spill] sm:$0xff]  ;;  %v13908_v52 = vld [vmem:[#allocation94_spill] sm:$0xff] }
 0x7f1   :  { %5295 = vmatpush1.msra.mxu0 %v13880_v2  ;;  %5366 = vmatpush1.msra.mxu1 %v13881_v14  ;;  %v13909_v2 = vld [vmem:[#allocation92_spill] sm:$0xff] }
 0x7f2   :  { %5296 = vmatprep.subr.mxu0 %v13882_v53  ;;  %5367 = vmatprep.subr.mxu1 %v13883_v50  ;;  %v13910_v14 = vld [vmem:[#allocation8_spill] sm:$0xff]  ;;  %v13912_v53 = vld [vmem:[#allocation10_spill] sm:$0xff]  ;;  %v13913_v50 = vld [vmem:[#allocation11_spill] sm:$0xff] }
 0x7f3   :  { %v6524_v34 = vpop.eup %6523  ;;  %5297 = vmatpush1.msra.mxu0 %v13884_v21  ;;  %5368 = vmatpush1.msra.mxu1 %v13885_v59  ;;  %v13915_v21 = vld [vmem:[#allocation13_spill] sm:$0xff]  ;;  %v13916_v59 = vld [vmem:[#allocation14_spill] sm:$0xff] }
 0x7f4   :  { %v6526_v61 = vpop.eup %6525  ;;  %5298 = vmatprep.subr.mxu0 %v13886_v42  ;;  %5369 = vmatprep.subr.mxu1 %v13887_v43  ;;  %v13917_v42 = vld [vmem:[#allocation15_spill] sm:$0xff] }
 0x7f5   :  { %v6528_v10 = vpop.eup %6527  ;;  %5299 = vmatpush1.msra.mxu0 %v11138_v36  ;;  %5370 = vmatpush1.msra.mxu1 %v13888_v9  ;;  %v4978_v63 = vmul.f32 %v6526_v61, %v6524_v34  ;;  %v13891_v36 = vld [vmem:[#allocation79_spill] sm:$0xff]  ;;  %v13914_v34 = vld [vmem:[#allocation12_spill] sm:$0xff] }
 0x7f6   :  { %v4977_v6 = vmul.f32 %v6528_v10, %v11206_v37  ;;  %5300 = vmatprep.subr.mxu0 %v11150_v54  ;;  %5371 = vmatprep.subr.mxu1 %v11155_v46  ;;  %v13893_v37 = vld [vmem:[#allocation81_spill] sm:$0xff]  ;;  %v13894_v54 = vld [vmem:[#allocation82_spill] sm:$0xff]  ;;  %v13895_v46 = vld [vmem:[#allocation83_spill] sm:$0xff] }
 0x7f7   :  { %5301 = vmatpush1.msra.mxu0 %v11162_v41  ;;  %5372 = vmatpush1.msra.mxu1 %v13889_v28  ;;  %v13896_v41 = vld [vmem:[#allocation84_spill] sm:$0xff]  ;;  %v12008_v9 = vld [vmem:[%s12511_s5 + $0x1b8] sm:$0xff]  ;;  %v12027_v28 = vld [vmem:[%s12511_s5 + $0x188] sm:$0xff] }
 0x7f8   :  { %v11907_v29 = vadd.f32 %v4978_v63, %v4977_v6  ;;  %5302 = vmatprep.subr.mxu0 %v11174_v25  ;;  %5373 = vmatprep.subr.mxu1 %v13890_v3  ;;  %v13898_v25 = vld [vmem:[#allocation86_spill] sm:$0xff]  ;;  %v12015_v63 = vld [vmem:[%s12511_s5 + $0x1a0] sm:$0xff]  ;;  %v12032_v3 = vld [vmem:[%s12511_s5 + $0x198] sm:$0xff] }
 0x7f9   :  { %5303 = vmatpush1.msra.mxu0 %v13891_v36  ;;  %5374 = vmatpush1.msra.mxu1 %v13892_v17  ;;  %v12020_v6 = vld [vmem:[%s12511_s5 + $0x1b0] sm:$0xff]  ;;  %v12039_v36 = vld [vmem:[%s12511_s5 + $0x180] sm:$0xff] }
 0x7fa   :  { %5304 = vmatprep.subr.mxu0 %v13893_v37  ;;  %5375 = vmatprep.subr.mxu1 %v13894_v54  ;;  %6531 = vtanh.f32 %v11907_v29  ;;  %v12044_v17 = vld [vmem:[%s12511_s5 + $0x190] sm:$0xff]  ;;  %v12051_v37 = vld [vmem:[%s12511_s5 + $0x168] sm:$0xff]  ;;  %v12056_v54 = vld [vmem:[%s12511_s5 + $0x178] sm:$0xff] }
 0x7fb   :  { %5305 = vmatpush1.msra.mxu0 %v13895_v46  ;;  %5376 = vmatpush1.msra.mxu1 %v13896_v41  ;;  %v12063_v46 = vld [vmem:[%s12511_s5 + $0x160] sm:$0xff]  ;;  %v12068_v41 = vld [vmem:[%s12511_s5 + $0x170] sm:$0xff] }
 0x7fc   :  { %5306 = vmatprep.subr.mxu0 %v13897_v55  ;;  %5377 = vmatprep.subr.mxu1 %v13898_v25  ;;  %v6530_v61 = vpop.eup %6529  ;;  %v12075_v55 = vld [vmem:[%s12511_s5 + $0x148] sm:$0xff]  ;;  %v12080_v25 = vld [vmem:[%s12511_s5 + $0x158] sm:$0xff] }
 0x7fd   :  { %5307 = vmatpush1.msra.mxu0 %v13899_v8  ;;  %5378 = vmatpush1.msra.mxu1 %v13900_v44  ;;  %v12087_v8 = vld [vmem:[%s12511_s5 + $0x140] sm:$0xff]  ;;  %v12092_v44 = vld [vmem:[%s12511_s5 + $0x150] sm:$0xff] }
 0x7fe   :  { %5308 = vmatprep.subr.mxu0 %v13901_v18  ;;  %5379 = vmatprep.subr.mxu1 %v13902_v40  ;;  %v12099_v18 = vld [vmem:[%s12511_s5 + $0x128] sm:$0xff]  ;;  %v12104_v40 = vld [vmem:[%s12511_s5 + $0x138] sm:$0xff] }
 0x7ff   :  { %5309 = vmatpush1.msra.mxu0 %v13903_v13  ;;  %5380 = vmatpush1.msra.mxu1 %v13904_v1  ;;  %v12111_v13 = vld [vmem:[%s12511_s5 + $0x120] sm:$0xff]  ;;  %v12116_v1 = vld [vmem:[%s12511_s5 + $0x130] sm:$0xff] }
 0x800   :  { %5310 = vmatprep.subr.mxu0 %v13905_v33  ;;  %5381 = vmatprep.subr.mxu1 %v13906_v7  ;;  %v12123_v33 = vld [vmem:[%s12511_s5 + $0x108] sm:$0xff]  ;;  %v12128_v7 = vld [vmem:[%s12511_s5 + $0x118] sm:$0xff] }
 0x801   :  { %5311 = vmatpush1.msra.mxu0 %v13907_v45  ;;  %5382 = vmatpush1.msra.mxu1 %v13908_v52  ;;  %v12135_v45 = vld [vmem:[%s12511_s5 + $0x100] sm:$0xff]  ;;  %v12140_v52 = vld [vmem:[%s12511_s5 + $0x110] sm:$0xff] }
 0x802   :  { %5312 = vmatprep.subr.mxu0 %v13909_v2  ;;  %5383 = vmatprep.subr.mxu1 %v13910_v14  ;;  %v12147_v2 = vld [vmem:[%s12511_s5 + $0xe8] sm:$0xff]  ;;  %v12152_v14 = vld [vmem:[%s12511_s5 + $0xf8] sm:$0xff] }
 0x803   :  { %5313 = vmatpush1.msra.mxu0 %v13911_v22  ;;  %5384 = vmatpush1.msra.mxu1 %v13912_v53  ;;  %v12159_v22 = vld [vmem:[%s12511_s5 + $0xe0] sm:$0xff]  ;;  %v12164_v53 = vld [vmem:[%s12511_s5 + $0xf0] sm:$0xff] }
 0x804   :  { %5314 = vmatprep.subr.mxu0 %v13913_v50  ;;  %5385 = vmatprep.subr.mxu1 %v13914_v34  ;;  %13918 = vst [vmem:[#allocation46_spill] sm:$0xff] %v12164_v53  ;;  %v12171_v50 = vld [vmem:[%s12511_s5 + $0xc8] sm:$0xff]  ;;  %v12176_v34 = vld [vmem:[%s12511_s5 + $0xd8] sm:$0xff] }
 0x805   :  { %5315 = vmatpush1.msra.mxu0 %v13915_v21  ;;  %5386 = vmatpush1.msra.mxu1 %v13916_v59  ;;  %13919 = vst [vmem:[#allocation47_spill] sm:$0xff] %v12171_v50  ;;  %13920 = vst [vmem:[#allocation48_spill] sm:$0xff] %v12176_v34  ;;  %v12183_v21 = vld [vmem:[%s12511_s5 + $0xc0] sm:$0xff]  ;;  %v12188_v59 = vld [vmem:[%s12511_s5 + $0xd0] sm:$0xff] }
 0x806   :  { %5316 = vmatprep.subr.mxu0 %v11346_v11  ;;  %5387 = vmatprep.subr.mxu1 %v13917_v42  ;;  %v11951_v11 = vld [vmem:[%s12511_s5 + $0x1e8] sm:$0xff]  ;;  %13921 = vst [vmem:[#allocation49_spill] sm:$0xff] %v12183_v21  ;;  %13922 = vst [vmem:[#allocation50_spill] sm:$0xff] %v12188_v59  ;;  %v12200_v42 = vld [vmem:[%s12511_s5 + $0xb8] sm:$0xff] }
 0x807   :  { %v6532_v43 = vpop.eup %6531  ;;  %5317 = vmatpush1.msra.mxu0 %v11358_v20  ;;  %5388 = vmatpush1.msra.mxu1 %v11363_v49  ;;  %v11956_v20 = vld [vmem:[%s12511_s5 + $0x1f8] sm:$0xff]  ;;  %v11963_v49 = vld [vmem:[%s12511_s5 + $0x1e0] sm:$0xff]  ;;  %13924 = vst [vmem:[#allocation110_spill] sm:$0xff] %v12200_v42 }
 0x808   :  { %5318 = vmatprep.subr.mxu0 %v11370_v27  ;;  %5389 = vmatprep.subr.mxu1 %v11375_v47  ;;  %v11944_v10 = vmul.f32 %v6532_v43, %v6530_v61  ;;  %v11968_v27 = vld [vmem:[%s12511_s5 + $0x1f0] sm:$0xff]  ;;  %v11984_v47 = vld [vmem:[%s12511_s5 + $0x1d8] sm:$0xff]  ;;  %v12195_v61 = vld [vmem:[%s12511_s5 + $0xa8] sm:$0xff] }
 0x809   :  { %5319 = vmatpush1.msra.mxu0 %v11382_v5  ;;  %5352 = vmatprep.mubr.f32.mxu0 %v13135_v56  ;;  %v11991_v5 = vld [vmem:[%s12511_s5 + $0x1c0] sm:$0xff]  ;;  %13923 = vst [vmem:[#allocation108_spill] sm:$0xff] %v12195_v61 }
 0x80a   :  { %5390 = vmatpush1.msra.mxu1 %v11389_v48  ;;  %5423 = vmatprep.mubr.f32.mxu1 %v13135_v56  ;;  %6260 = vst [vmem:[%s12513_s7 + $0x28] sm:$0xff] %v11944_v10  ;;  %v11979_v48 = vld [vmem:[%s12511_s5 + $0x1c8] sm:$0xff]  ;;  %v12207_v43 = vld [vmem:[%s12511_s5 + $0xa0] sm:$0xff] }
 0x80b   :  { %5353 = vmatmul.mubr.f32.vlgmr.msra.gmra.mxu0 %v11876_v4  ;;  %5424 = vmatmul.mubr.f32.vlgmr.msra.gmra.mxu1 %v11876_v4  ;;  %v11996_v4 = vld [vmem:[%s12511_s5 + $0x1d0] sm:$0xff]  ;;  %13925 = vst [vmem:[#allocation111_spill] sm:$0xff] %v12207_v43 }
 0x80c   :  { %5526 = vmatprep.subr.mxu0 %v11951_v11  ;;  %5597 = vmatprep.subr.mxu1 %v11956_v20 }
 0x80d   :  { %5527 = vmatpush1.msra.mxu0 %v11963_v49  ;;  %5598 = vmatpush1.msra.mxu1 %v11968_v27 }
 0x80e   :  { %5528 = vmatprep.subr.mxu0 %v11979_v48  ;;  %5599 = vmatprep.subr.mxu1 %v11984_v47 }
 0x80f   :  { %5529 = vmatpush1.msra.mxu0 %v11991_v5  ;;  %5600 = vmatpush1.msra.mxu1 %v11996_v4 }
 0x810   :  { %5530 = vmatprep.subr.mxu0 %v12003_v16  ;;  %5601 = vmatprep.subr.mxu1 %v12008_v9 }
 0x811   :  { %5531 = vmatpush1.msra.mxu0 %v12015_v63  ;;  %5602 = vmatpush1.msra.mxu1 %v12020_v6 }
 0x812   :  { %5532 = vmatprep.subr.mxu0 %v12027_v28  ;;  %5603 = vmatprep.subr.mxu1 %v12032_v3 }
 0x813   :  { %5533 = vmatpush1.msra.mxu0 %v12039_v36  ;;  %5604 = vmatpush1.msra.mxu1 %v12044_v17 }
 0x814   :  { %5534 = vmatprep.subr.mxu0 %v12051_v37  ;;  %5605 = vmatprep.subr.mxu1 %v12056_v54 }
 0x815   :  { %5535 = vmatpush1.msra.mxu0 %v12063_v46  ;;  %5606 = vmatpush1.msra.mxu1 %v12068_v41 }
 0x816   :  { %5536 = vmatprep.subr.mxu0 %v12075_v55  ;;  %5607 = vmatprep.subr.mxu1 %v12080_v25 }
 0x817   :  { %5537 = vmatpush1.msra.mxu0 %v12087_v8  ;;  %5608 = vmatpush1.msra.mxu1 %v12092_v44 }
 0x818   :  { %5538 = vmatprep.subr.mxu0 %v12099_v18  ;;  %5609 = vmatprep.subr.mxu1 %v12104_v40 }
 0x819   :  { %5539 = vmatpush1.msra.mxu0 %v12111_v13  ;;  %5610 = vmatpush1.msra.mxu1 %v12116_v1 }
 0x81a   :  { %5540 = vmatprep.subr.mxu0 %v12123_v33  ;;  %5611 = vmatprep.subr.mxu1 %v12128_v7 }
 0x81b   :  { %5541 = vmatpush1.msra.mxu0 %v12135_v45  ;;  %5612 = vmatpush1.msra.mxu1 %v12140_v52 }
 0x81c   :  { %5542 = vmatprep.subr.mxu0 %v12147_v2  ;;  %5613 = vmatprep.subr.mxu1 %v12152_v14 }
 0x81d   :  { %5543 = vmatpush1.msra.mxu0 %v12159_v22  ;;  %5614 = vmatpush1.msra.mxu1 %v12164_v53  ;;  %v12212_v53 = vld [vmem:[%s12511_s5 + $0xb0] sm:$0xff] }
 0x81e   :  { %5544 = vmatprep.subr.mxu0 %v12171_v50  ;;  %5615 = vmatprep.subr.mxu1 %v12176_v34  ;;  %13926 = vst [vmem:[#allocation109_spill] sm:$0xff] %v12212_v53  ;;  %v12219_v50 = vld [vmem:[%s12511_s5 + $0x88] sm:$0xff]  ;;  %v12224_v34 = vld [vmem:[%s12511_s5 + $0x98] sm:$0xff] }
 0x81f   :  { %5545 = vmatpush1.msra.mxu0 %v12183_v21  ;;  %5616 = vmatpush1.msra.mxu1 %v12188_v59  ;;  %13927 = vst [vmem:[#allocation51_spill] sm:$0xff] %v12219_v50  ;;  %13928 = vst [vmem:[#allocation52_spill] sm:$0xff] %v12224_v34  ;;  %v12231_v21 = vld [vmem:[%s12511_s5 + $0x80] sm:$0xff]  ;;  %v12236_v59 = vld [vmem:[%s12511_s5 + $0x90] sm:$0xff] }
 0x820   :  { %5546 = vmatprep.subr.mxu0 %v12195_v61  ;;  %5617 = vmatprep.subr.mxu1 %v12200_v42  ;;  %13929 = vst [vmem:[#allocation53_spill] sm:$0xff] %v12231_v21  ;;  %13930 = vst [vmem:[#allocation54_spill] sm:$0xff] %v12236_v59  ;;  %v12243_v61 = vld [vmem:[%s12511_s5 + $0x68] sm:$0xff]  ;;  %v12248_v42 = vld [vmem:[%s12511_s5 + $0x78] sm:$0xff] }
 0x821   :  { %5547 = vmatpush1.msra.mxu0 %v12207_v43  ;;  %5618 = vmatpush1.msra.mxu1 %v12212_v53  ;;  %13931 = vst [vmem:[#allocation55_spill] sm:$0xff] %v12243_v61  ;;  %13932 = vst [vmem:[#allocation56_spill] sm:$0xff] %v12248_v42  ;;  %v12255_v43 = vld [vmem:[%s12511_s5 + $0x60] sm:$0xff]  ;;  %v12260_v53 = vld [vmem:[%s12511_s5 + $0x70] sm:$0xff] }
 0x822   :  { %5548 = vmatprep.subr.mxu0 %v12219_v50  ;;  %5619 = vmatprep.subr.mxu1 %v12224_v34  ;;  %13933 = vst [vmem:[#allocation57_spill] sm:$0xff] %v12255_v43  ;;  %13934 = vst [vmem:[#allocation58_spill] sm:$0xff] %v12260_v53  ;;  %v12267_v50 = vld [vmem:[%s12511_s5 + $0x48] sm:$0xff]  ;;  %v12272_v34 = vld [vmem:[%s12511_s5 + $0x58] sm:$0xff] }
 0x823   :  { %5549 = vmatpush1.msra.mxu0 %v12231_v21  ;;  %5620 = vmatpush1.msra.mxu1 %v12236_v59  ;;  %13935 = vst [vmem:[#allocation59_spill] sm:$0xff] %v12267_v50  ;;  %13936 = vst [vmem:[#allocation60_spill] sm:$0xff] %v12272_v34  ;;  %v12279_v21 = vld [vmem:[%s12511_s5 + $0x40] sm:$0xff]  ;;  %v12284_v59 = vld [vmem:[%s12511_s5 + $0x50] sm:$0xff] }
 0x824   :  { %5550 = vmatprep.subr.mxu0 %v12243_v61  ;;  %5621 = vmatprep.subr.mxu1 %v12248_v42  ;;  %13937 = vst [vmem:[#allocation61_spill] sm:$0xff] %v12279_v21  ;;  %13938 = vst [vmem:[#allocation62_spill] sm:$0xff] %v12284_v59  ;;  %v12291_v61 = vld [vmem:[%s12511_s5 + $0x28] sm:$0xff]  ;;  %v12296_v42 = vld [vmem:[%s12511_s5 + $0x38] sm:$0xff] }
 0x825   :  { %5551 = vmatpush1.msra.mxu0 %v12255_v43  ;;  %5622 = vmatpush1.msra.mxu1 %v12260_v53  ;;  %v12303_v43 = vld [vmem:[%s12511_s5 + $0x20] sm:$0xff]  ;;  %v12308_v53 = vld [vmem:[%s12511_s5 + $0x30] sm:$0xff] }
 0x826   :  { %5552 = vmatprep.subr.mxu0 %v12267_v50  ;;  %5623 = vmatprep.subr.mxu1 %v12272_v34  ;;  %13939 = vst [vmem:[#allocation63_spill] sm:$0xff] %v12303_v43  ;;  %13940 = vst [vmem:[#allocation116_spill] sm:$0xff] %v12308_v53  ;;  %v12315_v50 = vld [vmem:[%s12511_s5 + $0x8] sm:$0xff]  ;;  %v12320_v34 = vld [vmem:[%s12511_s5 + $0x18] sm:$0xff] }
 0x827   :  { %5553 = vmatpush1.msra.mxu0 %v12279_v21  ;;  %5624 = vmatpush1.msra.mxu1 %v12284_v59  ;;  %13941 = vst [vmem:[#allocation118_spill] sm:$0xff] %v12315_v50  ;;  %13942 = vst [vmem:[#allocation119_spill] sm:$0xff] %v12320_v34  ;;  %v12327_v21 = vld [vmem:[%s12511_s5] sm:$0xff]  ;;  %v12334_v59 = vld [vmem:[%s12511_s5 + $0x10] sm:$0xff] }
 0x828   :  { %5554 = vmatprep.subr.mxu0 %v12291_v61  ;;  %5625 = vmatprep.subr.mxu1 %v12296_v42  ;;  %13943 = vst [vmem:[#allocation117_spill] sm:$0xff] %v12327_v21  ;;  %13944 = vst [vmem:[#allocation64_spill] sm:$0xff] %v12334_v59 }
 0x829   :  { %5555 = vmatpush1.msra.mxu0 %v12303_v43  ;;  %5626 = vmatpush1.msra.mxu1 %v12308_v53 }
 0x82a   :  { %5556 = vmatprep.subr.mxu0 %v12315_v50  ;;  %5627 = vmatprep.subr.mxu1 %v12320_v34 }
 0x82b   :  { %5557 = vmatpush1.msra.mxu0 %v12327_v21  ;;  %5590 = vmatprep.mubr.f32.mxu0 %v13135_v56 }
 0x82c   :  { %5628 = vmatpush1.msra.mxu1 %v12334_v59  ;;  %5661 = vmatprep.mubr.f32.mxu1 %v13135_v56 }
 0x82d   :  { %5591 = vmatmul.mubr.f32.vlgmr.msra.gmra.mxu0 %v11944_v10  ;;  %5662 = vmatmul.mubr.f32.vlgmr.msra.gmra.mxu1 %v11944_v10  ;;  %v13960_v10 = vld [vmem:[#allocation104_spill] sm:$0xff] }
 0x82e   :  { %5789 = vmatprep.subr.mxu0 %v11478_v0  ;;  %5860 = vmatprep.subr.mxu1 %v11483_v38  ;;  %v13945_v0 = vld [vmem:[#allocation16_spill] sm:$0xff]  ;;  %v13946_v38 = vld [vmem:[#allocation17_spill] sm:$0xff] }
 0x82f   :  { %5790 = vmatpush1.msra.mxu0 %v11490_v23  ;;  %5861 = vmatpush1.msra.mxu1 %v11495_v60  ;;  %v13947_v23 = vld [vmem:[#allocation18_spill] sm:$0xff]  ;;  %v13948_v60 = vld [vmem:[#allocation19_spill] sm:$0xff] }
 0x830   :  { %5791 = vmatprep.subr.mxu0 %v11502_v12  ;;  %5862 = vmatprep.subr.mxu1 %v11507_v35  ;;  %v13949_v12 = vld [vmem:[#allocation20_spill] sm:$0xff]  ;;  %v13950_v35 = vld [vmem:[#allocation21_spill] sm:$0xff] }
 0x831   :  { %5792 = vmatpush1.msra.mxu0 %v11514_v62  ;;  %5863 = vmatpush1.msra.mxu1 %v11519_v24  ;;  %v13951_v62 = vld [vmem:[#allocation22_spill] sm:$0xff]  ;;  %v13952_v24 = vld [vmem:[#allocation23_spill] sm:$0xff] }
 0x832   :  { %5793 = vmatprep.subr.mxu0 %v11526_v15  ;;  %5864 = vmatprep.subr.mxu1 %v11531_v32  ;;  %v13953_v15 = vld [vmem:[#allocation24_spill] sm:$0xff]  ;;  %v13954_v32 = vld [vmem:[#allocation25_spill] sm:$0xff] }
 0x833   :  { %5794 = vmatpush1.msra.mxu0 %v11538_v57  ;;  %5865 = vmatpush1.msra.mxu1 %v11543_v31  ;;  %v13955_v57 = vld [vmem:[#allocation26_spill] sm:$0xff]  ;;  %v13956_v31 = vld [vmem:[#allocation27_spill] sm:$0xff] }
 0x834   :  { %5795 = vmatprep.subr.mxu0 %v11550_v19  ;;  %5866 = vmatprep.subr.mxu1 %v11555_v58  ;;  %v13957_v19 = vld [vmem:[#allocation124_spill] sm:$0xff]  ;;  %v13958_v58 = vld [vmem:[#allocation125_spill] sm:$0xff] }
 0x835   :  { %5796 = vmatpush1.msra.mxu0 %v11562_v30  ;;  %5867 = vmatpush1.msra.mxu1 %v13945_v0  ;;  %v13959_v30 = vld [vmem:[#allocation126_spill] sm:$0xff] }
 0x836   :  { %5797 = vmatprep.subr.mxu0 %v13946_v38  ;;  %5868 = vmatprep.subr.mxu1 %v13947_v23  ;;  %v13961_v0 = vld [vmem:[#allocation106_spill] sm:$0xff]  ;;  %v13962_v38 = vld [vmem:[#allocation107_spill] sm:$0xff]  ;;  %v13963_v23 = vld [vmem:[#allocation105_spill] sm:$0xff] }
 0x837   :  { %5798 = vmatpush1.msra.mxu0 %v13948_v60  ;;  %5869 = vmatpush1.msra.mxu1 %v13949_v12  ;;  %v13964_v60 = vld [vmem:[#allocation127_spill] sm:$0xff]  ;;  %v13965_v12 = vld [vmem:[#allocation128_spill] sm:$0xff] }
 0x838   :  { %5799 = vmatprep.subr.mxu0 %v13950_v35  ;;  %5870 = vmatprep.subr.mxu1 %v13951_v62  ;;  %v13966_v35 = vld [vmem:[#allocation129_spill] sm:$0xff]  ;;  %v13967_v62 = vld [vmem:[#allocation130_spill] sm:$0xff] }
 0x839   :  { %5800 = vmatpush1.msra.mxu0 %v13952_v24  ;;  %5871 = vmatpush1.msra.mxu1 %v13953_v15  ;;  %v13968_v24 = vld [vmem:[#allocation28_spill] sm:$0xff]  ;;  %v13969_v15 = vld [vmem:[#allocation29_spill] sm:$0xff] }
 0x83a   :  { %5801 = vmatprep.subr.mxu0 %v13954_v32  ;;  %5872 = vmatprep.subr.mxu1 %v13955_v57  ;;  %v13970_v32 = vld [vmem:[#allocation100_spill] sm:$0xff]  ;;  %v13971_v57 = vld [vmem:[#allocation102_spill] sm:$0xff] }
 0x83b   :  { %5802 = vmatpush1.msra.mxu0 %v13956_v31  ;;  %5873 = vmatpush1.msra.mxu1 %v13957_v19  ;;  %v13972_v31 = vld [vmem:[#allocation103_spill] sm:$0xff]  ;;  %v13973_v19 = vld [vmem:[#allocation101_spill] sm:$0xff] }
 0x83c   :  { %5803 = vmatprep.subr.mxu0 %v13958_v58  ;;  %5874 = vmatprep.subr.mxu1 %v13959_v30  ;;  %v13974_v58 = vld [vmem:[#allocation30_spill] sm:$0xff]  ;;  %v13975_v30 = vld [vmem:[#allocation31_spill] sm:$0xff] }
 0x83d   :  { %5804 = vmatpush1.msra.mxu0 %v13960_v10  ;;  %5875 = vmatpush1.msra.mxu1 %v13961_v0  ;;  %v13976_v10 = vld [vmem:[#allocation32_spill] sm:$0xff]  ;;  %v13977_v0 = vld [vmem:[#allocation33_spill] sm:$0xff] }
 0x83e   :  { %5805 = vmatprep.subr.mxu0 %v13962_v38  ;;  %5876 = vmatprep.subr.mxu1 %v13963_v23  ;;  %v13978_v38 = vld [vmem:[#allocation34_spill] sm:$0xff]  ;;  %v13979_v23 = vld [vmem:[#allocation35_spill] sm:$0xff] }
 0x83f   :  { %5806 = vmatpush1.msra.mxu0 %v13964_v60  ;;  %5877 = vmatpush1.msra.mxu1 %v13965_v12  ;;  %v13980_v60 = vld [vmem:[#allocation36_spill] sm:$0xff] }
 0x840   :  { %5807 = vmatprep.subr.mxu0 %v13966_v35  ;;  %5878 = vmatprep.subr.mxu1 %v13967_v62  ;;  %v13981_v12 = vld [vmem:[#allocation112_spill] sm:$0xff]  ;;  %v13982_v35 = vld [vmem:[#allocation114_spill] sm:$0xff]  ;;  %v13983_v62 = vld [vmem:[#allocation115_spill] sm:$0xff] }
 0x841   :  { %5808 = vmatpush1.msra.mxu0 %v13968_v24  ;;  %5879 = vmatpush1.msra.mxu1 %v13969_v15  ;;  %v13984_v24 = vld [vmem:[#allocation113_spill] sm:$0xff] }
 0x842   :  { %5809 = vmatprep.subr.mxu0 %v13970_v32  ;;  %5880 = vmatprep.subr.mxu1 %v13971_v57  ;;  %v13985_v15 = vld [vmem:[#allocation37_spill] sm:$0xff]  ;;  %v13986_v32 = vld [vmem:[#allocation38_spill] sm:$0xff]  ;;  %v13987_v57 = vld [vmem:[#allocation39_spill] sm:$0xff] }
 0x843   :  { %5810 = vmatpush1.msra.mxu0 %v13972_v31  ;;  %5881 = vmatpush1.msra.mxu1 %v13973_v19  ;;  %v13988_v31 = vld [vmem:[#allocation40_spill] sm:$0xff]  ;;  %v13989_v19 = vld [vmem:[#allocation41_spill] sm:$0xff] }
 0x844   :  { %5811 = vmatprep.subr.mxu0 %v13974_v58  ;;  %5882 = vmatprep.subr.mxu1 %v13975_v30  ;;  %v13990_v58 = vld [vmem:[#allocation42_spill] sm:$0xff]  ;;  %v13991_v30 = vld [vmem:[#allocation43_spill] sm:$0xff] }
 0x845   :  { %5812 = vmatpush1.msra.mxu0 %v13976_v10  ;;  %5883 = vmatpush1.msra.mxu1 %v13977_v0  ;;  %v13992_v10 = vld [vmem:[#allocation44_spill] sm:$0xff]  ;;  %v13993_v0 = vld [vmem:[#allocation45_spill] sm:$0xff] }
 0x846   :  { %5813 = vmatprep.subr.mxu0 %v13978_v38  ;;  %5884 = vmatprep.subr.mxu1 %v13979_v23 }
 0x847   :  { %5814 = vmatpush1.msra.mxu0 %v13980_v60  ;;  %5885 = vmatpush1.msra.mxu1 %v13981_v12 }
 0x848   :  { %5815 = vmatprep.subr.mxu0 %v13982_v35  ;;  %5886 = vmatprep.subr.mxu1 %v13983_v62  ;;  %v13994_v35 = vld [vmem:[#allocation120_spill] sm:$0xff] }
 0x849   :  { %5816 = vmatpush1.msra.mxu0 %v13984_v24  ;;  %5887 = vmatpush1.msra.mxu1 %v13985_v15 }
 0x84a   :  { %5817 = vmatprep.subr.mxu0 %v13986_v32  ;;  %5888 = vmatprep.subr.mxu1 %v13987_v57  ;;  %v13995_v32 = vld [vmem:[#allocation122_spill] sm:$0xff] }
 0x84b   :  { %5818 = vmatpush1.msra.mxu0 %v13988_v31  ;;  %5889 = vmatpush1.msra.mxu1 %v13989_v19 }
 0x84c   :  { %5819 = vmatprep.subr.mxu0 %v13990_v58  ;;  %5890 = vmatprep.subr.mxu1 %v13991_v30 }
 0x84d   :  { %5820 = vmatpush1.msra.mxu0 %v13992_v10  ;;  %5853 = vmatprep.mubr.f32.mxu0 %v13135_v56  ;;  %v13996_v10 = vld [vmem:[#allocation123_spill] sm:$0xff] }
 0x84e   :  { %5891 = vmatpush1.msra.mxu1 %v13993_v0  ;;  %5924 = vmatprep.mubr.f32.mxu1 %v13135_v56  ;;  %v13997_v0 = vld [vmem:[#allocation121_spill] sm:$0xff] }
 0x84f   :  { %5996 = vmatprep.subr.mxu0 %v11951_v11  ;;  %6067 = vmatprep.subr.mxu1 %v11956_v20 }
 0x8aa   :  { %v5140_v38 = vpop.f32.mrf.mxu0  ;;  %v5211_v12 = vpop.f32.mrf.mxu1 }
 0x8ac   :  { %v5142_v23 = vpop.f32.mrf.mxu0  ;;  %v5213_v31 = vpop.f32.mrf.mxu1 }
 0x8cb   :  { %v5354_v60 = vpop.f32.mrf.mxu0  ;;  %v5425_v58 = vpop.f32.mrf.mxu1 }
 0x8cc   :  { %v5430_v62 = vadd.f32 %v5354_v60, %v13994_v35  ;;  %v5432_v20 = vadd.f32 %v5425_v58, %v13997_v0  ;;  %v5052_v35 = vld [vmem:[%s12512_s6] sm:$0xf] }
 0x8cd   :  { %v5356_v24 = vpop.f32.mrf.mxu0  ;;  %v5427_v30 = vpop.f32.mrf.mxu1 }
 0x8ce   :  { %v6261_v15 = vmul.f32 -1.442695, %v5430_v62  ;;  %v5431_v57 = vadd.f32 %v5356_v24, %v13995_v32  ;;  %v5433_v11 = vadd.f32 %v5427_v30, %v13996_v10  ;;  %v13998_v62 = vld [vmem:[#allocation93_spill] sm:$0xff] }
 0x8cf   :  { %v5057_v24 = vrot.slane %v5052_v35, %v13998_v62 }
 0x8d0   :  { %6533 = vpow2.f32 %v6261_v15  ;;  %v6262_v19 = vmul.f32 -1.442695, %v5431_v57  ;;  %v6263_v56 = vmul.f32 -1.442695, %v5433_v11  ;;  %v13999_v15 = vld [vmem:[#allocation95_spill] sm:$0xff] }
 0x8d1   :  { %v5061_v32 = vrot.slane %v5052_v35, %v13999_v15  ;;  %v5069_v15 = vrot.slane %v5052_v35, %v13236_v26 }
 0x8d2   :  { %6535 = vpow2.f32 %v6262_v19  ;;  %v5141_v19 = vadd.f32 %v5140_v38, %v5057_v24  ;;  %v5065_v24 = vrot.slane %v5052_v35, %v13237_v51  ;;  %v14027_v35 = vld [vmem:[#allocation64_spill] sm:$0xff] }
 0x8d3   :  { %6537 = vtanh.f32 %v5432_v20 }
 0x8dd   :  { %v6534_v59 = vpop.eup %6533 }
 0x8de   :  { %v5437_v21 = vadd.f32 1.0, %v6534_v59  ;;  %v5143_v59 = vadd.f32 %v5142_v23, %v5061_v32  ;;  %v5214_v23 = vadd.f32 %v5213_v31, %v5069_v15  ;;  %v14026_v31 = vmov 0.0  }
 0x8df   :  { %v6536_v34 = vpop.eup %6535 }
 0x8e0   :  { %6539 = vrcp.f32 %v5437_v21  ;;  %v5443_v60 = vadd.f32 1.0, %v6536_v34  ;;  %v6538_v57 = vpop.eup %6537 }
 0x8e1   :  { %6541 = vpow2.f32 %v6263_v56 }
 0x8e2   :  { %6543 = vrcp.f32 %v5443_v60 }
 0x8ed   :  { %v6540_v58 = vpop.eup %6539  ;;  %v5592_v30 = vpop.f32.mrf.mxu0 }
 0x8ee   :  { %v6542_v10 = vpop.eup %6541  ;;  %v5455_v11 = vmul.f32 %v6540_v58, %v6538_v57  ;;  %v5668_v0 = vadd.f32 %v5592_v30, %v5141_v19  ;;  %v5663_v62 = vpop.f32.mrf.mxu1  ;;  %v5212_v57 = vadd.f32 %v5211_v12, %v5065_v24  ;;  %v14025_v12 = vld [vmem:[#allocation117_spill] sm:$0xff] }
 0x8ef   :  { %v6544_v21 = vpop.eup %6543  ;;  %v5594_v34 = vpop.f32.mrf.mxu0  ;;  %v5450_v50 = vadd.f32 1.0, %v6542_v10 }
 0x8f0   :  { %v5454_v56 = vmul.f32 %v6544_v21, %v11871_v39  ;;  %v6264_v20 = vmul.f32 -1.442695, %v5668_v0  ;;  %v5669_v60 = vadd.f32 %v5594_v34, %v5143_v59  ;;  %v5665_v38 = vpop.f32.mrf.mxu1  ;;  %v5670_v58 = vadd.f32 %v5663_v62, %v5212_v57  ;;  %v14028_v62 = vld [vmem:[#allocation93_spill] sm:$0xff]  ;;  %v14029_v21 = vld [vmem:[#allocation95_spill] sm:$0xff] }
 0x8f1   :  { %v5671_v32 = vadd.f32 %v5665_v38, %v5214_v23 }
 0x8f2   :  { %v5456_v53 = vadd.f32 %v5455_v11, %v5454_v56  ;;  %6545 = vpow2.f32 %v6264_v20  ;;  %v6265_v43 = vmul.f32 -1.442695, %v5669_v60 }
 0x8f3   :  { %v6266_v19 = vmul.f32 -1.442695, %v5671_v32 }
 0x8f4   :  { %6547 = vpow2.f32 %v6265_v43 }
 0x8f5   :  { %6549 = vrcp.f32 %v5450_v50 }
 0x8f6   :  { %6551 = vtanh.f32 %v5456_v53  ;;  %v14024_v53 = vld [vmem:[#allocation119_spill] sm:$0xff] }
 0x8f7   :  { %6553 = vpow2.f32 %v6266_v19 }
 0x8ff   :  { %v6546_v39 = vpop.eup %6545 }
 0x900   :  { %v5675_v30 = vadd.f32 1.0, %v6546_v39 }
 0x901   :  { %v6548_v10 = vpop.eup %6547 }
 0x902   :  { %v6550_v59 = vpop.eup %6549  ;;  %6555 = vrcp.f32 %v5675_v30  ;;  %v5681_v11 = vadd.f32 1.0, %v6548_v10 }
 0x903   :  { %v6552_v0 = vpop.eup %6551  ;;  %6557 = vtanh.f32 %v5670_v58 }
 0x904   :  { %6559 = vrcp.f32 %v5681_v11  ;;  %v5458_v50 = vmul.f32 %v6552_v0, %v6550_v59 }
 0x906   :  { %5854 = vmatmul.mubr.f32.vlgmr.msra.gmra.mxu0 %v5458_v50  ;;  %5925 = vmatmul.mubr.f32.vlgmr.msra.gmra.mxu1 %v5458_v50 }
 0x907   :  { %5997 = vmatpush1.msra.mxu0 %v11963_v49  ;;  %6068 = vmatpush1.msra.mxu1 %v11968_v27  ;;  %v6554_v49 = vpop.eup %6553 }
 0x908   :  { %5998 = vmatprep.subr.mxu0 %v11979_v48  ;;  %6069 = vmatprep.subr.mxu1 %v11984_v47 }
 0x909   :  { %5999 = vmatpush1.msra.mxu0 %v11991_v5  ;;  %6070 = vmatpush1.msra.mxu1 %v11996_v4  ;;  %v5688_v5 = vadd.f32 1.0, %v6554_v49 }
 0x90a   :  { %6000 = vmatprep.subr.mxu0 %v12003_v16  ;;  %6071 = vmatprep.subr.mxu1 %v12008_v9 }
 0x90b   :  { %6001 = vmatpush1.msra.mxu0 %v12015_v63  ;;  %6072 = vmatpush1.msra.mxu1 %v12020_v6  ;;  %6561 = vrcp.f32 %v5688_v5  ;;  %v14001_v63 = vld [vmem:[#allocation47_spill] sm:$0xff]  ;;  %v14002_v6 = vld [vmem:[#allocation48_spill] sm:$0xff] }
 0x90c   :  { %6002 = vmatprep.subr.mxu0 %v12027_v28  ;;  %6073 = vmatprep.subr.mxu1 %v12032_v3  ;;  %v14003_v28 = vld [vmem:[#allocation49_spill] sm:$0xff]  ;;  %v14004_v3 = vld [vmem:[#allocation50_spill] sm:$0xff] }
 0x90d   :  { %6003 = vmatpush1.msra.mxu0 %v12039_v36  ;;  %6074 = vmatpush1.msra.mxu1 %v12044_v17  ;;  %v14005_v36 = vld [vmem:[#allocation108_spill] sm:$0xff]  ;;  %v14006_v17 = vld [vmem:[#allocation110_spill] sm:$0xff] }
 0x90e   :  { %6004 = vmatprep.subr.mxu0 %v12051_v37  ;;  %6075 = vmatprep.subr.mxu1 %v12056_v54  ;;  %v14007_v37 = vld [vmem:[#allocation111_spill] sm:$0xff]  ;;  %v14008_v54 = vld [vmem:[#allocation109_spill] sm:$0xff] }
 0x90f   :  { %v6556_v27 = vpop.eup %6555  ;;  %6005 = vmatpush1.msra.mxu0 %v12063_v46  ;;  %6076 = vmatpush1.msra.mxu1 %v12068_v41  ;;  %v14009_v46 = vld [vmem:[#allocation51_spill] sm:$0xff]  ;;  %v14010_v41 = vld [vmem:[#allocation52_spill] sm:$0xff] }
 0x910   :  { %v6558_v48 = vpop.eup %6557  ;;  %6006 = vmatprep.subr.mxu0 %v12075_v55  ;;  %6077 = vmatprep.subr.mxu1 %v12080_v25  ;;  %v14011_v55 = vld [vmem:[#allocation53_spill] sm:$0xff]  ;;  %v14012_v25 = vld [vmem:[#allocation54_spill] sm:$0xff] }
 0x911   :  { %v6560_v47 = vpop.eup %6559  ;;  %6007 = vmatpush1.msra.mxu0 %v12087_v8  ;;  %6078 = vmatpush1.msra.mxu1 %v12092_v44  ;;  %v5693_v4 = vmul.f32 %v6558_v48, %v6556_v27  ;;  %v14013_v8 = vld [vmem:[#allocation55_spill] sm:$0xff]  ;;  %v14014_v44 = vld [vmem:[#allocation56_spill] sm:$0xff] }
 0x912   :  { %v5692_v16 = vmul.f32 %v6560_v47, %v11907_v29  ;;  %6008 = vmatprep.subr.mxu0 %v12099_v18  ;;  %6079 = vmatprep.subr.mxu1 %v12104_v40  ;;  %v14000_v29 = vld [vmem:[#allocation46_spill] sm:$0xff]  ;;  %v14015_v18 = vld [vmem:[#allocation57_spill] sm:$0xff] }
 0x913   :  { %6009 = vmatpush1.msra.mxu0 %v12111_v13  ;;  %6080 = vmatpush1.msra.mxu1 %v12116_v1  ;;  %v14016_v40 = vld [vmem:[#allocation58_spill] sm:$0xff]  ;;  %v14017_v13 = vld [vmem:[#allocation59_spill] sm:$0xff]  ;;  %v14018_v1 = vld [vmem:[#allocation60_spill] sm:$0xff] }
 0x914   :  { %v12451_v9 = vadd.f32 %v5693_v4, %v5692_v16  ;;  %6010 = vmatprep.subr.mxu0 %v12123_v33  ;;  %6081 = vmatprep.subr.mxu1 %v12128_v7  ;;  %v14019_v33 = vld [vmem:[#allocation61_spill] sm:$0xff]  ;;  %v14020_v7 = vld [vmem:[#allocation62_spill] sm:$0xff] }
 0x915   :  { %6011 = vmatpush1.msra.mxu0 %v12135_v45  ;;  %6082 = vmatpush1.msra.mxu1 %v12140_v52 }
 0x916   :  { %6012 = vmatprep.subr.mxu0 %v12147_v2  ;;  %6083 = vmatprep.subr.mxu1 %v12152_v14  ;;  %6563 = vtanh.f32 %v12451_v9  ;;  %v14021_v2 = vld [vmem:[#allocation63_spill] sm:$0xff]  ;;  %v14022_v14 = vld [vmem:[#allocation116_spill] sm:$0xff] }
 0x917   :  { %6013 = vmatpush1.msra.mxu0 %v12159_v22  ;;  %6084 = vmatpush1.msra.mxu1 %v14000_v29  ;;  %v14023_v22 = vld [vmem:[#allocation118_spill] sm:$0xff] }
 0x918   :  { %6014 = vmatprep.subr.mxu0 %v14001_v63  ;;  %6085 = vmatprep.subr.mxu1 %v14002_v6  ;;  %v6562_v45 = vpop.eup %6561 }
 0x919   :  { %6015 = vmatpush1.msra.mxu0 %v14003_v28  ;;  %6086 = vmatpush1.msra.mxu1 %v14004_v3 }
 0x91a   :  { %6016 = vmatprep.subr.mxu0 %v14005_v36  ;;  %6087 = vmatprep.subr.mxu1 %v14006_v17 }
 0x91b   :  { %6017 = vmatpush1.msra.mxu0 %v14007_v37  ;;  %6088 = vmatpush1.msra.mxu1 %v14008_v54 }
 0x91c   :  { %6018 = vmatprep.subr.mxu0 %v14009_v46  ;;  %6089 = vmatprep.subr.mxu1 %v14010_v41 }
 0x91d   :  { %6019 = vmatpush1.msra.mxu0 %v14011_v55  ;;  %6090 = vmatpush1.msra.mxu1 %v14012_v25 }
 0x91e   :  { %6020 = vmatprep.subr.mxu0 %v14013_v8  ;;  %6091 = vmatprep.subr.mxu1 %v14014_v44 }
 0x91f   :  { %6021 = vmatpush1.msra.mxu0 %v14015_v18  ;;  %6092 = vmatpush1.msra.mxu1 %v14016_v40 }
 0x920   :  { %6022 = vmatprep.subr.mxu0 %v14017_v13  ;;  %6093 = vmatprep.subr.mxu1 %v14018_v1 }
 0x921   :  { %6023 = vmatpush1.msra.mxu0 %v14019_v33  ;;  %6094 = vmatpush1.msra.mxu1 %v14020_v7 }
 0x922   :  { %6024 = vmatprep.subr.mxu0 %v12291_v61  ;;  %6095 = vmatprep.subr.mxu1 %v12296_v42  ;;  %v5767_v61 = vld [vmem:[%s12512_s6] sm:$0xf] }
 0x923   :  { %v6564_v52 = vpop.eup %6563  ;;  %6025 = vmatpush1.msra.mxu0 %v14021_v2  ;;  %6096 = vmatpush1.msra.mxu1 %v14022_v14  ;;  %v5772_v15 = vrot.slane %v5767_v61, %v14028_v62  ;;  %v5776_v34 = vrot.slane %v5767_v61, %v14029_v21  ;;  %v5784_v10 = vrot.slane %v5767_v61, %v13236_v26 }
 0x924   :  { %6026 = vmatprep.subr.mxu0 %v14023_v22  ;;  %6097 = vmatprep.subr.mxu1 %v14024_v53  ;;  %v5696_v43 = vmul.f32 %v6564_v52, %v6562_v45  ;;  %v5780_v0 = vrot.slane %v5767_v61, %v13237_v51 }
 0x925   :  { %6027 = vmatpush1.msra.mxu0 %v14025_v12  ;;  %6060 = vmatprep.mubr.f32.mxu0 %v14026_v31 }
 0x926   :  { %6098 = vmatpush1.msra.mxu1 %v14027_v35  ;;  %6131 = vmatprep.mubr.f32.mxu1 %v14026_v31  ;;  %6267 = vst [vmem:[%s12513_s7 + $0x30] sm:$0xff] %v5696_v43 }
 0x927   :  { %6061 = vmatmul.mubr.f32.vlgmr.msra.gmra.mxu0 %v5696_v43  ;;  %6132 = vmatmul.mubr.f32.vlgmr.msra.gmra.mxu1 %v5696_v43 }
 0x9c6   :  { %v5855_v42 = vpop.f32.mrf.mxu0  ;;  %v5926_v60 = vpop.f32.mrf.mxu1 }
 0x9c7   :  { %v5856_v20 = vadd.f32 %v5855_v42, %v5772_v15  ;;  %v5927_v49 = vadd.f32 %v5926_v60, %v5780_v0 }
 0x9c8   :  { %v5857_v56 = vpop.f32.mrf.mxu0  ;;  %v5928_v57 = vpop.f32.mrf.mxu1 }
 0x9c9   :  { %v5858_v23 = vadd.f32 %v5857_v56, %v5776_v34  ;;  %v5929_v11 = vadd.f32 %v5928_v57, %v5784_v10 }
 0x9e7   :  { %v6062_v38 = vpop.f32.mrf.mxu0  ;;  %v6133_v58 = vpop.f32.mrf.mxu1 }
 0x9e8   :  { %v6138_v24 = vadd.f32 %v6062_v38, %v5856_v20  ;;  %v6140_v47 = vadd.f32 %v6133_v58, %v5927_v49 }
 0x9e9   :  { %v6064_v32 = vpop.f32.mrf.mxu0  ;;  %v6135_v59 = vpop.f32.mrf.mxu1 }
 0x9ea   :  { %v6268_v19 = vmul.f32 -1.442695, %v6138_v24  ;;  %v6139_v39 = vadd.f32 %v6064_v32, %v5858_v23  ;;  %v6141_v50 = vadd.f32 %v6135_v59, %v5929_v11 }
 0x9ec   :  { %6565 = vpow2.f32 %v6268_v19  ;;  %v6269_v30 = vmul.f32 -1.442695, %v6139_v39  ;;  %v6270_v27 = vmul.f32 -1.442695, %v6141_v50 }
 0x9ee   :  { %6567 = vpow2.f32 %v6269_v30 }
 0x9ef   :  { %6569 = vpow2.f32 %v6270_v27 }
 0x9f9   :  { %v6566_v48 = vpop.eup %6565 }
 0x9fa   :  { %v6145_v5 = vadd.f32 1.0, %v6566_v48 }
 0x9fb   :  { %v6568_v4 = vpop.eup %6567 }
 0x9fc   :  { %6571 = vrcp.f32 %v6145_v5  ;;  %v6151_v16 = vadd.f32 1.0, %v6568_v4  ;;  %v6570_v29 = vpop.eup %6569 }
 0x9fd   :  { %6573 = vtanh.f32 %v6140_v47  ;;  %v6158_v28 = vadd.f32 1.0, %v6570_v29 }
 0x9fe   :  { %6575 = vrcp.f32 %v6151_v16 }
 0x9ff   :  { %6577 = vrcp.f32 %v6158_v28 }
 0xa09   :  { %v6572_v63 = vpop.eup %6571 }
 0xa0a   :  { %v6574_v26 = vpop.eup %6573 }
 0xa0b   :  { %v6576_v6 = vpop.eup %6575  ;;  %v6163_v3 = vmul.f32 %v6574_v26, %v6572_v63 }
 0xa0c   :  { %v6162_v51 = vmul.f32 %v6576_v6, %v12451_v9  ;;  %v6578_v17 = vpop.eup %6577 }
 0xa0e   :  { %v6164_v36 = vadd.f32 %v6163_v3, %v6162_v51 }
 0xa10   :  { %6579 = vtanh.f32 %v6164_v36 }
 0xa1d   :  { %v6580_v37 = vpop.eup %6579 }
 0xa1e   :  { %v6166_v54 = vmul.f32 %v6580_v37, %v6578_v17 }
 0xa20   :  { %6169 = vst [vmem:[%s12513_s7 + $0x38] sm:$0xff] %v6166_v54 }

</bundles_post_ra>
